<compile_context>
chip_gen: v7x
topology: tpu7x:2x2x1
jax: 0.10.0
libtpu: 0.0.40
codegen_flags: <defaults>
</compile_context>

<pallas_src>
import jax
import jax.numpy as jnp
import numpy as np
from jax.experimental import pallas as pl
from jax.experimental.pallas import tpu as pltpu

# Images per grid step.  Must be a multiple of 8 (sublane tile).  24*TB = 384
# output rows -> 3 full 128-wide MXU passes on v5e, >=256 on v6e/v7x; FC M = TB.
TB = 16


# ---------------------------------------------------------------------------
# Whole-network fused kernel (one grid step == TB images)
# ---------------------------------------------------------------------------
def _embedding_net_kernel(
    x_ref,      # (28, TB, 28)   f32   input, indexed [image_row, image, col]
    c1w_ref,    # (5, 28, 768)   bf16  conv1 banded weights (one slab per kh)
    c1b_ref,    # (1, 768)       f32   conv1 bias, tiled per packed column
    c2w_ref,    # (5, 384, 512)  bf16  conv2 banded weights
    c2b_ref,    # (1, 512)       f32
    f1w_ref,    # (1024, 256)    bf16  fc1 (torch NCHW flatten folded in)
    f1b_ref,    # (1, 256)       f32
    f2w_ref,    # (256, 256)     bf16
    f2b_ref,    # (1, 256)       f32
    f3w_ref,    # (256, 2)       bf16
    f3b_ref,    # (1, 2)         f32
    alpha_ref,  # (4,)           f32   per-layer PReLU alphas (SMEM)
    o_ref,      # (TB, 2)        f32   output slab
    z1_ref,     # (12, TB, 384)  bf16  scratch: pooled conv1 activations
):
    f32 = jnp.float32
    bf16 = jnp.bfloat16

    def prelu(v, a):
        return jnp.where(v >= 0.0, v, a * v)

    # ---- conv1: banded matmul over the 5 kernel rows, M = 24*TB -------------
    # Output row index = oh*TB + b; output column = (ow%2)*384 + (ow//2)*32 + co
    # (even/odd ow in separate lane halves so the horizontal pool is a lane max).
    xb = x_ref[...].astype(bf16)                        # cast input once

    def c1dot(kh):
        win = xb[kh:kh + 24].reshape(24 * TB, 28)       # contiguous leading slice
        return jnp.dot(win, c1w_ref[kh], preferred_element_type=f32)

    acc1 = (c1dot(0) + c1dot(1)) + (c1dot(2) + c1dot(3)) + c1dot(4)   # (24TB,768)
    y1 = prelu(acc1 + c1b_ref[...], alpha_ref[0])

    # ---- maxpool 2x2 / stride 2: (24,24,32) -> (12,12,32) -------------------
    hp1 = jnp.maximum(y1[:, 0:384], y1[:, 384:768])     # horizontal half (24TB,384)
    for i in range(12):                                 # vertical half: full-vreg slabs
        z1_ref[i] = jnp.maximum(
            hp1[(2 * i) * TB:(2 * i + 1) * TB],
            hp1[(2 * i + 1) * TB:(2 * i + 2) * TB]).astype(bf16)

    # ---- conv2: banded matmul over the 5 kernel rows, M = 8*TB --------------
    def c2dot(kh):
        win = z1_ref[kh:kh + 8].reshape(8 * TB, 384)    # bf16, no per-window cast
        return jnp.dot(win, c2w_ref[kh], preferred_element_type=f32)

    acc2 = (c2dot(0) + c2dot(1)) + (c2dot(2) + c2dot(3)) + c2dot(4)   # (8TB,512)
    y2 = prelu(acc2 + c2b_ref[...], alpha_ref[1])

    # ---- maxpool 2x2 / stride 2: (8,8,64) -> (4,4,64); stays in vregs -------
    hp2 = jnp.maximum(y2[:, 0:256], y2[:, 256:512])     # (8*TB, 256)
    z2 = [jnp.maximum(hp2[(2 * i) * TB:(2 * i + 1) * TB],
                      hp2[(2 * i + 1) * TB:(2 * i + 2) * TB]) for i in range(4)]
    zflat = jnp.concatenate(z2, axis=1).astype(bf16)    # (TB, 1024), lane = h*256+w*64+c

    # ---- fc1 + PReLU, fc2 + PReLU, fc3 (no activation) ----------------------
    h = prelu(jnp.dot(zflat, f1w_ref[...], preferred_element_type=f32)
              + f1b_ref[...], alpha_ref[2])
    h = prelu(jnp.dot(h.astype(bf16), f2w_ref[...], preferred_element_type=f32)
              + f2b_ref[...], alpha_ref[3])
    o_ref[...] = (jnp.dot(h.astype(bf16), f3w_ref[...],
                          preferred_element_type=f32) + f3b_ref[...])


# ---------------------------------------------------------------------------
# Forward wrapper (single pallas_call, grid over batch tiles of TB images)
# ---------------------------------------------------------------------------
@jax.jit
def embedding_net_forward(x_nchw, params):
    B = x_nchw.shape[0]
    assert x_nchw.shape[1:] == (1, 28, 28)
    grid_len = -(-B // TB)            # ceil-div; pick B so this is even on v7x
    Bp = grid_len * TB
    x = x_nchw.reshape(B, 28, 28).transpose(1, 0, 2)    # (28, B, 28) = [h, b, w]
    if Bp != B:
        x = jnp.pad(x, ((0, 0), (0, Bp - B), (0, 0)))

    out = pl.pallas_call(
        _embedding_net_kernel,
        out_shape=jax.ShapeDtypeStruct((Bp, 2), jnp.float32),
        grid=(grid_len,),
        in_specs=[
            pl.BlockSpec((28, TB, 28), lambda g: (0, g, 0)),       # x tile
            # Weights/biases: constant block index -> DMA'd once, reused.
            pl.BlockSpec((5, 28, 768), lambda g: (0, 0, 0)),       # conv1 W
            pl.BlockSpec((1, 768), lambda g: (0, 0)),              # conv1 b
            pl.BlockSpec((5, 384, 512), lambda g: (0, 0, 0)),      # conv2 W
            pl.BlockSpec((1, 512), lambda g: (0, 0)),              # conv2 b
            pl.BlockSpec((1024, 256), lambda g: (0, 0)),           # fc1 W
            pl.BlockSpec((1, 256), lambda g: (0, 0)),              # fc1 b
            pl.BlockSpec((256, 256), lambda g: (0, 0)),            # fc2 W
            pl.BlockSpec((1, 256), lambda g: (0, 0)),              # fc2 b
            pl.BlockSpec((256, 2), lambda g: (0, 0)),              # fc3 W
            pl.BlockSpec((1, 2), lambda g: (0, 0)),                # fc3 b
            pl.BlockSpec(memory_space=pltpu.MemorySpace.SMEM),     # PReLU alphas
        ],
        out_specs=pl.BlockSpec((TB, 2), lambda g: (g, 0)),
        scratch_shapes=[pltpu.VMEM((12, TB, 384), jnp.bfloat16)],  # pooled conv1
        compiler_params=pltpu.CompilerParams(
            dimension_semantics=("parallel",)),
    )(x, params["c1w"], params["c1b"], params["c2w"], params["c2b"],
      params["f1w"], params["f1b"], params["f2w"], params["f2b"],
      params["f3w"], params["f3b"], params["alphas"])
    return out[:B]


# ---------------------------------------------------------------------------
# Parameter packing: torch-layout weights -> banded / permuted kernel layouts
# ---------------------------------------------------------------------------
def _pack_conv1(w1, b1):
    """Conv2d(1, 32, 5): Y[oh, col(ow,co)] = sum_kh X[oh+kh, :] @ W[kh].
    col(ow, co) = (ow % 2) * 384 + (ow // 2) * 32 + co  (even/odd pool split)."""
    wmat = np.zeros((5, 28, 768), np.float32)
    btile = np.zeros((1, 768), np.float32)
    for ow in range(24):
        col = (ow % 2) * 384 + (ow // 2) * 32
        btile[0, col:col + 32] = b1
        for kh in range(5):
            for kw in range(5):
                wmat[kh, ow + kw, col:col + 32] = w1[:, 0, kh, kw]
    return wmat, btile


def _pack_conv2(w2, b2):
    """Conv2d(32, 64, 5) on the pooled (12,12,32) NHWC activation.
    K index = w*32 + cin; col(ow, co) = (ow % 2) * 256 + (ow // 2) * 64 + co."""
    wmat = np.zeros((5, 384, 512), np.float32)
    btile = np.zeros((1, 512), np.float32)
    for ow in range(8):
        col = (ow % 2) * 256 + (ow // 2) * 64
        btile[0, col:col + 64] = b2
        for kh in range(5):
            for kw in range(5):
                wp = ow + kw
                wmat[kh, wp * 32:(wp + 1) * 32, col:col + 64] = w2[:, :, kh, kw].T
    return wmat, btile


def _pack_fc1(wf1):
    """Linear(64*4*4, 256): torch flattens NCHW -> index c*16 + h*4 + w.
    Kernel consumes one (TB, 1024) slab with lane index h*256 + w*64 + c."""
    w = wf1.reshape(256, 64, 4, 4)            # [out, c, h, w]
    w = np.transpose(w, (2, 3, 1, 0))         # [h, w, c, out]
    return np.ascontiguousarray(w.reshape(1024, 256))


def init_raw_weights(key):
    ks = jax.random.split(key, 10)
    rnd = lambda k, shape, s: np.asarray(
        s * jax.random.normal(k, shape, dtype=jnp.float32))
    return dict(
        w1=rnd(ks[0], (32, 1, 5, 5), 0.20), b1=rnd(ks[1], (32,), 0.10),
        w2=rnd(ks[2], (64, 32, 5, 5), 0.05), b2=rnd(ks[3], (64,), 0.10),
        wf1=rnd(ks[4], (256, 1024), 0.03), bf1=rnd(ks[5], (256,), 0.10),
        wf2=rnd(ks[6], (256, 256), 0.06), bf2=rnd(ks[7], (256,), 0.10),
        wf3=rnd(ks[8], (2, 256), 0.06), bf3=rnd(ks[9], (2,), 0.10),
        # One alpha per nn.PReLU() (conv1, conv2, fc1, fc2); default init 0.25.
        alphas=np.full((4,), 0.25, np.float32))


def pack_params(raw):
    c1w, c1b = _pack_conv1(raw["w1"], raw["b1"])
    c2w, c2b = _pack_conv2(raw["w2"], raw["b2"])
    return dict(
        c1w=jnp.asarray(c1w, jnp.bfloat16), c1b=jnp.asarray(c1b, jnp.float32),
        c2w=jnp.asarray(c2w, jnp.bfloat16), c2b=jnp.asarray(c2b, jnp.float32),
        f1w=jnp.asarray(_pack_fc1(raw["wf1"]), jnp.bfloat16),
        f1b=jnp.asarray(raw["bf1"].reshape(1, 256), jnp.float32),
        f2w=jnp.asarray(raw["wf2"].T, jnp.bfloat16),
        f2b=jnp.asarray(raw["bf2"].reshape(1, 256), jnp.float32),
        f3w=jnp.asarray(raw["wf3"].T, jnp.bfloat16),
        f3b=jnp.asarray(raw["bf3"].reshape(1, 2), jnp.float32),
        alphas=jnp.asarray(raw["alphas"], jnp.float32))


# ---------------------------------------------------------------------------
# Pure-JAX reference (weights rounded to bf16 to match the kernel's storage)
# ---------------------------------------------------------------------------
def reference_forward(x_nchw, raw):
    f32 = jnp.float32
    rd = lambda w: jnp.asarray(w).astype(jnp.bfloat16).astype(f32)
    a = raw["alphas"]
    prelu = lambda v, al: jnp.where(v >= 0.0, v, al * v)
    dn = ("NCHW", "OIHW", "NCHW")
    pool = lambda v: jax.lax.reduce_window(v, -jnp.inf, jax.lax.max,
                                           (1, 1, 2, 2), (1, 1, 2, 2), "VALID")
    y = jax.lax.conv_general_dilated(x_nchw, rd(raw["w1"]), (1, 1), "VALID",
                                     dimension_numbers=dn)
    y = pool(prelu(y + jnp.asarray(raw["b1"]).reshape(1, -1, 1, 1), a[0]))
    y = jax.lax.conv_general_dilated(y, rd(raw["w2"]), (1, 1), "VALID",
                                     dimension_numbers=dn)
    y = pool(prelu(y + jnp.asarray(raw["b2"]).reshape(1, -1, 1, 1), a[1]))
    y = y.reshape(y.shape[0], -1)                         # torch NCHW flatten
    y = prelu(y @ rd(raw["wf1"]).T + raw["bf1"], a[2])
    y = prelu(y @ rd(raw["wf2"]).T + raw["bf2"], a[3])
    return y @ rd(raw["wf3"]).T + raw["bf3"]


if __name__ == "__main__":
    key = jax.random.PRNGKey(0)
    k_x, k_p = jax.random.split(key)
    # Input size implied by Linear(64*4*4, .): MNIST-like [B, 1, 28, 28].
    # B = 2*TB -> grid of 2 "parallel" steps (keeps both v7x TensorCores busy).
    B = 2 * TB
    x = jax.random.normal(k_x, (B, 1, 28, 28), dtype=jnp.float32)
    raw = init_raw_weights(k_p)
    params = pack_params(raw)

    out = jax.block_until_ready(embedding_net_forward(x, params))
    assert out.shape == (B, 2) and out.dtype == jnp.float32

    ref = reference_forward(x, raw)
    err = float(jnp.max(jnp.abs(out - ref)))
    # bf16 matmul inputs vs f32 reference -> loose tolerance.
    assert err < 1e-1, f"max abs error vs reference: {err}"
    print("KERNEL_OK")
</pallas_src>

<mosaic_0001>
module attributes {stable_mosaic.version = 11 : i64} {
  func.func @_embedding_net_kernel(%arg0: i32, %arg1: memref<28x16x28xf32, #tpu.memory_space<vmem>>, %arg2: memref<5x28x768xbf16, #tpu.memory_space<vmem>>, %arg3: memref<1x768xf32, #tpu.memory_space<vmem>>, %arg4: memref<5x384x512xbf16, #tpu.memory_space<vmem>>, %arg5: memref<1x512xf32, #tpu.memory_space<vmem>>, %arg6: memref<1024x256xbf16, #tpu.memory_space<vmem>>, %arg7: memref<1x256xf32, #tpu.memory_space<vmem>>, %arg8: memref<256x256xbf16, #tpu.memory_space<vmem>>, %arg9: memref<1x256xf32, #tpu.memory_space<vmem>>, %arg10: memref<256x2xbf16, #tpu.memory_space<vmem>>, %arg11: memref<1x2xf32, #tpu.memory_space<vmem>>, %arg12: memref<4xf32, #tpu.memory_space<smem>>, %arg13: memref<16x2xf32, #tpu.memory_space<vmem>>, %arg14: memref<12x16x384xbf16, #tpu.memory_space<vmem>>) attributes {dimension_semantics = [#tpu.dimension_semantics<parallel>], iteration_bounds = array<i64: 2>, scalar_prefetch = 0 : i64, scratch_operands = 1 : i64, tpu.core_type = #tpu.core_type<tc>, window_params = [{transform_indices = @transform_0, window_bounds = array<i64: 28, 16, 28>}, {pipeline_mode = #tpu.pipeline_mode<synchronous>, transform_indices = @transform_1, window_bounds = array<i64: 5, 28, 768>}, {pipeline_mode = #tpu.pipeline_mode<synchronous>, transform_indices = @transform_2, window_bounds = array<i64: 1, 768>}, {pipeline_mode = #tpu.pipeline_mode<synchronous>, transform_indices = @transform_3, window_bounds = array<i64: 5, 384, 512>}, {pipeline_mode = #tpu.pipeline_mode<synchronous>, transform_indices = @transform_4, window_bounds = array<i64: 1, 512>}, {pipeline_mode = #tpu.pipeline_mode<synchronous>, transform_indices = @transform_5, window_bounds = array<i64: 1024, 256>}, {pipeline_mode = #tpu.pipeline_mode<synchronous>, transform_indices = @transform_6, window_bounds = array<i64: 1, 256>}, {pipeline_mode = #tpu.pipeline_mode<synchronous>, transform_indices = @transform_7, window_bounds = array<i64: 256, 256>}, {pipeline_mode = #tpu.pipeline_mode<synchronous>, transform_indices = @transform_8, window_bounds = array<i64: 1, 256>}, {pipeline_mode = #tpu.pipeline_mode<synchronous>, transform_indices = @transform_9, window_bounds = array<i64: 256, 2>}, {pipeline_mode = #tpu.pipeline_mode<synchronous>, transform_indices = @transform_10, window_bounds = array<i64: 1, 2>}, {transform_indices = @transform_11, window_bounds = array<i64: 4>}, {transform_indices = @transform_12, window_bounds = array<i64: 16, 2>}]} {
    %c0 = arith.constant 0 : index
    %c0_0 = arith.constant 0 : index
    %c0_1 = arith.constant 0 : index
    %0 = vector.load %arg1[%c0, %c0_0, %c0_1] : memref<28x16x28xf32, #tpu.memory_space<vmem>>, vector<28x16x28xf32>
    %1 = arith.truncf %0 : vector<28x16x28xf32> to vector<28x16x28xbf16>
    %2 = vector.extract_strided_slice %1 {offsets = [0, 0, 0], sizes = [24, 16, 28], strides = [1, 1, 1]} : vector<28x16x28xbf16> to vector<24x16x28xbf16>
    %3 = vector.shape_cast %2 : vector<24x16x28xbf16> to vector<384x28xbf16>
    %c0_2 = arith.constant 0 : index
    %c0_3 = arith.constant 0 : index
    %c0_4 = arith.constant 0 : index
    %4 = vector.load %arg2[%c0_2, %c0_3, %c0_4] : memref<5x28x768xbf16, #tpu.memory_space<vmem>>, vector<1x28x768xbf16>
    %5 = vector.shape_cast %4 : vector<1x28x768xbf16> to vector<28x768xbf16>
    %cst = arith.constant dense<0.000000e+00> : vector<384x768xf32>
    %6 = tpu.matmul %3, %5, %cst {dimension_numbers = #tpu.dot_dimension_numbers<[1], [0], [0], [1], [0, 0, 1, 1], [], []>} : vector<384x28xbf16>, vector<28x768xbf16>, vector<384x768xf32> -> vector<384x768xf32>
    %7 = vector.extract_strided_slice %1 {offsets = [1, 0, 0], sizes = [24, 16, 28], strides = [1, 1, 1]} : vector<28x16x28xbf16> to vector<24x16x28xbf16>
    %8 = vector.shape_cast %7 : vector<24x16x28xbf16> to vector<384x28xbf16>
    %c1 = arith.constant 1 : index
    %c0_5 = arith.constant 0 : index
    %c0_6 = arith.constant 0 : index
    %9 = vector.load %arg2[%c1, %c0_5, %c0_6] : memref<5x28x768xbf16, #tpu.memory_space<vmem>>, vector<1x28x768xbf16>
    %10 = vector.shape_cast %9 : vector<1x28x768xbf16> to vector<28x768xbf16>
    %cst_7 = arith.constant dense<0.000000e+00> : vector<384x768xf32>
    %11 = tpu.matmul %8, %10, %cst_7 {dimension_numbers = #tpu.dot_dimension_numbers<[1], [0], [0], [1], [0, 0, 1, 1], [], []>} : vector<384x28xbf16>, vector<28x768xbf16>, vector<384x768xf32> -> vector<384x768xf32>
    %12 = arith.addf %6, %11 : vector<384x768xf32>
    %13 = vector.extract_strided_slice %1 {offsets = [2, 0, 0], sizes = [24, 16, 28], strides = [1, 1, 1]} : vector<28x16x28xbf16> to vector<24x16x28xbf16>
    %14 = vector.shape_cast %13 : vector<24x16x28xbf16> to vector<384x28xbf16>
    %c2 = arith.constant 2 : index
    %c0_8 = arith.constant 0 : index
    %c0_9 = arith.constant 0 : index
    %15 = vector.load %arg2[%c2, %c0_8, %c0_9] : memref<5x28x768xbf16, #tpu.memory_space<vmem>>, vector<1x28x768xbf16>
    %16 = vector.shape_cast %15 : vector<1x28x768xbf16> to vector<28x768xbf16>
    %cst_10 = arith.constant dense<0.000000e+00> : vector<384x768xf32>
    %17 = tpu.matmul %14, %16, %cst_10 {dimension_numbers = #tpu.dot_dimension_numbers<[1], [0], [0], [1], [0, 0, 1, 1], [], []>} : vector<384x28xbf16>, vector<28x768xbf16>, vector<384x768xf32> -> vector<384x768xf32>
    %18 = vector.extract_strided_slice %1 {offsets = [3, 0, 0], sizes = [24, 16, 28], strides = [1, 1, 1]} : vector<28x16x28xbf16> to vector<24x16x28xbf16>
    %19 = vector.shape_cast %18 : vector<24x16x28xbf16> to vector<384x28xbf16>
    %c3 = arith.constant 3 : index
    %c0_11 = arith.constant 0 : index
    %c0_12 = arith.constant 0 : index
    %20 = vector.load %arg2[%c3, %c0_11, %c0_12] : memref<5x28x768xbf16, #tpu.memory_space<vmem>>, vector<1x28x768xbf16>
    %21 = vector.shape_cast %20 : vector<1x28x768xbf16> to vector<28x768xbf16>
    %cst_13 = arith.constant dense<0.000000e+00> : vector<384x768xf32>
    %22 = tpu.matmul %19, %21, %cst_13 {dimension_numbers = #tpu.dot_dimension_numbers<[1], [0], [0], [1], [0, 0, 1, 1], [], []>} : vector<384x28xbf16>, vector<28x768xbf16>, vector<384x768xf32> -> vector<384x768xf32>
    %23 = arith.addf %17, %22 : vector<384x768xf32>
    %24 = arith.addf %12, %23 : vector<384x768xf32>
    %25 = vector.extract_strided_slice %1 {offsets = [4, 0, 0], sizes = [24, 16, 28], strides = [1, 1, 1]} : vector<28x16x28xbf16> to vector<24x16x28xbf16>
    %26 = vector.shape_cast %25 : vector<24x16x28xbf16> to vector<384x28xbf16>
    %c4 = arith.constant 4 : index
    %c0_14 = arith.constant 0 : index
    %c0_15 = arith.constant 0 : index
    %27 = vector.load %arg2[%c4, %c0_14, %c0_15] : memref<5x28x768xbf16, #tpu.memory_space<vmem>>, vector<1x28x768xbf16>
    %28 = vector.shape_cast %27 : vector<1x28x768xbf16> to vector<28x768xbf16>
    %cst_16 = arith.constant dense<0.000000e+00> : vector<384x768xf32>
    %29 = tpu.matmul %26, %28, %cst_16 {dimension_numbers = #tpu.dot_dimension_numbers<[1], [0], [0], [1], [0, 0, 1, 1], [], []>} : vector<384x28xbf16>, vector<28x768xbf16>, vector<384x768xf32> -> vector<384x768xf32>
    %30 = arith.addf %24, %29 : vector<384x768xf32>
    %c0_17 = arith.constant 0 : index
    %c0_18 = arith.constant 0 : index
    %31 = vector.load %arg3[%c0_17, %c0_18] : memref<1x768xf32, #tpu.memory_space<vmem>>, vector<1x768xf32>
    %32 = vector.broadcast %31 : vector<1x768xf32> to vector<384x768xf32>
    %33 = arith.addf %30, %32 : vector<384x768xf32>
    %c0_19 = arith.constant 0 : index
    %34 = memref.load %arg12[%c0_19] : memref<4xf32, #tpu.memory_space<smem>>
    %cst_20 = arith.constant 0.000000e+00 : f32
    %35 = vector.broadcast %cst_20 : f32 to vector<384x768xf32>
    %36 = arith.cmpf oge, %33, %35 : vector<384x768xf32>
    %37 = vector.broadcast %34 : f32 to vector<384x768xf32>
    %38 = arith.mulf %37, %33 : vector<384x768xf32>
    %39 = arith.select %36, %33, %38 : vector<384x768xi1>, vector<384x768xf32>
    %40 = vector.extract_strided_slice %39 {offsets = [0, 0], sizes = [384, 384], strides = [1, 1]} : vector<384x768xf32> to vector<384x384xf32>
    %41 = vector.extract_strided_slice %39 {offsets = [0, 384], sizes = [384, 384], strides = [1, 1]} : vector<384x768xf32> to vector<384x384xf32>
    %42 = arith.maximumf %40, %41 : vector<384x384xf32>
    %43 = vector.extract_strided_slice %42 {offsets = [0, 0], sizes = [16, 384], strides = [1, 1]} : vector<384x384xf32> to vector<16x384xf32>
    %44 = vector.extract_strided_slice %42 {offsets = [16, 0], sizes = [16, 384], strides = [1, 1]} : vector<384x384xf32> to vector<16x384xf32>
    %45 = arith.maximumf %43, %44 : vector<16x384xf32>
    %46 = arith.truncf %45 : vector<16x384xf32> to vector<16x384xbf16>
    %c0_21 = arith.constant 0 : index
    %c0_22 = arith.constant 0 : index
    %c0_23 = arith.constant 0 : index
    %47 = vector.load %arg14[%c0_21, %c0_22, %c0_23] : memref<12x16x384xbf16, #tpu.memory_space<vmem>>, vector<1x16x384xbf16>
    %48 = vector.shape_cast %47 : vector<1x16x384xbf16> to vector<16x384xbf16>
    %49 = vector.shape_cast %46 : vector<16x384xbf16> to vector<1x16x384xbf16>
    tpu.vector_store %arg14[%c0_21, %c0_22, %c0_23], %49 {strides = array<i32>} : memref<12x16x384xbf16, #tpu.memory_space<vmem>>, vector<1x16x384xbf16>,
    %50 = vector.extract_strided_slice %42 {offsets = [32, 0], sizes = [16, 384], strides = [1, 1]} : vector<384x384xf32> to vector<16x384xf32>
    %51 = vector.extract_strided_slice %42 {offsets = [48, 0], sizes = [16, 384], strides = [1, 1]} : vector<384x384xf32> to vector<16x384xf32>
    %52 = arith.maximumf %50, %51 : vector<16x384xf32>
    %53 = arith.truncf %52 : vector<16x384xf32> to vector<16x384xbf16>
    %c1_24 = arith.constant 1 : index
    %c0_25 = arith.constant 0 : index
    %c0_26 = arith.constant 0 : index
    %54 = vector.load %arg14[%c1_24, %c0_25, %c0_26] : memref<12x16x384xbf16, #tpu.memory_space<vmem>>, vector<1x16x384xbf16>
    %55 = vector.shape_cast %54 : vector<1x16x384xbf16> to vector<16x384xbf16>
    %56 = vector.shape_cast %53 : vector<16x384xbf16> to vector<1x16x384xbf16>
    tpu.vector_store %arg14[%c1_24, %c0_25, %c0_26], %56 {strides = array<i32>} : memref<12x16x384xbf16, #tpu.memory_space<vmem>>, vector<1x16x384xbf16>,
    %57 = vector.extract_strided_slice %42 {offsets = [64, 0], sizes = [16, 384], strides = [1, 1]} : vector<384x384xf32> to vector<16x384xf32>
    %58 = vector.extract_strided_slice %42 {offsets = [80, 0], sizes = [16, 384], strides = [1, 1]} : vector<384x384xf32> to vector<16x384xf32>
    %59 = arith.maximumf %57, %58 : vector<16x384xf32>
    %60 = arith.truncf %59 : vector<16x384xf32> to vector<16x384xbf16>
    %c2_27 = arith.constant 2 : index
    %c0_28 = arith.constant 0 : index
    %c0_29 = arith.constant 0 : index
    %61 = vector.load %arg14[%c2_27, %c0_28, %c0_29] : memref<12x16x384xbf16, #tpu.memory_space<vmem>>, vector<1x16x384xbf16>
    %62 = vector.shape_cast %61 : vector<1x16x384xbf16> to vector<16x384xbf16>
    %63 = vector.shape_cast %60 : vector<16x384xbf16> to vector<1x16x384xbf16>
    tpu.vector_store %arg14[%c2_27, %c0_28, %c0_29], %63 {strides = array<i32>} : memref<12x16x384xbf16, #tpu.memory_space<vmem>>, vector<1x16x384xbf16>,
    %64 = vector.extract_strided_slice %42 {offsets = [96, 0], sizes = [16, 384], strides = [1, 1]} : vector<384x384xf32> to vector<16x384xf32>
    %65 = vector.extract_strided_slice %42 {offsets = [112, 0], sizes = [16, 384], strides = [1, 1]} : vector<384x384xf32> to vector<16x384xf32>
    %66 = arith.maximumf %64, %65 : vector<16x384xf32>
    %67 = arith.truncf %66 : vector<16x384xf32> to vector<16x384xbf16>
    %c3_30 = arith.constant 3 : index
    %c0_31 = arith.constant 0 : index
    %c0_32 = arith.constant 0 : index
    %68 = vector.load %arg14[%c3_30, %c0_31, %c0_32] : memref<12x16x384xbf16, #tpu.memory_space<vmem>>, vector<1x16x384xbf16>
    %69 = vector.shape_cast %68 : vector<1x16x384xbf16> to vector<16x384xbf16>
    %70 = vector.shape_cast %67 : vector<16x384xbf16> to vector<1x16x384xbf16>
    tpu.vector_store %arg14[%c3_30, %c0_31, %c0_32], %70 {strides = array<i32>} : memref<12x16x384xbf16, #tpu.memory_space<vmem>>, vector<1x16x384xbf16>,
    %71 = vector.extract_strided_slice %42 {offsets = [128, 0], sizes = [16, 384], strides = [1, 1]} : vector<384x384xf32> to vector<16x384xf32>
    %72 = vector.extract_strided_slice %42 {offsets = [144, 0], sizes = [16, 384], strides = [1, 1]} : vector<384x384xf32> to vector<16x384xf32>
    %73 = arith.maximumf %71, %72 : vector<16x384xf32>
    %74 = arith.truncf %73 : vector<16x384xf32> to vector<16x384xbf16>
    %c4_33 = arith.constant 4 : index
    %c0_34 = arith.constant 0 : index
    %c0_35 = arith.constant 0 : index
    %75 = vector.load %arg14[%c4_33, %c0_34, %c0_35] : memref<12x16x384xbf16, #tpu.memory_space<vmem>>, vector<1x16x384xbf16>
    %76 = vector.shape_cast %75 : vector<1x16x384xbf16> to vector<16x384xbf16>
    %77 = vector.shape_cast %74 : vector<16x384xbf16> to vector<1x16x384xbf16>
    tpu.vector_store %arg14[%c4_33, %c0_34, %c0_35], %77 {strides = array<i32>} : memref<12x16x384xbf16, #tpu.memory_space<vmem>>, vector<1x16x384xbf16>,
    %78 = vector.extract_strided_slice %42 {offsets = [160, 0], sizes = [16, 384], strides = [1, 1]} : vector<384x384xf32> to vector<16x384xf32>
    %79 = vector.extract_strided_slice %42 {offsets = [176, 0], sizes = [16, 384], strides = [1, 1]} : vector<384x384xf32> to vector<16x384xf32>
    %80 = arith.maximumf %78, %79 : vector<16x384xf32>
    %81 = arith.truncf %80 : vector<16x384xf32> to vector<16x384xbf16>
    %c5 = arith.constant 5 : index
    %c0_36 = arith.constant 0 : index
    %c0_37 = arith.constant 0 : index
    %82 = vector.load %arg14[%c5, %c0_36, %c0_37] : memref<12x16x384xbf16, #tpu.memory_space<vmem>>, vector<1x16x384xbf16>
    %83 = vector.shape_cast %82 : vector<1x16x384xbf16> to vector<16x384xbf16>
    %84 = vector.shape_cast %81 : vector<16x384xbf16> to vector<1x16x384xbf16>
    tpu.vector_store %arg14[%c5, %c0_36, %c0_37], %84 {strides = array<i32>} : memref<12x16x384xbf16, #tpu.memory_space<vmem>>, vector<1x16x384xbf16>,
    %85 = vector.extract_strided_slice %42 {offsets = [192, 0], sizes = [16, 384], strides = [1, 1]} : vector<384x384xf32> to vector<16x384xf32>
    %86 = vector.extract_strided_slice %42 {offsets = [208, 0], sizes = [16, 384], strides = [1, 1]} : vector<384x384xf32> to vector<16x384xf32>
    %87 = arith.maximumf %85, %86 : vector<16x384xf32>
    %88 = arith.truncf %87 : vector<16x384xf32> to vector<16x384xbf16>
    %c6 = arith.constant 6 : index
    %c0_38 = arith.constant 0 : index
    %c0_39 = arith.constant 0 : index
    %89 = vector.load %arg14[%c6, %c0_38, %c0_39] : memref<12x16x384xbf16, #tpu.memory_space<vmem>>, vector<1x16x384xbf16>
    %90 = vector.shape_cast %89 : vector<1x16x384xbf16> to vector<16x384xbf16>
    %91 = vector.shape_cast %88 : vector<16x384xbf16> to vector<1x16x384xbf16>
    tpu.vector_store %arg14[%c6, %c0_38, %c0_39], %91 {strides = array<i32>} : memref<12x16x384xbf16, #tpu.memory_space<vmem>>, vector<1x16x384xbf16>,
    %92 = vector.extract_strided_slice %42 {offsets = [224, 0], sizes = [16, 384], strides = [1, 1]} : vector<384x384xf32> to vector<16x384xf32>
    %93 = vector.extract_strided_slice %42 {offsets = [240, 0], sizes = [16, 384], strides = [1, 1]} : vector<384x384xf32> to vector<16x384xf32>
    %94 = arith.maximumf %92, %93 : vector<16x384xf32>
    %95 = arith.truncf %94 : vector<16x384xf32> to vector<16x384xbf16>
    %c7 = arith.constant 7 : index
    %c0_40 = arith.constant 0 : index
    %c0_41 = arith.constant 0 : index
    %96 = vector.load %arg14[%c7, %c0_40, %c0_41] : memref<12x16x384xbf16, #tpu.memory_space<vmem>>, vector<1x16x384xbf16>
    %97 = vector.shape_cast %96 : vector<1x16x384xbf16> to vector<16x384xbf16>
    %98 = vector.shape_cast %95 : vector<16x384xbf16> to vector<1x16x384xbf16>
    tpu.vector_store %arg14[%c7, %c0_40, %c0_41], %98 {strides = array<i32>} : memref<12x16x384xbf16, #tpu.memory_space<vmem>>, vector<1x16x384xbf16>,
    %99 = vector.extract_strided_slice %42 {offsets = [256, 0], sizes = [16, 384], strides = [1, 1]} : vector<384x384xf32> to vector<16x384xf32>
    %100 = vector.extract_strided_slice %42 {offsets = [272, 0], sizes = [16, 384], strides = [1, 1]} : vector<384x384xf32> to vector<16x384xf32>
    %101 = arith.maximumf %99, %100 : vector<16x384xf32>
    %102 = arith.truncf %101 : vector<16x384xf32> to vector<16x384xbf16>
    %c8 = arith.constant 8 : index
    %c0_42 = arith.constant 0 : index
    %c0_43 = arith.constant 0 : index
    %103 = vector.load %arg14[%c8, %c0_42, %c0_43] : memref<12x16x384xbf16, #tpu.memory_space<vmem>>, vector<1x16x384xbf16>
    %104 = vector.shape_cast %103 : vector<1x16x384xbf16> to vector<16x384xbf16>
    %105 = vector.shape_cast %102 : vector<16x384xbf16> to vector<1x16x384xbf16>
    tpu.vector_store %arg14[%c8, %c0_42, %c0_43], %105 {strides = array<i32>} : memref<12x16x384xbf16, #tpu.memory_space<vmem>>, vector<1x16x384xbf16>,
    %106 = vector.extract_strided_slice %42 {offsets = [288, 0], sizes = [16, 384], strides = [1, 1]} : vector<384x384xf32> to vector<16x384xf32>
    %107 = vector.extract_strided_slice %42 {offsets = [304, 0], sizes = [16, 384], strides = [1, 1]} : vector<384x384xf32> to vector<16x384xf32>
    %108 = arith.maximumf %106, %107 : vector<16x384xf32>
    %109 = arith.truncf %108 : vector<16x384xf32> to vector<16x384xbf16>
    %c9 = arith.constant 9 : index
    %c0_44 = arith.constant 0 : index
    %c0_45 = arith.constant 0 : index
    %110 = vector.load %arg14[%c9, %c0_44, %c0_45] : memref<12x16x384xbf16, #tpu.memory_space<vmem>>, vector<1x16x384xbf16>
    %111 = vector.shape_cast %110 : vector<1x16x384xbf16> to vector<16x384xbf16>
    %112 = vector.shape_cast %109 : vector<16x384xbf16> to vector<1x16x384xbf16>
    tpu.vector_store %arg14[%c9, %c0_44, %c0_45], %112 {strides = array<i32>} : memref<12x16x384xbf16, #tpu.memory_space<vmem>>, vector<1x16x384xbf16>,
    %113 = vector.extract_strided_slice %42 {offsets = [320, 0], sizes = [16, 384], strides = [1, 1]} : vector<384x384xf32> to vector<16x384xf32>
    %114 = vector.extract_strided_slice %42 {offsets = [336, 0], sizes = [16, 384], strides = [1, 1]} : vector<384x384xf32> to vector<16x384xf32>
    %115 = arith.maximumf %113, %114 : vector<16x384xf32>
    %116 = arith.truncf %115 : vector<16x384xf32> to vector<16x384xbf16>
    %c10 = arith.constant 10 : index
    %c0_46 = arith.constant 0 : index
    %c0_47 = arith.constant 0 : index
    %117 = vector.load %arg14[%c10, %c0_46, %c0_47] : memref<12x16x384xbf16, #tpu.memory_space<vmem>>, vector<1x16x384xbf16>
    %118 = vector.shape_cast %117 : vector<1x16x384xbf16> to vector<16x384xbf16>
    %119 = vector.shape_cast %116 : vector<16x384xbf16> to vector<1x16x384xbf16>
    tpu.vector_store %arg14[%c10, %c0_46, %c0_47], %119 {strides = array<i32>} : memref<12x16x384xbf16, #tpu.memory_space<vmem>>, vector<1x16x384xbf16>,
    %120 = vector.extract_strided_slice %42 {offsets = [352, 0], sizes = [16, 384], strides = [1, 1]} : vector<384x384xf32> to vector<16x384xf32>
    %121 = vector.extract_strided_slice %42 {offsets = [368, 0], sizes = [16, 384], strides = [1, 1]} : vector<384x384xf32> to vector<16x384xf32>
    %122 = arith.maximumf %120, %121 : vector<16x384xf32>
    %123 = arith.truncf %122 : vector<16x384xf32> to vector<16x384xbf16>
    %c11 = arith.constant 11 : index
    %c0_48 = arith.constant 0 : index
    %c0_49 = arith.constant 0 : index
    %124 = vector.load %arg14[%c11, %c0_48, %c0_49] : memref<12x16x384xbf16, #tpu.memory_space<vmem>>, vector<1x16x384xbf16>
    %125 = vector.shape_cast %124 : vector<1x16x384xbf16> to vector<16x384xbf16>
    %126 = vector.shape_cast %123 : vector<16x384xbf16> to vector<1x16x384xbf16>
    tpu.vector_store %arg14[%c11, %c0_48, %c0_49], %126 {strides = array<i32>} : memref<12x16x384xbf16, #tpu.memory_space<vmem>>, vector<1x16x384xbf16>,
    %c0_50 = arith.constant 0 : index
    %c0_51 = arith.constant 0 : index
    %c0_52 = arith.constant 0 : index
    %127 = vector.load %arg14[%c0_50, %c0_51, %c0_52] : memref<12x16x384xbf16, #tpu.memory_space<vmem>>, vector<8x16x384xbf16>
    %128 = vector.shape_cast %127 : vector<8x16x384xbf16> to vector<128x384xbf16>
    %c0_53 = arith.constant 0 : index
    %c0_54 = arith.constant 0 : index
    %c0_55 = arith.constant 0 : index
    %129 = vector.load %arg4[%c0_53, %c0_54, %c0_55] : memref<5x384x512xbf16, #tpu.memory_space<vmem>>, vector<1x384x512xbf16>
    %130 = vector.shape_cast %129 : vector<1x384x512xbf16> to vector<384x512xbf16>
    %cst_56 = arith.constant dense<0.000000e+00> : vector<128x512xf32>
    %131 = tpu.matmul %128, %130, %cst_56 {dimension_numbers = #tpu.dot_dimension_numbers<[1], [0], [0], [1], [0, 0, 1, 1], [], []>} : vector<128x384xbf16>, vector<384x512xbf16>, vector<128x512xf32> -> vector<128x512xf32>
    %c1_57 = arith.constant 1 : index
    %c0_58 = arith.constant 0 : index
    %c0_59 = arith.constant 0 : index
    %132 = vector.load %arg14[%c1_57, %c0_58, %c0_59] : memref<12x16x384xbf16, #tpu.memory_space<vmem>>, vector<8x16x384xbf16>
    %133 = vector.shape_cast %132 : vector<8x16x384xbf16> to vector<128x384xbf16>
    %c1_60 = arith.constant 1 : index
    %c0_61 = arith.constant 0 : index
    %c0_62 = arith.constant 0 : index
    %134 = vector.load %arg4[%c1_60, %c0_61, %c0_62] : memref<5x384x512xbf16, #tpu.memory_space<vmem>>, vector<1x384x512xbf16>
    %135 = vector.shape_cast %134 : vector<1x384x512xbf16> to vector<384x512xbf16>
    %cst_63 = arith.constant dense<0.000000e+00> : vector<128x512xf32>
    %136 = tpu.matmul %133, %135, %cst_63 {dimension_numbers = #tpu.dot_dimension_numbers<[1], [0], [0], [1], [0, 0, 1, 1], [], []>} : vector<128x384xbf16>, vector<384x512xbf16>, vector<128x512xf32> -> vector<128x512xf32>
    %137 = arith.addf %131, %136 : vector<128x512xf32>
    %c2_64 = arith.constant 2 : index
    %c0_65 = arith.constant 0 : index
    %c0_66 = arith.constant 0 : index
    %138 = vector.load %arg14[%c2_64, %c0_65, %c0_66] : memref<12x16x384xbf16, #tpu.memory_space<vmem>>, vector<8x16x384xbf16>
    %139 = vector.shape_cast %138 : vector<8x16x384xbf16> to vector<128x384xbf16>
    %c2_67 = arith.constant 2 : index
    %c0_68 = arith.constant 0 : index
    %c0_69 = arith.constant 0 : index
    %140 = vector.load %arg4[%c2_67, %c0_68, %c0_69] : memref<5x384x512xbf16, #tpu.memory_space<vmem>>, vector<1x384x512xbf16>
    %141 = vector.shape_cast %140 : vector<1x384x512xbf16> to vector<384x512xbf16>
    %cst_70 = arith.constant dense<0.000000e+00> : vector<128x512xf32>
    %142 = tpu.matmul %139, %141, %cst_70 {dimension_numbers = #tpu.dot_dimension_numbers<[1], [0], [0], [1], [0, 0, 1, 1], [], []>} : vector<128x384xbf16>, vector<384x512xbf16>, vector<128x512xf32> -> vector<128x512xf32>
    %c3_71 = arith.constant 3 : index
    %c0_72 = arith.constant 0 : index
    %c0_73 = arith.constant 0 : index
    %143 = vector.load %arg14[%c3_71, %c0_72, %c0_73] : memref<12x16x384xbf16, #tpu.memory_space<vmem>>, vector<8x16x384xbf16>
    %144 = vector.shape_cast %143 : vector<8x16x384xbf16> to vector<128x384xbf16>
    %c3_74 = arith.constant 3 : index
    %c0_75 = arith.constant 0 : index
    %c0_76 = arith.constant 0 : index
    %145 = vector.load %arg4[%c3_74, %c0_75, %c0_76] : memref<5x384x512xbf16, #tpu.memory_space<vmem>>, vector<1x384x512xbf16>
    %146 = vector.shape_cast %145 : vector<1x384x512xbf16> to vector<384x512xbf16>
    %cst_77 = arith.constant dense<0.000000e+00> : vector<128x512xf32>
    %147 = tpu.matmul %144, %146, %cst_77 {dimension_numbers = #tpu.dot_dimension_numbers<[1], [0], [0], [1], [0, 0, 1, 1], [], []>} : vector<128x384xbf16>, vector<384x512xbf16>, vector<128x512xf32> -> vector<128x512xf32>
    %148 = arith.addf %142, %147 : vector<128x512xf32>
    %149 = arith.addf %137, %148 : vector<128x512xf32>
    %c4_78 = arith.constant 4 : index
    %c0_79 = arith.constant 0 : index
    %c0_80 = arith.constant 0 : index
    %150 = vector.load %arg14[%c4_78, %c0_79, %c0_80] : memref<12x16x384xbf16, #tpu.memory_space<vmem>>, vector<8x16x384xbf16>
    %151 = vector.shape_cast %150 : vector<8x16x384xbf16> to vector<128x384xbf16>
    %c4_81 = arith.constant 4 : index
    %c0_82 = arith.constant 0 : index
    %c0_83 = arith.constant 0 : index
    %152 = vector.load %arg4[%c4_81, %c0_82, %c0_83] : memref<5x384x512xbf16, #tpu.memory_space<vmem>>, vector<1x384x512xbf16>
    %153 = vector.shape_cast %152 : vector<1x384x512xbf16> to vector<384x512xbf16>
    %cst_84 = arith.constant dense<0.000000e+00> : vector<128x512xf32>
    %154 = tpu.matmul %151, %153, %cst_84 {dimension_numbers = #tpu.dot_dimension_numbers<[1], [0], [0], [1], [0, 0, 1, 1], [], []>} : vector<128x384xbf16>, vector<384x512xbf16>, vector<128x512xf32> -> vector<128x512xf32>
    %155 = arith.addf %149, %154 : vector<128x512xf32>
    %c0_85 = arith.constant 0 : index
    %c0_86 = arith.constant 0 : index
    %156 = vector.load %arg5[%c0_85, %c0_86] : memref<1x512xf32, #tpu.memory_space<vmem>>, vector<1x512xf32>
    %157 = vector.broadcast %156 : vector<1x512xf32> to vector<128x512xf32>
    %158 = arith.addf %155, %157 : vector<128x512xf32>
    %c1_87 = arith.constant 1 : index
    %159 = memref.load %arg12[%c1_87] : memref<4xf32, #tpu.memory_space<smem>>
    %cst_88 = arith.constant 0.000000e+00 : f32
    %160 = vector.broadcast %cst_88 : f32 to vector<128x512xf32>
    %161 = arith.cmpf oge, %158, %160 : vector<128x512xf32>
    %162 = vector.broadcast %159 : f32 to vector<128x512xf32>
    %163 = arith.mulf %162, %158 : vector<128x512xf32>
    %164 = arith.select %161, %158, %163 : vector<128x512xi1>, vector<128x512xf32>
    %165 = vector.extract_strided_slice %164 {offsets = [0, 0], sizes = [128, 256], strides = [1, 1]} : vector<128x512xf32> to vector<128x256xf32>
    %166 = vector.extract_strided_slice %164 {offsets = [0, 256], sizes = [128, 256], strides = [1, 1]} : vector<128x512xf32> to vector<128x256xf32>
    %167 = arith.maximumf %165, %166 : vector<128x256xf32>
    %168 = vector.extract_strided_slice %167 {offsets = [0, 0], sizes = [16, 256], strides = [1, 1]} : vector<128x256xf32> to vector<16x256xf32>
    %169 = vector.extract_strided_slice %167 {offsets = [16, 0], sizes = [16, 256], strides = [1, 1]} : vector<128x256xf32> to vector<16x256xf32>
    %170 = arith.maximumf %168, %169 : vector<16x256xf32>
    %171 = vector.extract_strided_slice %167 {offsets = [32, 0], sizes = [16, 256], strides = [1, 1]} : vector<128x256xf32> to vector<16x256xf32>
    %172 = vector.extract_strided_slice %167 {offsets = [48, 0], sizes = [16, 256], strides = [1, 1]} : vector<128x256xf32> to vector<16x256xf32>
    %173 = arith.maximumf %171, %172 : vector<16x256xf32>
    %174 = vector.extract_strided_slice %167 {offsets = [64, 0], sizes = [16, 256], strides = [1, 1]} : vector<128x256xf32> to vector<16x256xf32>
    %175 = vector.extract_strided_slice %167 {offsets = [80, 0], sizes = [16, 256], strides = [1, 1]} : vector<128x256xf32> to vector<16x256xf32>
    %176 = arith.maximumf %174, %175 : vector<16x256xf32>
    %177 = vector.extract_strided_slice %167 {offsets = [96, 0], sizes = [16, 256], strides = [1, 1]} : vector<128x256xf32> to vector<16x256xf32>
    %178 = vector.extract_strided_slice %167 {offsets = [112, 0], sizes = [16, 256], strides = [1, 1]} : vector<128x256xf32> to vector<16x256xf32>
    %179 = arith.maximumf %177, %178 : vector<16x256xf32>
    %180 = tpu.concatenate %170, %173, %176, %179 in 1 : vector<16x256xf32>, vector<16x256xf32>, vector<16x256xf32>, vector<16x256xf32> -> vector<16x1024xf32>
    %181 = arith.truncf %180 : vector<16x1024xf32> to vector<16x1024xbf16>
    %c0_89 = arith.constant 0 : index
    %c0_90 = arith.constant 0 : index
    %182 = vector.load %arg6[%c0_89, %c0_90] : memref<1024x256xbf16, #tpu.memory_space<vmem>>, vector<1024x256xbf16>
    %cst_91 = arith.constant dense<0.000000e+00> : vector<16x256xf32>
    %183 = tpu.matmul %181, %182, %cst_91 {dimension_numbers = #tpu.dot_dimension_numbers<[1], [0], [0], [1], [0, 0, 1, 1], [], []>} : vector<16x1024xbf16>, vector<1024x256xbf16>, vector<16x256xf32> -> vector<16x256xf32>
    %c0_92 = arith.constant 0 : index
    %c0_93 = arith.constant 0 : index
    %184 = vector.load %arg7[%c0_92, %c0_93] : memref<1x256xf32, #tpu.memory_space<vmem>>, vector<1x256xf32>
    %185 = vector.broadcast %184 : vector<1x256xf32> to vector<16x256xf32>
    %186 = arith.addf %183, %185 : vector<16x256xf32>
    %c2_94 = arith.constant 2 : index
    %187 = memref.load %arg12[%c2_94] : memref<4xf32, #tpu.memory_space<smem>>
    %cst_95 = arith.constant 0.000000e+00 : f32
    %188 = vector.broadcast %cst_95 : f32 to vector<16x256xf32>
    %189 = arith.cmpf oge, %186, %188 : vector<16x256xf32>
    %190 = vector.broadcast %187 : f32 to vector<16x256xf32>
    %191 = arith.mulf %190, %186 : vector<16x256xf32>
    %192 = arith.select %189, %186, %191 : vector<16x256xi1>, vector<16x256xf32>
    %193 = arith.truncf %192 : vector<16x256xf32> to vector<16x256xbf16>
    %c0_96 = arith.constant 0 : index
    %c0_97 = arith.constant 0 : index
    %194 = vector.load %arg8[%c0_96, %c0_97] : memref<256x256xbf16, #tpu.memory_space<vmem>>, vector<256x256xbf16>
    %cst_98 = arith.constant dense<0.000000e+00> : vector<16x256xf32>
    %195 = tpu.matmul %193, %194, %cst_98 {dimension_numbers = #tpu.dot_dimension_numbers<[1], [0], [0], [1], [0, 0, 1, 1], [], []>} : vector<16x256xbf16>, vector<256x256xbf16>, vector<16x256xf32> -> vector<16x256xf32>
    %c0_99 = arith.constant 0 : index
    %c0_100 = arith.constant 0 : index
    %196 = vector.load %arg9[%c0_99, %c0_100] : memref<1x256xf32, #tpu.memory_space<vmem>>, vector<1x256xf32>
    %197 = vector.broadcast %196 : vector<1x256xf32> to vector<16x256xf32>
    %198 = arith.addf %195, %197 : vector<16x256xf32>
    %c3_101 = arith.constant 3 : index
    %199 = memref.load %arg12[%c3_101] : memref<4xf32, #tpu.memory_space<smem>>
    %cst_102 = arith.constant 0.000000e+00 : f32
    %200 = vector.broadcast %cst_102 : f32 to vector<16x256xf32>
    %201 = arith.cmpf oge, %198, %200 : vector<16x256xf32>
    %202 = vector.broadcast %199 : f32 to vector<16x256xf32>
    %203 = arith.mulf %202, %198 : vector<16x256xf32>
    %204 = arith.select %201, %198, %203 : vector<16x256xi1>, vector<16x256xf32>
    %205 = arith.truncf %204 : vector<16x256xf32> to vector<16x256xbf16>
    %c0_103 = arith.constant 0 : index
    %c0_104 = arith.constant 0 : index
    %206 = vector.load %arg10[%c0_103, %c0_104] : memref<256x2xbf16, #tpu.memory_space<vmem>>, vector<256x2xbf16>
    %cst_105 = arith.constant dense<0.000000e+00> : vector<16x2xf32>
    %207 = tpu.matmul %205, %206, %cst_105 {dimension_numbers = #tpu.dot_dimension_numbers<[1], [0], [0], [1], [0, 0, 1, 1], [], []>} : vector<16x256xbf16>, vector<256x2xbf16>, vector<16x2xf32> -> vector<16x2xf32>
    %c0_106 = arith.constant 0 : index
    %c0_107 = arith.constant 0 : index
    %208 = vector.load %arg11[%c0_106, %c0_107] : memref<1x2xf32, #tpu.memory_space<vmem>>, vector<1x2xf32>
    %209 = vector.broadcast %208 : vector<1x2xf32> to vector<16x2xf32>
    %210 = arith.addf %207, %209 : vector<16x2xf32>
    %c0_108 = arith.constant 0 : index
    %c0_109 = arith.constant 0 : index
    %211 = vector.load %arg13[%c0_108, %c0_109] : memref<16x2xf32, #tpu.memory_space<vmem>>, vector<16x2xf32>
    tpu.vector_store %arg13[%c0_108, %c0_109], %210 {strides = array<i32>} : memref<16x2xf32, #tpu.memory_space<vmem>>, vector<16x2xf32>,
    return
  }
  func.func @transform_0(%arg0: i32) -> (i32, i32, i32) {
    %c0_i32 = arith.constant 0 : i32
    %c0_i32_0 = arith.constant 0 : i32
    %c0_i32_1 = arith.constant 0 : i32
    return %c0_i32, %arg0, %c0_i32_0 : i32, i32, i32
  }
  func.func @transform_1(%arg0: i32) -> (i32, i32, i32) {
    %c0_i32 = arith.constant 0 : i32
    %c0_i32_0 = arith.constant 0 : i32
    %c0_i32_1 = arith.constant 0 : i32
    %c0_i32_2 = arith.constant 0 : i32
    return %c0_i32, %c0_i32_0, %c0_i32_1 : i32, i32, i32
  }
  func.func @transform_2(%arg0: i32) -> (i32, i32) {
    %c0_i32 = arith.constant 0 : i32
    %c0_i32_0 = arith.constant 0 : i32
    %c0_i32_1 = arith.constant 0 : i32
    return %c0_i32, %c0_i32_0 : i32, i32
  }
  func.func @transform_3(%arg0: i32) -> (i32, i32, i32) {
    %c0_i32 = arith.constant 0 : i32
    %c0_i32_0 = arith.constant 0 : i32
    %c0_i32_1 = arith.constant 0 : i32
    %c0_i32_2 = arith.constant 0 : i32
    return %c0_i32, %c0_i32_0, %c0_i32_1 : i32, i32, i32
  }
  func.func @transform_4(%arg0: i32) -> (i32, i32) {
    %c0_i32 = arith.constant 0 : i32
    %c0_i32_0 = arith.constant 0 : i32
    %c0_i32_1 = arith.constant 0 : i32
    return %c0_i32, %c0_i32_0 : i32, i32
  }
  func.func @transform_5(%arg0: i32) -> (i32, i32) {
    %c0_i32 = arith.constant 0 : i32
    %c0_i32_0 = arith.constant 0 : i32
    %c0_i32_1 = arith.constant 0 : i32
    return %c0_i32, %c0_i32_0 : i32, i32
  }
  func.func @transform_6(%arg0: i32) -> (i32, i32) {
    %c0_i32 = arith.constant 0 : i32
    %c0_i32_0 = arith.constant 0 : i32
    %c0_i32_1 = arith.constant 0 : i32
    return %c0_i32, %c0_i32_0 : i32, i32
  }
  func.func @transform_7(%arg0: i32) -> (i32, i32) {
    %c0_i32 = arith.constant 0 : i32
    %c0_i32_0 = arith.constant 0 : i32
    %c0_i32_1 = arith.constant 0 : i32
    return %c0_i32, %c0_i32_0 : i32, i32
  }
  func.func @transform_8(%arg0: i32) -> (i32, i32) {
    %c0_i32 = arith.constant 0 : i32
    %c0_i32_0 = arith.constant 0 : i32
    %c0_i32_1 = arith.constant 0 : i32
    return %c0_i32, %c0_i32_0 : i32, i32
  }
  func.func @transform_9(%arg0: i32) -> (i32, i32) {
    %c0_i32 = arith.constant 0 : i32
    %c0_i32_0 = arith.constant 0 : i32
    %c0_i32_1 = arith.constant 0 : i32
    return %c0_i32, %c0_i32_0 : i32, i32
  }
  func.func @transform_10(%arg0: i32) -> (i32, i32) {
    %c0_i32 = arith.constant 0 : i32
    %c0_i32_0 = arith.constant 0 : i32
    %c0_i32_1 = arith.constant 0 : i32
    return %c0_i32, %c0_i32_0 : i32, i32
  }
  func.func @transform_11(%arg0: i32) -> i32 {
    %c0_i32 = arith.constant 0 : i32
    %c0_i32_0 = arith.constant 0 : i32
    return %c0_i32 : i32
  }
  func.func @transform_12(%arg0: i32) -> (i32, i32) {
    %c0_i32 = arith.constant 0 : i32
    %c0_i32_0 = arith.constant 0 : i32
    return %arg0, %c0_i32 : i32, i32
  }
}

</mosaic_0001>

<bundles_post_ra>
// kernel: embedding_net_forward.1
= control target key start
LH: loop header
LB: loop body
LE: loop exit
PB: predicated region body
PF: predicated region fallthrough
CT: control target
= control target key end

     0   :  { %s23497_s0 = inlined_call_operand.vmem [shape: f32[28,32,28], index: 0, kind: input, shape index: {}]   ;;  %s23498_s1 = inlined_call_operand.hbm [shape: bf16[5,28,768], index: 1, kind: input, shape index: {}]   ;;  %s23499_s2 = inlined_call_operand.hbm [shape: f32[1,768], index: 2, kind: input, shape index: {}]   ;;  %s23500_s3 = inlined_call_operand.hbm [shape: bf16[5,384,512], index: 3, kind: input, shape index: {}]   ;;  %s23501_s4 = inlined_call_operand.hbm [shape: f32[1,512], index: 4, kind: input, shape index: {}]   ;;  %s23502_s5 = inlined_call_operand.hbm [shape: bf16[1024,256], index: 5, kind: input, shape index: {}]   ;;  %s23503_s6 = inlined_call_operand.hbm [shape: f32[1,256], index: 6, kind: input, shape index: {}]   ;;  %s23504_s7 = inlined_call_operand.hbm [shape: bf16[256,256], index: 7, kind: input, shape index: {}]   ;;  %s23505_s8 = inlined_call_operand.hbm [shape: f32[1,256], index: 8, kind: input, shape index: {}]   ;;  %s23506_s9 = inlined_call_operand.vmem [shape: bf16[256,2], index: 9, kind: input, shape index: {}]   ;;  %s23507_s10 = inlined_call_operand.hbm [shape: f32[1,2], index: 10, kind: input, shape index: {}]   ;;  %s23508_s11 = inlined_call_operand.hbm [shape: f32[4], index: 11, kind: input, shape index: {}]   ;;  %s23509_s12 = inlined_call_operand.vmem [shape: f32[32,2], index: 12, kind: output, shape index: {}]  }
   0x1   :  { %23550 = sst [smem:[#allocation118_spill]] %s23498_s1 }
   0x2   :  { %23551 = sst [smem:[#allocation119_spill]] %s23499_s2 }
   0x3   :  { %23552 = sst [smem:[#allocation120_spill]] %s23500_s3 }
   0x4   :  { %23553 = sst [smem:[#allocation121_spill]] %s23501_s4 }
   0x5   :  { %23554 = sst [smem:[#allocation122_spill]] %s23506_s9 }
   0x6   :  { %23555 = sst [smem:[#allocation123_spill]] %s23509_s12 }
   0x7   :  { %17 = vsyncpa [#allocation5], 0 }
   0x8   :  { %18 = vsyncpa [#allocation8], 0 }
   0x9   :  { %19 = vsyncpa [#allocation11], 0 }
   0xa   :  { %20 = vsyncpa [#allocation14], 0 }
   0xb   :  { %21 = vsyncpa [#allocation17], 0 }
   0xc   :  { %22 = vsyncpa [#allocation6], 0  ;;  %s19348_s21 = smov 0   ;;  %s19350_s22 = smov 0  }
   0xd   :  { %s19352_s23 = smov 0  }
   0xe LB: > { %s23510_s24 = sadd.s32 4294967295, %s19264_s23   ;;  %s19365_s25 = sadd.s32 1, %s19264_s23   ;;  %s19264_s23 = sphi %s19352_s23, %s23869_s23   ;;  %s19260_s22 = sphi %s19350_s22, %s23872_s22   ;;  %s19256_s21 = sphi %s19348_s21, %s23871_s21  }
   0xf   : > { %23556 = sst [smem:[#allocation26_spill]] %s19365_s25  ;;  %s32_s26 = ssub.s32 %s19264_s23, %s19365_s25 }
  0x10   : > { %s35_s27 = sadd.s32 1, %s19260_s22  ;;  %p33_p0 = scmp.eq.s32.totalorder %s32_s26, 0 }
  0x11   : > { %p42_p1 = scmp.ne.s32.totalorder %s19260_s22, %s19256_s21  ;;  %p43_p2 = scmp.eq.s32.totalorder %s19264_s23, 0 }
  0x12   : > { %p14857_p3 = scmp.ge.s32.totalorder %s19264_s23, 1  ;;  %p316_p5 = scmp.lt.s32.totalorder %s19264_s23, 3 }
  0x13   : > { %s19375_s28 = scalar_select %p33_p0, %s19260_s22, %s35_s27  }
  0x14   : > { %p19377_p4 = por %p43_p2, %p42_p1  ;;  %p19384_p6 = scmp.eq.s32.totalorder %s23510_s24, 0 }
  0x15   : > { %23557 = sst [smem:[#allocation27_spill]] %s19375_s28  ;;  %p19388_p7 = pnand %p14857_p3, %p316_p5 }
  0x16   : > { %s23558_s29 = scalar_select %p19377_p4, 1, 0 }
  0x17   : > { %s23559_s30 = scalar_select %p19384_p6, 1, 0 }
  0x18   : > { %s23560_s13 = scalar_select %p19388_p7, 1, 0 }
  0x19   : > { %s19266_s14 = smov [#allocation7]   ;;  %p17794_p8 = pneg %p19388_p7 }
  0x1a   : > { %s342_s15 = sshll.u32 %s19266_s14, 4  ;;  %s19267_s16 = smov [#allocation10]   ;;  %s343_s15 = int_to_ptr.vmem [resolvable:$true] %s342_s15 }
  0x1b   : > { %s366_s17 = sshll.u32 %s19267_s16, 4  ;;  %p19396_p9 = pnand %p19384_p6, %p17794_p8  ;;  %s19400_s17 = int_to_ptr.vmem [resolvable:$true] %s366_s17 }
  0x1c   : > { %s19268_s19 = smov [#allocation13]   ;;  %s23562_s2 = sld [smem:[#allocation119_spill]] }
  0x1d   : > { %s390_s20 = sshll.u32 %s19268_s19, 4  ;;  %p19412_p11 = pneg %p19396_p9  ;;  %s19402_s20 = int_to_ptr.vmem [resolvable:$true] %s390_s20 }
  0x22   : > { %s18953_s14 = scalar_lea.hbm %s23562_s2, 96 }
  0x23   : > { %p18954_p10 = scmp.ne.s32.totalorder %s23562_s2, %s18953_s14  ;;  %p18960_p0 = scmp.lt.u32.totalorder %s18953_s14, %s23562_s2 }
  0x25   : > { %p18956_p12 = pnand %p19412_p11, %p18954_p10 }
  0x27   : > { %p18957_p13 = pneg %p18956_p12 }
  0x29   : > { %p18962_p1 = pnand %p18960_p0, %p18957_p13 }
  0x2b   : > { %18965 = shalt.err (!%p18962_p1)
}
  0x2c   : > { %s18966_s26 = scalar_lea.vmem %s343_s15, 96  ;;  %p18974_p8 = scmp.lt.s32.totalorder %s343_s15, %s343_s15 }
  0x2d   : > { %p18967_p2 = scmp.ne.s32.totalorder %s343_s15, %s18966_s26  ;;  %p18975_p6 = scmp.lt.s32.totalorder %s18966_s26, %s18966_s26 }
  0x2f   : > { %p18969_p3 = pnand %p18967_p2, %p19412_p11  ;;  %p18976_p7 = por %p18975_p6, %p18974_p8 }
  0x31   : > { %p18970_p5 = pneg %p18969_p3 }
  0x33   : > { %p18977_p4 = pnand %p18976_p7, %p18970_p5 }
  0x35   : > { %18980 = shalt.err (!%p18977_p4)
}
  0x36   : > { %17800 = dma.hbm_to_vmem [thread:$0]  (!%p19396_p9), %s23562_s2, 96, %s343_s15, [#allocation8]  }
  0x37   : > { %s23564_s4 = sld [smem:[#allocation121_spill]] }
  0x3d   : > { %s18981_s14 = scalar_lea.hbm %s23564_s4, 64 }
  0x3e   : > { %p18982_p10 = scmp.ne.s32.totalorder %s23564_s4, %s18981_s14  ;;  %p18988_p4 = scmp.lt.u32.totalorder %s18981_s14, %s23564_s4 }
  0x40   : > { %p18984_p12 = pnand %p18982_p10, %p19412_p11 }
  0x42   : > { %p18985_p6 = pneg %p18984_p12 }
  0x44   : > { %p18990_p7 = pnand %p18988_p4, %p18985_p6 }
  0x46   : > { %18993 = shalt.err (!%p18990_p7)
}
  0x47   : > { %s18994_s15 = scalar_lea.vmem %s19400_s17, 64  ;;  %p19002_p2 = scmp.lt.s32.totalorder %s19400_s17, %s19400_s17 }
  0x48   : > { %p18995_p13 = scmp.ne.s32.totalorder %s19400_s17, %s18994_s15  ;;  %p19003_p3 = scmp.lt.s32.totalorder %s18994_s15, %s18994_s15 }
  0x4a   : > { %p18997_p0 = pnand %p18995_p13, %p19412_p11  ;;  %p19004_p5 = por %p19003_p3, %p19002_p2 }
  0x4c   : > { %p18998_p1 = pneg %p18997_p0 }
  0x4e   : > { %p19005_p8 = pnand %p19004_p5, %p18998_p1 }
  0x50   : > { %19008 = shalt.err (!%p19005_p8)
}
  0x51   : > { %17806 = dma.hbm_to_vmem [thread:$0]  (!%p19396_p9), %s23564_s4, 64, %s19400_s17, [#allocation11]  }
  0x52   : > { %s19009_s25 = scalar_lea.hbm %s23503_s6, 32 }
  0x53   : > { %p19010_p10 = scmp.ne.s32.totalorder %s23503_s6, %s19009_s25  ;;  %p19016_p4 = scmp.lt.u32.totalorder %s19009_s25, %s23503_s6 }
  0x55   : > { %p19012_p12 = pnand %p19010_p10, %p19412_p11 }
  0x57   : > { %p19013_p6 = pneg %p19012_p12 }
  0x59   : > { %p19018_p7 = pnand %p19016_p4, %p19013_p6 }
  0x5b   : > { %19021 = shalt.err (!%p19018_p7)
}
  0x5c   : > { %s19022_s17 = scalar_lea.vmem %s19402_s20, 32  ;;  %p19030_p2 = scmp.lt.s32.totalorder %s19402_s20, %s19402_s20 }
  0x5d   : > { %p19023_p13 = scmp.ne.s32.totalorder %s19402_s20, %s19022_s17  ;;  %p19031_p3 = scmp.lt.s32.totalorder %s19022_s17, %s19022_s17 }
  0x5f   : > { %p19025_p0 = pnand %p19023_p13, %p19412_p11  ;;  %p19032_p5 = por %p19031_p3, %p19030_p2 }
  0x61   : > { %p19026_p1 = pneg %p19025_p0 }
  0x63   : > { %p19033_p8 = pnand %p19032_p5, %p19026_p1 }
  0x65   : > { %19036 = shalt.err (!%p19033_p8)
}
  0x66   : > { %17812 = dma.hbm_to_vmem [thread:$0]  (!%p19396_p9), %s23503_s6, 32, %s19402_s20, [#allocation14]  }
  0x67   : > { %s19269_s12 = smov [#allocation16]   ;;  %s19270_s28 = smov [#allocation4]  }
  0x68   : > { %s414_s24 = sshll.u32 %s19269_s12, 4  ;;  %s328_s25 = sshll.u32 %s19270_s28, 4  ;;  %s415_s24 = int_to_ptr.vmem [resolvable:$true] %s414_s24  ;;  %s329_s25 = int_to_ptr.vmem [resolvable:$true] %s328_s25 }
  0x69   : > { %s19037_s19 = scalar_lea.hbm %s23505_s8, 32 }
  0x6a   : > { %p19038_p10 = scmp.ne.s32.totalorder %s23505_s8, %s19037_s19  ;;  %p19044_p4 = scmp.lt.u32.totalorder %s19037_s19, %s23505_s8 }
  0x6c   : > { %p19040_p12 = pnand %p19038_p10, %p19412_p11 }
  0x6e   : > { %p19041_p6 = pneg %p19040_p12 }
  0x70   : > { %p19046_p7 = pnand %p19044_p4, %p19041_p6 }
  0x72   : > { %19049 = shalt.err (!%p19046_p7)
}
  0x73   : > { %s19050_s20 = scalar_lea.vmem %s415_s24, 32  ;;  %p19058_p2 = scmp.lt.s32.totalorder %s415_s24, %s415_s24 }
  0x74   : > { %p19051_p13 = scmp.ne.s32.totalorder %s415_s24, %s19050_s20  ;;  %p19059_p3 = scmp.lt.s32.totalorder %s19050_s20, %s19050_s20 }
  0x76   : > { %p19053_p0 = pnand %p19051_p13, %p19412_p11  ;;  %p19060_p5 = por %p19059_p3, %p19058_p2 }
  0x78   : > { %p19054_p1 = pneg %p19053_p0 }
  0x7a   : > { %p19061_p8 = pnand %p19060_p5, %p19054_p1 }
  0x7c   : > { %19064 = shalt.err (!%p19061_p8)
}
  0x7d   : > { %17818 = dma.hbm_to_vmem [thread:$0]  (!%p19396_p9), %s23505_s8, 32, %s415_s24, [#allocation17]  }
  0x7e   : > { %s23565_s1 = sld [smem:[#allocation118_spill]] }
  0x84   : > { %s19065_s27 = scalar_lea.hbm %s23565_s1, 7680 }
  0x85   : > { %p19066_p10 = scmp.ne.s32.totalorder %s23565_s1, %s19065_s27  ;;  %p19072_p4 = scmp.lt.u32.totalorder %s19065_s27, %s23565_s1 }
  0x87   : > { %p19068_p12 = pnand %p19066_p10, %p19412_p11 }
  0x89   : > { %p19069_p6 = pneg %p19068_p12 }
  0x8b   : > { %p19074_p7 = pnand %p19072_p4, %p19069_p6 }
  0x8d   : > { %19077 = shalt.err (!%p19074_p7)
}
  0x8e   : > { %s19078_s15 = scalar_lea.vmem %s329_s25, 7680  ;;  %p19086_p2 = scmp.lt.s32.totalorder %s329_s25, %s329_s25 }
  0x8f   : > { %p19079_p13 = scmp.ne.s32.totalorder %s329_s25, %s19078_s15  ;;  %p19087_p3 = scmp.lt.s32.totalorder %s19078_s15, %s19078_s15 }
  0x91   : > { %p19081_p0 = pnand %p19079_p13, %p19412_p11  ;;  %p19088_p5 = por %p19087_p3, %p19086_p2 }
  0x93   : > { %p19082_p1 = pneg %p19081_p0 }
  0x95   : > { %p19089_p8 = pnand %p19088_p5, %p19082_p1 }
  0x97   : > { %19092 = shalt.err (!%p19089_p8)
}
  0x98   : > { %s19271_s24 = smov 384   ;;  %s19272_s20 = smov 24  }
  0x99   : > { %17797 = dma.hbm_to_vmem [thread:$0]  (!%p19396_p9), %s23565_s1, 7680, %s329_s25, [#allocation5], %s19271_s24, %s19271_s24, %s19272_s20  }
  0x9a   : > { %s19273_s2 = smov [#allocation9]   ;;  %s23566_s3 = sld [smem:[#allocation120_spill]] }
  0x9b   : > { %s352_s28 = sshll.u32 %s19273_s2, 4  ;;  %s353_s28 = int_to_ptr.vmem [resolvable:$true] %s352_s28 }
  0xa0   : > { %s19093_s19 = scalar_lea.hbm %s23566_s3, 61440 }
  0xa1   : > { %p19094_p10 = scmp.ne.s32.totalorder %s23566_s3, %s19093_s19  ;;  %p19100_p4 = scmp.lt.u32.totalorder %s19093_s19, %s23566_s3 }
  0xa3   : > { %p19096_p12 = pnand %p19094_p10, %p19412_p11 }
  0xa5   : > { %p19097_p6 = pneg %p19096_p12 }
  0xa7   : > { %p19102_p7 = pnand %p19100_p4, %p19097_p6 }
  0xa9   : > { %19105 = shalt.err (!%p19102_p7)
}
  0xaa   : > { %s19106_s25 = scalar_lea.vmem %s353_s28, 61440  ;;  %p19114_p2 = scmp.lt.s32.totalorder %s353_s28, %s353_s28 }
  0xab   : > { %p19107_p13 = scmp.ne.s32.totalorder %s353_s28, %s19106_s25  ;;  %p19115_p3 = scmp.lt.s32.totalorder %s19106_s25, %s19106_s25 }
  0xad   : > { %p19109_p0 = pnand %p19107_p13, %p19412_p11  ;;  %p19116_p5 = por %p19115_p3, %p19114_p2 }
  0xaf   : > { %p19110_p1 = pneg %p19109_p0 }
  0xb1   : > { %p19117_p8 = pnand %p19116_p5, %p19110_p1 }
  0xb3   : > { %19120 = shalt.err (!%p19117_p8)
}
  0xb4   : > { %s19274_s24 = smov 256   ;;  %s19275_s20 = smov 16  }
  0xb5   : > { %17803 = dma.hbm_to_vmem [thread:$0]  (!%p19396_p9), %s23566_s3, 61440, %s353_s28, [#allocation8], %s19274_s24, %s19274_s24, %s19275_s20  }
  0xb6   : > { %s19276_s12 = smov [#allocation12]   ;;  %s19121_s19 = scalar_lea.hbm %s23502_s5, 16384 }
  0xb7   : > { %s376_s2 = sshll.u32 %s19276_s12, 4  ;;  %p19122_p10 = scmp.ne.s32.totalorder %s23502_s5, %s19121_s19  ;;  %s377_s2 = int_to_ptr.vmem [resolvable:$true] %s376_s2 }
  0xb8   : > { %p19128_p4 = scmp.lt.u32.totalorder %s19121_s19, %s23502_s5 }
  0xb9   : > { %p19124_p12 = pnand %p19122_p10, %p19412_p11 }
  0xbb   : > { %p19125_p6 = pneg %p19124_p12 }
  0xbd   : > { %p19130_p7 = pnand %p19128_p4, %p19125_p6 }
  0xbf   : > { %19133 = shalt.err (!%p19130_p7)
}
  0xc0   : > { %s19134_s28 = scalar_lea.vmem %s377_s2, 16384  ;;  %p19142_p2 = scmp.lt.s32.totalorder %s377_s2, %s377_s2 }
  0xc1   : > { %p19135_p13 = scmp.ne.s32.totalorder %s377_s2, %s19134_s28  ;;  %p19143_p3 = scmp.lt.s32.totalorder %s19134_s28, %s19134_s28 }
  0xc3   : > { %p19137_p0 = pnand %p19135_p13, %p19412_p11  ;;  %p19144_p5 = por %p19143_p3, %p19142_p2 }
  0xc5   : > { %p19138_p1 = pneg %p19137_p0 }
  0xc7   : > { %p19145_p8 = pnand %p19144_p5, %p19138_p1 }
  0xc9   : > { %19148 = shalt.err (!%p19145_p8)
}
  0xca   : > { %s19277_s24 = smov 128   ;;  %s19278_s20 = smov 8  }
  0xcb   : > { %17809 = dma.hbm_to_vmem [thread:$0]  (!%p19396_p9), %s23502_s5, 16384, %s377_s2, [#allocation11], %s19277_s24, %s19277_s24, %s19278_s20  }
  0xcc   : > { %s19279_s12 = smov [#allocation15]   ;;  %s19280_s14 = smov [#allocation18]  }
  0xcd   : > { %s400_s27 = sshll.u32 %s19279_s12, 4  ;;  %s428_s19 = sshll.u32 %s19280_s14, 4  ;;  %s401_s27 = int_to_ptr.vmem [resolvable:$true] %s400_s27  ;;  %s429_s19 = int_to_ptr.vmem [resolvable:$true] %s428_s19 }
  0xce   : > { %s19149_s15 = scalar_lea.hbm %s23504_s7, 4096 }
  0xcf   : > { %p19150_p10 = scmp.ne.s32.totalorder %s23504_s7, %s19149_s15  ;;  %p19156_p4 = scmp.lt.u32.totalorder %s19149_s15, %s23504_s7 }
  0xd1   : > { %p19152_p12 = pnand %p19150_p10, %p19412_p11 }
  0xd3   : > { %p19153_p6 = pneg %p19152_p12 }
  0xd5   : > { %p19158_p7 = pnand %p19156_p4, %p19153_p6 }
  0xd7   : > { %19161 = shalt.err (!%p19158_p7)
}
  0xd8   : > { %s19162_s2 = scalar_lea.vmem %s401_s27, 4096  ;;  %p19170_p2 = scmp.lt.s32.totalorder %s401_s27, %s401_s27 }
  0xd9   : > { %p19163_p13 = scmp.ne.s32.totalorder %s401_s27, %s19162_s2  ;;  %p19171_p3 = scmp.lt.s32.totalorder %s19162_s2, %s19162_s2 }
  0xdb   : > { %p19165_p0 = pnand %p19163_p13, %p19412_p11  ;;  %p19172_p5 = por %p19171_p3, %p19170_p2 }
  0xdd   : > { %p19166_p1 = pneg %p19165_p0 }
  0xdf   : > { %p19173_p8 = pnand %p19172_p5, %p19166_p1 }
  0xe1   : > { %19176 = shalt.err (!%p19173_p8)
}
  0xe2   : > { %17815 = dma.hbm_to_vmem [thread:$0]  (!%p19396_p9), %s23504_s7, 4096, %s401_s27, [#allocation14], %s19277_s24, %s19277_s24, %s19278_s20  }
  0xe3   : > { %s19177_s12 = scalar_lea.hbm %s23507_s10, 16 }
  0xe4   : > { %p19178_p10 = scmp.ne.s32.totalorder %s23507_s10, %s19177_s12  ;;  %p19184_p4 = scmp.lt.u32.totalorder %s19177_s12, %s23507_s10 }
  0xe6   : > { %p19180_p12 = pnand %p19178_p10, %p19412_p11 }
  0xe8   : > { %p19181_p6 = pneg %p19180_p12 }
  0xea   : > { %p19186_p7 = pnand %p19184_p4, %p19181_p6 }
  0xec   : > { %19189 = shalt.err (!%p19186_p7)
}
  0xed   : > { %s19190_s25 = scalar_lea.vmem %s429_s19, 16  ;;  %s19197_s24 = scalar_lea.vmem %s429_s19, 32 }
  0xee   : > { %p19191_p13 = scmp.ne.s32.totalorder %s429_s19, %s19190_s25  ;;  %p19198_p2 = scmp.lt.s32.totalorder %s429_s19, %s429_s19 }
  0xef   : > { %p19199_p3 = scmp.lt.s32.totalorder %s19197_s24, %s19190_s25 }
  0xf0   : > { %p19193_p0 = pnand %p19191_p13, %p19412_p11 }
  0xf1   : > { %p19200_p5 = por %p19199_p3, %p19198_p2 }
  0xf2   : > { %p19194_p1 = pneg %p19193_p0 }
  0xf4   : > { %p19201_p8 = pnand %p19200_p5, %p19194_p1 }
  0xf6   : > { %19204 = shalt.err (!%p19201_p8)
}
  0xf7   : > { %17821 = dma.hbm_to_vmem [thread:$0]  (!%p19396_p9), %s23507_s10, 16, %s429_s19, [#allocation17]  }
  0xf8   : > { %s19205_s4 = scalar_lea.hbm %s23508_s11, 16 }
  0xf9   : > { %p19206_p10 = scmp.ne.s32.totalorder %s23508_s11, %s19205_s4  ;;  %p19212_p4 = scmp.lt.u32.totalorder %s19205_s4, %s23508_s11 }
  0xfb   : > { %p19208_p12 = pnand %p19206_p10, %p19412_p11 }
  0xfd   : > { %p19209_p6 = pneg %p19208_p12 }
  0xff   : > { %p19214_p7 = pnand %p19212_p4, %p19209_p6 }
 0x101   : > { %19217 = shalt.err (!%p19214_p7)
}
 0x102   : > { %s19281_s14 = smov [#allocation19]   ;;  %p14868_p13 = scmp.ge.s32.totalorder %s19264_s23, 2 }
 0x103   : > { %17824 = dma.hbm_to_smem (!%p19396_p9), %s23508_s11, 16, %s19281_s14, [#allocation6]  }
 0x104   : > { %444 = sbr.rel (%p14868_p13) target bundleno = 299 (0x12b), region = 60  ;;  %p23567_p0 = scmp.ne.s32.totalorder (!%p14868_p13), %s23558_s29, 0 }
 0x10b   : > { %447 = sbr.rel (!%p23567_p0) target bundleno = 299 (0x12b), region = 64  ;;  %s449_s16 = sand.u32 (%p23567_p0), 1, %s19260_s22  }
 0x10c   : > { %s15981_s17 = sshll.u32 (%p23567_p0), %s19264_s23, 4  ;;  %s17752_s15 = smul.u32 (%p23567_p0), 448, %s449_s16 }
 0x10d   : > { %s19606_s20 = scalar_lea.vmem (%p23567_p0), %s23497_s0, %s15981_s17 }
 0x10e   : > { %v592_v0 = vld [vmem:[%s19606_s20] sm:$0xff] (%p23567_p0)  ;;  %v594_v1 = vld [vmem:[%s19606_s20 + $0x8] sm:$0xff] (%p23567_p0)  ;;  %s19614_s29 = scalar_lea.vmem (%p23567_p0), [#allocation3], %s17752_s15 }
 0x10f   : > { %v596_v2 = vld [vmem:[%s19606_s20 + $0x20] sm:$0xff] (%p23567_p0)  ;;  %v598_v3 = vld [vmem:[%s19606_s20 + $0x28] sm:$0xff] (%p23567_p0)  ;;  %593 = vst [vmem:[%s19614_s29] sm:$0xff] (%p23567_p0), %v592_v0  ;;  %595 = vst [vmem:[%s19614_s29 + $0x8] sm:$0xff] (%p23567_p0), %v594_v1 }
 0x110   : > { %v600_v4 = vld [vmem:[%s19606_s20 + $0x40] sm:$0xff] (%p23567_p0)  ;;  %v602_v5 = vld [vmem:[%s19606_s20 + $0x48] sm:$0xff] (%p23567_p0)  ;;  %597 = vst [vmem:[%s19614_s29 + $0x10] sm:$0xff] (%p23567_p0), %v596_v2  ;;  %599 = vst [vmem:[%s19614_s29 + $0x18] sm:$0xff] (%p23567_p0), %v598_v3 }
 0x111   : > { %601 = vst [vmem:[%s19614_s29 + $0x20] sm:$0xff] (%p23567_p0), %v600_v4  ;;  %603 = vst [vmem:[%s19614_s29 + $0x28] sm:$0xff] (%p23567_p0), %v602_v5  ;;  %v604_v6 = vld [vmem:[%s19606_s20 + $0x60] sm:$0xff] (%p23567_p0)  ;;  %v606_v7 = vld [vmem:[%s19606_s20 + $0x68] sm:$0xff] (%p23567_p0) }
 0x112   : > { %v608_v8 = vld [vmem:[%s19606_s20 + $0x80] sm:$0xff]  ;;  %605 = vst [vmem:[%s19614_s29 + $0x30] sm:$0xff] %v604_v6  ;;  %607 = vst [vmem:[%s19614_s29 + $0x38] sm:$0xff] %v606_v7  ;;  %v610_v9 = vld [vmem:[%s19606_s20 + $0x88] sm:$0xff] }
 0x113   : > { %609 = vst [vmem:[%s19614_s29 + $0x40] sm:$0xff] %v608_v8  ;;  %v612_v10 = vld [vmem:[%s19606_s20 + $0xa0] sm:$0xff]  ;;  %v614_v11 = vld [vmem:[%s19606_s20 + $0xa8] sm:$0xff]  ;;  %611 = vst [vmem:[%s19614_s29 + $0x48] sm:$0xff] %v610_v9 }
 0x114   : > { %613 = vst [vmem:[%s19614_s29 + $0x50] sm:$0xff] %v612_v10  ;;  %615 = vst [vmem:[%s19614_s29 + $0x58] sm:$0xff] %v614_v11  ;;  %v616_v12 = vld [vmem:[%s19606_s20 + $0xc0] sm:$0xff]  ;;  %v618_v13 = vld [vmem:[%s19606_s20 + $0xc8] sm:$0xff] }
 0x115   : > { %v620_v14 = vld [vmem:[%s19606_s20 + $0xe0] sm:$0xff]  ;;  %617 = vst [vmem:[%s19614_s29 + $0x60] sm:$0xff] %v616_v12  ;;  %619 = vst [vmem:[%s19614_s29 + $0x68] sm:$0xff] %v618_v13  ;;  %v622_v15 = vld [vmem:[%s19606_s20 + $0xe8] sm:$0xff] }
 0x116   : > { %621 = vst [vmem:[%s19614_s29 + $0x70] sm:$0xff] %v620_v14  ;;  %v624_v16 = vld [vmem:[%s19606_s20 + $0x100] sm:$0xff]  ;;  %v626_v17 = vld [vmem:[%s19606_s20 + $0x108] sm:$0xff]  ;;  %623 = vst [vmem:[%s19614_s29 + $0x78] sm:$0xff] %v622_v15 }
 0x117   : > { %625 = vst [vmem:[%s19614_s29 + $0x80] sm:$0xff] %v624_v16  ;;  %627 = vst [vmem:[%s19614_s29 + $0x88] sm:$0xff] %v626_v17  ;;  %v628_v18 = vld [vmem:[%s19606_s20 + $0x120] sm:$0xff]  ;;  %v630_v19 = vld [vmem:[%s19606_s20 + $0x128] sm:$0xff] }
 0x118   : > { %v632_v20 = vld [vmem:[%s19606_s20 + $0x140] sm:$0xff]  ;;  %629 = vst [vmem:[%s19614_s29 + $0x90] sm:$0xff] %v628_v18  ;;  %631 = vst [vmem:[%s19614_s29 + $0x98] sm:$0xff] %v630_v19  ;;  %v634_v21 = vld [vmem:[%s19606_s20 + $0x148] sm:$0xff] }
 0x119   : > { %633 = vst [vmem:[%s19614_s29 + $0xa0] sm:$0xff] %v632_v20  ;;  %v636_v22 = vld [vmem:[%s19606_s20 + $0x160] sm:$0xff]  ;;  %v638_v23 = vld [vmem:[%s19606_s20 + $0x168] sm:$0xff]  ;;  %635 = vst [vmem:[%s19614_s29 + $0xa8] sm:$0xff] %v634_v21 }
 0x11a   : > { %637 = vst [vmem:[%s19614_s29 + $0xb0] sm:$0xff] %v636_v22  ;;  %639 = vst [vmem:[%s19614_s29 + $0xb8] sm:$0xff] %v638_v23  ;;  %v640_v24 = vld [vmem:[%s19606_s20 + $0x180] sm:$0xff]  ;;  %v642_v25 = vld [vmem:[%s19606_s20 + $0x188] sm:$0xff] }
 0x11b   : > { %v644_v26 = vld [vmem:[%s19606_s20 + $0x1a0] sm:$0xff]  ;;  %641 = vst [vmem:[%s19614_s29 + $0xc0] sm:$0xff] %v640_v24  ;;  %643 = vst [vmem:[%s19614_s29 + $0xc8] sm:$0xff] %v642_v25  ;;  %v646_v27 = vld [vmem:[%s19606_s20 + $0x1a8] sm:$0xff] }
 0x11c   : > { %645 = vst [vmem:[%s19614_s29 + $0xd0] sm:$0xff] %v644_v26  ;;  %v648_v28 = vld [vmem:[%s19606_s20 + $0x1c0] sm:$0xff]  ;;  %v650_v29 = vld [vmem:[%s19606_s20 + $0x1c8] sm:$0xff]  ;;  %647 = vst [vmem:[%s19614_s29 + $0xd8] sm:$0xff] %v646_v27 }
 0x11d   : > { %649 = vst [vmem:[%s19614_s29 + $0xe0] sm:$0xff] %v648_v28  ;;  %651 = vst [vmem:[%s19614_s29 + $0xe8] sm:$0xff] %v650_v29  ;;  %v652_v30 = vld [vmem:[%s19606_s20 + $0x1e0] sm:$0xff]  ;;  %v654_v31 = vld [vmem:[%s19606_s20 + $0x1e8] sm:$0xff] }
 0x11e   : > { %v656_v32 = vld [vmem:[%s19606_s20 + $0x200] sm:$0xff]  ;;  %653 = vst [vmem:[%s19614_s29 + $0xf0] sm:$0xff] %v652_v30  ;;  %655 = vst [vmem:[%s19614_s29 + $0xf8] sm:$0xff] %v654_v31  ;;  %v658_v33 = vld [vmem:[%s19606_s20 + $0x208] sm:$0xff] }
 0x11f   : > { %657 = vst [vmem:[%s19614_s29 + $0x100] sm:$0xff] %v656_v32  ;;  %v660_v34 = vld [vmem:[%s19606_s20 + $0x220] sm:$0xff]  ;;  %v662_v35 = vld [vmem:[%s19606_s20 + $0x228] sm:$0xff]  ;;  %659 = vst [vmem:[%s19614_s29 + $0x108] sm:$0xff] %v658_v33 }
 0x120   : > { %661 = vst [vmem:[%s19614_s29 + $0x110] sm:$0xff] %v660_v34  ;;  %663 = vst [vmem:[%s19614_s29 + $0x118] sm:$0xff] %v662_v35  ;;  %v664_v36 = vld [vmem:[%s19606_s20 + $0x240] sm:$0xff]  ;;  %v666_v37 = vld [vmem:[%s19606_s20 + $0x248] sm:$0xff] }
 0x121   : > { %v668_v38 = vld [vmem:[%s19606_s20 + $0x260] sm:$0xff]  ;;  %665 = vst [vmem:[%s19614_s29 + $0x120] sm:$0xff] %v664_v36  ;;  %667 = vst [vmem:[%s19614_s29 + $0x128] sm:$0xff] %v666_v37  ;;  %v670_v39 = vld [vmem:[%s19606_s20 + $0x268] sm:$0xff] }
 0x122   : > { %669 = vst [vmem:[%s19614_s29 + $0x130] sm:$0xff] %v668_v38  ;;  %v672_v40 = vld [vmem:[%s19606_s20 + $0x280] sm:$0xff]  ;;  %v674_v41 = vld [vmem:[%s19606_s20 + $0x288] sm:$0xff]  ;;  %671 = vst [vmem:[%s19614_s29 + $0x138] sm:$0xff] %v670_v39 }
 0x123   : > { %673 = vst [vmem:[%s19614_s29 + $0x140] sm:$0xff] %v672_v40  ;;  %675 = vst [vmem:[%s19614_s29 + $0x148] sm:$0xff] %v674_v41  ;;  %v676_v42 = vld [vmem:[%s19606_s20 + $0x2a0] sm:$0xff]  ;;  %v678_v43 = vld [vmem:[%s19606_s20 + $0x2a8] sm:$0xff] }
 0x124   : > { %v680_v44 = vld [vmem:[%s19606_s20 + $0x2c0] sm:$0xff]  ;;  %677 = vst [vmem:[%s19614_s29 + $0x150] sm:$0xff] %v676_v42  ;;  %679 = vst [vmem:[%s19614_s29 + $0x158] sm:$0xff] %v678_v43  ;;  %v682_v45 = vld [vmem:[%s19606_s20 + $0x2c8] sm:$0xff] }
 0x125   : > { %681 = vst [vmem:[%s19614_s29 + $0x160] sm:$0xff] %v680_v44  ;;  %v684_v46 = vld [vmem:[%s19606_s20 + $0x2e0] sm:$0xff]  ;;  %v686_v47 = vld [vmem:[%s19606_s20 + $0x2e8] sm:$0xff]  ;;  %683 = vst [vmem:[%s19614_s29 + $0x168] sm:$0xff] %v682_v45 }
 0x126   : > { %685 = vst [vmem:[%s19614_s29 + $0x170] sm:$0xff] %v684_v46  ;;  %687 = vst [vmem:[%s19614_s29 + $0x178] sm:$0xff] %v686_v47  ;;  %v688_v48 = vld [vmem:[%s19606_s20 + $0x300] sm:$0xff]  ;;  %v690_v49 = vld [vmem:[%s19606_s20 + $0x308] sm:$0xff] }
 0x127   : > { %v692_v50 = vld [vmem:[%s19606_s20 + $0x320] sm:$0xff]  ;;  %689 = vst [vmem:[%s19614_s29 + $0x180] sm:$0xff] %v688_v48  ;;  %691 = vst [vmem:[%s19614_s29 + $0x188] sm:$0xff] %v690_v49  ;;  %v694_v51 = vld [vmem:[%s19606_s20 + $0x328] sm:$0xff] }
 0x128   : > { %693 = vst [vmem:[%s19614_s29 + $0x190] sm:$0xff] %v692_v50  ;;  %v696_v52 = vld [vmem:[%s19606_s20 + $0x340] sm:$0xff]  ;;  %v698_v53 = vld [vmem:[%s19606_s20 + $0x348] sm:$0xff]  ;;  %695 = vst [vmem:[%s19614_s29 + $0x198] sm:$0xff] %v694_v51 }
 0x129   : > { %697 = vst [vmem:[%s19614_s29 + $0x1a0] sm:$0xff] %v696_v52  ;;  %699 = vst [vmem:[%s19614_s29 + $0x1a8] sm:$0xff] %v698_v53  ;;  %v700_v54 = vld [vmem:[%s19606_s20 + $0x360] sm:$0xff]  ;;  %v702_v55 = vld [vmem:[%s19606_s20 + $0x368] sm:$0xff] }
 0x12a   : > { %701 = vst [vmem:[%s19614_s29 + $0x1b0] sm:$0xff] %v700_v54  ;;  %703 = vst [vmem:[%s19614_s29 + $0x1b8] sm:$0xff] %v702_v55 }
 0x12b PF: > { %p23568_p9 = scmp.ne.s32.totalorder %s23560_s13, 0 }
 0x12d   : > { %712 = sbr.rel (%p23568_p9) target bundleno = 4687 (0x124f), region = 102 }
 0x134   : > { %s715_s18 = sand.u32 1, %s19256_s21   ;;  %p23569_p11 = scmp.ne.s32.totalorder %s23559_s30, 0 }
 0x135   : > { %s17753_s27 = smul.u32 448, %s715_s18 }
 0x137   : > { %s19725_s28 = scalar_lea.vmem [#allocation3], %s17753_s27 }
 0x138   : > { %19231 = dma.done.wait (%p23569_p11), [#allocation5], 7680  }
 0x139   : > { %19233 = vsyncadd (%p23569_p11), [#allocation5], 4294959616 }
 0x13a   : > { %19235 = dma.done.wait (%p23569_p11), [#allocation8], 61536  }
 0x13b   : > { %19237 = vsyncadd (%p23569_p11), [#allocation8], 4294905760 }
 0x13c   : > { %19239 = dma.done.wait (%p23569_p11), [#allocation11], 16448  }
 0x13d   : > { %19241 = vsyncadd (%p23569_p11), [#allocation11], 4294950848 }
 0x13e   : > { %19243 = dma.done.wait (%p23569_p11), [#allocation14], 4128  }
 0x13f   : > { %19245 = vsyncadd (%p23569_p11), [#allocation14], 4294963168 }
 0x140   : > { %19247 = dma.done.wait (%p23569_p11), [#allocation17], 48  }
 0x141   : > { %19249 = vsyncadd (%p23569_p11), [#allocation17], 4294967248 }
 0x142   : > { %19251 = dma.done.wait (%p23569_p11), [#allocation6], 16  }
 0x143   : > { %19253 = vsyncadd (%p23569_p11), [#allocation6], 4294967280 }
 0x144   : > { %761 = sfence }
 0x145   : > { %v17886_v56 = vld [vmem:[#allocation4 + $0x64] ss:$24 sps:$4 sm:$0xff]   ;;  %v23521_v58 = vmov 0   ;;  %v17890_v59 = vld [vmem:[#allocation4 + $0x60] ss:$24 sps:$4 sm:$0xff]   ;;  %vm1041_vm0 = vcmask 1045504  }
 0x146   : > { %v17888_v57 = vld [vmem:[#allocation4 + $0x6c] ss:$24 sps:$4 sm:$0xff]   ;;  %1092 = vmatprep.mubr.bf16.mxu0 %v23521_v58  ;;  %1375 = vmatprep.mubr.bf16.mxu1 %v23521_v58  ;;  %v17891_v60 = vld [vmem:[#allocation4 + $0x68] ss:$24 sps:$4 sm:$0xff]   ;;  %v807_v63 = vld [vmem:[%s19725_s28 + $0x10] sm:$0xff]  ;;  %vm968_vm1 = vcmask 228352  }
 0x147   : > { %1060 = vmatprep.subr.bf16.mxu0 %v17886_v56  ;;  %16004 = vmatprep.subr.bf16.mxu1 %v17888_v57  ;;  %v17892_v61 = vld [vmem:[#allocation4 + $0x94] ss:$24 sps:$4 sm:$0x3f]   ;;  %v17896_v0 = vld [vmem:[#allocation4 + $0x90] ss:$24 sps:$4 sm:$0x3f]  }
 0x148   : > { %1061 = vmatpush1.bf16.msra.mxu0 %v17890_v59  ;;  %16006 = vmatpush1.bf16.msra.mxu1 %v17891_v60  ;;  %v17894_v62 = vld [vmem:[#allocation4 + $0x9c] ss:$24 sps:$4 sm:$0x3f]   ;;  %v17897_v1 = vld [vmem:[#allocation4 + $0x98] ss:$24 sps:$4 sm:$0x3f]  }
 0x149   : > { %14896 = vmatprep.subr.msk.bf16.mxu0 %vm1041_vm0, %v17892_v61  ;;  %16005 = vmatprep.subr.msk.bf16.mxu1 %vm1041_vm0, %v17894_v62  ;;  %v808_v2 = vld [vmem:[%s19725_s28 + $0x18] sm:$0xff]  ;;  %v809_v3 = vld [vmem:[%s19725_s28 + $0x20] sm:$0xff]  ;;  %v810_v4 = vld [vmem:[%s19725_s28 + $0x28] sm:$0xff]  ;;  %v1043_v5 = vsel %vm1041_vm0, %v17896_v0, 0  ;;  %v1049_v6 = vsel %vm1041_vm0, %v17897_v1, 0  ;;  %s6390_s21 = sld [smem:[#allocation19]] }
 0x14a   : > { %v19761_v7 = vpack.c.bf16 %v808_v2, %v807_v63  ;;  %v19763_v8 = vpack.c.bf16 %v810_v4, %v809_v3  ;;  %v811_v9 = vld [vmem:[%s19725_s28 + $0x30] sm:$0xff]  ;;  %v812_v10 = vld [vmem:[%s19725_s28 + $0x38] sm:$0xff]  ;;  %v813_v12 = vld [vmem:[%s19725_s28 + $0x40] sm:$0xff]  ;;  %s15799_s30 = sld [smem:[#allocation19 + $0x1]]  ;;  %s23866_s4 = sld [smem:[#allocation122_spill]] }
 0x14b   : > { %v19774_v11 = vpack.c.bf16 %v812_v10, %v811_v9  ;;  %v814_v13 = vld [vmem:[%s19725_s28 + $0x48] sm:$0xff]  ;;  %v815_v15 = vld [vmem:[%s19725_s28 + $0x50] sm:$0xff]  ;;  %v816_v16 = vld [vmem:[%s19725_s28 + $0x58] sm:$0xff]  ;;  %s15928_s9 = sld [smem:[#allocation19 + $0x2]]  ;;  %s15961_s25 = sld [smem:[#allocation19 + $0x3]] }
 0x14c   : > { %1063 = vmatpush1.bf16.msra.mxu0 %v1043_v5  ;;  %16007 = vmatpush1.bf16.msra.mxu1 %v1049_v6  ;;  %v19784_v14 = vpack.c.bf16 %v814_v13, %v813_v12  ;;  %v19794_v17 = vpack.c.bf16 %v816_v16, %v815_v15  ;;  %v817_v18 = vld [vmem:[%s19725_s28 + $0x60] sm:$0xff]  ;;  %v818_v19 = vld [vmem:[%s19725_s28 + $0x68] sm:$0xff]  ;;  %v819_v21 = vld [vmem:[%s19725_s28 + $0x70] sm:$0xff]  ;;  %s23867_s24 = sadd.s32 4294967295, %s19264_s23  }
 0x14d   : > { %1333 = vmatprep.subr.bf16.mxu0 %v17888_v57  ;;  %v19804_v20 = vpack.c.bf16 %v818_v19, %v817_v18  ;;  %v820_v22 = vld [vmem:[%s19725_s28 + $0x78] sm:$0xff]  ;;  %v821_v24 = vld [vmem:[%s19725_s28 + $0x80] sm:$0xff]  ;;  %v822_v25 = vld [vmem:[%s19725_s28 + $0x88] sm:$0xff]  ;;  %s14882_s20 = sshll.u32 %s23867_s24, 1 }
 0x14e   : > { %v19814_v23 = vpack.c.bf16 %v820_v22, %v819_v21  ;;  %v19824_v26 = vpack.c.bf16 %v822_v25, %v821_v24  ;;  %v17900_v27 = vld [vmem:[#allocation4 + $0xc] ss:$24 sps:$4 sm:$0xff]   ;;  %v823_v28 = vld [vmem:[%s19725_s28 + $0x90] sm:$0xff]  ;;  %v824_v29 = vld [vmem:[%s19725_s28 + $0x98] sm:$0xff]  ;;  %p799_p1 = scmp.lt.s32.totalorder %s14882_s20, 3 }
 0x14f   : > { %14897 = vmatmul.mubr.msk.bf16.vlgmr.msra.gmra.mrb[0].mxu0 %vm968_vm1, %v19761_v7  ;;  %14923 = vmatmul.mubr.msk.bf16.vlgmr.msra.gmra.mrb[0].mxu1 %vm968_vm1, %v19763_v8  ;;  %v17898_v30 = vld [vmem:[#allocation4 + $0x8] ss:$24 sps:$4 sm:$0xff]   ;;  %v17901_v31 = vld [vmem:[#allocation4 + $0x3c] ss:$24 sps:$4 sm:$0x3f]   ;;  %v19834_v33 = vpack.c.bf16 %v824_v29, %v823_v28 }
 0x150   : > { %1334 = vmatpush1.bf16.msra.mxu0 %v17891_v60  ;;  %1102 = vmatprep.mubr.bf16.mxu0 %v23521_v58  ;;  %v17903_v32 = vld [vmem:[#allocation4 + $0x38] ss:$24 sps:$4 sm:$0x3f]   ;;  %v825_v35 = vld [vmem:[%s19725_s28 + $0xa0] sm:$0xff]  ;;  %v826_v36 = vld [vmem:[%s19725_s28 + $0xa8] sm:$0xff]  ;;  %s23874_s20 = smov (!%p799_p1, %s14882_s20), 3 }
 0x151   : > { %1385 = vmatprep.mubr.bf16.mxu1 %v23521_v58  ;;  %14921 = vmatprep.subr.msk.bf16.mxu0 %vm1041_vm0, %v17894_v62  ;;  %v1943_v34 = vsel %vm1041_vm0, %v17903_v32, 0  ;;  %v19846_v37 = vpack.c.bf16 %v826_v36, %v825_v35  ;;  %v17906_v38 = vld [vmem:[#allocation4 + $0x74] ss:$24 sps:$4 sm:$0xff]   ;;  %v828_v40 = vld [vmem:[%s19725_s28 + $0xb8] sm:$0xff]  ;;  %v829_v42 = vld [vmem:[%s19725_s28 + $0xc0] sm:$0xff]  ;;  %s14883_s29 = sshll.u32 %s23874_s20, 3 }
 0x152   : > { %2227 = vmatprep.subr.bf16.mxu1 %v17900_v27  ;;  %v827_v39 = vld [vmem:[%s19725_s28 + $0xb0] sm:$0xff]  ;;  %v830_v43 = vld [vmem:[%s19725_s28 + $0xc8] sm:$0xff]  ;;  %v832_v46 = vld [vmem:[%s19725_s28 + $0xd8] sm:$0xff] }
 0x153   : > { %2228 = vmatpush1.bf16.msra.mxu1 %v17898_v30  ;;  %v19856_v41 = vpack.c.bf16 %v828_v40, %v827_v39  ;;  %v19866_v44 = vpack.c.bf16 %v830_v43, %v829_v42  ;;  %v831_v45 = vld [vmem:[%s19725_s28 + $0xd0] sm:$0xff]  ;;  %v833_v48 = vld [vmem:[%s19725_s28 + $0xe0] sm:$0xff]  ;;  %v834_v49 = vld [vmem:[%s19725_s28 + $0xe8] sm:$0xff] }
 0x154   : > { %1336 = vmatpush1.bf16.msra.mxu0 %v1049_v6  ;;  %15008 = vmatprep.subr.msk.bf16.mxu1 %vm1041_vm0, %v17901_v31  ;;  %v19876_v47 = vpack.c.bf16 %v832_v46, %v831_v45  ;;  %v19886_v50 = vpack.c.bf16 %v834_v49, %v833_v48  ;;  %v835_v51 = vld [vmem:[%s19725_s28 + $0xf0] sm:$0xff]  ;;  %v836_v52 = vld [vmem:[%s19725_s28 + $0xf8] sm:$0xff]  ;;  %v837_v54 = vld [vmem:[%s19725_s28 + $0x100] sm:$0xff] }
 0x155   : > { %1606 = vmatprep.subr.bf16.mxu0 %v17906_v38  ;;  %v19896_v53 = vpack.c.bf16 %v836_v52, %v835_v51  ;;  %v838_v55 = vld [vmem:[%s19725_s28 + $0x108] sm:$0xff]  ;;  %v839_v57 = vld [vmem:[%s19725_s28 + $0x110] sm:$0xff]  ;;  %v840_v59 = vld [vmem:[%s19725_s28 + $0x118] sm:$0xff] }
 0x156   : > { %v19906_v56 = vpack.c.bf16 %v838_v55, %v837_v54  ;;  %v19916_v60 = vpack.c.bf16 %v840_v59, %v839_v57  ;;  %v841_v61 = vld [vmem:[%s19725_s28 + $0x120] sm:$0xff]  ;;  %v842_v62 = vld [vmem:[%s19725_s28 + $0x128] sm:$0xff]  ;;  %v843_v0 = vld [vmem:[%s19725_s28 + $0x130] sm:$0xff] }
 0x157   : > { %14898 = vmatmul.mubr.msk.bf16.gmra.mrb[4].mxu0 %vm968_vm1, %v19763_v8  ;;  %14924 = vmatmul.mubr.msk.bf16.gmra.mrb[4].mxu1 %vm968_vm1, %v19774_v11  ;;  %v19926_v63 = vpack.c.bf16 %v842_v62, %v841_v61  ;;  %v844_v1 = vld [vmem:[%s19725_s28 + $0x138] sm:$0xff]  ;;  %v845_v3 = vld [vmem:[%s19725_s28 + $0x140] sm:$0xff]  ;;  %v846_v4 = vld [vmem:[%s19725_s28 + $0x148] sm:$0xff] }
 0x158   : > { %1112 = vmatprep.mubr.bf16.mxu0 %v23521_v58  ;;  %1395 = vmatprep.mubr.bf16.mxu1 %v23521_v58  ;;  %v19936_v2 = vpack.c.bf16 %v844_v1, %v843_v0  ;;  %v19946_v5 = vpack.c.bf16 %v846_v4, %v845_v3  ;;  %v847_v6 = vld [vmem:[%s19725_s28 + $0x150] sm:$0xff]  ;;  %v848_v9 = vld [vmem:[%s19725_s28 + $0x158] sm:$0xff]  ;;  %v849_v12 = vld [vmem:[%s19725_s28 + $0x160] sm:$0xff] }
 0x159   : > { %2230 = vmatpush1.bf16.msra.mxu1 %v1943_v34  ;;  %v19956_v10 = vpack.c.bf16 %v848_v9, %v847_v6  ;;  %v850_v13 = vld [vmem:[%s19725_s28 + $0x168] sm:$0xff]  ;;  %v851_v16 = vld [vmem:[%s19725_s28 + $0x170] sm:$0xff]  ;;  %v852_v18 = vld [vmem:[%s19725_s28 + $0x178] sm:$0xff] }
 0x15a   : > { %v19966_v15 = vpack.c.bf16 %v850_v13, %v849_v12  ;;  %v19976_v19 = vpack.c.bf16 %v852_v18, %v851_v16  ;;  %v853_v21 = vld [vmem:[%s19725_s28 + $0x180] sm:$0xff]  ;;  %v854_v22 = vld [vmem:[%s19725_s28 + $0x188] sm:$0xff]  ;;  %v17919_v43 = vld [vmem:[#allocation4 + $0x15c] ss:$24 sps:$4 sm:$0x3f]  }
 0x15b   : > { %23570 = vst [vmem:[#allocation28_spill] sm:$0xff] %v19956_v10  ;;  %v19986_v24 = vpack.c.bf16 %v854_v22, %v853_v21  ;;  %v805_v25 = vld [vmem:[%s19725_s28] sm:$0xff]  ;;  %v806_v27 = vld [vmem:[%s19725_s28 + $0x8] sm:$0xff]  ;;  %v17921_v45 = vld [vmem:[#allocation4 + $0x158] ss:$24 sps:$4 sm:$0x3f]  }
 0x15c   : > { %23571 = vst [vmem:[#allocation29_spill] sm:$0xff] %v19966_v15  ;;  %23572 = vst [vmem:[#allocation30_spill] sm:$0xff] %v19976_v19  ;;  %v19996_v28 = vpack.c.bf16 %v806_v27, %v805_v25  ;;  %v17904_v29 = vld [vmem:[#allocation4 + $0x70] ss:$24 sps:$4 sm:$0xff]   ;;  %v17912_v32 = vld [vmem:[#allocation4 + $0x4] ss:$24 sps:$4 sm:$0xff]  }
 0x15d   : > { %23573 = vst [vmem:[#allocation31_spill] sm:$0xff] %v19986_v24  ;;  %v17907_v30 = vld [vmem:[#allocation4 + $0xa4] ss:$24 sps:$4 sm:$0x3f]   ;;  %v17910_v35 = vld [vmem:[#allocation4] ss:$24 sps:$4 sm:$0xff]  }
 0x15e   : > { %v17909_v31 = vld [vmem:[#allocation4 + $0xa0] ss:$24 sps:$4 sm:$0x3f]   ;;  %v17913_v36 = vld [vmem:[#allocation4 + $0x34] ss:$24 sps:$4 sm:$0x3f]  }
 0x15f   : > { %14899 = vmatmul.mubr.msk.bf16.gmra.mrb[8].mxu0 %vm968_vm1, %v19774_v11  ;;  %14925 = vmatmul.mubr.msk.bf16.gmra.mrb[8].mxu1 %vm968_vm1, %v19784_v14  ;;  %v1055_v34 = vsel %vm1041_vm0, %v17909_v31, 0  ;;  %v17915_v38 = vld [vmem:[#allocation4 + $0x30] ss:$24 sps:$4 sm:$0x3f]   ;;  %v17918_v40 = vld [vmem:[#allocation4 + $0x12c] ss:$24 sps:$4 sm:$0xff]  }
 0x160   : > { %1122 = vmatprep.mubr.bf16.mxu0 %v23521_v58  ;;  %1405 = vmatprep.mubr.bf16.mxu1 %v23521_v58  ;;  %v1937_v39 = vsel %vm1041_vm0, %v17915_v38, 0  ;;  %v17916_v42 = vld [vmem:[#allocation4 + $0x128] ss:$24 sps:$4 sm:$0xff]   ;;  %v2866_v46 = vsel %vm1041_vm0, %v17921_v45, 0  ;;  %v17924_v48 = vld [vmem:[#allocation4 + $0x14] ss:$24 sps:$4 sm:$0xff]  }
 0x161   : > { %3150 = vmatprep.subr.bf16.mxu1 %v17918_v40  ;;  %v17922_v49 = vld [vmem:[#allocation4 + $0x10] ss:$24 sps:$4 sm:$0xff]   ;;  %v17925_v51 = vld [vmem:[#allocation4 + $0x44] ss:$24 sps:$4 sm:$0x3f]  }
 0x162   : > { %v17927_v52 = vld [vmem:[#allocation4 + $0x40] ss:$24 sps:$4 sm:$0x3f]   ;;  %v17930_v62 = vld [vmem:[#allocation4 + $0xcc] ss:$24 sps:$4 sm:$0xff]   ;;  %v855_v9 = vld [vmem:[%s19725_s28 + $0x190] sm:$0xff] }
 0x163   : > { %v1949_v54 = vsel %vm1041_vm0, %v17927_v52, 0  ;;  %v17928_v0 = vld [vmem:[#allocation4 + $0xc8] ss:$24 sps:$4 sm:$0xff]   ;;  %v17931_v1 = vld [vmem:[#allocation4 + $0xfc] ss:$24 sps:$4 sm:$0x3f]  }
 0x164   : > { %v17933_v3 = vld [vmem:[#allocation4 + $0xf8] ss:$24 sps:$4 sm:$0x3f]   ;;  %v17936_v6 = vld [vmem:[#allocation4 + $0x124] ss:$24 sps:$4 sm:$0xff]   ;;  %v858_v18 = vld [vmem:[%s19725_s28 + $0x1a8] sm:$0xff] }
 0x165   : > { %v3757_v4 = vsel %vm1041_vm0, %v17933_v3, 0  ;;  %v856_v12 = vld [vmem:[%s19725_s28 + $0x198] sm:$0xff]  ;;  %v857_v16 = vld [vmem:[%s19725_s28 + $0x1a0] sm:$0xff]  ;;  %v17937_v25 = vld [vmem:[#allocation4 + $0x154] ss:$24 sps:$4 sm:$0x3f]  }
 0x166   : > { %v20294_v13 = vpack.c.bf16 %v856_v12, %v855_v9  ;;  %v20304_v21 = vpack.c.bf16 %v858_v18, %v857_v16  ;;  %v17934_v22 = vld [vmem:[#allocation4 + $0x120] ss:$24 sps:$4 sm:$0xff]   ;;  %v17939_v27 = vld [vmem:[#allocation4 + $0x150] ss:$24 sps:$4 sm:$0x3f]  }
 0x167   : > { %14900 = vmatmul.mubr.msk.bf16.gmra.mrb[12].mxu0 %vm968_vm1, %v19784_v14  ;;  %14926 = vmatmul.mubr.msk.bf16.gmra.mrb[12].mxu1 %vm968_vm1, %v19794_v17  ;;  %v17945_v31 = vld [vmem:[#allocation4 + $0x1b8] ss:$24 sps:$4 sm:$0x3f]   ;;  %v17954_v40 = vld [vmem:[#allocation4 + $0xc4] ss:$24 sps:$4 sm:$0xff]  }
 0x168   : > { %1132 = vmatprep.mubr.bf16.mxu0 %v23521_v58  ;;  %1415 = vmatprep.mubr.bf16.mxu1 %v23521_v58  ;;  %23574 = vst [vmem:[#allocation32_spill] sm:$0xff] %v20294_v13  ;;  %23575 = vst [vmem:[#allocation33_spill] sm:$0xff] %v20304_v21  ;;  %v17951_v38 = vld [vmem:[#allocation4 + $0x160] ss:$24 sps:$4 sm:$0x3f]  }
 0x169   : > { %v17957_v45 = vld [vmem:[#allocation4 + $0xf0] ss:$24 sps:$4 sm:$0x3f]  }
 0x16f   : > { %14901 = vmatmul.mubr.msk.bf16.gmra.mrb[16].mxu0 %vm968_vm1, %v19794_v17  ;;  %14927 = vmatmul.mubr.msk.bf16.gmra.mrb[16].mxu1 %vm968_vm1, %v19804_v20 }
 0x170   : > { %1142 = vmatprep.mubr.bf16.mxu0 %v23521_v58  ;;  %1425 = vmatprep.mubr.bf16.mxu1 %v23521_v58 }
 0x177   : > { %14902 = vmatmul.mubr.msk.bf16.gmra.mrb[20].mxu0 %vm968_vm1, %v19804_v20  ;;  %14928 = vmatmul.mubr.msk.bf16.gmra.mrb[20].mxu1 %vm968_vm1, %v19814_v23 }
 0x178   : > { %1152 = vmatprep.mubr.bf16.mxu0 %v23521_v58  ;;  %1435 = vmatprep.mubr.bf16.mxu1 %v23521_v58 }
 0x17f   : > { %14903 = vmatmul.mubr.msk.bf16.gmra.mrb[24].mxu0 %vm968_vm1, %v19814_v23  ;;  %14929 = vmatmul.mubr.msk.bf16.gmra.mrb[24].mxu1 %vm968_vm1, %v19824_v26 }
 0x180   : > { %1162 = vmatprep.mubr.bf16.mxu0 %v23521_v58  ;;  %1445 = vmatprep.mubr.bf16.mxu1 %v23521_v58 }
 0x187   : > { %14904 = vmatmul.mubr.msk.bf16.gmra.mrb[28].mxu0 %vm968_vm1, %v19824_v26  ;;  %14930 = vmatmul.mubr.msk.bf16.gmra.mrb[28].mxu1 %vm968_vm1, %v19834_v33 }
 0x188   : > { %1172 = vmatprep.mubr.bf16.mxu0 %v23521_v58  ;;  %1455 = vmatprep.mubr.bf16.mxu1 %v23521_v58 }
 0x18f   : > { %14905 = vmatmul.mubr.msk.bf16.gmra.mrb[32].mxu0 %vm968_vm1, %v19834_v33  ;;  %14931 = vmatmul.mubr.msk.bf16.gmra.mrb[32].mxu1 %vm968_vm1, %v19846_v37 }
 0x190   : > { %1182 = vmatprep.mubr.bf16.mxu0 %v23521_v58  ;;  %1465 = vmatprep.mubr.bf16.mxu1 %v23521_v58 }
 0x197   : > { %14906 = vmatmul.mubr.msk.bf16.gmra.mrb[36].mxu0 %vm968_vm1, %v19846_v37  ;;  %14932 = vmatmul.mubr.msk.bf16.gmra.mrb[36].mxu1 %vm968_vm1, %v19856_v41 }
 0x198   : > { %1192 = vmatprep.mubr.bf16.mxu0 %v23521_v58  ;;  %1475 = vmatprep.mubr.bf16.mxu1 %v23521_v58 }
 0x19f   : > { %14907 = vmatmul.mubr.msk.bf16.gmra.mrb[40].mxu0 %vm968_vm1, %v19856_v41  ;;  %14933 = vmatmul.mubr.msk.bf16.gmra.mrb[40].mxu1 %vm968_vm1, %v19866_v44 }
 0x1a0   : > { %1202 = vmatprep.mubr.bf16.mxu0 %v23521_v58  ;;  %1485 = vmatprep.mubr.bf16.mxu1 %v23521_v58 }
 0x1a7   : > { %14908 = vmatmul.mubr.msk.bf16.gmra.mrb[44].mxu0 %vm968_vm1, %v19866_v44  ;;  %14934 = vmatmul.mubr.msk.bf16.gmra.mrb[44].mxu1 %vm968_vm1, %v19876_v47 }
 0x1a8   : > { %1212 = vmatprep.mubr.bf16.mxu0 %v23521_v58  ;;  %1495 = vmatprep.mubr.bf16.mxu1 %v23521_v58 }
 0x1af   : > { %14909 = vmatmul.mubr.msk.bf16.gmra.mrb[48].mxu0 %vm968_vm1, %v19876_v47  ;;  %14935 = vmatmul.mubr.msk.bf16.gmra.mrb[48].mxu1 %vm968_vm1, %v19886_v50 }
 0x1b0   : > { %1222 = vmatprep.mubr.bf16.mxu0 %v23521_v58  ;;  %1505 = vmatprep.mubr.bf16.mxu1 %v23521_v58 }
 0x1b7   : > { %14910 = vmatmul.mubr.msk.bf16.gmra.mrb[52].mxu0 %vm968_vm1, %v19886_v50  ;;  %14936 = vmatmul.mubr.msk.bf16.gmra.mrb[52].mxu1 %vm968_vm1, %v19896_v53 }
 0x1b8   : > { %1232 = vmatprep.mubr.bf16.mxu0 %v23521_v58  ;;  %1515 = vmatprep.mubr.bf16.mxu1 %v23521_v58 }
 0x1bf   : > { %14911 = vmatmul.mubr.msk.bf16.gmra.mrb[56].mxu0 %vm968_vm1, %v19896_v53  ;;  %14937 = vmatmul.mubr.msk.bf16.gmra.mrb[56].mxu1 %vm968_vm1, %v19906_v56 }
 0x1c0   : > { %1242 = vmatprep.mubr.bf16.mxu0 %v23521_v58  ;;  %1525 = vmatprep.mubr.bf16.mxu1 %v23521_v58 }
 0x1c7   : > { %14912 = vmatmul.mubr.msk.bf16.gmra.mrb[60].mxu0 %vm968_vm1, %v19906_v56  ;;  %14938 = vmatmul.mubr.msk.bf16.gmra.mrb[60].mxu1 %vm968_vm1, %v19916_v60 }
 0x1c8   : > { %1252 = vmatprep.mubr.bf16.mxu0 %v23521_v58  ;;  %1535 = vmatprep.mubr.bf16.mxu1 %v23521_v58 }
 0x1cf   : > { %14913 = vmatmul.mubr.msk.bf16.gmra.mrb[64].mxu0 %vm968_vm1, %v19916_v60  ;;  %14939 = vmatmul.mubr.msk.bf16.gmra.mrb[64].mxu1 %vm968_vm1, %v19926_v63 }
 0x1d0   : > { %1262 = vmatprep.mubr.bf16.mxu0 %v23521_v58  ;;  %1545 = vmatprep.mubr.bf16.mxu1 %v23521_v58 }
 0x1d7   : > { %14914 = vmatmul.mubr.msk.bf16.gmra.mrb[68].mxu0 %vm968_vm1, %v19926_v63  ;;  %14940 = vmatmul.mubr.msk.bf16.gmra.mrb[68].mxu1 %vm968_vm1, %v19936_v2 }
 0x1d8   : > { %1272 = vmatprep.mubr.bf16.mxu0 %v23521_v58  ;;  %1555 = vmatprep.mubr.bf16.mxu1 %v23521_v58 }
 0x1df   : > { %14915 = vmatmul.mubr.msk.bf16.gmra.mrb[72].mxu0 %vm968_vm1, %v19936_v2  ;;  %14941 = vmatmul.mubr.msk.bf16.gmra.mrb[72].mxu1 %vm968_vm1, %v19946_v5 }
 0x1e0   : > { %1282 = vmatprep.mubr.bf16.mxu0 %v23521_v58  ;;  %1565 = vmatprep.mubr.bf16.mxu1 %v23521_v58 }
 0x1e7   : > { %14916 = vmatmul.mubr.msk.bf16.gmra.mrb[76].mxu0 %vm968_vm1, %v19946_v5  ;;  %14942 = vmatmul.mubr.msk.bf16.gmra.mrb[76].mxu1 %vm968_vm1, %v19956_v10 }
 0x1e8   : > { %1292 = vmatprep.mubr.bf16.mxu0 %v23521_v58  ;;  %1575 = vmatprep.mubr.bf16.mxu1 %v23521_v58 }
 0x1ef   : > { %14917 = vmatmul.mubr.msk.bf16.gmra.mrb[80].mxu0 %vm968_vm1, %v19956_v10  ;;  %14943 = vmatmul.mubr.msk.bf16.gmra.mrb[80].mxu1 %vm968_vm1, %v19966_v15 }
 0x1f0   : > { %1302 = vmatprep.mubr.bf16.mxu0 %v23521_v58  ;;  %1585 = vmatprep.mubr.bf16.mxu1 %v23521_v58 }
 0x1f7   : > { %14918 = vmatmul.mubr.msk.bf16.gmra.mrb[84].mxu0 %vm968_vm1, %v19966_v15  ;;  %14944 = vmatmul.mubr.msk.bf16.gmra.mrb[84].mxu1 %vm968_vm1, %v19976_v19 }
 0x1f8   : > { %1312 = vmatprep.mubr.bf16.mxu0 %v23521_v58  ;;  %1595 = vmatprep.mubr.bf16.mxu1 %v23521_v58 }
 0x1ff   : > { %14919 = vmatmul.mubr.msk.bf16.gmra.mrb[88].mxu0 %vm968_vm1, %v19976_v19  ;;  %14945 = vmatmul.mubr.msk.bf16.gmra.mrb[88].mxu1 %vm968_vm1, %v19986_v24 }
 0x200   : > { %1322 = vmatprep.mubr.bf16.mxu0 %v23521_v58  ;;  %2259 = vmatprep.mubr.bf16.mxu1 %v23521_v58 }
 0x207   : > { %14920 = vmatmul.mubr.msk.bf16.gmra.mrb[92].mxu0 %vm968_vm1, %v19986_v24  ;;  %15009 = vmatmul.mubr.msk.bf16.vlgmr.msra.gmra.mrb[92].mxu1 %vm968_vm1, %v19996_v28 }
 0x208   : > { %1365 = vmatprep.mubr.bf16.mxu0 %v23521_v58  ;;  %2269 = vmatprep.mubr.bf16.mxu1 %v23521_v58 }
 0x209   : > { %3151 = vmatpush1.bf16.msra.mxu1 %v17916_v42  ;;  %v17952_v42 = vld [vmem:[#allocation4 + $0xc0] ss:$24 sps:$4 sm:$0xff]  }
 0x20a   : > { %15095 = vmatprep.subr.msk.bf16.mxu1 %vm1041_vm0, %v17919_v43  ;;  %v17955_v43 = vld [vmem:[#allocation4 + $0xf4] ss:$24 sps:$4 sm:$0x3f]  }
 0x20d   : > { %3153 = vmatpush1.bf16.msra.mxu1 %v2866_v46  ;;  %v3751_v46 = vsel %vm1041_vm0, %v17957_v45, 0 }
 0x20e   : > { %4041 = vmatprep.subr.bf16.mxu1 %v17930_v62 }
 0x20f   : > { %14922 = vmatmul.mubr.msk.bf16.vlgmr.msra.gmra.mrb[96].mxu0 %vm968_vm1, %v19761_v7  ;;  %15010 = vmatmul.mubr.msk.bf16.gmra.mrb[0].mxu1 %vm968_vm1, %v19761_v7 }
 0x210   : > { %1607 = vmatpush1.bf16.msra.mxu0 %v17904_v29  ;;  %1638 = vmatprep.mubr.bf16.mxu0 %v23521_v58  ;;  %v2860_v29 = vsel %vm1041_vm0, %v17939_v27, 0 }
 0x211   : > { %14946 = vmatprep.subr.msk.bf16.mxu0 %vm1041_vm0, %v17907_v30  ;;  %2279 = vmatprep.mubr.bf16.mxu1 %v23521_v58  ;;  %v17943_v30 = vld [vmem:[#allocation4 + $0x1bc] ss:$24 sps:$4 sm:$0x3f]  }
 0x214   : > { %1609 = vmatpush1.bf16.msra.mxu0 %v1055_v34  ;;  %v17948_v34 = vld [vmem:[#allocation4 + $0x134] ss:$24 sps:$4 sm:$0xff]  }
 0x215   : > { %1954 = vmatprep.subr.bf16.mxu0 %v17912_v32  ;;  %v4952_v32 = vsel %vm1041_vm0, %v17945_v31, 0 }
 0x217   : > { %14947 = vmatmul.mubr.msk.bf16.vlgmr.msra.gmra.mrb[100].mxu0 %vm968_vm1, %v19761_v7  ;;  %15011 = vmatmul.mubr.msk.bf16.gmra.mrb[4].mxu1 %vm968_vm1, %v19763_v8 }
 0x218   : > { %1955 = vmatpush1.bf16.msra.mxu0 %v17910_v35  ;;  %1648 = vmatprep.mubr.bf16.mxu0 %v23521_v58  ;;  %v17946_v35 = vld [vmem:[#allocation4 + $0x130] ss:$24 sps:$4 sm:$0xff]  }
 0x219   : > { %2289 = vmatprep.mubr.bf16.mxu1 %v23521_v58  ;;  %14983 = vmatprep.subr.msk.bf16.mxu0 %vm1041_vm0, %v17913_v36  ;;  %v17949_v36 = vld [vmem:[#allocation4 + $0x164] ss:$24 sps:$4 sm:$0x3f]  }
 0x21c   : > { %1957 = vmatpush1.bf16.msra.mxu0 %v1937_v39  ;;  %v2872_v39 = vsel %vm1041_vm0, %v17951_v38, 0 }
 0x21d   : > { %2500 = vmatprep.subr.bf16.mxu0 %v17924_v48 }
 0x21f   : > { %14948 = vmatmul.mubr.msk.bf16.gmra.mrb[104].mxu0 %vm968_vm1, %v19763_v8  ;;  %15012 = vmatmul.mubr.msk.bf16.gmra.mrb[8].mxu1 %vm968_vm1, %v19774_v11 }
 0x220   : > { %1658 = vmatprep.mubr.bf16.mxu0 %v23521_v58  ;;  %2299 = vmatprep.mubr.bf16.mxu1 %v23521_v58 }
 0x227   : > { %14949 = vmatmul.mubr.msk.bf16.gmra.mrb[108].mxu0 %vm968_vm1, %v19774_v11  ;;  %15013 = vmatmul.mubr.msk.bf16.gmra.mrb[12].mxu1 %vm968_vm1, %v19784_v14 }
 0x228   : > { %1668 = vmatprep.mubr.bf16.mxu0 %v23521_v58  ;;  %2309 = vmatprep.mubr.bf16.mxu1 %v23521_v58 }
 0x22f   : > { %14950 = vmatmul.mubr.msk.bf16.gmra.mrb[112].mxu0 %vm968_vm1, %v19784_v14  ;;  %15014 = vmatmul.mubr.msk.bf16.gmra.mrb[16].mxu1 %vm968_vm1, %v19794_v17 }
 0x230   : > { %1678 = vmatprep.mubr.bf16.mxu0 %v23521_v58  ;;  %2319 = vmatprep.mubr.bf16.mxu1 %v23521_v58 }
 0x237   : > { %14951 = vmatmul.mubr.msk.bf16.gmra.mrb[116].mxu0 %vm968_vm1, %v19794_v17  ;;  %15015 = vmatmul.mubr.msk.bf16.gmra.mrb[20].mxu1 %vm968_vm1, %v19804_v20 }
 0x238   : > { %1688 = vmatprep.mubr.bf16.mxu0 %v23521_v58  ;;  %2329 = vmatprep.mubr.bf16.mxu1 %v23521_v58 }
 0x23f   : > { %14952 = vmatmul.mubr.msk.bf16.gmra.mrb[120].mxu0 %vm968_vm1, %v19804_v20  ;;  %15016 = vmatmul.mubr.msk.bf16.gmra.mrb[24].mxu1 %vm968_vm1, %v19814_v23 }
 0x240   : > { %1698 = vmatprep.mubr.bf16.mxu0 %v23521_v58  ;;  %2339 = vmatprep.mubr.bf16.mxu1 %v23521_v58 }
 0x247   : > { %14953 = vmatmul.mubr.msk.bf16.gmra.mrb[124].mxu0 %vm968_vm1, %v19814_v23  ;;  %15017 = vmatmul.mubr.msk.bf16.gmra.mrb[28].mxu1 %vm968_vm1, %v19824_v26 }
 0x248   : > { %1708 = vmatprep.mubr.bf16.mxu0 %v23521_v58  ;;  %2349 = vmatprep.mubr.bf16.mxu1 %v23521_v58 }
 0x24f   : > { %14954 = vmatmul.mubr.msk.bf16.gmra.mrb[128].mxu0 %vm968_vm1, %v19824_v26  ;;  %15018 = vmatmul.mubr.msk.bf16.gmra.mrb[32].mxu1 %vm968_vm1, %v19834_v33 }
 0x250   : > { %1718 = vmatprep.mubr.bf16.mxu0 %v23521_v58  ;;  %2359 = vmatprep.mubr.bf16.mxu1 %v23521_v58 }
 0x257   : > { %14955 = vmatmul.mubr.msk.bf16.gmra.mrb[132].mxu0 %vm968_vm1, %v19834_v33  ;;  %15019 = vmatmul.mubr.msk.bf16.gmra.mrb[36].mxu1 %vm968_vm1, %v19846_v37 }
 0x258   : > { %1728 = vmatprep.mubr.bf16.mxu0 %v23521_v58  ;;  %2369 = vmatprep.mubr.bf16.mxu1 %v23521_v58 }
 0x25f   : > { %14956 = vmatmul.mubr.msk.bf16.gmra.mrb[136].mxu0 %vm968_vm1, %v19846_v37  ;;  %15020 = vmatmul.mubr.msk.bf16.gmra.mrb[40].mxu1 %vm968_vm1, %v19856_v41 }
 0x260   : > { %1738 = vmatprep.mubr.bf16.mxu0 %v23521_v58  ;;  %2379 = vmatprep.mubr.bf16.mxu1 %v23521_v58 }
 0x267   : > { %14957 = vmatmul.mubr.msk.bf16.gmra.mrb[140].mxu0 %vm968_vm1, %v19856_v41  ;;  %15021 = vmatmul.mubr.msk.bf16.gmra.mrb[44].mxu1 %vm968_vm1, %v19866_v44 }
 0x268   : > { %1748 = vmatprep.mubr.bf16.mxu0 %v23521_v58  ;;  %2389 = vmatprep.mubr.bf16.mxu1 %v23521_v58 }
 0x26f   : > { %14958 = vmatmul.mubr.msk.bf16.gmra.mrb[144].mxu0 %vm968_vm1, %v19866_v44  ;;  %15022 = vmatmul.mubr.msk.bf16.gmra.mrb[48].mxu1 %vm968_vm1, %v19876_v47 }
 0x270   : > { %1758 = vmatprep.mubr.bf16.mxu0 %v23521_v58  ;;  %2399 = vmatprep.mubr.bf16.mxu1 %v23521_v58 }
 0x277   : > { %14959 = vmatmul.mubr.msk.bf16.gmra.mrb[148].mxu0 %vm968_vm1, %v19876_v47  ;;  %15023 = vmatmul.mubr.msk.bf16.gmra.mrb[52].mxu1 %vm968_vm1, %v19886_v50 }
 0x278   : > { %1768 = vmatprep.mubr.bf16.mxu0 %v23521_v58  ;;  %2409 = vmatprep.mubr.bf16.mxu1 %v23521_v58 }
 0x27f   : > { %14960 = vmatmul.mubr.msk.bf16.gmra.mrb[152].mxu0 %vm968_vm1, %v19886_v50  ;;  %15024 = vmatmul.mubr.msk.bf16.gmra.mrb[56].mxu1 %vm968_vm1, %v19896_v53 }
 0x280   : > { %1778 = vmatprep.mubr.bf16.mxu0 %v23521_v58  ;;  %2419 = vmatprep.mubr.bf16.mxu1 %v23521_v58 }
 0x287   : > { %14961 = vmatmul.mubr.msk.bf16.gmra.mrb[156].mxu0 %vm968_vm1, %v19896_v53  ;;  %15025 = vmatmul.mubr.msk.bf16.gmra.mrb[60].mxu1 %vm968_vm1, %v19906_v56 }
 0x288   : > { %1788 = vmatprep.mubr.bf16.mxu0 %v23521_v58  ;;  %2429 = vmatprep.mubr.bf16.mxu1 %v23521_v58 }
 0x28f   : > { %14962 = vmatmul.mubr.msk.bf16.gmra.mrb[160].mxu0 %vm968_vm1, %v19906_v56  ;;  %15026 = vmatmul.mubr.msk.bf16.gmra.mrb[64].mxu1 %vm968_vm1, %v19916_v60 }
 0x290   : > { %1798 = vmatprep.mubr.bf16.mxu0 %v23521_v58  ;;  %2439 = vmatprep.mubr.bf16.mxu1 %v23521_v58 }
 0x297   : > { %14963 = vmatmul.mubr.msk.bf16.gmra.mrb[164].mxu0 %vm968_vm1, %v19916_v60  ;;  %15027 = vmatmul.mubr.msk.bf16.gmra.mrb[68].mxu1 %vm968_vm1, %v19926_v63 }
 0x298   : > { %1808 = vmatprep.mubr.bf16.mxu0 %v23521_v58  ;;  %2449 = vmatprep.mubr.bf16.mxu1 %v23521_v58 }
 0x29f   : > { %14964 = vmatmul.mubr.msk.bf16.gmra.mrb[168].mxu0 %vm968_vm1, %v19926_v63  ;;  %15028 = vmatmul.mubr.msk.bf16.gmra.mrb[72].mxu1 %vm968_vm1, %v19936_v2 }
 0x2a0   : > { %1818 = vmatprep.mubr.bf16.mxu0 %v23521_v58  ;;  %2459 = vmatprep.mubr.bf16.mxu1 %v23521_v58 }
 0x2a7   : > { %14965 = vmatmul.mubr.msk.bf16.gmra.mrb[172].mxu0 %vm968_vm1, %v19936_v2  ;;  %15029 = vmatmul.mubr.msk.bf16.gmra.mrb[76].mxu1 %vm968_vm1, %v19946_v5 }
 0x2a8   : > { %1828 = vmatprep.mubr.bf16.mxu0 %v23521_v58  ;;  %2469 = vmatprep.mubr.bf16.mxu1 %v23521_v58 }
 0x2af   : > { %14966 = vmatmul.mubr.msk.bf16.gmra.mrb[176].mxu0 %vm968_vm1, %v19946_v5  ;;  %15030 = vmatmul.mubr.msk.bf16.gmra.mrb[80].mxu1 %vm968_vm1, %v19956_v10 }
 0x2b0   : > { %1838 = vmatprep.mubr.bf16.mxu0 %v23521_v58  ;;  %2479 = vmatprep.mubr.bf16.mxu1 %v23521_v58 }
 0x2b7   : > { %14967 = vmatmul.mubr.msk.bf16.gmra.mrb[180].mxu0 %vm968_vm1, %v19956_v10  ;;  %15031 = vmatmul.mubr.msk.bf16.gmra.mrb[84].mxu1 %vm968_vm1, %v19966_v15 }
 0x2b8   : > { %1848 = vmatprep.mubr.bf16.mxu0 %v23521_v58  ;;  %2489 = vmatprep.mubr.bf16.mxu1 %v23521_v58 }
 0x2bf   : > { %14968 = vmatmul.mubr.msk.bf16.gmra.mrb[184].mxu0 %vm968_vm1, %v19966_v15  ;;  %15032 = vmatmul.mubr.msk.bf16.gmra.mrb[88].mxu1 %vm968_vm1, %v19976_v19 }
 0x2c0   : > { %1858 = vmatprep.mubr.bf16.mxu0 %v23521_v58  ;;  %3182 = vmatprep.mubr.bf16.mxu1 %v23521_v58 }
 0x2c7   : > { %14969 = vmatmul.mubr.msk.bf16.gmra.mrb[188].mxu0 %vm968_vm1, %v19976_v19  ;;  %15096 = vmatmul.mubr.msk.bf16.vlgmr.msra.gmra.mrb[92].mxu1 %vm968_vm1, %v19774_v11 }
 0x2c8   : > { %1868 = vmatprep.mubr.bf16.mxu0 %v23521_v58  ;;  %3192 = vmatprep.mubr.bf16.mxu1 %v23521_v58 }
 0x2c9   : > { %4042 = vmatpush1.bf16.msra.mxu1 %v17928_v0 }
 0x2ca   : > { %15182 = vmatprep.subr.msk.bf16.mxu1 %vm1041_vm0, %v17931_v1 }
 0x2cd   : > { %4044 = vmatpush1.bf16.msra.mxu1 %v3757_v4 }
 0x2cf   : > { %14970 = vmatmul.mubr.msk.bf16.gmra.mrb[192].mxu0 %vm968_vm1, %v19986_v24  ;;  %15097 = vmatmul.mubr.msk.bf16.gmra.mrb[0].mxu1 %vm968_vm1, %v19784_v14 }
 0x2d0   : > { %1986 = vmatprep.mubr.bf16.mxu0 %v23521_v58  ;;  %3202 = vmatprep.mubr.bf16.mxu1 %v23521_v58 }
 0x2d7   : > { %14984 = vmatmul.mubr.msk.bf16.vlgmr.msra.gmra.mrb[0].mxu0 %vm968_vm1, %v19996_v28  ;;  %15098 = vmatmul.mubr.msk.bf16.gmra.mrb[4].mxu1 %vm968_vm1, %v19794_v17 }
 0x2d8   : > { %2501 = vmatpush1.bf16.msra.mxu0 %v17922_v49  ;;  %1996 = vmatprep.mubr.bf16.mxu0 %v23521_v58 }
 0x2d9   : > { %3212 = vmatprep.mubr.bf16.mxu1 %v23521_v58  ;;  %15033 = vmatprep.subr.msk.bf16.mxu0 %vm1041_vm0, %v17925_v51 }
 0x2dc   : > { %2503 = vmatpush1.bf16.msra.mxu0 %v1949_v54 }
 0x2dd   : > { %2877 = vmatprep.subr.bf16.mxu0 %v17936_v6 }
 0x2df   : > { %14985 = vmatmul.mubr.msk.bf16.gmra.mrb[4].mxu0 %vm968_vm1, %v19761_v7  ;;  %15099 = vmatmul.mubr.msk.bf16.gmra.mrb[8].mxu1 %vm968_vm1, %v19804_v20 }
 0x2e0   : > { %2006 = vmatprep.mubr.bf16.mxu0 %v23521_v58  ;;  %3222 = vmatprep.mubr.bf16.mxu1 %v23521_v58 }
 0x2e2   : > { %v20174_v55 = vpop.f32.mrb[96].mxu0 }
 0x2e3   : > { %v20176_v57 = vpop.f32.mrb[97].mxu0 }
 0x2e4   : > { %v20178_v59 = vpop.f32.mrb[98].mxu0 }
 0x2e5   : > { %v20180_v61 = vpop.f32.mrb[99].mxu0 }
 0x2e7   : > { %14986 = vmatmul.mubr.msk.bf16.gmra.mrb[8].mxu0 %vm968_vm1, %v19763_v8  ;;  %15100 = vmatmul.mubr.msk.bf16.gmra.mrb[12].mxu1 %vm968_vm1, %v19814_v23 }
 0x2e8   : > { %2016 = vmatprep.mubr.bf16.mxu0 %v23521_v58  ;;  %3232 = vmatprep.mubr.bf16.mxu1 %v23521_v58 }
 0x2ef   : > { %14987 = vmatmul.mubr.msk.bf16.gmra.mrb[12].mxu0 %vm968_vm1, %v19774_v11  ;;  %15101 = vmatmul.mubr.msk.bf16.gmra.mrb[16].mxu1 %vm968_vm1, %v19824_v26 }
 0x2f0   : > { %2026 = vmatprep.mubr.bf16.mxu0 %v23521_v58  ;;  %3242 = vmatprep.mubr.bf16.mxu1 %v23521_v58 }
 0x2f7   : > { %14988 = vmatmul.mubr.msk.bf16.gmra.mrb[16].mxu0 %vm968_vm1, %v19784_v14  ;;  %15102 = vmatmul.mubr.msk.bf16.gmra.mrb[20].mxu1 %vm968_vm1, %v19834_v33 }
 0x2f8   : > { %2036 = vmatprep.mubr.bf16.mxu0 %v23521_v58  ;;  %3252 = vmatprep.mubr.bf16.mxu1 %v23521_v58 }
 0x2ff   : > { %14989 = vmatmul.mubr.msk.bf16.gmra.mrb[20].mxu0 %vm968_vm1, %v19794_v17  ;;  %15103 = vmatmul.mubr.msk.bf16.gmra.mrb[24].mxu1 %vm968_vm1, %v19846_v37 }
 0x300   : > { %2046 = vmatprep.mubr.bf16.mxu0 %v23521_v58  ;;  %3262 = vmatprep.mubr.bf16.mxu1 %v23521_v58 }
 0x307   : > { %14990 = vmatmul.mubr.msk.bf16.gmra.mrb[24].mxu0 %vm968_vm1, %v19804_v20  ;;  %15104 = vmatmul.mubr.msk.bf16.gmra.mrb[28].mxu1 %vm968_vm1, %v19856_v41 }
 0x308   : > { %2056 = vmatprep.mubr.bf16.mxu0 %v23521_v58  ;;  %3272 = vmatprep.mubr.bf16.mxu1 %v23521_v58 }
 0x30f   : > { %14991 = vmatmul.mubr.msk.bf16.gmra.mrb[28].mxu0 %vm968_vm1, %v19814_v23  ;;  %15105 = vmatmul.mubr.msk.bf16.gmra.mrb[32].mxu1 %vm968_vm1, %v19866_v44 }
 0x310   : > { %2066 = vmatprep.mubr.bf16.mxu0 %v23521_v58  ;;  %3282 = vmatprep.mubr.bf16.mxu1 %v23521_v58 }
 0x317   : > { %14992 = vmatmul.mubr.msk.bf16.gmra.mrb[32].mxu0 %vm968_vm1, %v19824_v26  ;;  %15106 = vmatmul.mubr.msk.bf16.gmra.mrb[36].mxu1 %vm968_vm1, %v19876_v47 }
 0x318   : > { %2076 = vmatprep.mubr.bf16.mxu0 %v23521_v58  ;;  %3292 = vmatprep.mubr.bf16.mxu1 %v23521_v58 }
 0x31f   : > { %14993 = vmatmul.mubr.msk.bf16.gmra.mrb[36].mxu0 %vm968_vm1, %v19834_v33  ;;  %15107 = vmatmul.mubr.msk.bf16.gmra.mrb[40].mxu1 %vm968_vm1, %v19886_v50 }
 0x320   : > { %2086 = vmatprep.mubr.bf16.mxu0 %v23521_v58  ;;  %3302 = vmatprep.mubr.bf16.mxu1 %v23521_v58 }
 0x327   : > { %14994 = vmatmul.mubr.msk.bf16.gmra.mrb[40].mxu0 %vm968_vm1, %v19846_v37  ;;  %15108 = vmatmul.mubr.msk.bf16.gmra.mrb[44].mxu1 %vm968_vm1, %v19896_v53 }
 0x328   : > { %2096 = vmatprep.mubr.bf16.mxu0 %v23521_v58  ;;  %3312 = vmatprep.mubr.bf16.mxu1 %v23521_v58 }
 0x32f   : > { %14995 = vmatmul.mubr.msk.bf16.gmra.mrb[44].mxu0 %vm968_vm1, %v19856_v41  ;;  %15109 = vmatmul.mubr.msk.bf16.gmra.mrb[48].mxu1 %vm968_vm1, %v19906_v56 }
 0x330   : > { %2106 = vmatprep.mubr.bf16.mxu0 %v23521_v58  ;;  %3322 = vmatprep.mubr.bf16.mxu1 %v23521_v58 }
 0x337   : > { %14996 = vmatmul.mubr.msk.bf16.gmra.mrb[48].mxu0 %vm968_vm1, %v19866_v44  ;;  %15110 = vmatmul.mubr.msk.bf16.gmra.mrb[52].mxu1 %vm968_vm1, %v19916_v60 }
 0x338   : > { %2116 = vmatprep.mubr.bf16.mxu0 %v23521_v58  ;;  %3332 = vmatprep.mubr.bf16.mxu1 %v23521_v58 }
 0x33f   : > { %14997 = vmatmul.mubr.msk.bf16.gmra.mrb[52].mxu0 %vm968_vm1, %v19876_v47  ;;  %15111 = vmatmul.mubr.msk.bf16.gmra.mrb[56].mxu1 %vm968_vm1, %v19926_v63 }
 0x340   : > { %2126 = vmatprep.mubr.bf16.mxu0 %v23521_v58  ;;  %3342 = vmatprep.mubr.bf16.mxu1 %v23521_v58 }
 0x347   : > { %14998 = vmatmul.mubr.msk.bf16.gmra.mrb[56].mxu0 %vm968_vm1, %v19886_v50  ;;  %15112 = vmatmul.mubr.msk.bf16.gmra.mrb[60].mxu1 %vm968_vm1, %v19936_v2 }
 0x348   : > { %2136 = vmatprep.mubr.bf16.mxu0 %v23521_v58  ;;  %3352 = vmatprep.mubr.bf16.mxu1 %v23521_v58 }
 0x34f   : > { %14999 = vmatmul.mubr.msk.bf16.gmra.mrb[60].mxu0 %vm968_vm1, %v19896_v53  ;;  %15113 = vmatmul.mubr.msk.bf16.gmra.mrb[64].mxu1 %vm968_vm1, %v19946_v5 }
 0x350   : > { %2146 = vmatprep.mubr.bf16.mxu0 %v23521_v58  ;;  %3362 = vmatprep.mubr.bf16.mxu1 %v23521_v58 }
 0x357   : > { %15000 = vmatmul.mubr.msk.bf16.gmra.mrb[64].mxu0 %vm968_vm1, %v19906_v56  ;;  %15114 = vmatmul.mubr.msk.bf16.gmra.mrb[68].mxu1 %vm968_vm1, %v19956_v10 }
 0x358   : > { %2156 = vmatprep.mubr.bf16.mxu0 %v23521_v58  ;;  %3372 = vmatprep.mubr.bf16.mxu1 %v23521_v58 }
 0x35f   : > { %15001 = vmatmul.mubr.msk.bf16.gmra.mrb[68].mxu0 %vm968_vm1, %v19916_v60  ;;  %15115 = vmatmul.mubr.msk.bf16.gmra.mrb[72].mxu1 %vm968_vm1, %v19966_v15 }
 0x360   : > { %2166 = vmatprep.mubr.bf16.mxu0 %v23521_v58  ;;  %3382 = vmatprep.mubr.bf16.mxu1 %v23521_v58 }
 0x367   : > { %15002 = vmatmul.mubr.msk.bf16.gmra.mrb[72].mxu0 %vm968_vm1, %v19926_v63  ;;  %15116 = vmatmul.mubr.msk.bf16.gmra.mrb[76].mxu1 %vm968_vm1, %v19976_v19 }
 0x368   : > { %2176 = vmatprep.mubr.bf16.mxu0 %v23521_v58  ;;  %3392 = vmatprep.mubr.bf16.mxu1 %v23521_v58 }
 0x36f   : > { %15003 = vmatmul.mubr.msk.bf16.gmra.mrb[76].mxu0 %vm968_vm1, %v19936_v2  ;;  %15117 = vmatmul.mubr.msk.bf16.gmra.mrb[80].mxu1 %vm968_vm1, %v19986_v24 }
 0x370   : > { %2186 = vmatprep.mubr.bf16.mxu0 %v23521_v58  ;;  %3402 = vmatprep.mubr.bf16.mxu1 %v23521_v58 }
 0x377   : > { %15004 = vmatmul.mubr.msk.bf16.gmra.mrb[80].mxu0 %vm968_vm1, %v19946_v5  ;;  %15118 = vmatmul.mubr.msk.bf16.gmra.mrb[84].mxu1 %vm968_vm1, %v20294_v13 }
 0x378   : > { %2196 = vmatprep.mubr.bf16.mxu0 %v23521_v58  ;;  %3412 = vmatprep.mubr.bf16.mxu1 %v23521_v58 }
 0x37f   : > { %15005 = vmatmul.mubr.msk.bf16.gmra.mrb[84].mxu0 %vm968_vm1, %v19956_v10  ;;  %15119 = vmatmul.mubr.msk.bf16.gmra.mrb[88].mxu1 %vm968_vm1, %v20304_v21 }
 0x380   : > { %2206 = vmatprep.mubr.bf16.mxu0 %v23521_v58  ;;  %4073 = vmatprep.mubr.bf16.mxu1 %v23521_v58 }
 0x387   : > { %15006 = vmatmul.mubr.msk.bf16.gmra.mrb[88].mxu0 %vm968_vm1, %v19966_v15  ;;  %15183 = vmatmul.mubr.msk.bf16.vlgmr.msra.gmra.mrb[92].mxu1 %vm968_vm1, %v19763_v8 }
 0x388   : > { %2216 = vmatprep.mubr.bf16.mxu0 %v23521_v58  ;;  %4083 = vmatprep.mubr.bf16.mxu1 %v23521_v58 }
 0x38f   : > { %15007 = vmatmul.mubr.msk.bf16.gmra.mrb[92].mxu0 %vm968_vm1, %v19976_v19  ;;  %15184 = vmatmul.mubr.msk.bf16.gmra.mrb[0].mxu1 %vm968_vm1, %v19774_v11 }
 0x390   : > { %2532 = vmatprep.mubr.bf16.mxu0 %v23521_v58  ;;  %4093 = vmatprep.mubr.bf16.mxu1 %v23521_v58 }
 0x397   : > { %15034 = vmatmul.mubr.msk.bf16.vlgmr.msra.gmra.mrb[100].mxu0 %vm968_vm1, %v19996_v28  ;;  %15185 = vmatmul.mubr.msk.bf16.gmra.mrb[4].mxu1 %vm968_vm1, %v19784_v14  ;;  %v17940_v28 = vld [vmem:[#allocation4 + $0x188] ss:$24 sps:$4 sm:$0xff]  }
 0x398   : > { %2878 = vmatpush1.bf16.msra.mxu0 %v17934_v22  ;;  %2542 = vmatprep.mubr.bf16.mxu0 %v23521_v58 }
 0x399   : > { %4103 = vmatprep.mubr.bf16.mxu1 %v23521_v58  ;;  %15070 = vmatprep.subr.msk.bf16.mxu0 %vm1041_vm0, %v17937_v25 }
 0x39c   : > { %2880 = vmatpush1.bf16.msra.mxu0 %v2860_v29 }
 0x39d   : > { %3423 = vmatprep.subr.bf16.mxu0 %v17948_v34 }
 0x39f   : > { %15035 = vmatmul.mubr.msk.bf16.gmra.mrb[104].mxu0 %vm968_vm1, %v19761_v7  ;;  %15186 = vmatmul.mubr.msk.bf16.gmra.mrb[8].mxu1 %vm968_vm1, %v19794_v17  ;;  %v17942_v7 = vld [vmem:[#allocation4 + $0x18c] ss:$24 sps:$4 sm:$0xff]  }
 0x3a0   : > { %2552 = vmatprep.mubr.bf16.mxu0 %v23521_v58  ;;  %4113 = vmatprep.mubr.bf16.mxu1 %v23521_v58 }
 0x3a1   : > { %5236 = vmatprep.subr.bf16.mxu1 %v17942_v7 }
 0x3a2   : > { %5237 = vmatpush1.bf16.msra.mxu1 %v17940_v28 }
 0x3a3   : > { %15269 = vmatprep.subr.msk.bf16.mxu1 %vm1041_vm0, %v17943_v30 }
 0x3a6   : > { %5239 = vmatpush1.bf16.msra.mxu1 %v4952_v32 }
 0x3a7   : > { %15036 = vmatmul.mubr.msk.bf16.gmra.mrb[108].mxu0 %vm968_vm1, %v19763_v8  ;;  %15187 = vmatmul.mubr.msk.bf16.gmra.mrb[12].mxu1 %vm968_vm1, %v19804_v20 }
 0x3a8   : > { %2562 = vmatprep.mubr.bf16.mxu0 %v23521_v58  ;;  %4123 = vmatprep.mubr.bf16.mxu1 %v23521_v58 }
 0x3af   : > { %15037 = vmatmul.mubr.msk.bf16.gmra.mrb[112].mxu0 %vm968_vm1, %v19774_v11  ;;  %15188 = vmatmul.mubr.msk.bf16.gmra.mrb[16].mxu1 %vm968_vm1, %v19814_v23 }
 0x3b0   : > { %2572 = vmatprep.mubr.bf16.mxu0 %v23521_v58  ;;  %4133 = vmatprep.mubr.bf16.mxu1 %v23521_v58 }
 0x3b7   : > { %15038 = vmatmul.mubr.msk.bf16.gmra.mrb[116].mxu0 %vm968_vm1, %v19784_v14  ;;  %15189 = vmatmul.mubr.msk.bf16.gmra.mrb[20].mxu1 %vm968_vm1, %v19824_v26 }
 0x3b8   : > { %2582 = vmatprep.mubr.bf16.mxu0 %v23521_v58  ;;  %4143 = vmatprep.mubr.bf16.mxu1 %v23521_v58 }
 0x3bf   : > { %15039 = vmatmul.mubr.msk.bf16.gmra.mrb[120].mxu0 %vm968_vm1, %v19794_v17  ;;  %15190 = vmatmul.mubr.msk.bf16.gmra.mrb[24].mxu1 %vm968_vm1, %v19834_v33 }
 0x3c0   : > { %2592 = vmatprep.mubr.bf16.mxu0 %v23521_v58  ;;  %4153 = vmatprep.mubr.bf16.mxu1 %v23521_v58 }
 0x3c7   : > { %15040 = vmatmul.mubr.msk.bf16.gmra.mrb[124].mxu0 %vm968_vm1, %v19804_v20  ;;  %15191 = vmatmul.mubr.msk.bf16.gmra.mrb[28].mxu1 %vm968_vm1, %v19846_v37 }
 0x3c8   : > { %2602 = vmatprep.mubr.bf16.mxu0 %v23521_v58  ;;  %4163 = vmatprep.mubr.bf16.mxu1 %v23521_v58 }
 0x3cf   : > { %15041 = vmatmul.mubr.msk.bf16.gmra.mrb[128].mxu0 %vm968_vm1, %v19814_v23  ;;  %15192 = vmatmul.mubr.msk.bf16.gmra.mrb[32].mxu1 %vm968_vm1, %v19856_v41 }
 0x3d0   : > { %2612 = vmatprep.mubr.bf16.mxu0 %v23521_v58  ;;  %4173 = vmatprep.mubr.bf16.mxu1 %v23521_v58 }
 0x3d7   : > { %15042 = vmatmul.mubr.msk.bf16.gmra.mrb[132].mxu0 %vm968_vm1, %v19824_v26  ;;  %15193 = vmatmul.mubr.msk.bf16.gmra.mrb[36].mxu1 %vm968_vm1, %v19866_v44 }
 0x3d8   : > { %2622 = vmatprep.mubr.bf16.mxu0 %v23521_v58  ;;  %4183 = vmatprep.mubr.bf16.mxu1 %v23521_v58 }
 0x3df   : > { %15043 = vmatmul.mubr.msk.bf16.gmra.mrb[136].mxu0 %vm968_vm1, %v19834_v33  ;;  %15194 = vmatmul.mubr.msk.bf16.gmra.mrb[40].mxu1 %vm968_vm1, %v19876_v47 }
 0x3e0   : > { %2632 = vmatprep.mubr.bf16.mxu0 %v23521_v58  ;;  %4193 = vmatprep.mubr.bf16.mxu1 %v23521_v58 }
 0x3e7   : > { %15044 = vmatmul.mubr.msk.bf16.gmra.mrb[140].mxu0 %vm968_vm1, %v19846_v37  ;;  %15195 = vmatmul.mubr.msk.bf16.gmra.mrb[44].mxu1 %vm968_vm1, %v19886_v50 }
 0x3e8   : > { %2642 = vmatprep.mubr.bf16.mxu0 %v23521_v58  ;;  %4203 = vmatprep.mubr.bf16.mxu1 %v23521_v58 }
 0x3ef   : > { %15045 = vmatmul.mubr.msk.bf16.gmra.mrb[144].mxu0 %vm968_vm1, %v19856_v41  ;;  %15196 = vmatmul.mubr.msk.bf16.gmra.mrb[48].mxu1 %vm968_vm1, %v19896_v53 }
 0x3f0   : > { %2652 = vmatprep.mubr.bf16.mxu0 %v23521_v58  ;;  %4213 = vmatprep.mubr.bf16.mxu1 %v23521_v58 }
 0x3f7   : > { %15046 = vmatmul.mubr.msk.bf16.gmra.mrb[148].mxu0 %vm968_vm1, %v19866_v44  ;;  %15197 = vmatmul.mubr.msk.bf16.gmra.mrb[52].mxu1 %vm968_vm1, %v19906_v56 }
 0x3f8   : > { %2662 = vmatprep.mubr.bf16.mxu0 %v23521_v58  ;;  %4223 = vmatprep.mubr.bf16.mxu1 %v23521_v58 }
 0x3ff   : > { %15047 = vmatmul.mubr.msk.bf16.gmra.mrb[152].mxu0 %vm968_vm1, %v19876_v47  ;;  %15198 = vmatmul.mubr.msk.bf16.gmra.mrb[56].mxu1 %vm968_vm1, %v19916_v60 }
 0x400   : > { %2672 = vmatprep.mubr.bf16.mxu0 %v23521_v58  ;;  %4233 = vmatprep.mubr.bf16.mxu1 %v23521_v58 }
 0x407   : > { %15048 = vmatmul.mubr.msk.bf16.gmra.mrb[156].mxu0 %vm968_vm1, %v19886_v50  ;;  %15199 = vmatmul.mubr.msk.bf16.gmra.mrb[60].mxu1 %vm968_vm1, %v19926_v63 }
 0x408   : > { %2682 = vmatprep.mubr.bf16.mxu0 %v23521_v58  ;;  %4243 = vmatprep.mubr.bf16.mxu1 %v23521_v58 }
 0x40f   : > { %15049 = vmatmul.mubr.msk.bf16.gmra.mrb[160].mxu0 %vm968_vm1, %v19896_v53  ;;  %15200 = vmatmul.mubr.msk.bf16.gmra.mrb[64].mxu1 %vm968_vm1, %v19936_v2 }
 0x410   : > { %2692 = vmatprep.mubr.bf16.mxu0 %v23521_v58  ;;  %4253 = vmatprep.mubr.bf16.mxu1 %v23521_v58 }
 0x417   : > { %15050 = vmatmul.mubr.msk.bf16.gmra.mrb[164].mxu0 %vm968_vm1, %v19906_v56  ;;  %15201 = vmatmul.mubr.msk.bf16.gmra.mrb[68].mxu1 %vm968_vm1, %v19946_v5 }
 0x418   : > { %2702 = vmatprep.mubr.bf16.mxu0 %v23521_v58  ;;  %4263 = vmatprep.mubr.bf16.mxu1 %v23521_v58 }
 0x41f   : > { %15051 = vmatmul.mubr.msk.bf16.gmra.mrb[168].mxu0 %vm968_vm1, %v19916_v60  ;;  %15202 = vmatmul.mubr.msk.bf16.gmra.mrb[72].mxu1 %vm968_vm1, %v19956_v10 }
 0x420   : > { %2712 = vmatprep.mubr.bf16.mxu0 %v23521_v58  ;;  %4273 = vmatprep.mubr.bf16.mxu1 %v23521_v58 }
 0x427   : > { %15052 = vmatmul.mubr.msk.bf16.gmra.mrb[172].mxu0 %vm968_vm1, %v19926_v63  ;;  %15203 = vmatmul.mubr.msk.bf16.gmra.mrb[76].mxu1 %vm968_vm1, %v19966_v15 }
 0x428   : > { %2722 = vmatprep.mubr.bf16.mxu0 %v23521_v58  ;;  %4283 = vmatprep.mubr.bf16.mxu1 %v23521_v58 }
 0x42f   : > { %15053 = vmatmul.mubr.msk.bf16.gmra.mrb[176].mxu0 %vm968_vm1, %v19936_v2  ;;  %15204 = vmatmul.mubr.msk.bf16.gmra.mrb[80].mxu1 %vm968_vm1, %v19976_v19 }
 0x430   : > { %2732 = vmatprep.mubr.bf16.mxu0 %v23521_v58  ;;  %4293 = vmatprep.mubr.bf16.mxu1 %v23521_v58 }
 0x437   : > { %15054 = vmatmul.mubr.msk.bf16.gmra.mrb[180].mxu0 %vm968_vm1, %v19946_v5  ;;  %15205 = vmatmul.mubr.msk.bf16.gmra.mrb[84].mxu1 %vm968_vm1, %v19986_v24 }
 0x438   : > { %2742 = vmatprep.mubr.bf16.mxu0 %v23521_v58  ;;  %4303 = vmatprep.mubr.bf16.mxu1 %v23521_v58 }
 0x43f   : > { %15055 = vmatmul.mubr.msk.bf16.gmra.mrb[184].mxu0 %vm968_vm1, %v19956_v10  ;;  %15206 = vmatmul.mubr.msk.bf16.gmra.mrb[88].mxu1 %vm968_vm1, %v20294_v13 }
 0x440   : > { %2752 = vmatprep.mubr.bf16.mxu0 %v23521_v58  ;;  %5268 = vmatprep.mubr.bf16.mxu1 %v23521_v58 }
 0x447   : > { %15056 = vmatmul.mubr.msk.bf16.gmra.mrb[188].mxu0 %vm968_vm1, %v19966_v15  ;;  %15270 = vmatmul.mubr.msk.bf16.vlgmr.msra.gmra.mrb[92].mxu1 %vm968_vm1, %v19784_v14 }
 0x448   : > { %2762 = vmatprep.mubr.bf16.mxu0 %v23521_v58  ;;  %5278 = vmatprep.mubr.bf16.mxu1 %v23521_v58 }
 0x44f   : > { %15057 = vmatmul.mubr.msk.bf16.gmra.mrb[192].mxu0 %vm968_vm1, %v19976_v19  ;;  %15271 = vmatmul.mubr.msk.bf16.gmra.mrb[0].mxu1 %vm968_vm1, %v19794_v17 }
 0x450   : > { %2909 = vmatprep.mubr.bf16.mxu0 %v23521_v58  ;;  %5288 = vmatprep.mubr.bf16.mxu1 %v23521_v58 }
 0x457   : > { %15071 = vmatmul.mubr.msk.bf16.vlgmr.msra.gmra.mrb[0].mxu0 %vm968_vm1, %v19774_v11  ;;  %15272 = vmatmul.mubr.msk.bf16.gmra.mrb[4].mxu1 %vm968_vm1, %v19804_v20 }
 0x458   : > { %3424 = vmatpush1.bf16.msra.mxu0 %v17946_v35  ;;  %2919 = vmatprep.mubr.bf16.mxu0 %v23521_v58 }
 0x459   : > { %15120 = vmatprep.subr.msk.bf16.mxu0 %vm1041_vm0, %v17949_v36  ;;  %5298 = vmatprep.mubr.bf16.mxu1 %v23521_v58 }
 0x45c   : > { %3426 = vmatpush1.bf16.msra.mxu0 %v2872_v39 }
 0x45d   : > { %3768 = vmatprep.subr.bf16.mxu0 %v17954_v40 }
 0x45f   : > { %15072 = vmatmul.mubr.msk.bf16.gmra.mrb[4].mxu0 %vm968_vm1, %v19784_v14  ;;  %15273 = vmatmul.mubr.msk.bf16.gmra.mrb[8].mxu1 %vm968_vm1, %v19814_v23 }
 0x460   : > { %2929 = vmatprep.mubr.bf16.mxu0 %v23521_v58  ;;  %5308 = vmatprep.mubr.bf16.mxu1 %v23521_v58 }
 0x467   : > { %15073 = vmatmul.mubr.msk.bf16.gmra.mrb[8].mxu0 %vm968_vm1, %v19794_v17  ;;  %15274 = vmatmul.mubr.msk.bf16.gmra.mrb[12].mxu1 %vm968_vm1, %v19824_v26 }
 0x468   : > { %2939 = vmatprep.mubr.bf16.mxu0 %v23521_v58  ;;  %5318 = vmatprep.mubr.bf16.mxu1 %v23521_v58 }
 0x46f   : > { %15074 = vmatmul.mubr.msk.bf16.gmra.mrb[12].mxu0 %vm968_vm1, %v19804_v20  ;;  %15275 = vmatmul.mubr.msk.bf16.gmra.mrb[16].mxu1 %vm968_vm1, %v19834_v33 }
 0x470   : > { %2949 = vmatprep.mubr.bf16.mxu0 %v23521_v58  ;;  %5328 = vmatprep.mubr.bf16.mxu1 %v23521_v58 }
 0x477   : > { %15075 = vmatmul.mubr.msk.bf16.gmra.mrb[16].mxu0 %vm968_vm1, %v19814_v23  ;;  %15276 = vmatmul.mubr.msk.bf16.gmra.mrb[20].mxu1 %vm968_vm1, %v19846_v37 }
 0x478   : > { %2959 = vmatprep.mubr.bf16.mxu0 %v23521_v58  ;;  %5338 = vmatprep.mubr.bf16.mxu1 %v23521_v58 }
 0x47f   : > { %15076 = vmatmul.mubr.msk.bf16.gmra.mrb[20].mxu0 %vm968_vm1, %v19824_v26  ;;  %15277 = vmatmul.mubr.msk.bf16.gmra.mrb[24].mxu1 %vm968_vm1, %v19856_v41 }
 0x480   : > { %2969 = vmatprep.mubr.bf16.mxu0 %v23521_v58  ;;  %5348 = vmatprep.mubr.bf16.mxu1 %v23521_v58 }
 0x487   : > { %15077 = vmatmul.mubr.msk.bf16.gmra.mrb[24].mxu0 %vm968_vm1, %v19834_v33  ;;  %15278 = vmatmul.mubr.msk.bf16.gmra.mrb[28].mxu1 %vm968_vm1, %v19866_v44 }
 0x488   : > { %2979 = vmatprep.mubr.bf16.mxu0 %v23521_v58  ;;  %5358 = vmatprep.mubr.bf16.mxu1 %v23521_v58 }
 0x48f   : > { %15078 = vmatmul.mubr.msk.bf16.gmra.mrb[28].mxu0 %vm968_vm1, %v19846_v37  ;;  %15279 = vmatmul.mubr.msk.bf16.gmra.mrb[32].mxu1 %vm968_vm1, %v19876_v47 }
 0x490   : > { %2989 = vmatprep.mubr.bf16.mxu0 %v23521_v58  ;;  %5368 = vmatprep.mubr.bf16.mxu1 %v23521_v58 }
 0x497   : > { %15079 = vmatmul.mubr.msk.bf16.gmra.mrb[32].mxu0 %vm968_vm1, %v19856_v41  ;;  %15280 = vmatmul.mubr.msk.bf16.gmra.mrb[36].mxu1 %vm968_vm1, %v19886_v50 }
 0x498   : > { %2999 = vmatprep.mubr.bf16.mxu0 %v23521_v58  ;;  %5378 = vmatprep.mubr.bf16.mxu1 %v23521_v58 }
 0x49f   : > { %15080 = vmatmul.mubr.msk.bf16.gmra.mrb[36].mxu0 %vm968_vm1, %v19866_v44  ;;  %15281 = vmatmul.mubr.msk.bf16.gmra.mrb[40].mxu1 %vm968_vm1, %v19896_v53 }
 0x4a0   : > { %3009 = vmatprep.mubr.bf16.mxu0 %v23521_v58  ;;  %5388 = vmatprep.mubr.bf16.mxu1 %v23521_v58 }
 0x4a7   : > { %15081 = vmatmul.mubr.msk.bf16.gmra.mrb[40].mxu0 %vm968_vm1, %v19876_v47  ;;  %15282 = vmatmul.mubr.msk.bf16.gmra.mrb[44].mxu1 %vm968_vm1, %v19906_v56 }
 0x4a8   : > { %3019 = vmatprep.mubr.bf16.mxu0 %v23521_v58  ;;  %5398 = vmatprep.mubr.bf16.mxu1 %v23521_v58 }
 0x4af   : > { %15082 = vmatmul.mubr.msk.bf16.gmra.mrb[44].mxu0 %vm968_vm1, %v19886_v50  ;;  %15283 = vmatmul.mubr.msk.bf16.gmra.mrb[48].mxu1 %vm968_vm1, %v19916_v60 }
 0x4b0   : > { %3029 = vmatprep.mubr.bf16.mxu0 %v23521_v58  ;;  %5408 = vmatprep.mubr.bf16.mxu1 %v23521_v58 }
 0x4b7   : > { %15083 = vmatmul.mubr.msk.bf16.gmra.mrb[48].mxu0 %vm968_vm1, %v19896_v53  ;;  %15284 = vmatmul.mubr.msk.bf16.gmra.mrb[52].mxu1 %vm968_vm1, %v19926_v63 }
 0x4b8   : > { %3039 = vmatprep.mubr.bf16.mxu0 %v23521_v58  ;;  %5418 = vmatprep.mubr.bf16.mxu1 %v23521_v58 }
 0x4bf   : > { %15084 = vmatmul.mubr.msk.bf16.gmra.mrb[52].mxu0 %vm968_vm1, %v19906_v56  ;;  %15285 = vmatmul.mubr.msk.bf16.gmra.mrb[56].mxu1 %vm968_vm1, %v19936_v2 }
 0x4c0   : > { %3049 = vmatprep.mubr.bf16.mxu0 %v23521_v58  ;;  %5428 = vmatprep.mubr.bf16.mxu1 %v23521_v58 }
 0x4c7   : > { %15085 = vmatmul.mubr.msk.bf16.gmra.mrb[56].mxu0 %vm968_vm1, %v19916_v60  ;;  %15286 = vmatmul.mubr.msk.bf16.gmra.mrb[60].mxu1 %vm968_vm1, %v19946_v5 }
 0x4c8   : > { %3059 = vmatprep.mubr.bf16.mxu0 %v23521_v58  ;;  %5438 = vmatprep.mubr.bf16.mxu1 %v23521_v58 }
 0x4cf   : > { %15086 = vmatmul.mubr.msk.bf16.gmra.mrb[60].mxu0 %vm968_vm1, %v19926_v63  ;;  %15287 = vmatmul.mubr.msk.bf16.gmra.mrb[64].mxu1 %vm968_vm1, %v19956_v10 }
 0x4d0   : > { %3069 = vmatprep.mubr.bf16.mxu0 %v23521_v58  ;;  %5448 = vmatprep.mubr.bf16.mxu1 %v23521_v58 }
 0x4d7   : > { %15087 = vmatmul.mubr.msk.bf16.gmra.mrb[64].mxu0 %vm968_vm1, %v19936_v2  ;;  %15288 = vmatmul.mubr.msk.bf16.gmra.mrb[68].mxu1 %vm968_vm1, %v19966_v15 }
 0x4d8   : > { %3079 = vmatprep.mubr.bf16.mxu0 %v23521_v58  ;;  %5458 = vmatprep.mubr.bf16.mxu1 %v23521_v58 }
 0x4df   : > { %15088 = vmatmul.mubr.msk.bf16.gmra.mrb[68].mxu0 %vm968_vm1, %v19946_v5  ;;  %15289 = vmatmul.mubr.msk.bf16.gmra.mrb[72].mxu1 %vm968_vm1, %v19976_v19 }
 0x4e0   : > { %3089 = vmatprep.mubr.bf16.mxu0 %v23521_v58  ;;  %5468 = vmatprep.mubr.bf16.mxu1 %v23521_v58 }
 0x4e7   : > { %15089 = vmatmul.mubr.msk.bf16.gmra.mrb[72].mxu0 %vm968_vm1, %v19956_v10  ;;  %15290 = vmatmul.mubr.msk.bf16.gmra.mrb[76].mxu1 %vm968_vm1, %v19986_v24 }
 0x4e8   : > { %3099 = vmatprep.mubr.bf16.mxu0 %v23521_v58  ;;  %5478 = vmatprep.mubr.bf16.mxu1 %v23521_v58 }
 0x4ef   : > { %15090 = vmatmul.mubr.msk.bf16.gmra.mrb[76].mxu0 %vm968_vm1, %v19966_v15  ;;  %15291 = vmatmul.mubr.msk.bf16.gmra.mrb[80].mxu1 %vm968_vm1, %v20294_v13 }
 0x4f0   : > { %3109 = vmatprep.mubr.bf16.mxu0 %v23521_v58  ;;  %5488 = vmatprep.mubr.bf16.mxu1 %v23521_v58 }
 0x4f7   : > { %15091 = vmatmul.mubr.msk.bf16.gmra.mrb[80].mxu0 %vm968_vm1, %v19976_v19  ;;  %15292 = vmatmul.mubr.msk.bf16.gmra.mrb[84].mxu1 %vm968_vm1, %v20304_v21 }
 0x4f8   : > { %3119 = vmatprep.mubr.bf16.mxu0 %v23521_v58  ;;  %5498 = vmatprep.mubr.bf16.mxu1 %v23521_v58 }
 0x4ff   : > { %15092 = vmatmul.mubr.msk.bf16.gmra.mrb[84].mxu0 %vm968_vm1, %v19986_v24 }
 0x500   : > { %3129 = vmatprep.mubr.bf16.mxu0 %v23521_v58 }
 0x507   : > { %15093 = vmatmul.mubr.msk.bf16.gmra.mrb[88].mxu0 %vm968_vm1, %v20294_v13 }
 0x508   : > { %3139 = vmatprep.mubr.bf16.mxu0 %v23521_v58 }
 0x50f   : > { %15094 = vmatmul.mubr.msk.bf16.gmra.mrb[92].mxu0 %vm968_vm1, %v20304_v21 }
 0x510   : > { %3455 = vmatprep.mubr.bf16.mxu0 %v23521_v58 }
 0x517   : > { %15121 = vmatmul.mubr.msk.bf16.vlgmr.msra.gmra.mrb[100].mxu0 %vm968_vm1, %v19774_v11 }
 0x518   : > { %3769 = vmatpush1.bf16.msra.mxu0 %v17952_v42  ;;  %3465 = vmatprep.mubr.bf16.mxu0 %v23521_v58 }
 0x519   : > { %15157 = vmatprep.subr.msk.bf16.mxu0 %vm1041_vm0, %v17955_v43 }
 0x51a   : > { %v5270_v48 = vpop.f32.mrb[92].mxu1 }
 0x51b   : > { %v20615_v49 = vadd.f32 %v5270_v48, %v20174_v55  ;;  %v5272_v51 = vpop.f32.mrb[93].mxu1  ;;  %v859_v55 = vld [vmem:[%s19725_s28 + $0x1b0] sm:$0xff] }
 0x51c   : > { %v20618_v52 = vadd.f32 %v5272_v51, %v20176_v57  ;;  %v5274_v54 = vpop.f32.mrb[94].mxu1  ;;  %3771 = vmatpush1.bf16.msra.mxu0 %v3751_v46  ;;  %v860_v57 = vld [vmem:[%s19725_s28 + $0x1b8] sm:$0xff]  ;;  %s23868_s28 = sld [smem:[#allocation123_spill]] }
 0x51d   : > { %v20621_v62 = vadd.f32 %v5274_v54, %v20178_v59  ;;  %v5276_v0 = vpop.f32.mrb[95].mxu1  ;;  %v20646_v59 = vpack.c.bf16 %v860_v57, %v859_v55 }
 0x51e   : > { %v20624_v1 = vadd.f32 %v5276_v0, %v20180_v61  ;;  %v17960_v61 = vld [vmem:[#allocation4 + $0xd4] ss:$24 sps:$4 sm:$0xff]  }
 0x51f   : > { %15122 = vmatmul.mubr.msk.bf16.gmra.mrb[104].mxu0 %vm968_vm1, %v19784_v14  ;;  %23576 = vst [vmem:[#allocation34_spill] sm:$0xff] %v20646_v59  ;;  %15293 = vmatmul.mubr.msk.bf16.gmra.mrb[88].mxu1 %vm968_vm1, %v20646_v59 }
 0x520   : > { %3475 = vmatprep.mubr.bf16.mxu0 %v23521_v58  ;;  %4314 = vmatprep.subr.bf16.mxu0 %v17960_v61 }
 0x522   : > { %v20662_v3 = vpop.f32.mrb[0].mxu1 }
 0x523   : > { %v20664_v4 = vpop.f32.mrb[1].mxu1 }
 0x524   : > { %v20668_v6 = vpop.f32.mrb[2].mxu1 }
 0x525   : > { %23577 = vst [vmem:[#allocation35_spill] sm:$0xff] %v20668_v6  ;;  %v20671_v9 = vpop.f32.mrb[3].mxu1 }
 0x527   : > { %15123 = vmatmul.mubr.msk.bf16.gmra.mrb[108].mxu0 %vm968_vm1, %v19794_v17 }
 0x528   : > { %3485 = vmatprep.mubr.bf16.mxu0 %v23521_v58 }
 0x52a   : > { %v20673_v12 = vpop.f32.mrb[4].mxu1 }
 0x52b   : > { %23578 = vst [vmem:[#allocation36_spill] sm:$0xff] %v20673_v12  ;;  %v20675_v16 = vpop.f32.mrb[5].mxu1  ;;  %v17963_v12 = vld [vmem:[#allocation4 + $0x100] ss:$24 sps:$4 sm:$0x3f]  }
 0x52c   : > { %v20679_v18 = vpop.f32.mrb[6].mxu1 }
 0x52d   : > { %23579 = vst [vmem:[#allocation37_spill] sm:$0xff] %v20679_v18  ;;  %v20682_v22 = vpop.f32.mrb[7].mxu1 }
 0x52f   : > { %15124 = vmatmul.mubr.msk.bf16.gmra.mrb[112].mxu0 %vm968_vm1, %v19804_v20 }
 0x530   : > { %3495 = vmatprep.mubr.bf16.mxu0 %v23521_v58 }
 0x532   : > { %v20684_v25 = vpop.f32.mrb[8].mxu1 }
 0x533   : > { %23580 = vst [vmem:[#allocation38_spill] sm:$0xff] %v20684_v25  ;;  %v20686_v27 = vpop.f32.mrb[9].mxu1 }
 0x534   : > { %v20690_v29 = vpop.f32.mrb[10].mxu1 }
 0x535   : > { %23581 = vst [vmem:[#allocation39_spill] sm:$0xff] %v20690_v29  ;;  %v20693_v7 = vpop.f32.mrb[11].mxu1 }
 0x537   : > { %15125 = vmatmul.mubr.msk.bf16.gmra.mrb[116].mxu0 %vm968_vm1, %v19814_v23 }
 0x538   : > { %3505 = vmatprep.mubr.bf16.mxu0 %v23521_v58 }
 0x53a   : > { %v20695_v28 = vpop.f32.mrb[12].mxu1 }
 0x53b   : > { %23582 = vst [vmem:[#allocation40_spill] sm:$0xff] %v20695_v28  ;;  %v20697_v30 = vpop.f32.mrb[13].mxu1 }
 0x53c   : > { %v20701_v31 = vpop.f32.mrb[14].mxu1 }
 0x53d   : > { %23583 = vst [vmem:[#allocation41_spill] sm:$0xff] %v20701_v31  ;;  %v20704_v32 = vpop.f32.mrb[15].mxu1 }
 0x53f   : > { %15126 = vmatmul.mubr.msk.bf16.gmra.mrb[120].mxu0 %vm968_vm1, %v19824_v26 }
 0x540   : > { %3515 = vmatprep.mubr.bf16.mxu0 %v23521_v58 }
 0x542   : > { %v20706_v34 = vpop.f32.mrb[16].mxu1 }
 0x543   : > { %23584 = vst [vmem:[#allocation42_spill] sm:$0xff] %v20706_v34  ;;  %v20708_v35 = vpop.f32.mrb[17].mxu1 }
 0x544   : > { %v20712_v36 = vpop.f32.mrb[18].mxu1 }
 0x545   : > { %23585 = vst [vmem:[#allocation43_spill] sm:$0xff] %v20712_v36  ;;  %v20715_v38 = vpop.f32.mrb[19].mxu1 }
 0x547   : > { %15127 = vmatmul.mubr.msk.bf16.gmra.mrb[124].mxu0 %vm968_vm1, %v19834_v33 }
 0x548   : > { %3525 = vmatprep.mubr.bf16.mxu0 %v23521_v58 }
 0x54a   : > { %v20717_v39 = vpop.f32.mrb[20].mxu1 }
 0x54b   : > { %23586 = vst [vmem:[#allocation44_spill] sm:$0xff] %v20717_v39  ;;  %v20719_v40 = vpop.f32.mrb[21].mxu1 }
 0x54c   : > { %v20723_v42 = vpop.f32.mrb[22].mxu1 }
 0x54d   : > { %23587 = vst [vmem:[#allocation45_spill] sm:$0xff] %v20723_v42  ;;  %v20726_v43 = vpop.f32.mrb[23].mxu1 }
 0x54f   : > { %15128 = vmatmul.mubr.msk.bf16.gmra.mrb[128].mxu0 %vm968_vm1, %v19846_v37 }
 0x550   : > { %3535 = vmatprep.mubr.bf16.mxu0 %v23521_v58 }
 0x552   : > { %v20728_v45 = vpop.f32.mrb[24].mxu1 }
 0x553   : > { %23588 = vst [vmem:[#allocation46_spill] sm:$0xff] %v20728_v45  ;;  %v20730_v46 = vpop.f32.mrb[25].mxu1 }
 0x554   : > { %v20734_v48 = vpop.f32.mrb[26].mxu1 }
 0x555   : > { %23589 = vst [vmem:[#allocation47_spill] sm:$0xff] %v20734_v48  ;;  %v20737_v51 = vpop.f32.mrb[27].mxu1 }
 0x557   : > { %15129 = vmatmul.mubr.msk.bf16.gmra.mrb[132].mxu0 %vm968_vm1, %v19856_v41 }
 0x558   : > { %3545 = vmatprep.mubr.bf16.mxu0 %v23521_v58 }
 0x55a   : > { %v20739_v54 = vpop.f32.mrb[28].mxu1 }
 0x55b   : > { %23590 = vst [vmem:[#allocation48_spill] sm:$0xff] %v20739_v54  ;;  %v20741_v0 = vpop.f32.mrb[29].mxu1 }
 0x55c   : > { %v20745_v55 = vpop.f32.mrb[30].mxu1 }
 0x55d   : > { %23591 = vst [vmem:[#allocation49_spill] sm:$0xff] %v20745_v55  ;;  %v20748_v57 = vpop.f32.mrb[31].mxu1 }
 0x55f   : > { %15130 = vmatmul.mubr.msk.bf16.gmra.mrb[136].mxu0 %vm968_vm1, %v19866_v44 }
 0x560   : > { %3555 = vmatprep.mubr.bf16.mxu0 %v23521_v58 }
 0x562   : > { %v20750_v61 = vpop.f32.mrb[32].mxu1 }
 0x563   : > { %23592 = vst [vmem:[#allocation50_spill] sm:$0xff] %v20750_v61  ;;  %v20752_v48 = vpop.f32.mrb[33].mxu1 }
 0x564   : > { %v20756_v45 = vpop.f32.mrb[34].mxu1 }
 0x565   : > { %23593 = vst [vmem:[#allocation51_spill] sm:$0xff] %v20756_v45  ;;  %v20759_v54 = vpop.f32.mrb[35].mxu1 }
 0x567   : > { %15131 = vmatmul.mubr.msk.bf16.gmra.mrb[140].mxu0 %vm968_vm1, %v19876_v47 }
 0x568   : > { %3565 = vmatprep.mubr.bf16.mxu0 %v23521_v58 }
 0x56a   : > { %v20761_v42 = vpop.f32.mrb[36].mxu1 }
 0x56b   : > { %23594 = vst [vmem:[#allocation52_spill] sm:$0xff] %v20761_v42  ;;  %v20763_v55 = vpop.f32.mrb[37].mxu1 }
 0x56c   : > { %v20768_v61 = vpop.f32.mrb[38].mxu1 }
 0x56d   : > { %23595 = vst [vmem:[#allocation53_spill] sm:$0xff] %v20768_v61  ;;  %v20770_v39 = vpop.f32.mrb[39].mxu1 }
 0x56f   : > { %15132 = vmatmul.mubr.msk.bf16.gmra.mrb[144].mxu0 %vm968_vm1, %v19886_v50 }
 0x570   : > { %3575 = vmatprep.mubr.bf16.mxu0 %v23521_v58 }
 0x572   : > { %v20772_v36 = vpop.f32.mrb[40].mxu1 }
 0x573   : > { %23596 = vst [vmem:[#allocation54_spill] sm:$0xff] %v20772_v36  ;;  %v20774_v45 = vpop.f32.mrb[41].mxu1 }
 0x574   : > { %v20778_v34 = vpop.f32.mrb[42].mxu1 }
 0x575   : > { %23597 = vst [vmem:[#allocation55_spill] sm:$0xff] %v20778_v34  ;;  %v20781_v42 = vpop.f32.mrb[43].mxu1 }
 0x577   : > { %15133 = vmatmul.mubr.msk.bf16.gmra.mrb[148].mxu0 %vm968_vm1, %v19896_v53 }
 0x578   : > { %3585 = vmatprep.mubr.bf16.mxu0 %v23521_v58 }
 0x57a   : > { %v20783_v31 = vpop.f32.mrb[44].mxu1 }
 0x57b   : > { %23598 = vst [vmem:[#allocation56_spill] sm:$0xff] %v20783_v31  ;;  %v20785_v28 = vpop.f32.mrb[45].mxu1 }
 0x57c   : > { %23599 = vst [vmem:[#allocation57_spill] sm:$0xff] %v20785_v28  ;;  %v20789_v61 = vpop.f32.mrb[46].mxu1  ;;  %v17961_v28 = vld [vmem:[#allocation4 + $0x104] ss:$24 sps:$4 sm:$0x3f]  }
 0x57d   : > { %23600 = vst [vmem:[#allocation58_spill] sm:$0xff] %v20789_v61  ;;  %v20792_v36 = vpop.f32.mrb[47].mxu1  ;;  %v17958_v61 = vld [vmem:[#allocation4 + $0xd0] ss:$24 sps:$4 sm:$0xff]  }
 0x57f   : > { %15134 = vmatmul.mubr.msk.bf16.gmra.mrb[152].mxu0 %vm968_vm1, %v19906_v56 }
 0x580   : > { %3595 = vmatprep.mubr.bf16.mxu0 %v23521_v58 }
 0x582   : > { %v20794_v29 = vpop.f32.mrb[48].mxu1 }
 0x583   : > { %23601 = vst [vmem:[#allocation59_spill] sm:$0xff] %v20794_v29  ;;  %v20796_v34 = vpop.f32.mrb[49].mxu1 }
 0x584   : > { %23602 = vst [vmem:[#allocation60_spill] sm:$0xff] %v20796_v34  ;;  %v20800_v25 = vpop.f32.mrb[50].mxu1 }
 0x585   : > { %23603 = vst [vmem:[#allocation61_spill] sm:$0xff] %v20800_v25  ;;  %v20803_v31 = vpop.f32.mrb[51].mxu1 }
 0x586   : > { %23604 = vst [vmem:[#allocation62_spill] sm:$0xff] %v20803_v31  ;;  %v3763_v31 = vsel %vm1041_vm0, %v17963_v12, 0 }
 0x587   : > { %15135 = vmatmul.mubr.msk.bf16.gmra.mrb[156].mxu0 %vm968_vm1, %v19916_v60 }
 0x588   : > { %3605 = vmatprep.mubr.bf16.mxu0 %v23521_v58 }
 0x58a   : > { %v20805_v18 = vpop.f32.mrb[52].mxu1 }
 0x58b   : > { %23605 = vst [vmem:[#allocation63_spill] sm:$0xff] %v20805_v18  ;;  %v20807_v6 = vpop.f32.mrb[53].mxu1 }
 0x58c   : > { %23606 = vst [vmem:[#allocation64_spill] sm:$0xff] %v20807_v6  ;;  %v20811_v29 = vpop.f32.mrb[54].mxu1 }
 0x58d   : > { %23607 = vst [vmem:[#allocation65_spill] sm:$0xff] %v20811_v29  ;;  %v20814_v25 = vpop.f32.mrb[55].mxu1 }
 0x58e   : > { %23608 = vst [vmem:[#allocation66_spill] sm:$0xff] %v20814_v25 }
 0x58f   : > { %15136 = vmatmul.mubr.msk.bf16.gmra.mrb[160].mxu0 %vm968_vm1, %v19926_v63 }
 0x590   : > { %3615 = vmatprep.mubr.bf16.mxu0 %v23521_v58 }
 0x592   : > { %v20818_v18 = vpop.f32.mrb[56].mxu1 }
 0x593   : > { %23609 = vst [vmem:[#allocation67_spill] sm:$0xff] %v20818_v18  ;;  %v20820_v34 = vpop.f32.mrb[57].mxu1 }
 0x594   : > { %v20824_v6 = vpop.f32.mrb[58].mxu1 }
 0x595   : > { %23610 = vst [vmem:[#allocation68_spill] sm:$0xff] %v20824_v6 }
 0x597   : > { %15137 = vmatmul.mubr.msk.bf16.gmra.mrb[164].mxu0 %vm968_vm1, %v19936_v2 }
 0x598   : > { %3625 = vmatprep.mubr.bf16.mxu0 %v23521_v58 }
 0x59f   : > { %15138 = vmatmul.mubr.msk.bf16.gmra.mrb[168].mxu0 %vm968_vm1, %v19946_v5 }
 0x5a0   : > { %3635 = vmatprep.mubr.bf16.mxu0 %v23521_v58 }
 0x5a7   : > { %15139 = vmatmul.mubr.msk.bf16.gmra.mrb[172].mxu0 %vm968_vm1, %v19956_v10 }
 0x5a8   : > { %3645 = vmatprep.mubr.bf16.mxu0 %v23521_v58 }
 0x5af   : > { %15140 = vmatmul.mubr.msk.bf16.gmra.mrb[176].mxu0 %vm968_vm1, %v19966_v15 }
 0x5b0   : > { %3655 = vmatprep.mubr.bf16.mxu0 %v23521_v58 }
 0x5b7   : > { %15141 = vmatmul.mubr.msk.bf16.gmra.mrb[180].mxu0 %vm968_vm1, %v19976_v19 }
 0x5b8   : > { %3665 = vmatprep.mubr.bf16.mxu0 %v23521_v58 }
 0x5bf   : > { %15142 = vmatmul.mubr.msk.bf16.gmra.mrb[184].mxu0 %vm968_vm1, %v19986_v24 }
 0x5c0   : > { %3675 = vmatprep.mubr.bf16.mxu0 %v23521_v58 }
 0x5c7   : > { %15143 = vmatmul.mubr.msk.bf16.gmra.mrb[188].mxu0 %vm968_vm1, %v20294_v13 }
 0x5c8   : > { %3685 = vmatprep.mubr.bf16.mxu0 %v23521_v58 }
 0x5cf   : > { %15144 = vmatmul.mubr.msk.bf16.gmra.mrb[192].mxu0 %vm968_vm1, %v20304_v21 }
 0x5d0   : > { %3800 = vmatprep.mubr.bf16.mxu0 %v23521_v58 }
 0x5d7   : > { %15158 = vmatmul.mubr.msk.bf16.vlgmr.msra.gmra.mrb[0].mxu0 %vm968_vm1, %v19763_v8 }
 0x5d8   : > { %4315 = vmatpush1.bf16.msra.mxu0 %v17958_v61  ;;  %3810 = vmatprep.mubr.bf16.mxu0 %v23521_v58  ;;  %v20827_v61 = vpop.f32.mrb[59].mxu1 }
 0x5d9   : > { %15207 = vmatprep.subr.msk.bf16.mxu0 %vm1041_vm0, %v17961_v28  ;;  %23611 = vst [vmem:[#allocation69_spill] sm:$0xff] %v20827_v61  ;;  %v20829_v29 = vpop.f32.mrb[60].mxu1 }
 0x5da   : > { %23612 = vst [vmem:[#allocation70_spill] sm:$0xff] %v20829_v29  ;;  %v20831_v25 = vpop.f32.mrb[61].mxu1 }
 0x5db   : > { %23613 = vst [vmem:[#allocation71_spill] sm:$0xff] %v20831_v25  ;;  %v20835_v12 = vpop.f32.mrb[62].mxu1 }
 0x5dc   : > { %4317 = vmatpush1.bf16.msra.mxu0 %v3763_v31  ;;  %23614 = vst [vmem:[#allocation72_spill] sm:$0xff] %v20835_v12  ;;  %v20838_v28 = vpop.f32.mrb[63].mxu1 }
 0x5dd   : > { %23615 = vst [vmem:[#allocation73_spill] sm:$0xff] %v20838_v28  ;;  %v20840_v31 = vpop.f32.mrb[64].mxu1 }
 0x5de   : > { %23616 = vst [vmem:[#allocation74_spill] sm:$0xff] %v20840_v31  ;;  %v20842_v6 = vpop.f32.mrb[65].mxu1 }
 0x5df   : > { %15159 = vmatmul.mubr.msk.bf16.gmra.mrb[4].mxu0 %vm968_vm1, %v19774_v11  ;;  %23617 = vst [vmem:[#allocation75_spill] sm:$0xff] %v20842_v6  ;;  %v20846_v18 = vpop.f32.mrb[66].mxu1 }
 0x5e0   : > { %3820 = vmatprep.mubr.bf16.mxu0 %v23521_v58  ;;  %23618 = vst [vmem:[#allocation76_spill] sm:$0xff] %v20846_v18  ;;  %v20849_v29 = vpop.f32.mrb[67].mxu1 }
 0x5e1   : > { %23619 = vst [vmem:[#allocation77_spill] sm:$0xff] %v20849_v29  ;;  %v20851_v25 = vpop.f32.mrb[68].mxu1 }
 0x5e2   : > { %23620 = vst [vmem:[#allocation78_spill] sm:$0xff] %v20851_v25  ;;  %v20853_v12 = vpop.f32.mrb[69].mxu1 }
 0x5e3   : > { %23621 = vst [vmem:[#allocation79_spill] sm:$0xff] %v20853_v12  ;;  %v20857_v28 = vpop.f32.mrb[70].mxu1 }
 0x5e4   : > { %23622 = vst [vmem:[#allocation80_spill] sm:$0xff] %v20857_v28  ;;  %v20860_v31 = vpop.f32.mrb[71].mxu1 }
 0x5e5   : > { %23623 = vst [vmem:[#allocation81_spill] sm:$0xff] %v20860_v31  ;;  %v20862_v6 = vpop.f32.mrb[72].mxu1 }
 0x5e6   : > { %23624 = vst [vmem:[#allocation82_spill] sm:$0xff] %v20862_v6  ;;  %v20864_v18 = vpop.f32.mrb[73].mxu1 }
 0x5e7   : > { %15160 = vmatmul.mubr.msk.bf16.gmra.mrb[8].mxu0 %vm968_vm1, %v19784_v14  ;;  %23625 = vst [vmem:[#allocation83_spill] sm:$0xff] %v20864_v18  ;;  %v20868_v29 = vpop.f32.mrb[74].mxu1 }
 0x5e8   : > { %3830 = vmatprep.mubr.bf16.mxu0 %v23521_v58  ;;  %23626 = vst [vmem:[#allocation84_spill] sm:$0xff] %v20868_v29  ;;  %v20871_v25 = vpop.f32.mrb[75].mxu1 }
 0x5e9   : > { %23627 = vst [vmem:[#allocation85_spill] sm:$0xff] %v20871_v25  ;;  %v20873_v12 = vpop.f32.mrb[76].mxu1 }
 0x5ea   : > { %23628 = vst [vmem:[#allocation86_spill] sm:$0xff] %v20873_v12  ;;  %v20875_v28 = vpop.f32.mrb[77].mxu1 }
 0x5eb   : > { %23629 = vst [vmem:[#allocation87_spill] sm:$0xff] %v20875_v28  ;;  %v20879_v31 = vpop.f32.mrb[78].mxu1 }
 0x5ec   : > { %23630 = vst [vmem:[#allocation88_spill] sm:$0xff] %v20879_v31  ;;  %v20882_v6 = vpop.f32.mrb[79].mxu1 }
 0x5ed   : > { %23631 = vst [vmem:[#allocation89_spill] sm:$0xff] %v20882_v6  ;;  %v20884_v18 = vpop.f32.mrb[80].mxu1  ;;  %v17966_v6 = vld [vmem:[#allocation4 + $0x184] ss:$24 sps:$4 sm:$0xff]  }
 0x5ee   : > { %23632 = vst [vmem:[#allocation90_spill] sm:$0xff] %v20884_v18  ;;  %v20886_v29 = vpop.f32.mrb[81].mxu1  ;;  %4963 = vmatprep.subr.bf16.mxu0 %v17966_v6  ;;  %v17964_v6 = vld [vmem:[#allocation4 + $0x180] ss:$24 sps:$4 sm:$0xff]  }
 0x5ef   : > { %15161 = vmatmul.mubr.msk.bf16.gmra.mrb[12].mxu0 %vm968_vm1, %v19794_v17  ;;  %23633 = vst [vmem:[#allocation91_spill] sm:$0xff] %v20886_v29  ;;  %v20890_v25 = vpop.f32.mrb[82].mxu1 }
 0x5f0   : > { %3840 = vmatprep.mubr.bf16.mxu0 %v23521_v58  ;;  %23634 = vst [vmem:[#allocation92_spill] sm:$0xff] %v20890_v25  ;;  %v20893_v12 = vpop.f32.mrb[83].mxu1 }
 0x5f1   : > { %23635 = vst [vmem:[#allocation93_spill] sm:$0xff] %v20893_v12  ;;  %v20895_v28 = vpop.f32.mrb[84].mxu1 }
 0x5f2   : > { %23636 = vst [vmem:[#allocation94_spill] sm:$0xff] %v20895_v28  ;;  %v20897_v31 = vpop.f32.mrb[85].mxu1 }
 0x5f3   : > { %23637 = vst [vmem:[#allocation95_spill] sm:$0xff] %v20897_v31  ;;  %v20901_v18 = vpop.f32.mrb[86].mxu1 }
 0x5f4   : > { %23638 = vst [vmem:[#allocation96_spill] sm:$0xff] %v20901_v18  ;;  %v20904_v29 = vpop.f32.mrb[87].mxu1 }
 0x5f5   : > { %23639 = vst [vmem:[#allocation97_spill] sm:$0xff] %v20904_v29  ;;  %v20906_v25 = vpop.f32.mrb[88].mxu1 }
 0x5f6   : > { %23640 = vst [vmem:[#allocation98_spill] sm:$0xff] %v20906_v25  ;;  %v20908_v61 = vpop.f32.mrb[89].mxu1  ;;  %v17969_v25 = vld [vmem:[#allocation4 + $0x1b0] ss:$24 sps:$4 sm:$0x3f]  }
 0x5f7   : > { %15162 = vmatmul.mubr.msk.bf16.gmra.mrb[16].mxu0 %vm968_vm1, %v19804_v20  ;;  %23641 = vst [vmem:[#allocation99_spill] sm:$0xff] %v20908_v61  ;;  %v20912_v28 = vpop.f32.mrb[90].mxu1  ;;  %v4946_v18 = vsel %vm1041_vm0, %v17969_v25, 0  ;;  %v17975_v25 = vld [vmem:[#allocation4 + $0x1c0] ss:$24 sps:$4 sm:$0x3f]  }
 0x5f8   : > { %3850 = vmatprep.mubr.bf16.mxu0 %v23521_v58  ;;  %23642 = vst [vmem:[#allocation100_spill] sm:$0xff] %v20912_v28  ;;  %v20915_v31 = vpop.f32.mrb[91].mxu1  ;;  %v17967_v28 = vld [vmem:[#allocation4 + $0x1b4] ss:$24 sps:$4 sm:$0x3f]  }
 0x5f9   : > { %23643 = vst [vmem:[#allocation101_spill] sm:$0xff] %v20915_v31  ;;  %v21115_v61 = vld [vmem:[#allocation7] sm:$0x3f] }
 0x5ff   : > { %15163 = vmatmul.mubr.msk.bf16.gmra.mrb[20].mxu0 %vm968_vm1, %v19814_v23 }
 0x600   : > { %3860 = vmatprep.mubr.bf16.mxu0 %v23521_v58 }
 0x607   : > { %15164 = vmatmul.mubr.msk.bf16.gmra.mrb[24].mxu0 %vm968_vm1, %v19824_v26 }
 0x608   : > { %3870 = vmatprep.mubr.bf16.mxu0 %v23521_v58 }
 0x60f   : > { %15165 = vmatmul.mubr.msk.bf16.gmra.mrb[28].mxu0 %vm968_vm1, %v19834_v33 }
 0x610   : > { %3880 = vmatprep.mubr.bf16.mxu0 %v23521_v58 }
 0x617   : > { %15166 = vmatmul.mubr.msk.bf16.gmra.mrb[32].mxu0 %vm968_vm1, %v19846_v37 }
 0x618   : > { %3890 = vmatprep.mubr.bf16.mxu0 %v23521_v58 }
 0x61f   : > { %15167 = vmatmul.mubr.msk.bf16.gmra.mrb[36].mxu0 %vm968_vm1, %v19856_v41 }
 0x620   : > { %3900 = vmatprep.mubr.bf16.mxu0 %v23521_v58 }
 0x627   : > { %15168 = vmatmul.mubr.msk.bf16.gmra.mrb[40].mxu0 %vm968_vm1, %v19866_v44 }
 0x628   : > { %3910 = vmatprep.mubr.bf16.mxu0 %v23521_v58 }
 0x62f   : > { %15169 = vmatmul.mubr.msk.bf16.gmra.mrb[44].mxu0 %vm968_vm1, %v19876_v47 }
 0x630   : > { %3920 = vmatprep.mubr.bf16.mxu0 %v23521_v58 }
 0x637   : > { %15170 = vmatmul.mubr.msk.bf16.gmra.mrb[48].mxu0 %vm968_vm1, %v19886_v50 }
 0x638   : > { %3930 = vmatprep.mubr.bf16.mxu0 %v23521_v58 }
 0x63f   : > { %15171 = vmatmul.mubr.msk.bf16.gmra.mrb[52].mxu0 %vm968_vm1, %v19896_v53 }
 0x640   : > { %3940 = vmatprep.mubr.bf16.mxu0 %v23521_v58 }
 0x647   : > { %15172 = vmatmul.mubr.msk.bf16.gmra.mrb[56].mxu0 %vm968_vm1, %v19906_v56 }
 0x648   : > { %3950 = vmatprep.mubr.bf16.mxu0 %v23521_v58 }
 0x64f   : > { %15173 = vmatmul.mubr.msk.bf16.gmra.mrb[60].mxu0 %vm968_vm1, %v19916_v60 }
 0x650   : > { %3960 = vmatprep.mubr.bf16.mxu0 %v23521_v58 }
 0x657   : > { %15174 = vmatmul.mubr.msk.bf16.gmra.mrb[64].mxu0 %vm968_vm1, %v19926_v63 }
 0x658   : > { %3970 = vmatprep.mubr.bf16.mxu0 %v23521_v58 }
 0x65f   : > { %15175 = vmatmul.mubr.msk.bf16.gmra.mrb[68].mxu0 %vm968_vm1, %v19936_v2 }
 0x660   : > { %3980 = vmatprep.mubr.bf16.mxu0 %v23521_v58 }
 0x667   : > { %15176 = vmatmul.mubr.msk.bf16.gmra.mrb[72].mxu0 %vm968_vm1, %v19946_v5 }
 0x668   : > { %3990 = vmatprep.mubr.bf16.mxu0 %v23521_v58 }
 0x66f   : > { %15177 = vmatmul.mubr.msk.bf16.gmra.mrb[76].mxu0 %vm968_vm1, %v19956_v10 }
 0x670   : > { %4000 = vmatprep.mubr.bf16.mxu0 %v23521_v58 }
 0x677   : > { %15178 = vmatmul.mubr.msk.bf16.gmra.mrb[80].mxu0 %vm968_vm1, %v19966_v15 }
 0x678   : > { %4010 = vmatprep.mubr.bf16.mxu0 %v23521_v58 }
 0x67f   : > { %15179 = vmatmul.mubr.msk.bf16.gmra.mrb[84].mxu0 %vm968_vm1, %v19976_v19 }
 0x680   : > { %4020 = vmatprep.mubr.bf16.mxu0 %v23521_v58 }
 0x687   : > { %15180 = vmatmul.mubr.msk.bf16.gmra.mrb[88].mxu0 %vm968_vm1, %v19986_v24 }
 0x688   : > { %4030 = vmatprep.mubr.bf16.mxu0 %v23521_v58 }
 0x68f   : > { %15181 = vmatmul.mubr.msk.bf16.gmra.mrb[92].mxu0 %vm968_vm1, %v20294_v13 }
 0x690   : > { %4346 = vmatprep.mubr.bf16.mxu0 %v23521_v58 }
 0x697   : > { %15208 = vmatmul.mubr.msk.bf16.vlgmr.msra.gmra.mrb[100].mxu0 %vm968_vm1, %v19763_v8  ;;  %v17972_v8 = vld [vmem:[#allocation4 + $0x194] ss:$24 sps:$4 sm:$0xff]  }
 0x698   : > { %4964 = vmatpush1.bf16.msra.mxu0 %v17964_v6  ;;  %4356 = vmatprep.mubr.bf16.mxu0 %v23521_v58  ;;  %v17976_v6 = vld [vmem:[#allocation9 + $0x300] ss:$16 sps:$4 sm:$0xff]  }
 0x699   : > { %15244 = vmatprep.subr.msk.bf16.mxu0 %vm1041_vm0, %v17967_v28  ;;  %v4958_v28 = vsel %vm1041_vm0, %v17975_v25, 0  ;;  %v17979_v25 = vld [vmem:[#allocation9 + $0x320] ss:$16 sps:$4 sm:$0xff]  }
 0x69c   : > { %4966 = vmatpush1.bf16.msra.mxu0 %v4946_v18  ;;  %v17973_v18 = vld [vmem:[#allocation4 + $0x1c4] ss:$24 sps:$4 sm:$0x3f]  }
 0x69d   : > { %5509 = vmatprep.subr.bf16.mxu0 %v17972_v8  ;;  %v17978_v8 = vld [vmem:[#allocation9 + $0x304] ss:$16 sps:$4 sm:$0xff]  }
 0x69e   : > { %8276 = vmatprep.subr.bf16.mxu1 %v17978_v8 }
 0x69f   : > { %15209 = vmatmul.mubr.msk.bf16.gmra.mrb[104].mxu0 %vm968_vm1, %v19774_v11  ;;  %v17970_v11 = vld [vmem:[#allocation4 + $0x190] ss:$24 sps:$4 sm:$0xff]   ;;  %8277 = vmatpush1.bf16.msra.mxu1 %v17976_v6 }
 0x6a0   : > { %4366 = vmatprep.mubr.bf16.mxu0 %v23521_v58  ;;  %v17982_v6 = vld [vmem:[#allocation9 + $0x340] ss:$16 sps:$4 sm:$0xff]  }
 0x6a7   : > { %15210 = vmatmul.mubr.msk.bf16.gmra.mrb[108].mxu0 %vm968_vm1, %v19784_v14 }
 0x6a8   : > { %4376 = vmatprep.mubr.bf16.mxu0 %v23521_v58 }
 0x6af   : > { %15211 = vmatmul.mubr.msk.bf16.gmra.mrb[112].mxu0 %vm968_vm1, %v19794_v17 }
 0x6b0   : > { %4386 = vmatprep.mubr.bf16.mxu0 %v23521_v58 }
 0x6b7   : > { %15212 = vmatmul.mubr.msk.bf16.gmra.mrb[116].mxu0 %vm968_vm1, %v19804_v20 }
 0x6b8   : > { %4396 = vmatprep.mubr.bf16.mxu0 %v23521_v58 }
 0x6bf   : > { %15213 = vmatmul.mubr.msk.bf16.gmra.mrb[120].mxu0 %vm968_vm1, %v19814_v23 }
 0x6c0   : > { %4406 = vmatprep.mubr.bf16.mxu0 %v23521_v58 }
 0x6c7   : > { %15214 = vmatmul.mubr.msk.bf16.gmra.mrb[124].mxu0 %vm968_vm1, %v19824_v26 }
 0x6c8   : > { %4416 = vmatprep.mubr.bf16.mxu0 %v23521_v58 }
 0x6cf   : > { %15215 = vmatmul.mubr.msk.bf16.gmra.mrb[128].mxu0 %vm968_vm1, %v19834_v33 }
 0x6d0   : > { %4426 = vmatprep.mubr.bf16.mxu0 %v23521_v58 }
 0x6d7   : > { %15216 = vmatmul.mubr.msk.bf16.gmra.mrb[132].mxu0 %vm968_vm1, %v19846_v37 }
 0x6d8   : > { %4436 = vmatprep.mubr.bf16.mxu0 %v23521_v58 }
 0x6df   : > { %15217 = vmatmul.mubr.msk.bf16.gmra.mrb[136].mxu0 %vm968_vm1, %v19856_v41 }
 0x6e0   : > { %4446 = vmatprep.mubr.bf16.mxu0 %v23521_v58 }
 0x6e7   : > { %15218 = vmatmul.mubr.msk.bf16.gmra.mrb[140].mxu0 %vm968_vm1, %v19866_v44 }
 0x6e8   : > { %4456 = vmatprep.mubr.bf16.mxu0 %v23521_v58 }
 0x6ef   : > { %15219 = vmatmul.mubr.msk.bf16.gmra.mrb[144].mxu0 %vm968_vm1, %v19876_v47 }
 0x6f0   : > { %4466 = vmatprep.mubr.bf16.mxu0 %v23521_v58 }
 0x6f7   : > { %15220 = vmatmul.mubr.msk.bf16.gmra.mrb[148].mxu0 %vm968_vm1, %v19886_v50 }
 0x6f8   : > { %4476 = vmatprep.mubr.bf16.mxu0 %v23521_v58 }
 0x6ff   : > { %15221 = vmatmul.mubr.msk.bf16.gmra.mrb[152].mxu0 %vm968_vm1, %v19896_v53 }
 0x700   : > { %4486 = vmatprep.mubr.bf16.mxu0 %v23521_v58 }
 0x707   : > { %15222 = vmatmul.mubr.msk.bf16.gmra.mrb[156].mxu0 %vm968_vm1, %v19906_v56 }
 0x708   : > { %4496 = vmatprep.mubr.bf16.mxu0 %v23521_v58 }
 0x70f   : > { %15223 = vmatmul.mubr.msk.bf16.gmra.mrb[160].mxu0 %vm968_vm1, %v19916_v60 }
 0x710   : > { %4506 = vmatprep.mubr.bf16.mxu0 %v23521_v58 }
 0x717   : > { %15224 = vmatmul.mubr.msk.bf16.gmra.mrb[164].mxu0 %vm968_vm1, %v19926_v63 }
 0x718   : > { %4516 = vmatprep.mubr.bf16.mxu0 %v23521_v58 }
 0x71f   : > { %15225 = vmatmul.mubr.msk.bf16.gmra.mrb[168].mxu0 %vm968_vm1, %v19936_v2 }
 0x720   : > { %4526 = vmatprep.mubr.bf16.mxu0 %v23521_v58 }
 0x727   : > { %15226 = vmatmul.mubr.msk.bf16.gmra.mrb[172].mxu0 %vm968_vm1, %v19946_v5 }
 0x728   : > { %4536 = vmatprep.mubr.bf16.mxu0 %v23521_v58 }
 0x72f   : > { %15227 = vmatmul.mubr.msk.bf16.gmra.mrb[176].mxu0 %vm968_vm1, %v19956_v10 }
 0x730   : > { %4546 = vmatprep.mubr.bf16.mxu0 %v23521_v58 }
 0x737   : > { %15228 = vmatmul.mubr.msk.bf16.gmra.mrb[180].mxu0 %vm968_vm1, %v19966_v15 }
 0x738   : > { %4556 = vmatprep.mubr.bf16.mxu0 %v23521_v58 }
 0x73f   : > { %15229 = vmatmul.mubr.msk.bf16.gmra.mrb[184].mxu0 %vm968_vm1, %v19976_v19 }
 0x740   : > { %4566 = vmatprep.mubr.bf16.mxu0 %v23521_v58 }
 0x747   : > { %15230 = vmatmul.mubr.msk.bf16.gmra.mrb[188].mxu0 %vm968_vm1, %v19986_v24 }
 0x748   : > { %4576 = vmatprep.mubr.bf16.mxu0 %v23521_v58 }
 0x74f   : > { %15231 = vmatmul.mubr.msk.bf16.gmra.mrb[192].mxu0 %vm968_vm1, %v20294_v13 }
 0x750   : > { %4995 = vmatprep.mubr.bf16.mxu0 %v23521_v58 }
 0x757   : > { %15245 = vmatmul.mubr.msk.bf16.vlgmr.msra.gmra.mrb[0].mxu0 %vm968_vm1, %v19784_v14 }
 0x758   : > { %5510 = vmatpush1.bf16.msra.mxu0 %v17970_v11  ;;  %5005 = vmatprep.mubr.bf16.mxu0 %v23521_v58  ;;  %v6072_v11 = vlaneseq }
 0x759   : > { %15294 = vmatprep.subr.msk.bf16.mxu0 %vm1041_vm0, %v17973_v18 }
 0x75a   : > { %v21110_v18 = vshrl.u32 %v6072_v11, 7 }
 0x75c   : > { %5512 = vmatpush1.bf16.msra.mxu0 %v4958_v28  ;;  %23644 = vst [vmem:[#allocation102_spill] sm:$0xff] %v21110_v18  ;;  %v17981_v28 = vld [vmem:[#allocation9 + $0x324] ss:$16 sps:$4 sm:$0xff]   ;;  %v23517_v31 = vsub.s32 3, %v21110_v18  ;;  %v21124_v11 = vsub.s32 0, %v21110_v18 }
 0x75d   : > { %8278 = vmatprep.subr.bf16.mxu1 %v17981_v28  ;;  %v21134_v28 = vstv %s6390_s21  ;;  %s802_s21 = scalar_lea.vmem %s23868_s28, %s14883_s29 }
 0x75e   : > { %8279 = vmatpush1.bf16.msra.mxu1 %v17979_v25  ;;  %v21121_v8 = vrot.slane %v21115_v61, %v23517_v31  ;;  %23645 = vst [vmem:[#allocation103_spill] sm:$0xff] %v21124_v11  ;;  %v21132_v25 = vrot.slane %v21115_v61, %v21124_v11 }
 0x75f   : > { %15246 = vmatmul.mubr.msk.bf16.gmra.mrb[4].mxu0 %vm968_vm1, %v19794_v17 }
 0x760   : > { %5015 = vmatprep.mubr.bf16.mxu0 %v23521_v58  ;;  %v6111_v31 = vadd.f32 %v20624_v1, %v21121_v8  ;;  %v6117_v1 = vadd.f32 %v21121_v8, %v20664_v4 }
 0x762   : > { %v6689_v12 = vmul.f32 %v21134_v28, %v6111_v31  ;;  %vm6400_vm4 = vcmp.ge.f32.partialorder %v6111_v31, 0.0  ;;  %vm6406_vm6 = vcmp.ge.f32.partialorder %v6117_v1, 0.0 }
 0x767   : > { %15247 = vmatmul.mubr.msk.bf16.gmra.mrb[8].mxu0 %vm968_vm1, %v19804_v20 }
 0x768   : > { %5025 = vmatprep.mubr.bf16.mxu0 %v23521_v58 }
 0x76f   : > { %15248 = vmatmul.mubr.msk.bf16.gmra.mrb[12].mxu0 %vm968_vm1, %v19814_v23 }
 0x770   : > { %5035 = vmatprep.mubr.bf16.mxu0 %v23521_v58 }
 0x777   : > { %15249 = vmatmul.mubr.msk.bf16.gmra.mrb[16].mxu0 %vm968_vm1, %v19824_v26 }
 0x778   : > { %5045 = vmatprep.mubr.bf16.mxu0 %v23521_v58 }
 0x77f   : > { %15250 = vmatmul.mubr.msk.bf16.gmra.mrb[20].mxu0 %vm968_vm1, %v19834_v33 }
 0x780   : > { %5055 = vmatprep.mubr.bf16.mxu0 %v23521_v58 }
 0x787   : > { %15251 = vmatmul.mubr.msk.bf16.gmra.mrb[24].mxu0 %vm968_vm1, %v19846_v37 }
 0x788   : > { %5065 = vmatprep.mubr.bf16.mxu0 %v23521_v58 }
 0x78f   : > { %15252 = vmatmul.mubr.msk.bf16.gmra.mrb[28].mxu0 %vm968_vm1, %v19856_v41 }
 0x790   : > { %5075 = vmatprep.mubr.bf16.mxu0 %v23521_v58 }
 0x797   : > { %15253 = vmatmul.mubr.msk.bf16.gmra.mrb[32].mxu0 %vm968_vm1, %v19866_v44 }
 0x798   : > { %5085 = vmatprep.mubr.bf16.mxu0 %v23521_v58 }
 0x79f   : > { %15254 = vmatmul.mubr.msk.bf16.gmra.mrb[36].mxu0 %vm968_vm1, %v19876_v47 }
 0x7a0   : > { %5095 = vmatprep.mubr.bf16.mxu0 %v23521_v58 }
 0x7a7   : > { %15255 = vmatmul.mubr.msk.bf16.gmra.mrb[40].mxu0 %vm968_vm1, %v19886_v50 }
 0x7a8   : > { %5105 = vmatprep.mubr.bf16.mxu0 %v23521_v58 }
 0x7af   : > { %15256 = vmatmul.mubr.msk.bf16.gmra.mrb[44].mxu0 %vm968_vm1, %v19896_v53 }
 0x7b0   : > { %5115 = vmatprep.mubr.bf16.mxu0 %v23521_v58 }
 0x7b7   : > { %15257 = vmatmul.mubr.msk.bf16.gmra.mrb[48].mxu0 %vm968_vm1, %v19906_v56 }
 0x7b8   : > { %5125 = vmatprep.mubr.bf16.mxu0 %v23521_v58 }
 0x7bf   : > { %15258 = vmatmul.mubr.msk.bf16.gmra.mrb[52].mxu0 %vm968_vm1, %v19916_v60 }
 0x7c0   : > { %5135 = vmatprep.mubr.bf16.mxu0 %v23521_v58 }
 0x7c7   : > { %15259 = vmatmul.mubr.msk.bf16.gmra.mrb[56].mxu0 %vm968_vm1, %v19926_v63 }
 0x7c8   : > { %5145 = vmatprep.mubr.bf16.mxu0 %v23521_v58 }
 0x7cf   : > { %15260 = vmatmul.mubr.msk.bf16.gmra.mrb[60].mxu0 %vm968_vm1, %v19936_v2 }
 0x7d0   : > { %5155 = vmatprep.mubr.bf16.mxu0 %v23521_v58 }
 0x7d7   : > { %15261 = vmatmul.mubr.msk.bf16.gmra.mrb[64].mxu0 %vm968_vm1, %v19946_v5 }
 0x7d8   : > { %5165 = vmatprep.mubr.bf16.mxu0 %v23521_v58 }
 0x7df   : > { %15262 = vmatmul.mubr.msk.bf16.gmra.mrb[68].mxu0 %vm968_vm1, %v19956_v10 }
 0x7e0   : > { %5175 = vmatprep.mubr.bf16.mxu0 %v23521_v58 }
 0x7e7   : > { %15263 = vmatmul.mubr.msk.bf16.gmra.mrb[72].mxu0 %vm968_vm1, %v19966_v15  ;;  %v6695_v15 = vmul.f32 %v21134_v28, %v6117_v1 }
 0x7e8   : > { %5185 = vmatprep.mubr.bf16.mxu0 %v23521_v58 }
 0x7ef   : > { %15264 = vmatmul.mubr.msk.bf16.gmra.mrb[76].mxu0 %vm968_vm1, %v19976_v19 }
 0x7f0   : > { %5195 = vmatprep.mubr.bf16.mxu0 %v23521_v58 }
 0x7f7   : > { %15265 = vmatmul.mubr.msk.bf16.gmra.mrb[80].mxu0 %vm968_vm1, %v19986_v24  ;;  %v23648_v24 = vmov 0  }
 0x7f8   : > { %5205 = vmatprep.mubr.bf16.mxu0 %v23521_v58 }
 0x7ff   : > { %15266 = vmatmul.mubr.msk.bf16.gmra.mrb[84].mxu0 %vm968_vm1, %v20294_v13 }
 0x800   : > { %5215 = vmatprep.mubr.bf16.mxu0 %v23521_v58 }
 0x807   : > { %15267 = vmatmul.mubr.msk.bf16.gmra.mrb[88].mxu0 %vm968_vm1, %v20304_v21 }
 0x808   : > { %5225 = vmatprep.mubr.bf16.mxu0 %v23521_v58 }
 0x80f   : > { %15268 = vmatmul.mubr.msk.bf16.gmra.mrb[92].mxu0 %vm968_vm1, %v20646_v59 }
 0x810   : > { %5541 = vmatprep.mubr.bf16.mxu0 %v23521_v58 }
 0x817   : > { %15295 = vmatmul.mubr.msk.bf16.vlgmr.msra.gmra.mrb[100].mxu0 %vm968_vm1, %v19784_v14  ;;  %v17984_v14 = vld [vmem:[#allocation9 + $0x344] ss:$16 sps:$4 sm:$0xff]  }
 0x818   : > { %5551 = vmatprep.mubr.bf16.mxu0 %v23521_v58  ;;  %8280 = vmatprep.subr.bf16.mxu1 %v17984_v14 }
 0x819   : > { %8281 = vmatpush1.bf16.msra.mxu1 %v17982_v6 }
 0x81f   : > { %15296 = vmatmul.mubr.msk.bf16.gmra.mrb[104].mxu0 %vm968_vm1, %v19794_v17  ;;  %v6105_v17 = vadd.f32 %v20618_v52, %v21121_v8 }
 0x820   : > { %5561 = vmatprep.mubr.bf16.mxu0 %v23521_v58 }
 0x821   : > { %v6683_v6 = vmul.f32 %v21134_v28, %v6105_v17  ;;  %vm6394_vm2 = vcmp.ge.f32.partialorder %v6105_v17, 0.0 }
 0x823   : > { %v6971_v13 = vsel %vm6394_vm2, %v6105_v17, %v6683_v6  ;;  %v17987_v17 = vld [vmem:[#allocation9 + $0x364] ss:$16 sps:$4 sm:$0xff]  }
 0x824   : > { %8282 = vmatprep.subr.bf16.mxu1 %v17987_v17  ;;  %v6135_v17 = vadd.f32 %v21121_v8, %v20682_v22 }
 0x826   : > { %vm6424_vm12 = vcmp.ge.f32.partialorder %v6135_v17, 0.0 }
 0x827   : > { %15297 = vmatmul.mubr.msk.bf16.gmra.mrb[108].mxu0 %vm968_vm1, %v19804_v20 }
 0x828   : > { %5571 = vmatprep.mubr.bf16.mxu0 %v23521_v58 }
 0x82a   : > { %v4997_v29 = vpop.f32.mrb[0].mxu0 }
 0x82b   : > { %v6102_v14 = vadd.f32 %v21132_v25, %v4997_v29  ;;  %v21141_v52 = vpop.f32.mrb[1].mxu0 }
 0x82c   : > { %23646 = vst [vmem:[#allocation104_spill] sm:$0xff] %v21141_v52  ;;  %v5001_v20 = vpop.f32.mrb[2].mxu0 }
 0x82d   : > { %vm6391_vm3 = vcmp.ge.f32.partialorder %v6102_v14, 0.0  ;;  %v6680_v11 = vmul.f32 %v21134_v28, %v6102_v14  ;;  %v6108_v59 = vadd.f32 %v21132_v25, %v5001_v20  ;;  %v21146_v58 = vpop.f32.mrb[3].mxu0  ;;  %v6123_v20 = vadd.f32 %v21121_v8, %v20671_v9 }
 0x82e   : > { %23647 = vst [vmem:[#allocation105_spill] sm:$0xff] %v21146_v58  ;;  %v6977_v58 = vsel %vm6400_vm4, %v6111_v31, %v6689_v12 }
 0x82f   : > { %v6968_v21 = vsel %vm6391_vm3, %v6102_v14, %v6680_v11  ;;  %vm6397_vm5 = vcmp.ge.f32.partialorder %v6108_v59, 0.0  ;;  %v6686_v29 = vmul.f32 %v21134_v28, %v6108_v59  ;;  %15298 = vmatmul.mubr.msk.bf16.gmra.mrb[112].mxu0 %vm968_vm1, %v19814_v23  ;;  %v17985_v11 = vld [vmem:[#allocation9 + $0x360] ss:$16 sps:$4 sm:$0xff]   ;;  %vm6412_vm8 = vcmp.ge.f32.partialorder %v6123_v20, 0.0 }
 0x830   : > { %v7256_v52 = vmax.f32 %v6968_v21, %v6971_v13  ;;  %5581 = vmatprep.mubr.bf16.mxu0 %v23648_v24  ;;  %v6701_v13 = vmul.f32 %v21134_v28, %v6123_v20  ;;  %8283 = vmatpush1.bf16.msra.mxu1 %v17985_v11 }
 0x831   : > { %v6974_v19 = vsel %vm6397_vm5, %v6108_v59, %v6686_v29 }
 0x832   : > { %v7259_v10 = vmax.f32 %v6974_v19, %v6977_v58  ;;  %v5007_v4 = vpop.f32.mrb[4].mxu0  ;;  %v6983_v58 = vsel %vm6406_vm6, %v6117_v1, %v6695_v15  ;;  %v6129_v19 = vadd.f32 %v21121_v8, %v20675_v16 }
 0x833   : > { %v6114_v6 = vadd.f32 %v21132_v25, %v5007_v4  ;;  %v21158_v14 = vpop.f32.mrb[5].mxu0  ;;  %v6989_v4 = vsel %vm6412_vm8, %v6123_v20, %v6701_v13 }
 0x834   : > { %v5011_v23 = vpop.f32.mrb[6].mxu0  ;;  %v6707_v16 = vmul.f32 %v21134_v28, %v6129_v19  ;;  %vm6418_vm10 = vcmp.ge.f32.partialorder %v6129_v19, 0.0 }
 0x835   : > { %vm6403_vm7 = vcmp.ge.f32.partialorder %v6114_v6, 0.0  ;;  %v6692_v21 = vmul.f32 %v21134_v28, %v6114_v6  ;;  %v6120_v59 = vadd.f32 %v21132_v25, %v5011_v23  ;;  %v21163_v9 = vpop.f32.mrb[7].mxu0 }
 0x836   : > { %23649 = vst [vmem:[#allocation106_spill] sm:$0xff] %v21163_v9 }
 0x837   : > { %v6980_v12 = vsel %vm6403_vm7, %v6114_v6, %v6692_v21  ;;  %vm6409_vm9 = vcmp.ge.f32.partialorder %v6120_v59, 0.0  ;;  %v6698_v31 = vmul.f32 %v21134_v28, %v6120_v59  ;;  %15299 = vmatmul.mubr.msk.bf16.gmra.mrb[116].mxu0 %vm968_vm1, %v19824_v26 }
 0x838   : > { %v7262_v29 = vmax.f32 %v6980_v12, %v6983_v58  ;;  %5591 = vmatprep.mubr.bf16.mxu0 %v23648_v24  ;;  %v6713_v58 = vmul.f32 %v21134_v28, %v6135_v17  ;;  %v17988_v12 = vld [vmem:[#allocation9 + $0x380] ss:$16 sps:$4 sm:$0xff]  }
 0x839   : > { %v6986_v11 = vsel %vm6409_vm9, %v6120_v59, %v6698_v31  ;;  %v17990_v31 = vld [vmem:[#allocation9 + $0x384] ss:$16 sps:$4 sm:$0xff]  }
 0x83a   : > { %v7400_v15 = vmax.f32 %v7256_v52, %v7262_v29  ;;  %v7265_v1 = vmax.f32 %v6986_v11, %v6989_v4  ;;  %v5017_v23 = vpop.f32.mrb[8].mxu0  ;;  %v6141_v52 = vadd.f32 %v21121_v8, %v20686_v27  ;;  %v6995_v29 = vsel %vm6418_vm10, %v6129_v19, %v6707_v16  ;;  %8284 = vmatprep.subr.bf16.mxu1 %v17990_v31 }
 0x83b   : > { %v6126_v6 = vadd.f32 %v21132_v25, %v5017_v23  ;;  %v21175_v21 = vpop.f32.mrb[9].mxu0  ;;  %v6147_v27 = vadd.f32 %v21121_v8, %v20693_v7  ;;  %8285 = vmatpush1.bf16.msra.mxu1 %v17988_v12 }
 0x83c   : > { %v7403_v9 = vmax.f32 %v7259_v10, %v7265_v1  ;;  %v5021_v26 = vpop.f32.mrb[10].mxu0  ;;  %v7001_v1 = vsel %vm6424_vm12, %v6135_v17, %v6713_v58  ;;  %vm6430_vm14 = vcmp.ge.f32.partialorder %v6141_v52, 0.0 }
 0x83d   : > { %vm6415_vm11 = vcmp.ge.f32.partialorder %v6126_v6, 0.0  ;;  %v6704_v20 = vmul.f32 %v21134_v28, %v6126_v6  ;;  %v6132_v22 = vadd.f32 %v21132_v25, %v5021_v26  ;;  %v21180_v13 = vpop.f32.mrb[11].mxu0  ;;  %v6725_v26 = vmul.f32 %v21134_v28, %v6147_v27 }
 0x83e   : > { %v21184_v59 = vpack.c.bf16 %v7403_v9, %v7400_v15  ;;  %v6719_v15 = vmul.f32 %v21134_v28, %v6141_v52  ;;  %vm6436_vm0 = vcmp.ge.f32.partialorder %v6147_v27, 0.0 }
 0x83f   : > { %v6992_v10 = vsel %vm6415_vm11, %v6126_v6, %v6704_v20  ;;  %vm6421_vm13 = vcmp.ge.f32.partialorder %v6132_v22, 0.0  ;;  %v6710_v4 = vmul.f32 %v21134_v28, %v6132_v22  ;;  %15300 = vmatmul.mubr.msk.bf16.gmra.mrb[120].mxu0 %vm968_vm1, %v19834_v33 }
 0x840   : > { %23650 = vst [vmem:[#allocation107_spill] sm:$0xff] %v21184_v59  ;;  %v7268_v11 = vmax.f32 %v6992_v10, %v6995_v29  ;;  %5601 = vmatprep.mubr.bf16.mxu0 %v23648_v24  ;;  %v7007_v20 = vsel %vm6430_vm14, %v6141_v52, %v6719_v15  ;;  %v7013_v10 = vsel %vm6436_vm0, %v6147_v27, %v6725_v26 }
 0x841   : > { %v6998_v9 = vsel %vm6421_vm13, %v6132_v22, %v6710_v4  ;;  %v6153_v22 = vadd.f32 %v21121_v8, %v20697_v30  ;;  %v6159_v4 = vadd.f32 %v21121_v8, %v20704_v32 }
 0x842   : > { %v7271_v19 = vmax.f32 %v6998_v9, %v7001_v1  ;;  %v5027_v23 = vpop.f32.mrb[12].mxu0 }
 0x843   : > { %v6138_v16 = vadd.f32 %v21132_v25, %v5027_v23  ;;  %v21194_v6 = vpop.f32.mrb[13].mxu0  ;;  %v6731_v30 = vmul.f32 %v21134_v28, %v6153_v22  ;;  %vm6442_vm3 = vcmp.ge.f32.partialorder %v6153_v22, 0.0  ;;  %vm6448_vm5 = vcmp.ge.f32.partialorder %v6159_v4, 0.0 }
 0x844   : > { %v5031_v33 = vpop.f32.mrb[14].mxu0 }
 0x845   : > { %vm6427_vm15 = vcmp.ge.f32.partialorder %v6138_v16, 0.0  ;;  %v6716_v17 = vmul.f32 %v21134_v28, %v6138_v16  ;;  %v6144_v58 = vadd.f32 %v21132_v25, %v5031_v33  ;;  %v21199_v7 = vpop.f32.mrb[15].mxu0 }
 0x847   : > { %v7004_v12 = vsel %vm6427_vm15, %v6138_v16, %v6716_v17  ;;  %vm6433_vm2 = vcmp.ge.f32.partialorder %v6144_v58, 0.0  ;;  %v6722_v31 = vmul.f32 %v21134_v28, %v6144_v58  ;;  %15301 = vmatmul.mubr.msk.bf16.gmra.mrb[124].mxu0 %vm968_vm1, %v19846_v37  ;;  %v6737_v17 = vmul.f32 %v21134_v28, %v6159_v4 }
 0x848   : > { %v7274_v29 = vmax.f32 %v7004_v12, %v7007_v20  ;;  %5611 = vmatprep.mubr.bf16.mxu0 %v23648_v24  ;;  %v17991_v20 = vld [vmem:[#allocation9 + $0x3a0] ss:$16 sps:$4 sm:$0xff]   ;;  %v17993_v12 = vld [vmem:[#allocation9 + $0x3a4] ss:$16 sps:$4 sm:$0xff]  }
 0x849   : > { %v7010_v1 = vsel %vm6433_vm2, %v6144_v58, %v6722_v31  ;;  %v7019_v31 = vsel %vm6442_vm3, %v6153_v22, %v6731_v30  ;;  %8286 = vmatprep.subr.bf16.mxu1 %v17993_v12  ;;  %v17994_v30 = vld [vmem:[#allocation9 + $0x3c0] ss:$16 sps:$4 sm:$0xff]  }
 0x84a   : > { %v7412_v52 = vmax.f32 %v7268_v11, %v7274_v29  ;;  %v7277_v9 = vmax.f32 %v7010_v1, %v7013_v10  ;;  %v5037_v15 = vpop.f32.mrb[16].mxu0  ;;  %v6165_v11 = vadd.f32 %v21121_v8, %v20708_v35  ;;  %v7025_v1 = vsel %vm6448_vm5, %v6159_v4, %v6737_v17  ;;  %8287 = vmatpush1.bf16.msra.mxu1 %v17991_v20 }
 0x84b   : > { %v6150_v23 = vadd.f32 %v21132_v25, %v5037_v15  ;;  %v21211_v16 = vpop.f32.mrb[17].mxu0  ;;  %v6171_v35 = vadd.f32 %v21121_v8, %v20715_v38  ;;  %v6177_v20 = vadd.f32 %v21121_v8, %v20719_v40 }
 0x84c   : > { %v7415_v33 = vmax.f32 %v7271_v19, %v7277_v9  ;;  %v5041_v37 = vpop.f32.mrb[18].mxu0  ;;  %v6743_v9 = vmul.f32 %v21134_v28, %v6165_v11  ;;  %vm6454_vm7 = vcmp.ge.f32.partialorder %v6165_v11, 0.0 }
 0x84d   : > { %vm6439_vm4 = vcmp.ge.f32.partialorder %v6150_v23, 0.0  ;;  %v6728_v27 = vmul.f32 %v21134_v28, %v6150_v23  ;;  %v6156_v32 = vadd.f32 %v21132_v25, %v5041_v37  ;;  %v21216_v26 = vpop.f32.mrb[19].mxu0  ;;  %v6749_v4 = vmul.f32 %v21134_v28, %v6171_v35 }
 0x84e   : > { %v21220_v58 = vpack.c.bf16 %v7415_v33, %v7412_v52  ;;  %vm6460_vm9 = vcmp.ge.f32.partialorder %v6171_v35, 0.0  ;;  %v6755_v40 = vmul.f32 %v21134_v28, %v6177_v20  ;;  %vm6466_vm11 = vcmp.ge.f32.partialorder %v6177_v20, 0.0 }
 0x84f   : > { %v7016_v19 = vsel %vm6439_vm4, %v6150_v23, %v6728_v27  ;;  %vm6445_vm6 = vcmp.ge.f32.partialorder %v6156_v32, 0.0  ;;  %v6734_v29 = vmul.f32 %v21134_v28, %v6156_v32  ;;  %15302 = vmatmul.mubr.msk.bf16.gmra.mrb[128].mxu0 %vm968_vm1, %v19856_v41  ;;  %v17996_v23 = vld [vmem:[#allocation9 + $0x3c4] ss:$16 sps:$4 sm:$0xff]  }
 0x850   : > { %v7280_v10 = vmax.f32 %v7016_v19, %v7019_v31  ;;  %5621 = vmatprep.mubr.bf16.mxu0 %v23648_v24  ;;  %8288 = vmatprep.subr.bf16.mxu1 %v17996_v23 }
 0x851   : > { %v7022_v52 = vsel %vm6445_vm6, %v6156_v32, %v6734_v29  ;;  %8289 = vmatpush1.bf16.msra.mxu1 %v17994_v30  ;;  %v7031_v32 = vsel %vm6454_vm7, %v6165_v11, %v6743_v9  ;;  %v7037_v29 = vsel %vm6460_vm9, %v6171_v35, %v6749_v4 }
 0x852   : > { %v7283_v22 = vmax.f32 %v7022_v52, %v7025_v1  ;;  %v5047_v15 = vpop.f32.mrb[20].mxu0  ;;  %v6183_v1 = vadd.f32 %v21121_v8, %v20726_v43 }
 0x853   : > { %v6162_v33 = vadd.f32 %v21132_v25, %v5047_v15  ;;  %v21230_v41 = vpop.f32.mrb[21].mxu0 }
 0x854   : > { %v5051_v37 = vpop.f32.mrb[22].mxu0  ;;  %vm6472_vm13 = vcmp.ge.f32.partialorder %v6183_v1, 0.0 }
 0x855   : > { %vm6451_vm8 = vcmp.ge.f32.partialorder %v6162_v33, 0.0  ;;  %v6740_v38 = vmul.f32 %v21134_v28, %v6162_v33  ;;  %v6168_v17 = vadd.f32 %v21132_v25, %v5051_v37  ;;  %v21235_v27 = vpop.f32.mrb[23].mxu0  ;;  %v6761_v37 = vmul.f32 %v21134_v28, %v6183_v1 }
 0x857   : > { %v7028_v12 = vsel %vm6451_vm8, %v6162_v33, %v6740_v38  ;;  %vm6457_vm10 = vcmp.ge.f32.partialorder %v6168_v17, 0.0  ;;  %v6746_v31 = vmul.f32 %v21134_v28, %v6168_v17  ;;  %15303 = vmatmul.mubr.msk.bf16.gmra.mrb[132].mxu0 %vm968_vm1, %v19866_v44 }
 0x858   : > { %v7286_v19 = vmax.f32 %v7028_v12, %v7031_v32  ;;  %5631 = vmatprep.mubr.bf16.mxu0 %v23648_v24 }
 0x859   : > { %v7034_v52 = vsel %vm6457_vm10, %v6168_v17, %v6746_v31  ;;  %v7043_v17 = vsel %vm6466_vm11, %v6177_v20, %v6755_v40  ;;  %v7049_v31 = vsel %vm6472_vm13, %v6183_v1, %v6761_v37  ;;  %v17997_v20 = vld [vmem:[#allocation9 + $0x3e0] ss:$16 sps:$4 sm:$0xff]   ;;  %v6201_v37 = vadd.f32 %v21121_v8, %v20741_v0  ;;  %v18002_v0 = vld [vmem:[#allocation9 + $0x404] ss:$16 sps:$4 sm:$0xff]  }
 0x85a   : > { %v7425_v11 = vmax.f32 %v7280_v10, %v7286_v19  ;;  %v7289_v9 = vmax.f32 %v7034_v52, %v7037_v29  ;;  %v5057_v15 = vpop.f32.mrb[24].mxu0  ;;  %v6189_v10 = vadd.f32 %v21121_v8, %v20730_v46  ;;  %v6195_v19 = vadd.f32 %v21121_v8, %v20737_v51 }
 0x85b   : > { %v6174_v30 = vadd.f32 %v21132_v25, %v5057_v15  ;;  %v21247_v23 = vpop.f32.mrb[25].mxu0  ;;  %vm6490_vm4 = vcmp.ge.f32.partialorder %v6201_v37, 0.0 }
 0x85c   : > { %v7428_v33 = vmax.f32 %v7283_v22, %v7289_v9  ;;  %v5061_v44 = vpop.f32.mrb[26].mxu0  ;;  %v6767_v46 = vmul.f32 %v21134_v28, %v6189_v10  ;;  %v17999_v9 = vld [vmem:[#allocation9 + $0x3e4] ss:$16 sps:$4 sm:$0xff]   ;;  %vm6478_vm15 = vcmp.ge.f32.partialorder %v6189_v10, 0.0  ;;  %vm6484_vm2 = vcmp.ge.f32.partialorder %v6195_v19, 0.0 }
 0x85d   : > { %vm6463_vm12 = vcmp.ge.f32.partialorder %v6174_v30, 0.0  ;;  %v6752_v35 = vmul.f32 %v21134_v28, %v6174_v30  ;;  %v6180_v43 = vadd.f32 %v21132_v25, %v5061_v44  ;;  %v21252_v4 = vpop.f32.mrb[27].mxu0  ;;  %8290 = vmatprep.subr.bf16.mxu1 %v17999_v9 }
 0x85e   : > { %v21256_v38 = vpack.c.bf16 %v7428_v33, %v7425_v11  ;;  %8291 = vmatpush1.bf16.msra.mxu1 %v17997_v20  ;;  %v7055_v44 = vsel %vm6478_vm15, %v6189_v10, %v6767_v46  ;;  %v6779_v20 = vmul.f32 %v21134_v28, %v6201_v37 }
 0x85f   : > { %v7040_v32 = vsel %vm6463_vm12, %v6174_v30, %v6752_v35  ;;  %vm6469_vm14 = vcmp.ge.f32.partialorder %v6180_v43, 0.0  ;;  %v6758_v22 = vmul.f32 %v21134_v28, %v6180_v43  ;;  %15304 = vmatmul.mubr.msk.bf16.gmra.mrb[136].mxu0 %vm968_vm1, %v19876_v47  ;;  %v6773_v30 = vmul.f32 %v21134_v28, %v6195_v19  ;;  %8292 = vmatprep.subr.bf16.mxu1 %v18002_v0 }
 0x860   : > { %23651 = vst [vmem:[#allocation108_spill] sm:$0xff] %v21256_v38  ;;  %v7292_v12 = vmax.f32 %v7040_v32, %v7043_v17  ;;  %5641 = vmatprep.mubr.bf16.mxu0 %v23648_v24 }
 0x861   : > { %v7046_v29 = vsel %vm6469_vm14, %v6180_v43, %v6758_v22  ;;  %v7061_v32 = vsel %vm6484_vm2, %v6195_v19, %v6773_v30  ;;  %v6207_v22 = vadd.f32 %v21121_v8, %v20748_v57 }
 0x862   : > { %v7295_v52 = vmax.f32 %v7046_v29, %v7049_v31  ;;  %v5067_v11 = vpop.f32.mrb[28].mxu0 }
 0x863   : > { %v6186_v15 = vadd.f32 %v21132_v25, %v5067_v11  ;;  %v21266_v40 = vpop.f32.mrb[29].mxu0  ;;  %v18000_v11 = vld [vmem:[#allocation9 + $0x400] ss:$16 sps:$4 sm:$0xff]   ;;  %v6785_v19 = vmul.f32 %v21134_v28, %v6207_v22  ;;  %vm6496_vm6 = vcmp.ge.f32.partialorder %v6207_v22, 0.0 }
 0x864   : > { %v5071_v47 = vpop.f32.mrb[30].mxu0  ;;  %8293 = vmatpush1.bf16.msra.mxu1 %v18000_v11  ;;  %v18005_v11 = vld [vmem:[#allocation9 + $0x424] ss:$16 sps:$4 sm:$0xff]  }
 0x865   : > { %vm6475_vm0 = vcmp.ge.f32.partialorder %v6186_v15, 0.0  ;;  %v6764_v1 = vmul.f32 %v21134_v28, %v6186_v15  ;;  %v6192_v51 = vadd.f32 %v21132_v25, %v5071_v47  ;;  %v21271_v33 = vpop.f32.mrb[31].mxu0  ;;  %8294 = vmatprep.subr.bf16.mxu1 %v18005_v11 }
 0x867   : > { %v7052_v35 = vsel %vm6475_vm0, %v6186_v15, %v6764_v1  ;;  %vm6481_vm3 = vcmp.ge.f32.partialorder %v6192_v51, 0.0  ;;  %v6770_v43 = vmul.f32 %v21134_v28, %v6192_v51  ;;  %15305 = vmatmul.mubr.msk.bf16.gmra.mrb[140].mxu0 %vm968_vm1, %v19886_v50  ;;  %v6213_v1 = vadd.f32 %v21121_v8, %v20752_v48 }
 0x868   : > { %v7298_v17 = vmax.f32 %v7052_v35, %v7055_v44  ;;  %5651 = vmatprep.mubr.bf16.mxu0 %v23648_v24  ;;  %v7067_v44 = vsel %vm6490_vm4, %v6201_v37, %v6779_v20 }
 0x869   : > { %v7058_v31 = vsel %vm6481_vm3, %v6192_v51, %v6770_v43  ;;  %v6791_v48 = vmul.f32 %v21134_v28, %v6213_v1  ;;  %vm6502_vm8 = vcmp.ge.f32.partialorder %v6213_v1, 0.0 }
 0x86a   : > { %v7438_v10 = vmax.f32 %v7292_v12, %v7298_v17  ;;  %v7301_v29 = vmax.f32 %v7058_v31, %v7061_v32  ;;  %v5077_v46 = vpop.f32.mrb[32].mxu0  ;;  %v7073_v17 = vsel %vm6496_vm6, %v6207_v22, %v6785_v19  ;;  %v6219_v32 = vadd.f32 %v21121_v8, %v20759_v54 }
 0x86b   : > { %v6198_v9 = vadd.f32 %v21132_v25, %v5077_v46  ;;  %v21283_v15 = vpop.f32.mrb[33].mxu0  ;;  %v6225_v19 = vadd.f32 %v21121_v8, %v20763_v55 }
 0x86c   : > { %v7441_v50 = vmax.f32 %v7295_v52, %v7301_v29  ;;  %v5081_v47 = vpop.f32.mrb[34].mxu0  ;;  %v6797_v20 = vmul.f32 %v21134_v28, %v6219_v32  ;;  %vm6508_vm10 = vcmp.ge.f32.partialorder %v6219_v32, 0.0 }
 0x86d   : > { %vm6487_vm5 = vcmp.ge.f32.partialorder %v6198_v9, 0.0  ;;  %v6776_v57 = vmul.f32 %v21134_v28, %v6198_v9  ;;  %v6204_v12 = vadd.f32 %v21132_v25, %v5081_v47  ;;  %v21288_v30 = vpop.f32.mrb[35].mxu0  ;;  %v7079_v47 = vsel %vm6502_vm8, %v6213_v1, %v6791_v48 }
 0x86e   : > { %23652 = vst [vmem:[#allocation109_spill] sm:$0xff] %v21288_v30  ;;  %v21292_v51 = vpack.c.bf16 %v7441_v50, %v7438_v10  ;;  %v23529_v50 = vsub.s32 2, %v21110_v18  ;;  %v6231_v1 = vadd.f32 %v21121_v8, %v20770_v39  ;;  %vm6514_vm12 = vcmp.ge.f32.partialorder %v6225_v19, 0.0 }
 0x86f   : > { %v7064_v52 = vsel %vm6487_vm5, %v6198_v9, %v6776_v57  ;;  %vm6493_vm7 = vcmp.ge.f32.partialorder %v6204_v12, 0.0  ;;  %v6782_v35 = vmul.f32 %v21134_v28, %v6204_v12  ;;  %15306 = vmatmul.mubr.msk.bf16.gmra.mrb[144].mxu0 %vm968_vm1, %v19896_v53  ;;  %v18003_v53 = vld [vmem:[#allocation9 + $0x420] ss:$16 sps:$4 sm:$0xff]  }
 0x870   : > { %23653 = vst [vmem:[#allocation110_spill] sm:$0xff] %v21292_v51  ;;  %v7304_v43 = vmax.f32 %v7064_v52, %v7067_v44  ;;  %5661 = vmatprep.mubr.bf16.mxu0 %v23648_v24  ;;  %8295 = vmatpush1.bf16.msra.mxu1 %v18003_v53  ;;  %v18008_v44 = vld [vmem:[#allocation9 + $0x444] ss:$16 sps:$4 sm:$0xff]   ;;  %v21321_v55 = vrot.slane %v21115_v61, %v23529_v50  ;;  %vm6520_vm14 = vcmp.ge.f32.partialorder %v6231_v1, 0.0  ;;  %v23668_v50 = vld [vmem:[#allocation60_spill] sm:$0xff] }
 0x871   : > { %v7070_v31 = vsel %vm6493_vm7, %v6204_v12, %v6782_v35  ;;  %v18006_v35 = vld [vmem:[#allocation9 + $0x440] ss:$16 sps:$4 sm:$0xff]   ;;  %8296 = vmatprep.subr.bf16.mxu1 %v18008_v44 }
 0x872   : > { %v7307_v10 = vmax.f32 %v7070_v31, %v7073_v17  ;;  %v5087_v29 = vpop.f32.mrb[36].mxu0  ;;  %v7085_v17 = vsel %vm6508_vm10, %v6219_v32, %v6797_v20  ;;  %v18011_v32 = vld [vmem:[#allocation9 + $0x464] ss:$16 sps:$4 sm:$0xff]   ;;  %v18009_v20 = vld [vmem:[#allocation9 + $0x460] ss:$16 sps:$4 sm:$0xff]  }
 0x873   : > { %v6210_v37 = vadd.f32 %v21132_v25, %v5087_v29  ;;  %v21302_v46 = vpop.f32.mrb[37].mxu0  ;;  %v23695_v51 = vld [vmem:[#allocation29_spill] sm:$0xff] }
 0x874   : > { %23654 = vst [vmem:[#allocation111_spill] sm:$0xff] %v21302_v46  ;;  %v5091_v0 = vpop.f32.mrb[38].mxu0  ;;  %8297 = vmatpush1.bf16.msra.mxu1 %v18006_v35  ;;  %v18014_v35 = vld [vmem:[#allocation9 + $0x484] ss:$16 sps:$4 sm:$0xff]  }
 0x875   : > { %vm6499_vm9 = vcmp.ge.f32.partialorder %v6210_v37, 0.0  ;;  %v6788_v22 = vmul.f32 %v21134_v28, %v6210_v37  ;;  %v6216_v54 = vadd.f32 %v21132_v25, %v5091_v0  ;;  %v21307_v9 = vpop.f32.mrb[39].mxu0  ;;  %8298 = vmatprep.subr.bf16.mxu1 %v18011_v32  ;;  %v21357_v32 = vadd.f32 %v21321_v55, %v20662_v3 }
 0x876   : > { %23655 = vst [vmem:[#allocation112_spill] sm:$0xff] %v21307_v9 }
 0x877   : > { %v7076_v57 = vsel %vm6499_vm9, %v6210_v37, %v6788_v22  ;;  %vm6505_vm11 = vcmp.ge.f32.partialorder %v6216_v54, 0.0  ;;  %v6794_v12 = vmul.f32 %v21134_v28, %v6216_v54  ;;  %15307 = vmatmul.mubr.msk.bf16.gmra.mrb[148].mxu0 %vm968_vm1, %v19906_v56  ;;  %v6803_v56 = vmul.f32 %v21134_v28, %v6225_v19 }
 0x878   : > { %v7310_v52 = vmax.f32 %v7076_v57, %v7079_v47  ;;  %5671 = vmatprep.mubr.bf16.mxu0 %v23648_v24  ;;  %v6809_v22 = vmul.f32 %v21134_v28, %v6231_v1  ;;  %v6104_v47 = vadd.f32 %v20615_v49, %v21321_v55  ;;  %v6237_v57 = vadd.f32 %v21121_v8, %v20774_v45 }
 0x879   : > { %v7082_v31 = vsel %vm6505_vm11, %v6216_v54, %v6794_v12  ;;  %8299 = vmatpush1.bf16.msra.mxu1 %v18009_v20  ;;  %v7091_v12 = vsel %vm6514_vm12, %v6225_v19, %v6803_v56  ;;  %v6243_v19 = vadd.f32 %v21121_v8, %v20781_v42  ;;  %vm6405_vm7 = vcmp.ge.f32.partialorder %v21357_v32, 0.0 }
 0x87a   : > { %v7451_v48 = vmax.f32 %v7304_v43, %v7310_v52  ;;  %v7313_v29 = vmax.f32 %v7082_v31, %v7085_v17  ;;  %v5097_v37 = vpop.f32.mrb[40].mxu0  ;;  %v6110_v17 = vadd.f32 %v20621_v62, %v21321_v55  ;;  %v18012_v31 = vld [vmem:[#allocation9 + $0x480] ss:$16 sps:$4 sm:$0xff]   ;;  %v21344_v45 = vsel %vm6520_vm14, %v6231_v1, %v6809_v22  ;;  %8300 = vmatprep.subr.bf16.mxu1 %v18014_v35 }
 0x87b   : > { %v6222_v11 = vadd.f32 %v21132_v25, %v5097_v37  ;;  %v21325_v0 = vpop.f32.mrb[41].mxu0  ;;  %vm6393_vm0 = vcmp.ge.f32.partialorder %v6104_v47, 0.0  ;;  %vm6526_vm2 = vcmp.ge.f32.partialorder %v6237_v57, 0.0  ;;  %v6682_v1 = vmul.f32 %v21134_v28, %v6104_v47 }
 0x87c   : > { %23656 = vst [vmem:[#allocation113_spill] sm:$0xff] %v21325_v0  ;;  %v7454_v39 = vmax.f32 %v7307_v10, %v7313_v29  ;;  %v5101_v53 = vpop.f32.mrb[42].mxu0  ;;  %v6815_v29 = vmul.f32 %v21134_v28, %v6237_v57  ;;  %vm6399_vm3 = vcmp.ge.f32.partialorder %v6110_v17, 0.0  ;;  %v6688_v42 = vmul.f32 %v21134_v28, %v6110_v17 }
 0x87d   : > { %vm6511_vm13 = vcmp.ge.f32.partialorder %v6222_v11, 0.0  ;;  %v6800_v61 = vmul.f32 %v21134_v28, %v6222_v11  ;;  %v6228_v43 = vadd.f32 %v21132_v25, %v5101_v53  ;;  %v21330_v54 = vpop.f32.mrb[43].mxu0  ;;  %8301 = vmatpush1.bf16.msra.mxu1 %v18012_v31  ;;  %v18015_v53 = vld [vmem:[#allocation9 + $0x4a0] ss:$16 sps:$4 sm:$0xff]   ;;  %v6821_v20 = vmul.f32 %v21134_v28, %v6243_v19 }
 0x87e   : > { %23657 = vst [vmem:[#allocation114_spill] sm:$0xff] %v21330_v54  ;;  %v21336_v10 = vpack.c.bf16 %v7454_v39, %v7451_v48  ;;  %v7103_v35 = vsel %vm6526_vm2, %v6237_v57, %v6815_v29  ;;  %vm6532_vm5 = vcmp.ge.f32.partialorder %v6243_v19, 0.0  ;;  %v23663_v31 = vld [vmem:[#allocation57_spill] sm:$0xff]  ;;  %v21381_v57 = vsel %vm6393_vm0, %v6104_v47, %v6682_v1 }
 0x87f   : > { %v7088_v44 = vsel %vm6511_vm13, %v6222_v11, %v6800_v61  ;;  %vm6517_vm15 = vcmp.ge.f32.partialorder %v6228_v43, 0.0  ;;  %v6806_v52 = vmul.f32 %v21134_v28, %v6228_v43  ;;  %15308 = vmatmul.mubr.msk.bf16.gmra.mrb[152].mxu0 %vm968_vm1, %v19916_v60  ;;  %v18017_v11 = vld [vmem:[#allocation9 + $0x4a4] ss:$16 sps:$4 sm:$0xff]   ;;  %v21384_v29 = vsel %vm6399_vm3, %v6110_v17, %v6688_v42 }
 0x880   : > { %23658 = vst [vmem:[#allocation115_spill] sm:$0xff] %v21336_v10  ;;  %v7316_v49 = vmax.f32 %v7088_v44, %v7091_v12  ;;  %5681 = vmatprep.mubr.bf16.mxu0 %v23648_v24  ;;  %8302 = vmatprep.subr.bf16.mxu1 %v18017_v11  ;;  %v23661_v12 = vld [vmem:[#allocation35_spill] sm:$0xff] }
 0x881   : > { %v7094_v48 = vsel %vm6517_vm15, %v6228_v43, %v6806_v52  ;;  %v21366_v44 = vadd.f32 %v21321_v55, %v23661_v12  ;;  %v23662_v52 = vld [vmem:[#allocation36_spill] sm:$0xff]  ;;  %8303 = vmatpush1.bf16.msra.mxu1 %v18015_v53  ;;  %v18020_v11 = vld [vmem:[#allocation9 + $0x4c4] ss:$16 sps:$4 sm:$0xff]  }
 0x882   : > { %v7319_v37 = vmax.f32 %v7094_v48, %v21344_v45  ;;  %v5107_v60 = vpop.f32.mrb[44].mxu0  ;;  %v21370_v3 = vadd.f32 %v21321_v55, %v23662_v52  ;;  %v6249_v45 = vadd.f32 %v21121_v8, %v23663_v31  ;;  %v18018_v53 = vld [vmem:[#allocation9 + $0x4c0] ss:$16 sps:$4 sm:$0xff]   ;;  %8304 = vmatprep.subr.bf16.mxu1 %v18020_v11 }
 0x883   : > { %v6234_v62 = vadd.f32 %v21132_v25, %v5107_v60  ;;  %v21351_v56 = vpop.f32.mrb[45].mxu0  ;;  %vm6411_vm8 = vcmp.ge.f32.partialorder %v21366_v44, 0.0  ;;  %v23664_v52 = vld [vmem:[#allocation37_spill] sm:$0xff]  ;;  %v6700_v17 = vmul.f32 %v21134_v28, %v21366_v44 }
 0x884   : > { %23659 = vst [vmem:[#allocation116_spill] sm:$0xff] %v21351_v56  ;;  %v5111_v39 = vpop.f32.mrb[46].mxu0  ;;  %vm6417_vm9 = vcmp.ge.f32.partialorder %v21370_v3, 0.0  ;;  %vm6538_vm10 = vcmp.ge.f32.partialorder %v6249_v45, 0.0  ;;  %v23684_v56 = vld [vmem:[#allocation28_spill] sm:$0xff] }
 0x885   : > { %vm6523_vm4 = vcmp.ge.f32.partialorder %v6234_v62, 0.0  ;;  %v6812_v22 = vmul.f32 %v21134_v28, %v6234_v62  ;;  %v6240_v61 = vadd.f32 %v21132_v25, %v5111_v39  ;;  %v21362_v43 = vpop.f32.mrb[47].mxu0  ;;  %8305 = vmatpush1.bf16.msra.mxu1 %v18018_v53 }
 0x886   : > { %23660 = vst [vmem:[#allocation117_spill] sm:$0xff] %v21362_v43 }
 0x887   : > { %v7100_v48 = vsel %vm6523_vm4, %v6234_v62, %v6812_v22  ;;  %vm6529_vm6 = vcmp.ge.f32.partialorder %v6240_v61, 0.0  ;;  %v6818_v60 = vmul.f32 %v21134_v28, %v6240_v61  ;;  %15309 = vmatmul.mubr.msk.bf16.gmra.mrb[156].mxu0 %vm968_vm1, %v19926_v63  ;;  %v6694_v62 = vmul.f32 %v21134_v28, %v21357_v32 }
 0x888   : > { %v7322_v39 = vmax.f32 %v7100_v48, %v7103_v35  ;;  %5691 = vmatprep.mubr.bf16.mxu0 %v23648_v24  ;;  %v7109_v22 = vsel %vm6532_vm5, %v6243_v19, %v6821_v20  ;;  %v6255_v63 = vadd.f32 %v21121_v8, %v20792_v36  ;;  %v6134_v35 = vadd.f32 %v21321_v55, %v23664_v52  ;;  %v18023_v20 = vld [vmem:[#allocation9 + $0x4e4] ss:$16 sps:$4 sm:$0xff]   ;;  %v23666_v48 = vld [vmem:[#allocation38_spill] sm:$0xff] }
 0x889   : > { %v7106_v12 = vsel %vm6529_vm6, %v6240_v61, %v6818_v60  ;;  %v6827_v19 = vmul.f32 %v21134_v28, %v6249_v45  ;;  %v6706_v61 = vmul.f32 %v21134_v28, %v21370_v3  ;;  %8306 = vmatprep.subr.bf16.mxu1 %v18023_v20 }
 0x88a   : > { %v7464_v47 = vmax.f32 %v7316_v49, %v7322_v39  ;;  %v7325_v1 = vmax.f32 %v7106_v12, %v7109_v22  ;;  %v5117_v31 = vpop.f32.mrb[48].mxu0  ;;  %v6140_v49 = vadd.f32 %v21321_v55, %v23666_v48  ;;  %v18021_v39 = vld [vmem:[#allocation9 + $0x4e0] ss:$16 sps:$4 sm:$0xff]   ;;  %v6833_v53 = vmul.f32 %v21134_v28, %v6255_v63 }
 0x88b   : > { %v6246_v36 = vadd.f32 %v21132_v25, %v5117_v31  ;;  %v21398_v42 = vpop.f32.mrb[49].mxu0  ;;  %v6712_v31 = vmul.f32 %v21134_v28, %v6134_v35  ;;  %vm6544_vm12 = vcmp.ge.f32.partialorder %v6255_v63, 0.0  ;;  %v6261_v48 = vadd.f32 %v21121_v8, %v23668_v50  ;;  %8307 = vmatpush1.bf16.msra.mxu1 %v18021_v39 }
 0x88c   : > { %23665 = vst [vmem:[#allocation35_spill] sm:$0xff] %v21398_v42  ;;  %v7467_v60 = vmax.f32 %v7319_v37, %v7325_v1  ;;  %v5121_v11 = vpop.f32.mrb[50].mxu0  ;;  %v7115_v37 = vsel %vm6538_vm10, %v6249_v45, %v6827_v19  ;;  %vm6423_vm14 = vcmp.ge.f32.partialorder %v6134_v35, 0.0  ;;  %v6718_v20 = vmul.f32 %v21134_v28, %v6140_v49 }
 0x88d   : > { %vm6535_vm11 = vcmp.ge.f32.partialorder %v6246_v36, 0.0  ;;  %v6824_v22 = vmul.f32 %v21134_v28, %v6246_v36  ;;  %v6252_v12 = vadd.f32 %v21132_v25, %v5121_v11  ;;  %v21407_v52 = vpop.f32.mrb[51].mxu0  ;;  %v23670_v11 = vld [vmem:[#allocation39_spill] sm:$0xff]  ;;  %vm6429_vm15 = vcmp.ge.f32.partialorder %v6140_v49, 0.0 }
 0x88e   : > { %23667 = vst [vmem:[#allocation36_spill] sm:$0xff] %v21407_v52  ;;  %v21412_v59 = vpack.c.bf16 %v7467_v60, %v7464_v47  ;;  %v6146_v52 = vadd.f32 %v21321_v55, %v23670_v11  ;;  %v7121_v50 = vsel %vm6544_vm12, %v6255_v63, %v6833_v53  ;;  %v23671_v47 = vld [vmem:[#allocation62_spill] sm:$0xff]  ;;  %v6839_v60 = vmul.f32 %v21134_v28, %v6261_v48 }
 0x88f   : > { %v7112_v1 = vsel %vm6535_vm11, %v6246_v36, %v6824_v22  ;;  %vm6541_vm13 = vcmp.ge.f32.partialorder %v6252_v12, 0.0  ;;  %v6830_v10 = vmul.f32 %v21134_v28, %v6252_v12  ;;  %15310 = vmatmul.mubr.msk.bf16.gmra.mrb[160].mxu0 %vm968_vm1, %v19936_v2  ;;  %v6267_v45 = vadd.f32 %v21121_v8, %v23671_v47  ;;  %v23677_v47 = vld [vmem:[#allocation64_spill] sm:$0xff] }
 0x890   : > { %23669 = vst [vmem:[#allocation57_spill] sm:$0xff] %v21412_v59  ;;  %v7328_v42 = vmax.f32 %v7112_v1, %v7115_v37  ;;  %5701 = vmatprep.mubr.bf16.mxu0 %v23648_v24  ;;  %v21426_v36 = vsel %vm6405_vm7, %v21357_v32, %v6694_v62  ;;  %v21431_v2 = vsel %vm6411_vm8, %v21366_v44, %v6700_v17  ;;  %vm6550_vm0 = vcmp.ge.f32.partialorder %v6261_v48, 0.0  ;;  %v23673_v17 = vld [vmem:[#allocation40_spill] sm:$0xff] }
 0x891   : > { %v7118_v19 = vsel %vm6541_vm13, %v6252_v12, %v6830_v10  ;;  %v21437_v63 = vsel %vm6417_vm9, %v21370_v3, %v6706_v61  ;;  %v21439_v10 = vsel %vm6423_vm14, %v6134_v35, %v6712_v31  ;;  %v21444_v53 = vsel %vm6429_vm15, %v6140_v49, %v6718_v20  ;;  %v23675_v31 = vld [vmem:[#allocation41_spill] sm:$0xff]  ;;  %v23676_v20 = vld [vmem:[#allocation42_spill] sm:$0xff] }
 0x892   : > { %v7331_v39 = vmax.f32 %v7118_v19, %v7121_v50  ;;  %v5127_v22 = vpop.f32.mrb[52].mxu0  ;;  %vm6435_vm2 = vcmp.ge.f32.partialorder %v6146_v52, 0.0  ;;  %v6724_v44 = vmul.f32 %v21134_v28, %v6146_v52  ;;  %v6152_v12 = vadd.f32 %v21321_v55, %v23673_v17 }
 0x893   : > { %v6258_v32 = vadd.f32 %v21132_v25, %v5127_v22  ;;  %v21442_v62 = vpop.f32.mrb[53].mxu0  ;;  %v6845_v1 = vmul.f32 %v21134_v28, %v6267_v45  ;;  %v6158_v49 = vadd.f32 %v21321_v55, %v23675_v31  ;;  %v6164_v11 = vadd.f32 %v21321_v55, %v23676_v20  ;;  %v23678_v31 = vld [vmem:[#allocation43_spill] sm:$0xff] }
 0x894   : > { %23672 = vst [vmem:[#allocation37_spill] sm:$0xff] %v21442_v62  ;;  %v5131_v37 = vpop.f32.mrb[54].mxu0  ;;  %v7127_v50 = vsel %vm6550_vm0, %v6261_v48, %v6839_v60  ;;  %vm6556_vm4 = vcmp.ge.f32.partialorder %v6267_v45, 0.0  ;;  %v6273_v19 = vadd.f32 %v21121_v8, %v23677_v47  ;;  %vm6441_vm6 = vcmp.ge.f32.partialorder %v6152_v12, 0.0 }
 0x895   : > { %vm6547_vm3 = vcmp.ge.f32.partialorder %v6258_v32, 0.0  ;;  %v6836_v3 = vmul.f32 %v21134_v28, %v6258_v32  ;;  %v6264_v35 = vadd.f32 %v21132_v25, %v5131_v37  ;;  %v21452_v61 = vpop.f32.mrb[55].mxu0  ;;  %v21464_v37 = vsel %vm6435_vm2, %v6146_v52, %v6724_v44 }
 0x896   : > { %23674 = vst [vmem:[#allocation38_spill] sm:$0xff] %v21452_v61  ;;  %v6170_v59 = vadd.f32 %v21321_v55, %v23678_v31  ;;  %v6730_v48 = vmul.f32 %v21134_v28, %v6152_v12  ;;  %v7133_v60 = vsel %vm6556_vm4, %v6267_v45, %v6845_v1  ;;  %vm6447_vm7 = vcmp.ge.f32.partialorder %v6158_v49, 0.0  ;;  %v23680_v61 = vld [vmem:[#allocation44_spill] sm:$0xff] }
 0x897   : > { %v7124_v22 = vsel %vm6547_vm3, %v6258_v32, %v6836_v3  ;;  %vm6553_vm5 = vcmp.ge.f32.partialorder %v6264_v35, 0.0  ;;  %v6842_v17 = vmul.f32 %v21134_v28, %v6264_v35  ;;  %15311 = vmatmul.mubr.msk.bf16.gmra.mrb[164].mxu0 %vm968_vm1, %v19946_v5  ;;  %v23679_v32 = vld [vmem:[#allocation66_spill] sm:$0xff]  ;;  %v6176_v5 = vadd.f32 %v21321_v55, %v23680_v61 }
 0x898   : > { %v7334_v20 = vmax.f32 %v7124_v22, %v7127_v50  ;;  %5711 = vmatprep.mubr.bf16.mxu0 %v23648_v24  ;;  %v6279_v3 = vadd.f32 %v21121_v8, %v23679_v32  ;;  %v6736_v43 = vmul.f32 %v21134_v28, %v6158_v49  ;;  %vm6453_vm8 = vcmp.ge.f32.partialorder %v6164_v11, 0.0 }
 0x899   : > { %v7130_v47 = vsel %vm6553_vm5, %v6264_v35, %v6842_v17  ;;  %v6851_v50 = vmul.f32 %v21134_v28, %v6273_v19  ;;  %v6742_v45 = vmul.f32 %v21134_v28, %v6164_v11  ;;  %v6748_v1 = vmul.f32 %v21134_v28, %v6170_v59 }
 0x89a   : > { %v7477_v52 = vmax.f32 %v7328_v42, %v7334_v20  ;;  %v7337_v44 = vmax.f32 %v7130_v47, %v7133_v60  ;;  %v5137_v62 = vpop.f32.mrb[56].mxu0  ;;  %vm6562_vm9 = vcmp.ge.f32.partialorder %v6273_v19, 0.0  ;;  %v6857_v42 = vmul.f32 %v21134_v28, %v6279_v3 }
 0x89b   : > { %v6270_v22 = vadd.f32 %v21132_v25, %v5137_v62  ;;  %v21477_v31 = vpop.f32.mrb[57].mxu0  ;;  %v6754_v62 = vmul.f32 %v21134_v28, %v6176_v5  ;;  %vm6568_vm11 = vcmp.ge.f32.partialorder %v6279_v3, 0.0  ;;  %v6285_v32 = vadd.f32 %v21121_v8, %v20820_v34 }
 0x89c   : > { %23681 = vst [vmem:[#allocation60_spill] sm:$0xff] %v21477_v31  ;;  %v7480_v35 = vmax.f32 %v7331_v39, %v7337_v44  ;;  %v5141_v17 = vpop.f32.mrb[58].mxu0  ;;  %v7139_v31 = vsel %vm6562_vm9, %v6273_v19, %v6851_v50  ;;  %vm6459_vm13 = vcmp.ge.f32.partialorder %v6170_v59, 0.0  ;;  %vm6465_vm14 = vcmp.ge.f32.partialorder %v6176_v5, 0.0  ;;  %v23686_v19 = vld [vmem:[#allocation69_spill] sm:$0xff] }
 0x89d   : > { %vm6559_vm10 = vcmp.ge.f32.partialorder %v6270_v22, 0.0  ;;  %v6848_v61 = vmul.f32 %v21134_v28, %v6270_v22  ;;  %v6276_v20 = vadd.f32 %v21132_v25, %v5141_v17  ;;  %v21484_v60 = vpop.f32.mrb[59].mxu0  ;;  %v23685_v17 = vld [vmem:[#allocation45_spill] sm:$0xff]  ;;  %v21498_v34 = vsel %vm6441_vm6, %v6152_v12, %v6730_v48 }
 0x89e   : > { %23682 = vst [vmem:[#allocation39_spill] sm:$0xff] %v21484_v60  ;;  %v21489_v47 = vpack.c.bf16 %v7480_v35, %v7477_v52  ;;  %v6182_v60 = vadd.f32 %v21321_v55, %v23685_v17  ;;  %v7145_v52 = vsel %vm6568_vm11, %v6279_v3, %v6857_v42  ;;  %v6291_v50 = vadd.f32 %v21121_v8, %v23686_v19  ;;  %v23690_v3 = vld [vmem:[#allocation47_spill] sm:$0xff] }
 0x89f   : > { %v7136_v39 = vsel %vm6559_vm10, %v6270_v22, %v6848_v61  ;;  %vm6565_vm12 = vcmp.ge.f32.partialorder %v6276_v20, 0.0  ;;  %v6854_v44 = vmul.f32 %v21134_v28, %v6276_v20  ;;  %15312 = vmatmul.mubr.msk.bf16.gmra.mrb[168].mxu0 %vm968_vm1, %v23684_v56  ;;  %v21503_v35 = vsel %vm6447_vm7, %v6158_v49, %v6736_v43  ;;  %v23689_v49 = vld [vmem:[#allocation46_spill] sm:$0xff] }
 0x8a0   : > { %23683 = vst [vmem:[#allocation62_spill] sm:$0xff] %v21489_v47  ;;  %v7340_v54 = vmax.f32 %v7136_v39, %v7139_v31  ;;  %5721 = vmatprep.mubr.bf16.mxu0 %v23648_v24  ;;  %v21506_v56 = vsel %vm6453_vm8, %v6164_v11, %v6742_v45  ;;  %v6863_v61 = vmul.f32 %v21134_v28, %v6285_v32  ;;  %vm6574_vm15 = vcmp.ge.f32.partialorder %v6285_v32, 0.0 }
 0x8a1   : > { %v7142_v22 = vsel %vm6565_vm12, %v6276_v20, %v6854_v44  ;;  %v21509_v39 = vsel %vm6459_vm13, %v6170_v59, %v6748_v1  ;;  %v21511_v47 = vsel %vm6465_vm14, %v6176_v5, %v6754_v62  ;;  %vm6471_vm0 = vcmp.ge.f32.partialorder %v6182_v60, 0.0  ;;  %v23692_v62 = vld [vmem:[#allocation48_spill] sm:$0xff] }
 0x8a2   : > { %v7343_v17 = vmax.f32 %v7142_v22, %v7145_v52  ;;  %v5147_v31 = vpop.f32.mrb[60].mxu0  ;;  %23687 = vst [vmem:[#allocation40_spill] sm:$0xff] %v21511_v47  ;;  %v6760_v43 = vmul.f32 %v21134_v28, %v6182_v60  ;;  %v21519_v11 = vadd.f32 %v21321_v55, %v23689_v49  ;;  %v21523_v45 = vadd.f32 %v21321_v55, %v23690_v3  ;;  %v23693_v52 = vld [vmem:[#allocation49_spill] sm:$0xff]  ;;  %v23727_v47 = vld [vmem:[#allocation32_spill] sm:$0xff] }
 0x8a3   : > { %v6282_v12 = vadd.f32 %v21132_v25, %v5147_v31  ;;  %v21514_v48 = vpop.f32.mrb[61].mxu0  ;;  %v6869_v5 = vmul.f32 %v21134_v28, %v6291_v50  ;;  %v6200_v44 = vadd.f32 %v21321_v55, %v23692_v62  ;;  %v6206_v19 = vadd.f32 %v21321_v55, %v23693_v52  ;;  %v23694_v31 = vld [vmem:[#allocation71_spill] sm:$0xff] }
 0x8a4   : > { %23688 = vst [vmem:[#allocation41_spill] sm:$0xff] %v21514_v48  ;;  %v5151_v59 = vpop.f32.mrb[62].mxu0  ;;  %v7151_v22 = vsel %vm6574_vm15, %v6285_v32, %v6863_v61  ;;  %vm6580_vm3 = vcmp.ge.f32.partialorder %v6291_v50, 0.0  ;;  %v6297_v49 = vadd.f32 %v21121_v8, %v23694_v31  ;;  %vm6477_vm5 = vcmp.ge.f32.partialorder %v21519_v11, 0.0 }
 0x8a5   : > { %vm6571_vm2 = vcmp.ge.f32.partialorder %v6282_v12, 0.0  ;;  %v6860_v1 = vmul.f32 %v21134_v28, %v6282_v12  ;;  %v6288_v42 = vadd.f32 %v21132_v25, %v5151_v59  ;;  %v21528_v20 = vpop.f32.mrb[63].mxu0  ;;  %v21540_v59 = vsel %vm6471_vm0, %v6182_v60, %v6760_v43 }
 0x8a6   : > { %23691 = vst [vmem:[#allocation42_spill] sm:$0xff] %v21528_v20  ;;  %23696 = vst [vmem:[#allocation64_spill] sm:$0xff] %v21540_v59  ;;  %v6766_v62 = vmul.f32 %v21134_v28, %v21519_v11  ;;  %vm6483_vm6 = vcmp.ge.f32.partialorder %v21523_v45, 0.0  ;;  %v7157_v61 = vsel %vm6580_vm3, %v6291_v50, %v6869_v5  ;;  %vm6489_vm7 = vcmp.ge.f32.partialorder %v6200_v44, 0.0  ;;  %v23699_v50 = vld [vmem:[#allocation50_spill] sm:$0xff] }
 0x8a7   : > { %v7148_v3 = vsel %vm6571_vm2, %v6282_v12, %v6860_v1  ;;  %vm6577_vm4 = vcmp.ge.f32.partialorder %v6288_v42, 0.0  ;;  %v6866_v48 = vmul.f32 %v21134_v28, %v6288_v42  ;;  %15313 = vmatmul.mubr.msk.bf16.gmra.mrb[172].mxu0 %vm968_vm1, %v23695_v51  ;;  %v23697_v12 = vld [vmem:[#allocation73_spill] sm:$0xff]  ;;  %v6772_v51 = vmul.f32 %v21134_v28, %v21523_v45  ;;  %v23704_v59 = vld [vmem:[#allocation30_spill] sm:$0xff] }
 0x8a8   : > { %v7346_v32 = vmax.f32 %v7148_v3, %v7151_v22  ;;  %5731 = vmatprep.mubr.bf16.mxu0 %v23648_v24  ;;  %v6303_v1 = vadd.f32 %v21121_v8, %v23697_v12  ;;  %v6778_v20 = vmul.f32 %v21134_v28, %v6200_v44  ;;  %vm6495_vm8 = vcmp.ge.f32.partialorder %v6206_v19, 0.0 }
 0x8a9   : > { %v7154_v52 = vsel %vm6577_vm4, %v6288_v42, %v6866_v48  ;;  %v6875_v22 = vmul.f32 %v21134_v28, %v6297_v49  ;;  %v6212_v5 = vadd.f32 %v21321_v55, %v23699_v50  ;;  %v23700_v48 = vld [vmem:[#allocation51_spill] sm:$0xff]  ;;  %vm6586_vm9 = vcmp.ge.f32.partialorder %v6297_v49, 0.0 }
 0x8aa   : > { %v7490_v60 = vmax.f32 %v7340_v54, %v7346_v32  ;;  %v7349_v43 = vmax.f32 %v7154_v52, %v7157_v61  ;;  %v5157_v31 = vpop.f32.mrb[64].mxu0  ;;  %v6218_v42 = vadd.f32 %v21321_v55, %v23700_v48  ;;  %v6881_v32 = vmul.f32 %v21134_v28, %v6303_v1 }
 0x8ab   : > { %v6294_v3 = vadd.f32 %v21132_v25, %v5157_v31  ;;  %v21554_v0 = vpop.f32.mrb[65].mxu0  ;;  %v6784_v31 = vmul.f32 %v21134_v28, %v6206_v19  ;;  %vm6592_vm11 = vcmp.ge.f32.partialorder %v6303_v1, 0.0  ;;  %v7163_v48 = vsel %vm6586_vm9, %v6297_v49, %v6875_v22 }
 0x8ac   : > { %23698 = vst [vmem:[#allocation43_spill] sm:$0xff] %v21554_v0  ;;  %v7493_v12 = vmax.f32 %v7343_v17, %v7349_v43  ;;  %v5161_v54 = vpop.f32.mrb[66].mxu0  ;;  %v23702_v0 = vld [vmem:[#allocation75_spill] sm:$0xff]  ;;  %vm6501_vm13 = vcmp.ge.f32.partialorder %v6212_v5, 0.0  ;;  %vm6507_vm14 = vcmp.ge.f32.partialorder %v6218_v42, 0.0 }
 0x8ad   : > { %vm6583_vm10 = vcmp.ge.f32.partialorder %v6294_v3, 0.0  ;;  %v6872_v61 = vmul.f32 %v21134_v28, %v6294_v3  ;;  %v6300_v52 = vadd.f32 %v21132_v25, %v5161_v54  ;;  %v21563_v9 = vpop.f32.mrb[67].mxu0  ;;  %v6309_v50 = vadd.f32 %v21121_v8, %v23702_v0 }
 0x8ae   : > { %23701 = vst [vmem:[#allocation66_spill] sm:$0xff] %v21563_v9  ;;  %v21568_v46 = vpack.c.bf16 %v7493_v12, %v7490_v60  ;;  %v6790_v54 = vmul.f32 %v21134_v28, %v6212_v5  ;;  %v6796_v9 = vmul.f32 %v21134_v28, %v6218_v42  ;;  %v7169_v0 = vsel %vm6592_vm11, %v6303_v1, %v6881_v32  ;;  %v23705_v60 = vld [vmem:[#allocation77_spill] sm:$0xff] }
 0x8af   : > { %v7160_v17 = vsel %vm6583_vm10, %v6294_v3, %v6872_v61  ;;  %vm6589_vm12 = vcmp.ge.f32.partialorder %v6300_v52, 0.0  ;;  %v6878_v43 = vmul.f32 %v21134_v28, %v6300_v52  ;;  %15314 = vmatmul.mubr.msk.bf16.gmra.mrb[176].mxu0 %vm968_vm1, %v23704_v59  ;;  %v6315_v49 = vadd.f32 %v21121_v8, %v23705_v60 }
 0x8b0   : > { %23703 = vst [vmem:[#allocation44_spill] sm:$0xff] %v21568_v46  ;;  %v7352_v38 = vmax.f32 %v7160_v17, %v7163_v48  ;;  %5741 = vmatprep.mubr.bf16.mxu0 %v23648_v24  ;;  %v21581_v3 = vsel %vm6477_vm5, %v21519_v11, %v6766_v62  ;;  %v21586_v59 = vsel %vm6483_vm6, %v21523_v45, %v6772_v51  ;;  %vm6598_vm15 = vcmp.ge.f32.partialorder %v6309_v50, 0.0  ;;  %v23713_v51 = vld [vmem:[#allocation52_spill] sm:$0xff] }
 0x8b1   : > { %v7166_v22 = vsel %vm6589_vm12, %v6300_v52, %v6878_v43  ;;  %23706 = vst [vmem:[#allocation28_spill] sm:$0xff] %v21581_v3  ;;  %23707 = vst [vmem:[#allocation45_spill] sm:$0xff] %v21586_v59  ;;  %v6887_v12 = vmul.f32 %v21134_v28, %v6309_v50  ;;  %v21590_v1 = vsel %vm6489_vm7, %v6200_v44, %v6778_v20  ;;  %v23714_v43 = vld [vmem:[#allocation53_spill] sm:$0xff]  ;;  %vm6604_vm2 = vcmp.ge.f32.partialorder %v6315_v49, 0.0 }
 0x8b2   : > { %v7355_v61 = vmax.f32 %v7166_v22, %v7169_v0  ;;  %v5167_v48 = vpop.f32.mrb[68].mxu0  ;;  %23708 = vst [vmem:[#allocation69_spill] sm:$0xff] %v21590_v1  ;;  %v21593_v32 = vsel %vm6495_vm8, %v6206_v19, %v6784_v31  ;;  %v21599_v62 = vsel %vm6501_vm13, %v6212_v5, %v6790_v54  ;;  %v21601_v45 = vsel %vm6507_vm14, %v6218_v42, %v6796_v9  ;;  %v23716_v5 = vld [vmem:[#allocation54_spill] sm:$0xff]  ;;  %v23717_v42 = vld [vmem:[#allocation55_spill] sm:$0xff] }
 0x8b3   : > { %23709 = vst [vmem:[#allocation46_spill] sm:$0xff] %v21593_v32  ;;  %v6306_v52 = vadd.f32 %v21132_v25, %v5167_v48  ;;  %v21596_v11 = vpop.f32.mrb[69].mxu0  ;;  %23711 = vst [vmem:[#allocation48_spill] sm:$0xff] %v21599_v62  ;;  %v6224_v17 = vadd.f32 %v21321_v55, %v23713_v51  ;;  %v6230_v20 = vadd.f32 %v21321_v55, %v23714_v43  ;;  %v23718_v48 = vld [vmem:[#allocation79_spill] sm:$0xff] }
 0x8b4   : > { %23710 = vst [vmem:[#allocation47_spill] sm:$0xff] %v21596_v11  ;;  %23712 = vst [vmem:[#allocation49_spill] sm:$0xff] %v21601_v45  ;;  %v5171_v44 = vpop.f32.mrb[70].mxu0  ;;  %v6893_v19 = vmul.f32 %v21134_v28, %v6315_v49  ;;  %v6236_v9 = vadd.f32 %v21321_v55, %v23716_v5  ;;  %v6242_v54 = vadd.f32 %v21321_v55, %v23717_v42  ;;  %v23719_v11 = vld [vmem:[#allocation31_spill] sm:$0xff] }
 0x8b5   : > { %vm6595_vm0 = vcmp.ge.f32.partialorder %v6306_v52, 0.0  ;;  %v6884_v31 = vmul.f32 %v21134_v28, %v6306_v52  ;;  %v6312_v0 = vadd.f32 %v21132_v25, %v5171_v44  ;;  %v21610_v60 = vpop.f32.mrb[71].mxu0  ;;  %v7175_v22 = vsel %vm6598_vm15, %v6309_v50, %v6887_v12  ;;  %v23721_v12 = vld [vmem:[#allocation81_spill] sm:$0xff] }
 0x8b6   : > { %23715 = vst [vmem:[#allocation71_spill] sm:$0xff] %v21610_v60  ;;  %v6321_v51 = vadd.f32 %v21121_v8, %v23718_v48  ;;  %vm6513_vm4 = vcmp.ge.f32.partialorder %v6224_v17, 0.0  ;;  %v6802_v44 = vmul.f32 %v21134_v28, %v6224_v17  ;;  %v23720_v60 = vld [vmem:[#allocation56_spill] sm:$0xff]  ;;  %vm6519_vm5 = vcmp.ge.f32.partialorder %v6230_v20, 0.0 }
 0x8b7   : > { %v7172_v43 = vsel %vm6595_vm0, %v6306_v52, %v6884_v31  ;;  %vm6601_vm3 = vcmp.ge.f32.partialorder %v6312_v0, 0.0  ;;  %v6890_v46 = vmul.f32 %v21134_v28, %v6312_v0  ;;  %15315 = vmatmul.mubr.msk.bf16.gmra.mrb[180].mxu0 %vm968_vm1, %v23719_v11  ;;  %v6248_v5 = vadd.f32 %v21321_v55, %v23720_v60 }
 0x8b8   : > { %v7358_v45 = vmax.f32 %v7172_v43, %v7175_v22  ;;  %5751 = vmatprep.mubr.bf16.mxu0 %v23648_v24  ;;  %v7181_v50 = vsel %vm6604_vm2, %v6315_v49, %v6893_v19  ;;  %v6327_v52 = vadd.f32 %v21121_v8, %v23721_v12  ;;  %v6808_v42 = vmul.f32 %v21134_v28, %v6230_v20 }
 0x8b9   : > { %v7178_v31 = vsel %vm6601_vm3, %v6312_v0, %v6890_v46  ;;  %vm6525_vm6 = vcmp.ge.f32.partialorder %v6236_v9, 0.0  ;;  %v6814_v32 = vmul.f32 %v21134_v28, %v6236_v9  ;;  %vm6531_vm7 = vcmp.ge.f32.partialorder %v6242_v54, 0.0 }
 0x8ba   : > { %v7503_v48 = vmax.f32 %v7352_v38, %v7358_v45  ;;  %v7361_v11 = vmax.f32 %v7178_v31, %v7181_v50  ;;  %v5177_v62 = vpop.f32.mrb[72].mxu0  ;;  %v6899_v60 = vmul.f32 %v21134_v28, %v6321_v51  ;;  %v6820_v49 = vmul.f32 %v21134_v28, %v6242_v54  ;;  %v23724_v31 = vld [vmem:[#allocation58_spill] sm:$0xff] }
 0x8bb   : > { %v6318_v22 = vadd.f32 %v21132_v25, %v5177_v62  ;;  %v21631_v43 = vpop.f32.mrb[73].mxu0  ;;  %v6826_v19 = vmul.f32 %v21134_v28, %v6248_v5  ;;  %vm6610_vm8 = vcmp.ge.f32.partialorder %v6321_v51, 0.0  ;;  %v6905_v38 = vmul.f32 %v21134_v28, %v6327_v52 }
 0x8bc   : > { %23722 = vst [vmem:[#allocation29_spill] sm:$0xff] %v21631_v43  ;;  %v7506_v46 = vmax.f32 %v7355_v61, %v7361_v11  ;;  %v5181_v0 = vpop.f32.mrb[74].mxu0  ;;  %v6254_v62 = vadd.f32 %v21321_v55, %v23724_v31  ;;  %vm6616_vm10 = vcmp.ge.f32.partialorder %v6327_v52, 0.0  ;;  %v23725_v43 = vld [vmem:[#allocation83_spill] sm:$0xff]  ;;  %v7187_v61 = vsel %vm6610_vm8, %v6321_v51, %v6899_v60  ;;  %v23729_v60 = vld [vmem:[#allocation85_spill] sm:$0xff] }
 0x8bd   : > { %vm6607_vm9 = vcmp.ge.f32.partialorder %v6318_v22, 0.0  ;;  %v6896_v45 = vmul.f32 %v21134_v28, %v6318_v22  ;;  %v6324_v50 = vadd.f32 %v21132_v25, %v5181_v0  ;;  %v21638_v12 = vpop.f32.mrb[75].mxu0  ;;  %v6333_v1 = vadd.f32 %v21121_v8, %v23725_v43 }
 0x8be   : > { %23723 = vst [vmem:[#allocation73_spill] sm:$0xff] %v21638_v12  ;;  %v21644_v59 = vpack.c.bf16 %v7506_v46, %v7503_v48  ;;  %v21650_v0 = vsel %vm6513_vm4, %v6224_v17, %v6802_v44  ;;  %vm6537_vm12 = vcmp.ge.f32.partialorder %v6248_v5, 0.0  ;;  %v23728_v12 = vld [vmem:[#allocation59_spill] sm:$0xff]  ;;  %v21656_v48 = vsel %vm6519_vm5, %v6230_v20, %v6808_v42 }
 0x8bf   : > { %v7184_v11 = vsel %vm6607_vm9, %v6318_v22, %v6896_v45  ;;  %vm6613_vm11 = vcmp.ge.f32.partialorder %v6324_v50, 0.0  ;;  %v6902_v3 = vmul.f32 %v21134_v28, %v6324_v50  ;;  %15316 = vmatmul.mubr.msk.bf16.gmra.mrb[184].mxu0 %vm968_vm1, %v23727_v47  ;;  %v6260_v31 = vadd.f32 %v21321_v55, %v23728_v12 }
 0x8c0   : > { %23726 = vst [vmem:[#allocation50_spill] sm:$0xff] %v21644_v59  ;;  %v7364_v30 = vmax.f32 %v7184_v11, %v7187_v61  ;;  %5761 = vmatprep.mubr.bf16.mxu0 %v23648_v24  ;;  %v7193_v51 = vsel %vm6616_vm10, %v6327_v52, %v6905_v38  ;;  %v6339_v22 = vadd.f32 %v21121_v8, %v23729_v60  ;;  %vm6543_vm13 = vcmp.ge.f32.partialorder %v6254_v62, 0.0  ;;  %v23737_v11 = vld [vmem:[#allocation65_spill] sm:$0xff] }
 0x8c1   : > { %v7190_v43 = vsel %vm6613_vm11, %v6324_v50, %v6902_v3  ;;  %v21661_v47 = vsel %vm6525_vm6, %v6236_v9, %v6814_v32  ;;  %v21664_v17 = vsel %vm6531_vm7, %v6242_v54, %v6820_v49  ;;  %v6911_v44 = vmul.f32 %v21134_v28, %v6333_v1  ;;  %v23734_v9 = vld [vmem:[#allocation61_spill] sm:$0xff]  ;;  %v23736_v50 = vld [vmem:[#allocation63_spill] sm:$0xff] }
 0x8c2   : > { %23730 = vst [vmem:[#allocation51_spill] sm:$0xff] %v21661_v47  ;;  %23731 = vst [vmem:[#allocation75_spill] sm:$0xff] %v21664_v17  ;;  %v7367_v46 = vmax.f32 %v7190_v43, %v7193_v51  ;;  %v5187_v45 = vpop.f32.mrb[76].mxu0  ;;  %v21667_v12 = vsel %vm6537_vm12, %v6248_v5, %v6826_v19  ;;  %vm6622_vm14 = vcmp.ge.f32.partialorder %v6333_v1, 0.0  ;;  %v6832_v3 = vmul.f32 %v21134_v28, %v6254_v62  ;;  %v23738_v43 = vld [vmem:[#allocation87_spill] sm:$0xff] }
 0x8c3   : > { %23732 = vst [vmem:[#allocation30_spill] sm:$0xff] %v21667_v12  ;;  %v6330_v20 = vadd.f32 %v21132_v25, %v5187_v45  ;;  %v21670_v52 = vpop.f32.mrb[77].mxu0  ;;  %vm6549_vm15 = vcmp.ge.f32.partialorder %v6260_v31, 0.0  ;;  %v6838_v32 = vmul.f32 %v21134_v28, %v6260_v31  ;;  %v6266_v54 = vadd.f32 %v21321_v55, %v23734_v9  ;;  %v23749_v12 = vld [vmem:[#allocation34_spill] sm:$0xff] }
 0x8c4   : > { %23733 = vst [vmem:[#allocation77_spill] sm:$0xff] %v21670_v52  ;;  %v5191_v42 = vpop.f32.mrb[78].mxu0  ;;  %v6917_v49 = vmul.f32 %v21134_v28, %v6339_v22  ;;  %v6272_v61 = vadd.f32 %v21321_v55, %v23736_v50  ;;  %v6278_v51 = vadd.f32 %v21321_v55, %v23737_v11  ;;  %v7199_v60 = vsel %vm6622_vm14, %v6333_v1, %v6911_v44  ;;  %v23739_v52 = vld [vmem:[#allocation33_spill] sm:$0xff] }
 0x8c5   : > { %vm6619_vm0 = vcmp.ge.f32.partialorder %v6330_v20, 0.0  ;;  %v6908_v5 = vmul.f32 %v21134_v28, %v6330_v20  ;;  %v6336_v19 = vadd.f32 %v21132_v25, %v5191_v42  ;;  %v21679_v38 = vpop.f32.mrb[79].mxu0  ;;  %vm6628_vm2 = vcmp.ge.f32.partialorder %v6339_v22, 0.0 }
 0x8c6   : > { %23735 = vst [vmem:[#allocation52_spill] sm:$0xff] %v21679_v38  ;;  %v6345_v45 = vadd.f32 %v21121_v8, %v23738_v43  ;;  %v21691_v42 = vsel %vm6543_vm13, %v6254_v62, %v6832_v3  ;;  %v21694_v50 = vsel %vm6549_vm15, %v6260_v31, %v6838_v32  ;;  %v23742_v38 = vld [vmem:[#allocation67_spill] sm:$0xff]  ;;  %vm6555_vm4 = vcmp.ge.f32.partialorder %v6266_v54, 0.0 }
 0x8c7   : > { %v7196_v9 = vsel %vm6619_vm0, %v6330_v20, %v6908_v5  ;;  %vm6625_vm3 = vcmp.ge.f32.partialorder %v6336_v19, 0.0  ;;  %v6914_v59 = vmul.f32 %v21134_v28, %v6336_v19  ;;  %15317 = vmatmul.mubr.msk.bf16.gmra.mrb[188].mxu0 %vm968_vm1, %v23739_v52  ;;  %23740 = vst [vmem:[#allocation53_spill] sm:$0xff] %v21691_v42  ;;  %23741 = vst [vmem:[#allocation54_spill] sm:$0xff] %v21694_v50  ;;  %v23743_v5 = vld [vmem:[#allocation89_spill] sm:$0xff]  ;;  %vm6561_vm5 = vcmp.ge.f32.partialorder %v6272_v61, 0.0 }
 0x8c8   : > { %v6284_v1 = vadd.f32 %v21321_v55, %v23742_v38  ;;  %v7370_v44 = vmax.f32 %v7196_v9, %v7199_v60  ;;  %5771 = vmatprep.mubr.bf16.mxu0 %v23648_v24  ;;  %v7205_v20 = vsel %vm6628_vm2, %v6339_v22, %v6917_v49  ;;  %v6351_v11 = vadd.f32 %v21121_v8, %v23743_v5  ;;  %v23746_v5 = vld [vmem:[#allocation68_spill] sm:$0xff] }
 0x8c9   : > { %v7202_v43 = vsel %vm6625_vm3, %v6336_v19, %v6914_v59  ;;  %v6844_v52 = vmul.f32 %v21134_v28, %v6266_v54  ;;  %v6850_v31 = vmul.f32 %v21134_v28, %v6272_v61  ;;  %vm6567_vm6 = vcmp.ge.f32.partialorder %v6278_v51, 0.0 }
 0x8ca   : > { %v7516_v62 = vmax.f32 %v7364_v30, %v7370_v44  ;;  %v7373_v3 = vmax.f32 %v7202_v43, %v7205_v20  ;;  %v5197_v42 = vpop.f32.mrb[80].mxu0  ;;  %v6923_v32 = vmul.f32 %v21134_v28, %v6345_v45  ;;  %v6856_v22 = vmul.f32 %v21134_v28, %v6278_v51  ;;  %v23747_v43 = vld [vmem:[#allocation91_spill] sm:$0xff] }
 0x8cb   : > { %v6342_v38 = vadd.f32 %v21132_v25, %v5197_v42  ;;  %v21705_v60 = vpop.f32.mrb[81].mxu0  ;;  %v6862_v49 = vmul.f32 %v21134_v28, %v6284_v1  ;;  %vm6634_vm7 = vcmp.ge.f32.partialorder %v6345_v45, 0.0  ;;  %v6929_v30 = vmul.f32 %v21134_v28, %v6351_v11 }
 0x8cc   : > { %23744 = vst [vmem:[#allocation55_spill] sm:$0xff] %v21705_v60  ;;  %v7519_v59 = vmax.f32 %v7367_v46, %v7373_v3  ;;  %v5201_v19 = vpop.f32.mrb[82].mxu0  ;;  %v6290_v42 = vadd.f32 %v21321_v55, %v23746_v5  ;;  %vm6640_vm9 = vcmp.ge.f32.partialorder %v6351_v11, 0.0  ;;  %v6357_v24 = vadd.f32 %v21121_v8, %v23747_v43  ;;  %v23751_v5 = vld [vmem:[#allocation70_spill] sm:$0xff] }
 0x8cd   : > { %vm6631_vm8 = vcmp.ge.f32.partialorder %v6342_v38, 0.0  ;;  %v6920_v9 = vmul.f32 %v21134_v28, %v6342_v38  ;;  %v6348_v44 = vadd.f32 %v21132_v25, %v5201_v19  ;;  %v21712_v20 = vpop.f32.mrb[83].mxu0  ;;  %v7211_v46 = vsel %vm6634_vm7, %v6345_v45, %v6923_v32  ;;  %v18026_v19 = vld [vmem:[#allocation9 + $0x504] ss:$16 sps:$4 sm:$0xff]  }
 0x8ce   : > { %23745 = vst [vmem:[#allocation79_spill] sm:$0xff] %v21712_v20  ;;  %v21718_v60 = vpack.c.bf16 %v7519_v59, %v7516_v62  ;;  %v21724_v20 = vsel %vm6555_vm4, %v6266_v54, %v6844_v52  ;;  %vm6573_vm11 = vcmp.ge.f32.partialorder %v6284_v1, 0.0  ;;  %v6296_v17 = vadd.f32 %v21321_v55, %v23751_v5  ;;  %v23753_v32 = vld [vmem:[#allocation93_spill] sm:$0xff]  ;;  %8389 = vmatprep.subr.bf16.mxu1 %v18026_v19 }
 0x8cf   : > { %v7208_v3 = vsel %vm6631_vm8, %v6342_v38, %v6920_v9  ;;  %vm6637_vm10 = vcmp.ge.f32.partialorder %v6348_v44, 0.0  ;;  %v6926_v50 = vmul.f32 %v21134_v28, %v6348_v44  ;;  %15318 = vmatmul.mubr.msk.bf16.gmra.mrb[192].mxu0 %vm968_vm1, %v23749_v12  ;;  %23750 = vst [vmem:[#allocation56_spill] sm:$0xff] %v21724_v20  ;;  %v21729_v62 = vsel %vm6561_vm5, %v6272_v61, %v6850_v31  ;;  %v23757_v31 = vld [vmem:[#allocation72_spill] sm:$0xff]  ;;  %v23773_v20 = vld [vmem:[#allocation101_spill] sm:$0xff] }
 0x8d0   : > { %23748 = vst [vmem:[#allocation31_spill] sm:$0xff] %v21718_v60  ;;  %v7376_v47 = vmax.f32 %v7208_v3, %v7211_v46  ;;  %23752 = vst [vmem:[#allocation81_spill] sm:$0xff] %v21729_v62  ;;  %v7217_v45 = vsel %vm6640_vm9, %v6351_v11, %v6929_v30  ;;  %v6363_v38 = vadd.f32 %v21121_v8, %v23753_v32  ;;  %vm6579_vm1 = vcmp.ge.f32.partialorder %v6290_v42, 0.0 }
 0x8d1   : > { %v7214_v59 = vsel %vm6637_vm10, %v6348_v44, %v6926_v50  ;;  %v21734_v12 = vsel %vm6567_vm6, %v6278_v51, %v6856_v22  ;;  %v6868_v54 = vmul.f32 %v21134_v28, %v6290_v42  ;;  %v6935_v52 = vmul.f32 %v21134_v28, %v6357_v24  ;;  %v23758_v22 = vld [vmem:[#allocation74_spill] sm:$0xff] }
 0x8d2   : > { %23754 = vst [vmem:[#allocation58_spill] sm:$0xff] %v21734_v12  ;;  %v7379_v9 = vmax.f32 %v7214_v59, %v7217_v45  ;;  %v5207_v43 = vpop.f32.mrb[84].mxu0  ;;  %v21738_v5 = vsel %vm6573_vm11, %v6284_v1, %v6862_v49  ;;  %vm6646_vm12 = vcmp.ge.f32.partialorder %v6357_v24, 0.0  ;;  %vm6585_vm13 = vcmp.ge.f32.partialorder %v6296_v17, 0.0  ;;  %v23761_v45 = vld [vmem:[#allocation76_spill] sm:$0xff] }
 0x8d3   : > { %23755 = vst [vmem:[#allocation83_spill] sm:$0xff] %v21738_v5  ;;  %v6354_v61 = vadd.f32 %v21132_v25, %v5207_v43  ;;  %v21741_v11 = vpop.f32.mrb[85].mxu0  ;;  %v6874_v50 = vmul.f32 %v21134_v28, %v6296_v17  ;;  %v6302_v51 = vadd.f32 %v21321_v55, %v23757_v31  ;;  %v6308_v30 = vadd.f32 %v21321_v55, %v23758_v22  ;;  %v23762_v43 = vld [vmem:[#allocation95_spill] sm:$0xff] }
 0x8d4   : > { %23756 = vst [vmem:[#allocation32_spill] sm:$0xff] %v21741_v11  ;;  %v5211_v44 = vpop.f32.mrb[86].mxu0  ;;  %v6941_v46 = vmul.f32 %v21134_v28, %v6363_v38  ;;  %v21753_v19 = vsel %vm6579_vm1, %v6290_v42, %v6868_v54  ;;  %v6314_v32 = vadd.f32 %v21321_v55, %v23761_v45  ;;  %v7223_v59 = vsel %vm6646_vm12, %v6357_v24, %v6935_v52 }
 0x8d5   : > { %vm6643_vm14 = vcmp.ge.f32.partialorder %v6354_v61, 0.0  ;;  %v6932_v1 = vmul.f32 %v21134_v28, %v6354_v61  ;;  %v6360_v49 = vadd.f32 %v21132_v25, %v5211_v44  ;;  %v21751_v3 = vpop.f32.mrb[87].mxu0  ;;  %23760 = vst [vmem:[#allocation85_spill] sm:$0xff] %v21753_v19  ;;  %vm6652_vm15 = vcmp.ge.f32.partialorder %v6363_v38, 0.0 }
 0x8d6   : > { %23759 = vst [vmem:[#allocation59_spill] sm:$0xff] %v21751_v3  ;;  %v6369_v31 = vadd.f32 %v21121_v8, %v23762_v43  ;;  %v21761_v11 = vsel %vm6585_vm13, %v6296_v17, %v6874_v50  ;;  %vm6591_vm2 = vcmp.ge.f32.partialorder %v6302_v51, 0.0  ;;  %v6880_v44 = vmul.f32 %v21134_v28, %v6302_v51  ;;  %v23764_v3 = vld [vmem:[#allocation97_spill] sm:$0xff] }
 0x8d7   : > { %v7220_v22 = vsel %vm6643_vm14, %v6354_v61, %v6932_v1  ;;  %vm6649_vm0 = vcmp.ge.f32.partialorder %v6360_v49, 0.0  ;;  %v6938_v60 = vmul.f32 %v21134_v28, %v6360_v49  ;;  %23763 = vst [vmem:[#allocation61_spill] sm:$0xff] %v21761_v11  ;;  %vm6597_vm3 = vcmp.ge.f32.partialorder %v6308_v30, 0.0  ;;  %v18952_v11 = vld [vmem:[#allocation7] sm:$0x3f] }
 0x8d8   : > { %v7382_v42 = vmax.f32 %v7220_v22, %v7223_v59  ;;  %v7229_v54 = vsel %vm6652_vm15, %v6363_v38, %v6941_v46  ;;  %v6375_v24 = vadd.f32 %v21121_v8, %v23764_v3  ;;  %v6886_v45 = vmul.f32 %v21134_v28, %v6308_v30  ;;  %v23767_v46 = vld [vmem:[#allocation78_spill] sm:$0xff] }
 0x8d9   : > { %v7226_v52 = vsel %vm6649_vm0, %v6360_v49, %v6938_v60  ;;  %v21768_v61 = vsub.s32 1, %v21110_v18  ;;  %vm6603_vm4 = vcmp.ge.f32.partialorder %v6314_v32, 0.0  ;;  %v6892_v17 = vmul.f32 %v21134_v28, %v6314_v32  ;;  %v23768_v49 = vld [vmem:[#allocation80_spill] sm:$0xff] }
 0x8da   : > { %v7529_v1 = vmax.f32 %v7376_v47, %v7382_v42  ;;  %v7385_v43 = vmax.f32 %v7226_v52, %v7229_v54  ;;  %v5217_v19 = vpop.f32.mrb[88].mxu0  ;;  %v6947_v50 = vmul.f32 %v21134_v28, %v6369_v31  ;;  %v6320_v60 = vadd.f32 %v21321_v55, %v23767_v46 }
 0x8db   : > { %23765 = vst [vmem:[#allocation63_spill] sm:$0xff] %v21768_v61  ;;  %v6366_v59 = vadd.f32 %v21132_v25, %v5217_v19  ;;  %v21773_v38 = vpop.f32.mrb[89].mxu0  ;;  %v21779_v3 = vadd.f32 %v21321_v55, %v23768_v49  ;;  %vm6658_vm5 = vcmp.ge.f32.partialorder %v6369_v31, 0.0  ;;  %v6953_v42 = vmul.f32 %v21134_v28, %v6375_v24 }
 0x8dc   : > { %23766 = vst [vmem:[#allocation65_spill] sm:$0xff] %v21773_v38  ;;  %v7532_v47 = vmax.f32 %v7379_v9, %v7385_v43  ;;  %v5221_v22 = vpop.f32.mrb[90].mxu0  ;;  %vm6664_vm7 = vcmp.ge.f32.partialorder %v6375_v24, 0.0  ;;  %v23770_v38 = vld [vmem:[#allocation99_spill] sm:$0xff]  ;;  %v21789_v49 = vrot.slane %v18952_v11, %v21768_v61  ;;  %v7235_v9 = vsel %vm6658_vm5, %v6369_v31, %v6947_v50 }
 0x8dd   : > { %vm6655_vm6 = vcmp.ge.f32.partialorder %v6366_v59, 0.0  ;;  %v6944_v54 = vmul.f32 %v21134_v28, %v6366_v59  ;;  %v6372_v52 = vadd.f32 %v21132_v25, %v5221_v22  ;;  %v21784_v19 = vpop.f32.mrb[91].mxu0  ;;  %v6381_v46 = vadd.f32 %v21121_v8, %v23770_v38 }
 0x8de   : > { %23769 = vst [vmem:[#allocation87_spill] sm:$0xff] %v21784_v19  ;;  %v21791_v5 = vpack.c.bf16 %v7532_v47, %v7529_v1  ;;  %v21795_v62 = vsel %vm6591_vm2, %v6302_v51, %v6880_v44  ;;  %v21798_v22 = vsel %vm6597_vm3, %v6308_v30, %v6886_v45  ;;  %v21801_v19 = vsel %vm6603_vm4, %v6314_v32, %v6892_v17  ;;  %v23774_v47 = vld [vmem:[#allocation104_spill] sm:$0xff]  ;;  %v23777_v17 = vld [vmem:[#allocation105_spill] sm:$0xff] }
 0x8df   : > { %v7232_v43 = vsel %vm6655_vm6, %v6366_v59, %v6944_v54  ;;  %vm6661_vm8 = vcmp.ge.f32.partialorder %v6372_v52, 0.0  ;;  %v6950_v12 = vmul.f32 %v21134_v28, %v6372_v52  ;;  %23772 = vst [vmem:[#allocation67_spill] sm:$0xff] %v21801_v19  ;;  %vm6609_vm9 = vcmp.ge.f32.partialorder %v6320_v60, 0.0 }
 0x8e0   : > { %23771 = vst [vmem:[#allocation33_spill] sm:$0xff] %v21791_v5  ;;  %v7388_v38 = vmax.f32 %v7232_v43, %v7235_v9  ;;  %v7241_v61 = vsel %vm6664_vm7, %v6375_v24, %v6953_v42  ;;  %v6387_v1 = vadd.f32 %v21121_v8, %v23773_v20  ;;  %v6898_v50 = vmul.f32 %v21134_v28, %v6320_v60  ;;  %v23776_v20 = vld [vmem:[#allocation82_spill] sm:$0xff] }
 0x8e1   : > { %v7238_v31 = vsel %vm6661_vm8, %v6372_v52, %v6950_v12  ;;  %v6959_v59 = vmul.f32 %v21134_v28, %v6381_v46  ;;  %v6103_v51 = vadd.f32 %v21789_v49, %v23774_v47  ;;  %vm6615_vm10 = vcmp.ge.f32.partialorder %v21779_v3, 0.0 }
 0x8e2   : > { %v7391_v44 = vmax.f32 %v7238_v31, %v7241_v61  ;;  %v5227_v30 = vpop.f32.mrb[92].mxu0  ;;  %vm6670_vm11 = vcmp.ge.f32.partialorder %v6381_v46, 0.0  ;;  %v6090_v24 = vsub.s32 4, %v21110_v18  ;;  %v6904_v8 = vmul.f32 %v21134_v28, %v21779_v3 }
 0x8e3   : > { %v6378_v32 = vadd.f32 %v21132_v25, %v5227_v30  ;;  %v21811_v45 = vpop.f32.mrb[93].mxu0  ;;  %v6332_v12 = vadd.f32 %v21321_v55, %v23776_v20  ;;  %v6109_v42 = vadd.f32 %v21789_v49, %v23777_v17  ;;  %v6094_v54 = vsub.s32 5, %v21110_v18 }
 0x8e4   : > { %23775 = vst [vmem:[#allocation89_spill] sm:$0xff] %v21811_v45  ;;  %v5231_v61 = vpop.f32.mrb[94].mxu0  ;;  %v6965_v52 = vmul.f32 %v21134_v28, %v6387_v1  ;;  %v7247_v47 = vsel %vm6670_vm11, %v6381_v46, %v6959_v59  ;;  %vm6676_vm12 = vcmp.ge.f32.partialorder %v6387_v1, 0.0  ;;  %vm6392_vm13 = vcmp.ge.f32.partialorder %v6103_v51, 0.0 }
 0x8e5   : > { %vm6667_vm1 = vcmp.ge.f32.partialorder %v6378_v32, 0.0  ;;  %v6956_v9 = vmul.f32 %v21134_v28, %v6378_v32  ;;  %v6384_v43 = vadd.f32 %v21132_v25, %v5231_v61  ;;  %v21824_v31 = vpop.f32.mrb[95].mxu0  ;;  %v6681_v30 = vmul.f32 %v21134_v28, %v6103_v51 }
 0x8e6   : > { %23778 = vst [vmem:[#allocation68_spill] sm:$0xff] %v21824_v31  ;;  %v21828_v5 = vrot.slane %v18952_v11, %v6090_v24  ;;  %v6687_v18 = vmul.f32 %v21134_v28, %v6109_v42  ;;  %v6115_v45 = vadd.f32 %v21789_v49, %v21158_v14  ;;  %v21833_v25 = vrot.slane %v18952_v11, %v6094_v54  ;;  %v23779_v54 = vld [vmem:[#allocation106_spill] sm:$0xff] }
 0x8e7   : > { %v7244_v20 = vsel %vm6667_vm1, %v6378_v32, %v6956_v9  ;;  %vm6673_vm14 = vcmp.ge.f32.partialorder %v6384_v43, 0.0  ;;  %v6962_v17 = vmul.f32 %v21134_v28, %v6384_v43  ;;  %v21836_v46 = vsel %vm6609_vm9, %v6320_v60, %v6898_v50 }
 0x8e8   : > { %v7394_v19 = vmax.f32 %v7244_v20, %v7247_v47  ;;  %v7253_v59 = vsel %vm6676_vm12, %v6387_v1, %v6965_v52  ;;  %vm6398_vm15 = vcmp.ge.f32.partialorder %v6109_v42, 0.0  ;;  %v21841_v32 = vsel %vm6615_vm10, %v21779_v3, %v6904_v8 }
 0x8e9   : > { %v7250_v61 = vsel %vm6673_vm14, %v6384_v43, %v6962_v17  ;;  %vm6621_vm0 = vcmp.ge.f32.partialorder %v6332_v12, 0.0  ;;  %v6910_v14 = vmul.f32 %v21134_v28, %v6332_v12  ;;  %v21845_v11 = vsel %vm6392_vm13, %v6103_v51, %v6681_v30 }
 0x8ea   : > { %v7397_v24 = vmax.f32 %v7250_v61, %v7253_v59  ;;  %v5543_v9 = vpop.f32.mrb[100].mxu0  ;;  %v7542_v31 = vmax.f32 %v7388_v38, %v7394_v19  ;;  %v6121_v60 = vadd.f32 %v21789_v49, %v23779_v54  ;;  %v21850_v52 = vsel %vm6398_vm15, %v6109_v42, %v6687_v18 }
 0x8eb   : > { %v6106_v1 = vadd.f32 %v21828_v5, %v5543_v9  ;;  %v5545_v50 = vpop.f32.mrb[101].mxu0  ;;  %v6693_v3 = vmul.f32 %v21134_v28, %v6115_v45  ;;  %v6127_v19 = vadd.f32 %v21789_v49, %v21175_v21  ;;  %vm6404_vm6 = vcmp.ge.f32.partialorder %v6115_v45, 0.0 }
 0x8ec   : > { %v6107_v8 = vadd.f32 %v21833_v25, %v5545_v50  ;;  %v5547_v43 = vpop.f32.mrb[102].mxu0  ;;  %v7545_v47 = vmax.f32 %v7391_v44, %v7397_v24  ;;  %v6699_v17 = vmul.f32 %v21134_v28, %v6121_v60  ;;  %vm6410_vm7 = vcmp.ge.f32.partialorder %v6121_v60, 0.0 }
 0x8ed   : > { %vm6395_vm2 = vcmp.ge.f32.partialorder %v6106_v1, 0.0  ;;  %v6684_v38 = vmul.f32 %v21134_v28, %v6106_v1  ;;  %v6112_v51 = vadd.f32 %v21828_v5, %v5547_v43  ;;  %v5549_v30 = vpop.f32.mrb[103].mxu0  ;;  %v6705_v50 = vmul.f32 %v21134_v28, %v6127_v19 }
 0x8ee   : > { %vm6396_vm3 = vcmp.ge.f32.partialorder %v6107_v8, 0.0  ;;  %v6685_v20 = vmul.f32 %v21134_v28, %v6107_v8  ;;  %v6113_v18 = vadd.f32 %v21833_v25, %v5549_v30  ;;  %v21860_v42 = vpack.c.bf16 %v7545_v47, %v7542_v31 }
 0x8ef   : > { %v6972_v59 = vsel %vm6395_vm2, %v6106_v1, %v6684_v38  ;;  %vm6401_vm4 = vcmp.ge.f32.partialorder %v6112_v51, 0.0  ;;  %v6690_v44 = vmul.f32 %v21134_v28, %v6112_v51  ;;  %v21868_v31 = vsel %vm6621_vm0, %v6332_v12, %v6910_v14 }
 0x8f0   : > { %23780 = vst [vmem:[#allocation91_spill] sm:$0xff] %v21860_v42  ;;  %v7257_v21 = vmax.f32 %v21845_v11, %v6972_v59  ;;  %v6973_v61 = vsel %vm6396_vm3, %v6107_v8, %v6685_v20  ;;  %vm6402_vm5 = vcmp.ge.f32.partialorder %v6113_v18, 0.0  ;;  %v6691_v24 = vmul.f32 %v21134_v28, %v6113_v18 }
 0x8f1   : > { %v7258_v9 = vmax.f32 %v21381_v57, %v6973_v61  ;;  %v6978_v54 = vsel %vm6401_vm4, %v6112_v51, %v6690_v44  ;;  %vm6416_vm8 = vcmp.ge.f32.partialorder %v6127_v19, 0.0  ;;  %v21874_v11 = vadd.f32 %v21789_v49, %v21180_v13  ;;  %v23781_v51 = vld [vmem:[#allocation84_spill] sm:$0xff] }
 0x8f2   : > { %v7260_v1 = vmax.f32 %v21850_v52, %v6978_v54  ;;  %v6979_v43 = vsel %vm6402_vm5, %v6113_v18, %v6691_v24  ;;  %v5553_v47 = vpop.f32.mrb[104].mxu0  ;;  %v21880_v12 = vadd.f32 %v21321_v55, %v23781_v51  ;;  %v6981_v14 = vsel %vm6404_vm6, %v6115_v45, %v6693_v3 }
 0x8f3   : > { %v7261_v8 = vmax.f32 %v21384_v29, %v6979_v43  ;;  %v6118_v38 = vadd.f32 %v21828_v5, %v5553_v47  ;;  %v5555_v57 = vpop.f32.mrb[105].mxu0  ;;  %v6987_v30 = vsel %vm6410_vm7, %v6121_v60, %v6699_v17  ;;  %v6139_v18 = vadd.f32 %v21789_v49, %v21194_v6 }
 0x8f4   : > { %v6119_v52 = vadd.f32 %v21833_v25, %v5555_v57  ;;  %v5557_v20 = vpop.f32.mrb[106].mxu0  ;;  %v21887_v44 = vsel %vm6416_vm8, %v6127_v19, %v6705_v50  ;;  %vm6422_vm11 = vcmp.ge.f32.partialorder %v21874_v11, 0.0  ;;  %v6711_v19 = vmul.f32 %v21134_v28, %v21874_v11 }
 0x8f5   : > { %vm6407_vm9 = vcmp.ge.f32.partialorder %v6118_v38, 0.0  ;;  %v6696_v13 = vmul.f32 %v21134_v28, %v6118_v38  ;;  %v6124_v29 = vadd.f32 %v21828_v5, %v5557_v20  ;;  %v5559_v59 = vpop.f32.mrb[107].mxu0  ;;  %vm6428_vm13 = vcmp.ge.f32.partialorder %v6139_v18, 0.0 }
 0x8f6   : > { %vm6408_vm10 = vcmp.ge.f32.partialorder %v6119_v52, 0.0  ;;  %v6697_v61 = vmul.f32 %v21134_v28, %v6119_v52  ;;  %v6125_v45 = vadd.f32 %v21833_v25, %v5559_v59  ;;  %v6717_v43 = vmul.f32 %v21134_v28, %v6139_v18 }
 0x8f7   : > { %v6984_v60 = vsel %vm6407_vm9, %v6118_v38, %v6696_v13  ;;  %vm6413_vm1 = vcmp.ge.f32.partialorder %v6124_v29, 0.0  ;;  %v6702_v3 = vmul.f32 %v21134_v28, %v6124_v29  ;;  %vm6627_vm8 = vcmp.ge.f32.partialorder %v21880_v12, 0.0 }
 0x8f8   : > { %v7263_v6 = vmax.f32 %v6981_v14, %v6984_v60  ;;  %v6985_v17 = vsel %vm6408_vm10, %v6119_v52, %v6697_v61  ;;  %vm6414_vm12 = vcmp.ge.f32.partialorder %v6125_v45, 0.0  ;;  %v6703_v24 = vmul.f32 %v21134_v28, %v6125_v45 }
 0x8f9   : > { %v7264_v54 = vmax.f32 %v21426_v36, %v6985_v17  ;;  %v6990_v50 = vsel %vm6413_vm1, %v6124_v29, %v6702_v3  ;;  %v21900_v14 = vadd.f32 %v21789_v49, %v21199_v7  ;;  %v6151_v36 = vadd.f32 %v21789_v49, %v21211_v16 }
 0x8fa   : > { %v7266_v47 = vmax.f32 %v6987_v30, %v6990_v50  ;;  %v6991_v57 = vsel %vm6414_vm12, %v6125_v45, %v6703_v24  ;;  %v5563_v38 = vpop.f32.mrb[108].mxu0  ;;  %v7401_v51 = vmax.f32 %v7257_v21, %v7263_v6  ;;  %v21908_v29 = vadd.f32 %v21789_v49, %v21216_v26 }
 0x8fb   : > { %v7402_v52 = vmax.f32 %v7258_v9, %v7264_v54  ;;  %v7267_v20 = vmax.f32 %v21431_v2, %v6991_v57  ;;  %v6130_v13 = vadd.f32 %v21828_v5, %v5563_v38  ;;  %v5565_v59 = vpop.f32.mrb[109].mxu0  ;;  %v21924_v54 = vmul.f32 %v21134_v28, %v21880_v12  ;;  %v23784_v38 = vld [vmem:[#allocation86_spill] sm:$0xff] }
 0x8fc   : > { %v6131_v30 = vadd.f32 %v21833_v25, %v5565_v59  ;;  %v5567_v21 = vpop.f32.mrb[110].mxu0  ;;  %v7404_v61 = vmax.f32 %v7260_v1, %v7266_v47  ;;  %v6999_v50 = vsel %vm6422_vm11, %v21874_v11, %v6711_v19  ;;  %vm6434_vm3 = vcmp.ge.f32.partialorder %v21900_v14, 0.0 }
 0x8fd   : > { %v7405_v45 = vmax.f32 %v7261_v8, %v7267_v20  ;;  %vm6419_vm14 = vcmp.ge.f32.partialorder %v6130_v13, 0.0  ;;  %v6708_v7 = vmul.f32 %v21134_v28, %v6130_v13  ;;  %v6136_v2 = vadd.f32 %v21828_v5, %v5567_v21  ;;  %v5569_v9 = vpop.f32.mrb[111].mxu0 }
 0x8fe   : > { %vm6420_vm15 = vcmp.ge.f32.partialorder %v6131_v30, 0.0  ;;  %v6709_v60 = vmul.f32 %v21134_v28, %v6131_v30  ;;  %v6137_v16 = vadd.f32 %v21833_v25, %v5569_v9  ;;  %v21915_v3 = vpack.c.bf16 %v7404_v61, %v7401_v51 }
 0x8ff   : > { %v21917_v26 = vpack.c.bf16 %v7405_v45, %v7402_v52  ;;  %v6996_v6 = vsel %vm6419_vm14, %v6130_v13, %v6708_v7  ;;  %vm6425_vm0 = vcmp.ge.f32.partialorder %v6136_v2, 0.0  ;;  %v6714_v1 = vmul.f32 %v21134_v28, %v6136_v2 }
 0x900   : > { %23782 = vst [vmem:[#allocation34_spill] sm:$0xff] %v21915_v3  ;;  %v7269_v8 = vmax.f32 %v21887_v44, %v6996_v6  ;;  %v6997_v17 = vsel %vm6420_vm15, %v6131_v30, %v6709_v60  ;;  %vm6426_vm2 = vcmp.ge.f32.partialorder %v6137_v16, 0.0  ;;  %v6715_v24 = vmul.f32 %v21134_v28, %v6137_v16 }
 0x901   : > { %23783 = vst [vmem:[#allocation70_spill] sm:$0xff] %v21917_v26  ;;  %v7270_v47 = vmax.f32 %v21437_v63, %v6997_v17  ;;  %v7002_v57 = vsel %vm6425_vm0, %v6136_v2, %v6714_v1  ;;  %v21932_v51 = vadd.f32 %v21321_v55, %v23784_v38  ;;  %v7005_v44 = vsel %vm6428_vm13, %v6139_v18, %v6717_v43  ;;  %v23822_v26 = vld [vmem:[#allocation43_spill] sm:$0xff] }
 0x902   : > { %v7272_v52 = vmax.f32 %v6999_v50, %v7002_v57  ;;  %v7003_v20 = vsel %vm6426_vm2, %v6137_v16, %v6715_v24  ;;  %v5573_v13 = vpop.f32.mrb[112].mxu0  ;;  %v6723_v59 = vmul.f32 %v21134_v28, %v21900_v14  ;;  %vm6440_vm4 = vcmp.ge.f32.partialorder %v6151_v36, 0.0 }
 0x903   : > { %v7273_v30 = vmax.f32 %v21439_v10, %v7003_v20  ;;  %v6142_v11 = vadd.f32 %v21828_v5, %v5573_v13  ;;  %v5575_v63 = vpop.f32.mrb[113].mxu0  ;;  %v6729_v19 = vmul.f32 %v21134_v28, %v6151_v36  ;;  %vm6446_vm5 = vcmp.ge.f32.partialorder %v21908_v29, 0.0 }
 0x904   : > { %v6143_v18 = vadd.f32 %v21833_v25, %v5575_v63  ;;  %v5577_v43 = vpop.f32.mrb[114].mxu0  ;;  %v6735_v21 = vmul.f32 %v21134_v28, %v21908_v29  ;;  %v21949_v7 = vadd.f32 %v21789_v49, %v21230_v41  ;;  %v21956_v60 = vadd.f32 %v21789_v49, %v21235_v27 }
 0x905   : > { %vm6431_vm6 = vcmp.ge.f32.partialorder %v6142_v11, 0.0  ;;  %v6720_v61 = vmul.f32 %v21134_v28, %v6142_v11  ;;  %v6148_v45 = vadd.f32 %v21828_v5, %v5577_v43  ;;  %v5579_v10 = vpop.f32.mrb[115].mxu0  ;;  %v7011_v24 = vsel %vm6434_vm3, %v21900_v14, %v6723_v59 }
 0x906   : > { %vm6432_vm7 = vcmp.ge.f32.partialorder %v6143_v18, 0.0  ;;  %v6721_v2 = vmul.f32 %v21134_v28, %v6143_v18  ;;  %v6149_v9 = vadd.f32 %v21833_v25, %v5579_v10  ;;  %v21964_v50 = vsel %vm6440_vm4, %v6151_v36, %v6729_v19 }
 0x907   : > { %v7008_v16 = vsel %vm6431_vm6, %v6142_v11, %v6720_v61  ;;  %vm6437_vm9 = vcmp.ge.f32.partialorder %v6148_v45, 0.0  ;;  %v6726_v6 = vmul.f32 %v21134_v28, %v6148_v45  ;;  %v21970_v38 = vsel %vm6446_vm5, %v21908_v29, %v6735_v21 }
 0x908   : > { %v7275_v1 = vmax.f32 %v7005_v44, %v7008_v16  ;;  %v7009_v17 = vsel %vm6432_vm7, %v6143_v18, %v6721_v2  ;;  %vm6438_vm10 = vcmp.ge.f32.partialorder %v6149_v9, 0.0  ;;  %v6727_v41 = vmul.f32 %v21134_v28, %v6149_v9  ;;  %v18029_v16 = vld [vmem:[#allocation9 + $0x524] ss:$16 sps:$4 sm:$0xff]  }
 0x909   : > { %v7276_v57 = vmax.f32 %v21444_v53, %v7009_v17  ;;  %v7014_v27 = vsel %vm6437_vm9, %v6148_v45, %v6726_v6  ;;  %v6741_v63 = vmul.f32 %v21134_v28, %v21949_v7  ;;  %v6747_v53 = vmul.f32 %v21134_v28, %v21956_v60 }
 0x90a   : > { %v7413_v44 = vmax.f32 %v7269_v8, %v7275_v1  ;;  %v7278_v20 = vmax.f32 %v7011_v24, %v7014_v27  ;;  %v7015_v13 = vsel %vm6438_vm10, %v6149_v9, %v6727_v41  ;;  %v5583_v11 = vpop.f32.mrb[116].mxu0  ;;  %v6175_v29 = vadd.f32 %v21789_v49, %v21247_v23  ;;  %v18024_v9 = vld [vmem:[#allocation9 + $0x500] ss:$16 sps:$4 sm:$0xff]  }
 0x90b   : > { %v7414_v18 = vmax.f32 %v7270_v47, %v7276_v57  ;;  %v7279_v14 = vmax.f32 %v21464_v37, %v7015_v13  ;;  %v6154_v36 = vadd.f32 %v21828_v5, %v5583_v11  ;;  %v5585_v59 = vpop.f32.mrb[117].mxu0  ;;  %vm6452_vm14 = vcmp.ge.f32.partialorder %v21949_v7, 0.0  ;;  %v18027_v13 = vld [vmem:[#allocation9 + $0x520] ss:$16 sps:$4 sm:$0xff]  }
 0x90c   : > { %v7416_v19 = vmax.f32 %v7272_v52, %v7278_v20  ;;  %v6155_v8 = vadd.f32 %v21833_v25, %v5585_v59  ;;  %v5587_v43 = vpop.f32.mrb[118].mxu0  ;;  %vm6458_vm15 = vcmp.ge.f32.partialorder %v21956_v60, 0.0  ;;  %v6753_v57 = vmul.f32 %v21134_v28, %v6175_v29 }
 0x90d   : > { %v7417_v21 = vmax.f32 %v7273_v30, %v7279_v14  ;;  %vm6443_vm11 = vcmp.ge.f32.partialorder %v6154_v36, 0.0  ;;  %v6732_v61 = vmul.f32 %v21134_v28, %v6154_v36  ;;  %v6160_v47 = vadd.f32 %v21828_v5, %v5587_v43  ;;  %v5589_v37 = vpop.f32.mrb[119].mxu0 }
 0x90e   : > { %vm6444_vm1 = vcmp.ge.f32.partialorder %v6155_v8, 0.0  ;;  %v6733_v45 = vmul.f32 %v21134_v28, %v6155_v8  ;;  %v6161_v10 = vadd.f32 %v21833_v25, %v5589_v37  ;;  %v21985_v2 = vpack.c.bf16 %v7416_v19, %v7413_v44 }
 0x90f   : > { %v21987_v23 = vpack.c.bf16 %v7417_v21, %v7414_v18  ;;  %v7020_v52 = vsel %vm6443_vm11, %v6154_v36, %v6732_v61  ;;  %vm6449_vm12 = vcmp.ge.f32.partialorder %v6160_v47, 0.0  ;;  %v6738_v30 = vmul.f32 %v21134_v28, %v6160_v47  ;;  %v18035_v61 = vld [vmem:[#allocation9 + $0x564] ss:$16 sps:$4 sm:$0xff]  }
 0x910   : > { %v7281_v6 = vmax.f32 %v21964_v50, %v7020_v52  ;;  %v21991_v1 = vsel %vm6444_vm1, %v6155_v8, %v6733_v45  ;;  %vm6450_vm13 = vcmp.ge.f32.partialorder %v6161_v10, 0.0  ;;  %v6739_v17 = vmul.f32 %v21134_v28, %v6161_v10  ;;  %8308 = vmatprep.mubr.bf16.mxu1 %v21985_v2 }
 0x911   : > { %v7282_v41 = vmax.f32 %v21498_v34, %v21991_v1  ;;  %v21999_v24 = vsel %vm6449_vm12, %v6160_v47, %v6738_v30  ;;  %8309 = vmatmul.mubr.bf16.vlgmr.msra.gmra.mrb[96].mxu1 %v21220_v58  ;;  %v22006_v50 = vsel %vm6627_vm8, %v21880_v12, %v21924_v54  ;;  %vm6464_vm0 = vcmp.ge.f32.partialorder %v6175_v29, 0.0  ;;  %v18032_v54 = vld [vmem:[#allocation9 + $0x544] ss:$16 sps:$4 sm:$0xff]  }
 0x912   : > { %v7284_v27 = vmax.f32 %v21970_v38, %v21999_v24  ;;  %v7027_v44 = vsel %vm6450_vm13, %v6161_v10, %v6739_v17  ;;  %v5593_v20 = vpop.f32.mrb[120].mxu0  ;;  %8390 = vmatpush1.bf16.msra.mxu1 %v18024_v9  ;;  %v22013_v34 = vadd.f32 %v21789_v49, %v21252_v4  ;;  %v22019_v14 = vmul.f32 %v21134_v28, %v21932_v51  ;;  %v18033_v24 = vld [vmem:[#allocation9 + $0x560] ss:$16 sps:$4 sm:$0xff]  }
 0x913   : > { %v7285_v11 = vmax.f32 %v21503_v35, %v7027_v44  ;;  %v6166_v18 = vadd.f32 %v21828_v5, %v5593_v20  ;;  %v5595_v12 = vpop.f32.mrb[121].mxu0  ;;  %8391 = vmatprep.subr.bf16.mxu1 %v18029_v16  ;;  %v7029_v38 = vsel %vm6452_vm14, %v21949_v7, %v6741_v63  ;;  %v7035_v4 = vsel %vm6458_vm15, %v21956_v60, %v6747_v53  ;;  %v18030_v53 = vld [vmem:[#allocation9 + $0x540] ss:$16 sps:$4 sm:$0xff]  }
 0x914   : > { %v6167_v36 = vadd.f32 %v21833_v25, %v5595_v12  ;;  %v5597_v35 = vpop.f32.mrb[122].mxu0  ;;  %v22030_v59 = vadd.f32 %v21789_v49, %v21266_v40  ;;  %vm6633_vm3 = vcmp.ge.f32.partialorder %v21932_v51, 0.0  ;;  %v22036_v7 = vsel %vm6464_vm0, %v6175_v29, %v6753_v57  ;;  %v23785_v12 = vld [vmem:[#allocation109_spill] sm:$0xff] }
 0x915   : > { %vm6455_vm2 = vcmp.ge.f32.partialorder %v6166_v18, 0.0  ;;  %v6744_v19 = vmul.f32 %v21134_v28, %v6166_v18  ;;  %v6172_v8 = vadd.f32 %v21828_v5, %v5597_v35  ;;  %v5599_v43 = vpop.f32.mrb[123].mxu0  ;;  %vm6470_vm5 = vcmp.ge.f32.partialorder %v22013_v34, 0.0 }
 0x916   : > { %vm6456_vm4 = vcmp.ge.f32.partialorder %v6167_v36, 0.0  ;;  %v6745_v60 = vmul.f32 %v21134_v28, %v6167_v36  ;;  %v6173_v63 = vadd.f32 %v21833_v25, %v5599_v43  ;;  %8392 = vmatpush1.bf16.msra.mxu1 %v18027_v13  ;;  %v6759_v45 = vmul.f32 %v21134_v28, %v22013_v34  ;;  %v18036_v43 = vld [vmem:[#allocation9 + $0x580] ss:$16 sps:$4 sm:$0xff]  }
 0x917   : > { %v7032_v40 = vsel %vm6455_vm2, %v6166_v18, %v6744_v19  ;;  %vm6461_vm6 = vcmp.ge.f32.partialorder %v6172_v8, 0.0  ;;  %v6750_v21 = vmul.f32 %v21134_v28, %v6172_v8  ;;  %8393 = vmatprep.subr.bf16.mxu1 %v18032_v54  ;;  %vm6476_vm8 = vcmp.ge.f32.partialorder %v22030_v59, 0.0  ;;  %v18038_v18 = vld [vmem:[#allocation9 + $0x584] ss:$16 sps:$4 sm:$0xff]  }
 0x918   : > { %v7287_v47 = vmax.f32 %v7029_v38, %v7032_v40  ;;  %v7033_v37 = vsel %vm6456_vm4, %v6167_v36, %v6745_v60  ;;  %vm6462_vm7 = vcmp.ge.f32.partialorder %v6173_v63, 0.0  ;;  %v6751_v29 = vmul.f32 %v21134_v28, %v6173_v63 }
 0x919   : > { %v7288_v10 = vmax.f32 %v21506_v56, %v7033_v37  ;;  %v7038_v9 = vsel %vm6461_vm6, %v6172_v8, %v6750_v21  ;;  %v6765_v52 = vmul.f32 %v21134_v28, %v22030_v59  ;;  %v22051_v57 = vadd.f32 %v21789_v49, %v21271_v33  ;;  %v23786_v37 = vld [vmem:[#allocation40_spill] sm:$0xff] }
 0x91a   : > { %v7426_v30 = vmax.f32 %v7281_v6, %v7287_v47  ;;  %v7290_v16 = vmax.f32 %v7035_v4, %v7038_v9  ;;  %v7039_v1 = vsel %vm6462_vm7, %v6173_v63, %v6751_v29  ;;  %v5603_v17 = vpop.f32.mrb[124].mxu0  ;;  %8394 = vmatpush1.bf16.msra.mxu1 %v18030_v53  ;;  %v22057_v6 = vadd.f32 %v21789_v49, %v21283_v15  ;;  %v18041_v63 = vld [vmem:[#allocation9 + $0x5a4] ss:$16 sps:$4 sm:$0xff]   ;;  %v23788_v9 = vld [vmem:[#allocation88_spill] sm:$0xff] }
 0x91b   : > { %v7427_v44 = vmax.f32 %v7282_v41, %v7288_v10  ;;  %v7291_v20 = vmax.f32 %v21509_v39, %v7039_v1  ;;  %v6178_v13 = vadd.f32 %v21828_v5, %v5603_v17  ;;  %v5605_v56 = vpop.f32.mrb[125].mxu0  ;;  %8395 = vmatprep.subr.bf16.mxu1 %v18035_v61  ;;  %v22061_v54 = vadd.f32 %v21789_v49, %v23785_v12  ;;  %v23787_v10 = vld [vmem:[#allocation108_spill] sm:$0xff] }
 0x91c   : > { %v7429_v38 = vmax.f32 %v7284_v27, %v7290_v16  ;;  %v6179_v33 = vadd.f32 %v21833_v25, %v5605_v56  ;;  %v5607_v4 = vpop.f32.mrb[126].mxu0  ;;  %v22080_v61 = vsel %vm6633_vm3, %v21932_v51, %v22019_v14  ;;  %v22085_v47 = vsel %vm6470_vm5, %v22013_v34, %v6759_v45  ;;  %v18039_v45 = vld [vmem:[#allocation9 + $0x5a0] ss:$16 sps:$4 sm:$0xff]  }
 0x91d   : > { %v7430_v41 = vmax.f32 %v7285_v11, %v7291_v20  ;;  %vm6467_vm9 = vcmp.ge.f32.partialorder %v6178_v13, 0.0  ;;  %v6756_v39 = vmul.f32 %v21134_v28, %v6178_v13  ;;  %v6184_v36 = vadd.f32 %v21828_v5, %v5607_v4  ;;  %v5609_v35 = vpop.f32.mrb[127].mxu0  ;;  %v23789_v17 = vld [vmem:[#allocation64_spill] sm:$0xff]  ;;  %v23790_v4 = vld [vmem:[#allocation111_spill] sm:$0xff] }
 0x91e   : > { %v22066_v19 = vpack.c.bf16 %v7429_v38, %v7426_v30  ;;  %vm6468_vm10 = vcmp.ge.f32.partialorder %v6179_v33, 0.0  ;;  %v6757_v15 = vmul.f32 %v21134_v28, %v6179_v33  ;;  %v6185_v8 = vadd.f32 %v21833_v25, %v5609_v35  ;;  %8396 = vmatpush1.bf16.msra.mxu1 %v18033_v24  ;;  %v18042_v35 = vld [vmem:[#allocation9 + $0x5c0] ss:$16 sps:$4 sm:$0xff]  }
 0x91f   : > { %v22070_v27 = vpack.c.bf16 %v7430_v41, %v7427_v44  ;;  %v7044_v60 = vsel %vm6467_vm9, %v6178_v13, %v6756_v39  ;;  %vm6473_vm11 = vcmp.ge.f32.partialorder %v6184_v36, 0.0  ;;  %v6762_v11 = vmul.f32 %v21134_v28, %v6184_v36  ;;  %8397 = vmatprep.subr.bf16.mxu1 %v18038_v18  ;;  %v18044_v13 = vld [vmem:[#allocation9 + $0x5c4] ss:$16 sps:$4 sm:$0xff]  }
 0x920   : > { %v7293_v53 = vmax.f32 %v22036_v7, %v7044_v60  ;;  %v7045_v40 = vsel %vm6468_vm10, %v6179_v33, %v6757_v15  ;;  %vm6474_vm1 = vcmp.ge.f32.partialorder %v6185_v8, 0.0  ;;  %v6763_v21 = vmul.f32 %v21134_v28, %v6185_v8  ;;  %8318 = vmatprep.mubr.bf16.mxu1 %v22066_v19  ;;  %v23791_v15 = vld [vmem:[#allocation112_spill] sm:$0xff] }
 0x921   : > { %v7294_v29 = vmax.f32 %v23786_v37, %v7045_v40  ;;  %v22088_v7 = vsel %vm6473_vm11, %v6184_v36, %v6762_v11  ;;  %8319 = vmatmul.mubr.bf16.gmra.mrb[100].mxu1 %v23787_v10  ;;  %v22093_v30 = vadd.f32 %v21321_v55, %v23788_v9  ;;  %v7053_v51 = vsel %vm6476_vm8, %v22030_v59, %v6765_v52  ;;  %v18047_v11 = vld [vmem:[#allocation9 + $0x5e4] ss:$16 sps:$4 sm:$0xff]  }
 0x922   : > { %v7296_v14 = vmax.f32 %v22085_v47, %v22088_v7  ;;  %v7051_v16 = vsel %vm6474_vm1, %v6185_v8, %v6763_v21  ;;  %v5613_v34 = vpop.f32.mrb[128].mxu0  ;;  %8398 = vmatpush1.bf16.msra.mxu1 %v18036_v43  ;;  %vm6482_vm12 = vcmp.ge.f32.partialorder %v22051_v57, 0.0  ;;  %v6771_v1 = vmul.f32 %v21134_v28, %v22051_v57  ;;  %v23792_v7 = vld [vmem:[#allocation28_spill] sm:$0xff] }
 0x923   : > { %v7297_v24 = vmax.f32 %v23789_v17, %v7051_v16  ;;  %v6190_v44 = vadd.f32 %v21828_v5, %v5613_v34  ;;  %v5615_v20 = vpop.f32.mrb[129].mxu0  ;;  %8399 = vmatprep.subr.bf16.mxu1 %v18041_v63  ;;  %vm6488_vm13 = vcmp.ge.f32.partialorder %v22057_v6, 0.0  ;;  %v6777_v59 = vmul.f32 %v21134_v28, %v22057_v6 }
 0x924   : > { %vm6494_vm14 = vcmp.ge.f32.partialorder %v22061_v54, 0.0  ;;  %v6191_v52 = vadd.f32 %v21833_v25, %v5615_v20  ;;  %v5617_v56 = vpop.f32.mrb[130].mxu0  ;;  %v6783_v18 = vmul.f32 %v21134_v28, %v22061_v54  ;;  %v22116_v41 = vadd.f32 %v21789_v49, %v23790_v4  ;;  %v18045_v20 = vld [vmem:[#allocation9 + $0x5e0] ss:$16 sps:$4 sm:$0xff]  }
 0x925   : > { %vm6479_vm15 = vcmp.ge.f32.partialorder %v6190_v44, 0.0  ;;  %v6768_v12 = vmul.f32 %v21134_v28, %v6190_v44  ;;  %v6196_v38 = vadd.f32 %v21828_v5, %v5617_v56  ;;  %v5619_v33 = vpop.f32.mrb[131].mxu0  ;;  %v22122_v8 = vadd.f32 %v21789_v49, %v23791_v15  ;;  %v18050_v56 = vld [vmem:[#allocation9 + $0x30c] ss:$16 sps:$4 sm:$0xff]  }
 0x926   : > { %vm6480_vm0 = vcmp.ge.f32.partialorder %v6191_v52, 0.0  ;;  %v6769_v39 = vmul.f32 %v21134_v28, %v6191_v52  ;;  %v6197_v36 = vadd.f32 %v21833_v25, %v5619_v33  ;;  %8400 = vmatpush1.bf16.msra.mxu1 %v18039_v45  ;;  %v7059_v47 = vsel %vm6482_vm12, %v22051_v57, %v6771_v1 }
 0x927   : > { %v7056_v43 = vsel %vm6479_vm15, %v6190_v44, %v6768_v12  ;;  %vm6485_vm2 = vcmp.ge.f32.partialorder %v6196_v38, 0.0  ;;  %v6774_v60 = vmul.f32 %v21134_v28, %v6196_v38  ;;  %8401 = vmatprep.subr.bf16.mxu1 %v18044_v13  ;;  %v22132_v37 = vsel %vm6488_vm13, %v22057_v6, %v6777_v59  ;;  %v23793_v6 = vld [vmem:[#allocation45_spill] sm:$0xff] }
 0x928   : > { %v7299_v63 = vmax.f32 %v7053_v51, %v7056_v43  ;;  %v7057_v40 = vsel %vm6480_vm0, %v6191_v52, %v6769_v39  ;;  %vm6486_vm3 = vcmp.ge.f32.partialorder %v6197_v36, 0.0  ;;  %v6775_v21 = vmul.f32 %v21134_v28, %v6197_v36 }
 0x929   : > { %v7300_v9 = vmax.f32 %v23792_v7, %v7057_v40  ;;  %v7062_v16 = vsel %vm6485_vm2, %v6196_v38, %v6774_v60  ;;  %v22138_v51 = vsel %vm6494_vm14, %v22061_v54, %v6783_v18  ;;  %v6789_v57 = vmul.f32 %v21134_v28, %v22116_v41 }
 0x92a   : > { %v7439_v34 = vmax.f32 %v7293_v53, %v7299_v63  ;;  %v7302_v45 = vmax.f32 %v7059_v47, %v7062_v16  ;;  %v7063_v17 = vsel %vm6486_vm3, %v6197_v36, %v6775_v21  ;;  %v5623_v44 = vpop.f32.mrb[132].mxu0  ;;  %8402 = vmatpush1.bf16.msra.mxu1 %v18042_v35  ;;  %v6795_v54 = vmul.f32 %v21134_v28, %v22122_v8  ;;  %v23794_v53 = vld [vmem:[#allocation113_spill] sm:$0xff] }
 0x92b   : > { %v7440_v1 = vmax.f32 %v7294_v29, %v7300_v9  ;;  %v7303_v13 = vmax.f32 %v23793_v6, %v7063_v17  ;;  %v6202_v59 = vadd.f32 %v21828_v5, %v5623_v44  ;;  %v5625_v52 = vpop.f32.mrb[133].mxu0  ;;  %8403 = vmatprep.subr.bf16.mxu1 %v18047_v11  ;;  %v6223_v18 = vadd.f32 %v21789_v49, %v23794_v53  ;;  %v23795_v21 = vld [vmem:[#allocation69_spill] sm:$0xff]  ;;  %v23796_v9 = vld [vmem:[#allocation110_spill] sm:$0xff] }
 0x92c   : > { %v7442_v12 = vmax.f32 %v7296_v14, %v7302_v45  ;;  %v6203_v38 = vadd.f32 %v21833_v25, %v5625_v52  ;;  %v5627_v33 = vpop.f32.mrb[134].mxu0  ;;  %vm6500_vm8 = vcmp.ge.f32.partialorder %v22116_v41, 0.0  ;;  %vm6506_vm9 = vcmp.ge.f32.partialorder %v22122_v8, 0.0  ;;  %v23797_v44 = vld [vmem:[#allocation114_spill] sm:$0xff] }
 0x92d   : > { %v7443_v4 = vmax.f32 %v7297_v24, %v7303_v13  ;;  %vm6491_vm4 = vcmp.ge.f32.partialorder %v6202_v59, 0.0  ;;  %v6780_v29 = vmul.f32 %v21134_v28, %v6202_v59  ;;  %v6208_v39 = vadd.f32 %v21828_v5, %v5627_v33  ;;  %v5629_v36 = vpop.f32.mrb[135].mxu0  ;;  %v23799_v52 = vld [vmem:[#allocation90_spill] sm:$0xff]  ;;  %v23800_v33 = vld [vmem:[#allocation116_spill] sm:$0xff] }
 0x92e   : > { %v22151_v35 = vpack.c.bf16 %v7442_v12, %v7439_v34  ;;  %vm6492_vm5 = vcmp.ge.f32.partialorder %v6203_v38, 0.0  ;;  %v6781_v15 = vmul.f32 %v21134_v28, %v6203_v38  ;;  %v6209_v43 = vadd.f32 %v21833_v25, %v5629_v36  ;;  %8404 = vmatpush1.bf16.msra.mxu1 %v18045_v20 }
 0x92f   : > { %v22155_v60 = vpack.c.bf16 %v7443_v4, %v7440_v1  ;;  %v7068_v14 = vsel %vm6491_vm4, %v6202_v59, %v6780_v29  ;;  %vm6497_vm6 = vcmp.ge.f32.partialorder %v6208_v39, 0.0  ;;  %v6786_v24 = vmul.f32 %v21134_v28, %v6208_v39  ;;  %8502 = vmatprep.subr.bf16.mxu1 %v18050_v56  ;;  %v23798_v1 = vld [vmem:[#allocation46_spill] sm:$0xff] }
 0x930   : > { %v7305_v11 = vmax.f32 %v22132_v37, %v7068_v14  ;;  %v7069_v63 = vsel %vm6492_vm5, %v6203_v38, %v6781_v15  ;;  %vm6498_vm7 = vcmp.ge.f32.partialorder %v6209_v43, 0.0  ;;  %v6787_v40 = vmul.f32 %v21134_v28, %v6209_v43  ;;  %8328 = vmatprep.mubr.bf16.mxu1 %v22151_v35 }
 0x931   : > { %v7306_v47 = vmax.f32 %v23795_v21, %v7069_v63  ;;  %v7074_v7 = vsel %vm6497_vm6, %v6208_v39, %v6786_v24  ;;  %8329 = vmatmul.mubr.bf16.gmra.mrb[104].mxu1 %v23796_v9  ;;  %v22167_v16 = vmul.f32 %v21134_v28, %v22093_v30  ;;  %v6801_v37 = vmul.f32 %v21134_v28, %v6223_v18  ;;  %v23801_v63 = vld [vmem:[#allocation48_spill] sm:$0xff] }
 0x932   : > { %v7308_v34 = vmax.f32 %v22138_v51, %v7074_v7  ;;  %v7075_v45 = vsel %vm6498_vm7, %v6209_v43, %v6787_v40  ;;  %v5633_v17 = vpop.f32.mrb[136].mxu0  ;;  %vm6512_vm10 = vcmp.ge.f32.partialorder %v6223_v18, 0.0  ;;  %v22173_v20 = vadd.f32 %v21789_v49, %v23797_v44 }
 0x933   : > { %v7309_v6 = vmax.f32 %v23798_v1, %v7075_v45  ;;  %v6214_v13 = vadd.f32 %v21828_v5, %v5633_v17  ;;  %v5635_v59 = vpop.f32.mrb[137].mxu0  ;;  %v22179_v56 = vadd.f32 %v21321_v55, %v23799_v52  ;;  %v7077_v51 = vsel %vm6500_vm8, %v22116_v41, %v6789_v57  ;;  %v23802_v1 = vld [vmem:[#allocation117_spill] sm:$0xff] }
 0x934   : > { %v7083_v53 = vsel %vm6506_vm9, %v22122_v8, %v6795_v54  ;;  %v6215_v12 = vadd.f32 %v21833_v25, %v5635_v59  ;;  %v5637_v38 = vpop.f32.mrb[138].mxu0  ;;  %v6235_v4 = vadd.f32 %v21789_v49, %v23800_v33  ;;  %vm6639_vm1 = vcmp.ge.f32.partialorder %v22093_v30, 0.0  ;;  %v23803_v52 = vld [vmem:[#allocation49_spill] sm:$0xff]  ;;  %v23804_v33 = vld [vmem:[#allocation35_spill] sm:$0xff] }
 0x935   : > { %vm6503_vm11 = vcmp.ge.f32.partialorder %v6214_v13, 0.0  ;;  %v6792_v29 = vmul.f32 %v21134_v28, %v6214_v13  ;;  %v6220_v39 = vadd.f32 %v21828_v5, %v5637_v38  ;;  %v5639_v36 = vpop.f32.mrb[139].mxu0  ;;  %v22194_v41 = vsel %vm6512_vm10, %v6223_v18, %v6801_v37 }
 0x936   : > { %vm6504_vm12 = vcmp.ge.f32.partialorder %v6215_v12, 0.0  ;;  %v6793_v8 = vmul.f32 %v21134_v28, %v6215_v12  ;;  %v6221_v57 = vadd.f32 %v21833_v25, %v5639_v36  ;;  %vm6518_vm13 = vcmp.ge.f32.partialorder %v22173_v20, 0.0 }
 0x937   : > { %v7080_v54 = vsel %vm6503_vm11, %v6214_v13, %v6792_v29  ;;  %vm6509_vm14 = vcmp.ge.f32.partialorder %v6220_v39, 0.0  ;;  %v6798_v15 = vmul.f32 %v21134_v28, %v6220_v39  ;;  %v6807_v18 = vmul.f32 %v21134_v28, %v22173_v20 }
 0x938   : > { %v7311_v43 = vmax.f32 %v7077_v51, %v7080_v54  ;;  %v7081_v14 = vsel %vm6504_vm12, %v6215_v12, %v6793_v8  ;;  %vm6510_vm15 = vcmp.ge.f32.partialorder %v6221_v57, 0.0  ;;  %v6799_v24 = vmul.f32 %v21134_v28, %v6221_v57 }
 0x939   : > { %vm6524_vm0 = vcmp.ge.f32.partialorder %v6235_v4, 0.0  ;;  %v7312_v40 = vmax.f32 %v23801_v63, %v7081_v14  ;;  %v7086_v21 = vsel %vm6509_vm14, %v6220_v39, %v6798_v15  ;;  %v6813_v7 = vmul.f32 %v21134_v28, %v6235_v4  ;;  %v23805_v39 = vld [vmem:[#allocation36_spill] sm:$0xff] }
 0x93a   : > { %v7452_v37 = vmax.f32 %v7305_v11, %v7311_v43  ;;  %v7314_v45 = vmax.f32 %v7083_v53, %v7086_v21  ;;  %v7087_v17 = vsel %vm6510_vm15, %v6221_v57, %v6799_v24  ;;  %v5643_v44 = vpop.f32.mrb[140].mxu0  ;;  %v22207_v13 = vadd.f32 %v21789_v49, %v23802_v1 }
 0x93b   : > { %v7453_v59 = vmax.f32 %v7306_v47, %v7312_v40  ;;  %v7315_v51 = vmax.f32 %v23803_v52, %v7087_v17  ;;  %v6226_v12 = vadd.f32 %v21828_v5, %v5643_v44  ;;  %v5645_v38 = vpop.f32.mrb[141].mxu0  ;;  %v6247_v29 = vadd.f32 %v21789_v49, %v23804_v33 }
 0x93c   : > { %v22215_v36 = vadd.f32 %v21789_v49, %v23805_v39  ;;  %v7455_v11 = vmax.f32 %v7308_v34, %v7314_v45  ;;  %v6227_v53 = vadd.f32 %v21833_v25, %v5645_v38  ;;  %v5647_v8 = vpop.f32.mrb[142].mxu0  ;;  %v7095_v17 = vsel %vm6518_vm13, %v22173_v20, %v6807_v18 }
 0x93d   : > { %v7456_v57 = vmax.f32 %v7309_v6, %v7315_v51  ;;  %vm6515_vm2 = vcmp.ge.f32.partialorder %v6226_v12, 0.0  ;;  %v6804_v47 = vmul.f32 %v21134_v28, %v6226_v12  ;;  %v6232_v54 = vadd.f32 %v21828_v5, %v5647_v8  ;;  %v5649_v15 = vpop.f32.mrb[143].mxu0 }
 0x93e   : > { %v22220_v43 = vpack.c.bf16 %v7455_v11, %v7452_v37  ;;  %vm6516_vm3 = vcmp.ge.f32.partialorder %v6227_v53, 0.0  ;;  %v6805_v14 = vmul.f32 %v21134_v28, %v6227_v53  ;;  %v6233_v24 = vadd.f32 %v21833_v25, %v5649_v15 }
 0x93f   : > { %v22224_v63 = vpack.c.bf16 %v7456_v57, %v7453_v59  ;;  %v7092_v34 = vsel %vm6515_vm2, %v6226_v12, %v6804_v47  ;;  %vm6521_vm4 = vcmp.ge.f32.partialorder %v6232_v54, 0.0  ;;  %v6810_v40 = vmul.f32 %v21134_v28, %v6232_v54 }
 0x940   : > { %v7317_v6 = vmax.f32 %v22194_v41, %v7092_v34  ;;  %v7093_v21 = vsel %vm6516_vm3, %v6227_v53, %v6805_v14  ;;  %vm6522_vm5 = vcmp.ge.f32.partialorder %v6233_v24, 0.0  ;;  %v6811_v45 = vmul.f32 %v21134_v28, %v6233_v24  ;;  %8338 = vmatprep.mubr.bf16.mxu1 %v22220_v43  ;;  %v23806_v41 = vld [vmem:[#allocation115_spill] sm:$0xff]  ;;  %v23807_v53 = vld [vmem:[#allocation37_spill] sm:$0xff] }
 0x941   : > { %v22234_v37 = vsel %vm6639_vm1, %v22093_v30, %v22167_v16  ;;  %v7318_v44 = vmax.f32 %v21650_v0, %v7093_v21  ;;  %v7098_v1 = vsel %vm6521_vm4, %v6232_v54, %v6810_v40  ;;  %8339 = vmatmul.mubr.bf16.gmra.mrb[108].mxu1 %v23806_v41  ;;  %v22243_v59 = vmul.f32 %v21134_v28, %v22179_v56  ;;  %v23808_v54 = vld [vmem:[#allocation38_spill] sm:$0xff] }
 0x942   : > { %v7101_v52 = vsel %vm6524_vm0, %v6235_v4, %v6813_v7  ;;  %v7320_v51 = vmax.f32 %v7095_v17, %v7098_v1  ;;  %v7099_v12 = vsel %vm6522_vm5, %v6233_v24, %v6811_v45  ;;  %v5653_v38 = vpop.f32.mrb[144].mxu0  ;;  %vm6530_vm6 = vcmp.ge.f32.partialorder %v22207_v13, 0.0  ;;  %v23809_v1 = vld [vmem:[#allocation51_spill] sm:$0xff] }
 0x943   : > { %v6819_v30 = vmul.f32 %v21134_v28, %v22207_v13  ;;  %v7321_v16 = vmax.f32 %v21656_v48, %v7099_v12  ;;  %v6238_v0 = vadd.f32 %v21828_v5, %v5653_v38  ;;  %v5655_v20 = vpop.f32.mrb[145].mxu0  ;;  %vm6536_vm7 = vcmp.ge.f32.partialorder %v6247_v29, 0.0 }
 0x944   : > { %v6825_v18 = vmul.f32 %v21134_v28, %v6247_v29  ;;  %vm6542_vm8 = vcmp.ge.f32.partialorder %v22215_v36, 0.0  ;;  %v6239_v4 = vadd.f32 %v21833_v25, %v5655_v20  ;;  %v5657_v7 = vpop.f32.mrb[146].mxu0  ;;  %v6831_v33 = vmul.f32 %v21134_v28, %v22215_v36 }
 0x945   : > { %vm6527_vm9 = vcmp.ge.f32.partialorder %v6238_v0, 0.0  ;;  %v6816_v39 = vmul.f32 %v21134_v28, %v6238_v0  ;;  %v6244_v11 = vadd.f32 %v21828_v5, %v5657_v7  ;;  %v5659_v48 = vpop.f32.mrb[147].mxu0  ;;  %v22260_v8 = vadd.f32 %v21789_v49, %v23807_v53  ;;  %v23811_v53 = vld [vmem:[#allocation60_spill] sm:$0xff] }
 0x946   : > { %vm6528_vm10 = vcmp.ge.f32.partialorder %v6239_v4, 0.0  ;;  %v6817_v57 = vmul.f32 %v21134_v28, %v6239_v4  ;;  %v6245_v47 = vadd.f32 %v21833_v25, %v5659_v48  ;;  %v22266_v15 = vadd.f32 %v21789_v49, %v23808_v54 }
 0x947   : > { %v7104_v14 = vsel %vm6527_vm9, %v6238_v0, %v6816_v39  ;;  %vm6533_vm11 = vcmp.ge.f32.partialorder %v6244_v11, 0.0  ;;  %v6822_v24 = vmul.f32 %v21134_v28, %v6244_v11  ;;  %v7107_v45 = vsel %vm6530_vm6, %v22207_v13, %v6819_v30  ;;  %v23810_v13 = vld [vmem:[#allocation75_spill] sm:$0xff] }
 0x948   : > { %v7323_v34 = vmax.f32 %v7101_v52, %v7104_v14  ;;  %v7105_v40 = vsel %vm6528_vm10, %v6239_v4, %v6817_v57  ;;  %vm6534_vm1 = vcmp.ge.f32.partialorder %v6245_v47, 0.0  ;;  %v6823_v21 = vmul.f32 %v21134_v28, %v6245_v47 }
 0x949   : > { %v22274_v17 = vsel %vm6536_vm7, %v6247_v29, %v6825_v18  ;;  %v7324_v12 = vmax.f32 %v23809_v1, %v7105_v40  ;;  %v7110_v38 = vsel %vm6533_vm11, %v6244_v11, %v6822_v24  ;;  %v22280_v0 = vsel %vm6542_vm8, %v22215_v36, %v6831_v33 }
 0x94a   : > { %v7465_v52 = vmax.f32 %v7317_v6, %v7323_v34  ;;  %v7326_v20 = vmax.f32 %v7107_v45, %v7110_v38  ;;  %v7111_v4 = vsel %vm6534_vm1, %v6245_v47, %v6823_v21  ;;  %v5663_v7 = vpop.f32.mrb[148].mxu0  ;;  %v6837_v39 = vmul.f32 %v21134_v28, %v22260_v8  ;;  %v23812_v38 = vld [vmem:[#allocation30_spill] sm:$0xff] }
 0x94b   : > { %v7466_v48 = vmax.f32 %v7318_v44, %v7324_v12  ;;  %v7327_v30 = vmax.f32 %v23810_v13, %v7111_v4  ;;  %v6250_v29 = vadd.f32 %v21828_v5, %v5663_v7  ;;  %v5665_v18 = vpop.f32.mrb[149].mxu0  ;;  %v6843_v11 = vmul.f32 %v21134_v28, %v22266_v15  ;;  %v23813_v4 = vld [vmem:[#allocation57_spill] sm:$0xff]  ;;  %v23814_v7 = vld [vmem:[#allocation92_spill] sm:$0xff] }
 0x94c   : > { %v6271_v36 = vadd.f32 %v21789_v49, %v23811_v53  ;;  %v7468_v33 = vmax.f32 %v7320_v51, %v7326_v20  ;;  %v6251_v6 = vadd.f32 %v21833_v25, %v5665_v18  ;;  %v5667_v57 = vpop.f32.mrb[150].mxu0  ;;  %vm6548_vm0 = vcmp.ge.f32.partialorder %v22260_v8, 0.0  ;;  %v23815_v18 = vld [vmem:[#allocation39_spill] sm:$0xff] }
 0x94d   : > { %v7469_v47 = vmax.f32 %v7321_v16, %v7327_v30  ;;  %vm6539_vm12 = vcmp.ge.f32.partialorder %v6250_v29, 0.0  ;;  %v6828_v54 = vmul.f32 %v21134_v28, %v6250_v29  ;;  %v6256_v44 = vadd.f32 %v21828_v5, %v5667_v57  ;;  %v5669_v14 = vpop.f32.mrb[151].mxu0 }
 0x94e   : > { %v22293_v24 = vpack.c.bf16 %v7468_v33, %v7465_v52  ;;  %vm6540_vm13 = vcmp.ge.f32.partialorder %v6251_v6, 0.0  ;;  %v6829_v34 = vmul.f32 %v21134_v28, %v6251_v6  ;;  %v6257_v40 = vadd.f32 %v21833_v25, %v5669_v14  ;;  %v23816_v33 = vld [vmem:[#allocation53_spill] sm:$0xff] }
 0x94f   : > { %v22297_v21 = vpack.c.bf16 %v7469_v47, %v7466_v48  ;;  %v7116_v51 = vsel %vm6539_vm12, %v6250_v29, %v6828_v54  ;;  %vm6545_vm14 = vcmp.ge.f32.partialorder %v6256_v44, 0.0  ;;  %v6834_v45 = vmul.f32 %v21134_v28, %v6256_v44  ;;  %v23817_v54 = vld [vmem:[#allocation94_spill] sm:$0xff] }
 0x950   : > { %v7329_v16 = vmax.f32 %v22274_v17, %v7116_v51  ;;  %v7117_v1 = vsel %vm6540_vm13, %v6251_v6, %v6829_v34  ;;  %vm6546_vm15 = vcmp.ge.f32.partialorder %v6257_v40, 0.0  ;;  %v6835_v12 = vmul.f32 %v21134_v28, %v6257_v40  ;;  %8348 = vmatprep.mubr.bf16.mxu1 %v22293_v24  ;;  %v23818_v51 = vld [vmem:[#allocation41_spill] sm:$0xff] }
 0x951   : > { %vm6554_vm2 = vcmp.ge.f32.partialorder %v22266_v15, 0.0  ;;  %v7330_v52 = vmax.f32 %v23812_v38, %v7117_v1  ;;  %v7122_v20 = vsel %vm6545_vm14, %v6256_v44, %v6834_v45  ;;  %8349 = vmatmul.mubr.bf16.gmra.mrb[112].mxu1 %v23813_v4  ;;  %v22309_v48 = vadd.f32 %v21321_v55, %v23814_v7 }
 0x952   : > { %v6849_v17 = vmul.f32 %v21134_v28, %v6271_v36  ;;  %v7332_v13 = vmax.f32 %v22280_v0, %v7122_v20  ;;  %v7123_v30 = vsel %vm6546_vm15, %v6257_v40, %v6835_v12  ;;  %v5673_v29 = vpop.f32.mrb[152].mxu0  ;;  %vm6560_vm3 = vcmp.ge.f32.partialorder %v6271_v36, 0.0 }
 0x953   : > { %v22315_v53 = vadd.f32 %v21789_v49, %v23815_v18  ;;  %v7333_v6 = vmax.f32 %v23816_v33, %v7123_v30  ;;  %v6262_v57 = vadd.f32 %v21828_v5, %v5673_v29  ;;  %v5675_v47 = vpop.f32.mrb[153].mxu0  ;;  %v22321_v44 = vadd.f32 %v21321_v55, %v23817_v54 }
 0x954   : > { %v7125_v0 = vsel %vm6548_vm0, %v22260_v8, %v6837_v39  ;;  %v7131_v14 = vsel %vm6554_vm2, %v22266_v15, %v6843_v11  ;;  %v6263_v34 = vadd.f32 %v21833_v25, %v5675_v47  ;;  %v5677_v40 = vpop.f32.mrb[154].mxu0  ;;  %v6283_v45 = vadd.f32 %v21789_v49, %v23818_v51 }
 0x955   : > { %vm6551_vm4 = vcmp.ge.f32.partialorder %v6262_v57, 0.0  ;;  %v6840_v1 = vmul.f32 %v21134_v28, %v6262_v57  ;;  %v6268_v12 = vadd.f32 %v21828_v5, %v5677_v40  ;;  %v5679_v38 = vpop.f32.mrb[155].mxu0  ;;  %v22334_v20 = vsel %vm6560_vm3, %v6271_v36, %v6849_v17  ;;  %v23819_v17 = vld [vmem:[#allocation54_spill] sm:$0xff] }
 0x956   : > { %vm6552_vm5 = vcmp.ge.f32.partialorder %v6263_v34, 0.0  ;;  %v6841_v8 = vmul.f32 %v21134_v28, %v6263_v34  ;;  %v6269_v39 = vadd.f32 %v21833_v25, %v5679_v38  ;;  %vm6566_vm6 = vcmp.ge.f32.partialorder %v22315_v53, 0.0  ;;  %v23821_v38 = vld [vmem:[#allocation56_spill] sm:$0xff] }
 0x957   : > { %v7128_v15 = vsel %vm6551_vm4, %v6262_v57, %v6840_v1  ;;  %vm6557_vm7 = vcmp.ge.f32.partialorder %v6268_v12, 0.0  ;;  %v6846_v11 = vmul.f32 %v21134_v28, %v6268_v12  ;;  %v6855_v36 = vmul.f32 %v21134_v28, %v22315_v53  ;;  %v23820_v1 = vld [vmem:[#allocation42_spill] sm:$0xff] }
 0x958   : > { %v7335_v7 = vmax.f32 %v7125_v0, %v7128_v15  ;;  %v7129_v30 = vsel %vm6552_vm5, %v6263_v34, %v6841_v8  ;;  %vm6558_vm8 = vcmp.ge.f32.partialorder %v6269_v39, 0.0  ;;  %v6847_v29 = vmul.f32 %v21134_v28, %v6269_v39 }
 0x959   : > { %vm6572_vm9 = vcmp.ge.f32.partialorder %v6283_v45, 0.0  ;;  %v7336_v18 = vmax.f32 %v23819_v17, %v7129_v30  ;;  %v7134_v33 = vsel %vm6557_vm7, %v6268_v12, %v6846_v11  ;;  %v6861_v47 = vmul.f32 %v21134_v28, %v6283_v45  ;;  %v23823_v12 = vld [vmem:[#allocation66_spill] sm:$0xff] }
 0x95a   : > { %v7478_v54 = vmax.f32 %v7329_v16, %v7335_v7  ;;  %v7338_v40 = vmax.f32 %v7131_v14, %v7134_v33  ;;  %v7135_v57 = vsel %vm6558_vm8, %v6269_v39, %v6847_v29  ;;  %v5683_v51 = vpop.f32.mrb[156].mxu0  ;;  %v22347_v0 = vadd.f32 %v21789_v49, %v23820_v1 }
 0x95b   : > { %v7479_v34 = vmax.f32 %v7330_v52, %v7336_v18  ;;  %v7339_v8 = vmax.f32 %v23821_v38, %v7135_v57  ;;  %v6274_v15 = vadd.f32 %v21828_v5, %v5683_v51  ;;  %v5685_v42 = vpop.f32.mrb[157].mxu0  ;;  %v22353_v30 = vadd.f32 %v21789_v49, %v23822_v26 }
 0x95c   : > { %v22357_v16 = vadd.f32 %v21789_v49, %v23823_v12  ;;  %v7481_v14 = vmax.f32 %v7332_v13, %v7338_v40  ;;  %v6275_v39 = vadd.f32 %v21833_v25, %v5685_v42  ;;  %v5687_v11 = vpop.f32.mrb[158].mxu0  ;;  %v7143_v1 = vsel %vm6566_vm6, %v22315_v53, %v6855_v36  ;;  %v23827_v53 = vld [vmem:[#allocation58_spill] sm:$0xff] }
 0x95d   : > { %v7482_v7 = vmax.f32 %v7333_v6, %v7339_v8  ;;  %vm6563_vm10 = vcmp.ge.f32.partialorder %v6274_v15, 0.0  ;;  %v6852_v52 = vmul.f32 %v21134_v28, %v6274_v15  ;;  %v6280_v29 = vadd.f32 %v21828_v5, %v5687_v11  ;;  %v5689_v17 = vpop.f32.mrb[159].mxu0 }
 0x95e   : > { %v22362_v18 = vpack.c.bf16 %v7481_v14, %v7478_v54  ;;  %vm6564_vm11 = vcmp.ge.f32.partialorder %v6275_v39, 0.0  ;;  %v6853_v26 = vmul.f32 %v21134_v28, %v6275_v39  ;;  %v6281_v33 = vadd.f32 %v21833_v25, %v5689_v17 }
 0x95f   : > { %v22366_v57 = vpack.c.bf16 %v7482_v7, %v7479_v34  ;;  %v7140_v13 = vsel %vm6563_vm10, %v6274_v15, %v6852_v52  ;;  %vm6569_vm1 = vcmp.ge.f32.partialorder %v6280_v29, 0.0  ;;  %v6858_v42 = vmul.f32 %v21134_v28, %v6280_v29  ;;  %v23825_v34 = vld [vmem:[#allocation81_spill] sm:$0xff]  ;;  %v23826_v15 = vld [vmem:[#allocation62_spill] sm:$0xff] }
 0x960   : > { %23824 = vst [vmem:[#allocation93_spill] sm:$0xff] %v22362_v18  ;;  %v7341_v6 = vmax.f32 %v22334_v20, %v7140_v13  ;;  %v7141_v40 = vsel %vm6564_vm11, %v6275_v39, %v6853_v26  ;;  %vm6570_vm12 = vcmp.ge.f32.partialorder %v6281_v33, 0.0  ;;  %v6859_v51 = vmul.f32 %v21134_v28, %v6281_v33  ;;  %8358 = vmatprep.mubr.bf16.mxu1 %v22362_v18  ;;  %v23831_v18 = vld [vmem:[#allocation85_spill] sm:$0xff] }
 0x961   : > { %v22374_v54 = vmul.f32 %v21134_v28, %v22309_v48  ;;  %v7342_v38 = vmax.f32 %v23825_v34, %v7141_v40  ;;  %v7146_v8 = vsel %vm6569_vm1, %v6280_v29, %v6858_v42  ;;  %8359 = vmatmul.mubr.bf16.gmra.mrb[116].mxu1 %v23826_v15  ;;  %v22383_v20 = vmul.f32 %v21134_v28, %v22321_v44  ;;  %v23828_v40 = vld [vmem:[#allocation47_spill] sm:$0xff] }
 0x962   : > { %v7149_v12 = vsel %vm6572_vm9, %v6283_v45, %v6861_v47  ;;  %v7344_v14 = vmax.f32 %v7143_v1, %v7146_v8  ;;  %v7147_v39 = vsel %vm6570_vm12, %v6281_v33, %v6859_v51  ;;  %v5693_v11 = vpop.f32.mrb[160].mxu0  ;;  %vm6578_vm13 = vcmp.ge.f32.partialorder %v22347_v0, 0.0  ;;  %v23829_v8 = vld [vmem:[#allocation71_spill] sm:$0xff] }
 0x963   : > { %v6867_v7 = vmul.f32 %v21134_v28, %v22347_v0  ;;  %v7345_v36 = vmax.f32 %v23827_v53, %v7147_v39  ;;  %v6286_v52 = vadd.f32 %v21828_v5, %v5693_v11  ;;  %v5695_v29 = vpop.f32.mrb[161].mxu0  ;;  %vm6584_vm14 = vcmp.ge.f32.partialorder %v22353_v30, 0.0 }
 0x964   : > { %v6873_v17 = vmul.f32 %v21134_v28, %v22353_v30  ;;  %vm6590_vm15 = vcmp.ge.f32.partialorder %v22357_v16, 0.0  ;;  %v6287_v45 = vadd.f32 %v21833_v25, %v5695_v29  ;;  %v5697_v47 = vpop.f32.mrb[162].mxu0  ;;  %v6879_v26 = vmul.f32 %v21134_v28, %v22357_v16 }
 0x965   : > { %vm6575_vm0 = vcmp.ge.f32.partialorder %v6286_v52, 0.0  ;;  %v6864_v33 = vmul.f32 %v21134_v28, %v6286_v52  ;;  %v6292_v13 = vadd.f32 %v21828_v5, %v5697_v47  ;;  %v5699_v42 = vpop.f32.mrb[163].mxu0  ;;  %v22402_v51 = vadd.f32 %v21789_v49, %v23828_v40 }
 0x966   : > { %vm6576_vm2 = vcmp.ge.f32.partialorder %v6287_v45, 0.0  ;;  %v6865_v1 = vmul.f32 %v21134_v28, %v6287_v45  ;;  %v6293_v34 = vadd.f32 %v21833_v25, %v5699_v42  ;;  %vm6645_vm3 = vcmp.ge.f32.partialorder %v22179_v56, 0.0 }
 0x967   : > { %vm6651_vm4 = vcmp.ge.f32.partialorder %v22309_v48, 0.0  ;;  %v22410_v39 = vadd.f32 %v21789_v49, %v23829_v8  ;;  %v7152_v11 = vsel %vm6575_vm0, %v6286_v52, %v6864_v33  ;;  %vm6581_vm5 = vcmp.ge.f32.partialorder %v6292_v13, 0.0  ;;  %v23830_v52 = vld [vmem:[#allocation83_spill] sm:$0xff] }
 0x968   : > { %v6870_v53 = vmul.f32 %v21134_v28, %v6292_v13  ;;  %vm6657_vm6 = vcmp.ge.f32.partialorder %v22321_v44, 0.0  ;;  %v7347_v29 = vmax.f32 %v7149_v12, %v7152_v11  ;;  %v7153_v47 = vsel %vm6576_vm2, %v6287_v45, %v6865_v1 }
 0x969   : > { %vm6582_vm7 = vcmp.ge.f32.partialorder %v6293_v34, 0.0  ;;  %v6871_v40 = vmul.f32 %v21134_v28, %v6293_v34  ;;  %v7155_v42 = vsel %vm6578_vm13, %v22347_v0, %v6867_v7  ;;  %v22421_v8 = vsel %vm6584_vm14, %v22353_v30, %v6873_v17 }
 0x96a   : > { %v7348_v33 = vmax.f32 %v23830_v52, %v7153_v47  ;;  %v7158_v3 = vsel %vm6581_vm5, %v6292_v13, %v6870_v53  ;;  %v22427_v12 = vsel %vm6590_vm15, %v22357_v16, %v6879_v26  ;;  %v7491_v45 = vmax.f32 %v7341_v6, %v7347_v29  ;;  %v5703_v15 = vpop.f32.mrb[164].mxu0  ;;  %v23832_v53 = vld [vmem:[#allocation29_spill] sm:$0xff] }
 0x96b   : > { %v7350_v1 = vmax.f32 %v7155_v42, %v7158_v3  ;;  %v7159_v11 = vsel %vm6582_vm7, %v6293_v34, %v6871_v40  ;;  %v6885_v0 = vmul.f32 %v21134_v28, %v22402_v51  ;;  %v6298_v30 = vadd.f32 %v21828_v5, %v5703_v15  ;;  %v5705_v17 = vpop.f32.mrb[165].mxu0 }
 0x96c   : > { %v7492_v7 = vmax.f32 %v7342_v38, %v7348_v33  ;;  %v7351_v4 = vmax.f32 %v23831_v18, %v7159_v11  ;;  %v6891_v13 = vmul.f32 %v21134_v28, %v22410_v39  ;;  %v6319_v16 = vadd.f32 %v21789_v49, %v23832_v53  ;;  %v5707_v6 = vpop.f32.mrb[166].mxu0 }
 0x96d   : > { %v7494_v26 = vmax.f32 %v7344_v14, %v7350_v1  ;;  %v6299_v3 = vadd.f32 %v21833_v25, %v5705_v17  ;;  %vm6587_vm8 = vcmp.ge.f32.partialorder %v6298_v30, 0.0  ;;  %v6876_v29 = vmul.f32 %v21134_v28, %v6298_v30  ;;  %v5709_v18 = vpop.f32.mrb[167].mxu0 }
 0x96e   : > { %v7495_v34 = vmax.f32 %v7345_v36, %v7351_v4  ;;  %v6304_v38 = vadd.f32 %v21828_v5, %v5707_v6  ;;  %v6305_v40 = vadd.f32 %v21833_v25, %v5709_v18  ;;  %vm6596_vm1 = vcmp.ge.f32.partialorder %v22402_v51, 0.0 }
 0x96f   : > { %v22440_v47 = vpack.c.bf16 %v7494_v26, %v7491_v45  ;;  %vm6588_vm9 = vcmp.ge.f32.partialorder %v6299_v3, 0.0  ;;  %v6877_v15 = vmul.f32 %v21134_v28, %v6299_v3  ;;  %v7164_v14 = vsel %vm6587_vm8, %v6298_v30, %v6876_v29  ;;  %v23833_v45 = vld [vmem:[#allocation61_spill] sm:$0xff] }
 0x970   : > { %v22444_v42 = vpack.c.bf16 %v7495_v34, %v7492_v7  ;;  %vm6593_vm10 = vcmp.ge.f32.partialorder %v6304_v38, 0.0  ;;  %v6882_v52 = vmul.f32 %v21134_v28, %v6304_v38  ;;  %v7353_v4 = vmax.f32 %v22421_v8, %v7164_v14  ;;  %v23834_v7 = vld [vmem:[#allocation44_spill] sm:$0xff] }
 0x971   : > { %v7165_v36 = vsel %vm6588_vm9, %v6299_v3, %v6877_v15  ;;  %vm6594_vm11 = vcmp.ge.f32.partialorder %v6305_v40, 0.0  ;;  %v6883_v33 = vmul.f32 %v21134_v28, %v6305_v40  ;;  %8368 = vmatprep.mubr.bf16.mxu1 %v22440_v47  ;;  %vm6602_vm12 = vcmp.ge.f32.partialorder %v22410_v39, 0.0  ;;  %v23836_v15 = vld [vmem:[#allocation77_spill] sm:$0xff] }
 0x972   : > { %v7354_v1 = vmax.f32 %v23833_v45, %v7165_v36  ;;  %v7170_v11 = vsel %vm6593_vm10, %v6304_v38, %v6882_v52  ;;  %8369 = vmatmul.mubr.bf16.gmra.mrb[120].mxu1 %v23834_v7  ;;  %v22458_v8 = vsel %vm6645_vm3, %v22179_v56, %v22243_v59  ;;  %v22464_v30 = vsel %vm6651_vm4, %v22309_v48, %v22374_v54  ;;  %v5713_v26 = vpop.f32.mrb[168].mxu0  ;;  %v23835_v38 = vld [vmem:[#allocation73_spill] sm:$0xff] }
 0x973   : > { %v7356_v17 = vmax.f32 %v22427_v12, %v7170_v11  ;;  %v7171_v53 = vsel %vm6594_vm11, %v6305_v40, %v6883_v33  ;;  %v22471_v3 = vsel %vm6657_vm6, %v22321_v44, %v22383_v20  ;;  %v6897_v6 = vmul.f32 %v21134_v28, %v6319_v16  ;;  %v5715_v34 = vpop.f32.mrb[169].mxu0 }
 0x974   : > { %v7357_v56 = vmax.f32 %v21795_v62, %v7171_v53  ;;  %v6310_v59 = vadd.f32 %v21828_v5, %v5713_v26  ;;  %v7173_v48 = vsel %vm6596_vm1, %v22402_v51, %v6885_v0  ;;  %v7179_v54 = vsel %vm6602_vm12, %v22410_v39, %v6891_v13  ;;  %v5717_v29 = vpop.f32.mrb[170].mxu0 }
 0x975   : > { %vm6608_vm13 = vcmp.ge.f32.partialorder %v6319_v16, 0.0  ;;  %v6311_v12 = vadd.f32 %v21833_v25, %v5715_v34  ;;  %v6325_v18 = vadd.f32 %v21789_v49, %v23835_v38  ;;  %v6316_v20 = vadd.f32 %v21828_v5, %v5717_v29  ;;  %v5719_v62 = vpop.f32.mrb[171].mxu0  ;;  %v23837_v38 = vld [vmem:[#allocation67_spill] sm:$0xff] }
 0x976   : > { %vm6599_vm14 = vcmp.ge.f32.partialorder %v6310_v59, 0.0  ;;  %v6888_v44 = vmul.f32 %v21134_v28, %v6310_v59  ;;  %v6331_v40 = vadd.f32 %v21789_v49, %v23836_v15  ;;  %v6317_v39 = vadd.f32 %v21833_v25, %v5719_v62  ;;  %v23838_v62 = vld [vmem:[#allocation52_spill] sm:$0xff] }
 0x977   : > { %vm6600_vm15 = vcmp.ge.f32.partialorder %v6311_v12, 0.0  ;;  %v6889_v51 = vmul.f32 %v21134_v28, %v6311_v12  ;;  %v22487_v0 = vsel %vm6608_vm13, %v6319_v16, %v6897_v6  ;;  %vm6605_vm0 = vcmp.ge.f32.partialorder %v6316_v20, 0.0 }
 0x978   : > { %v7176_v13 = vsel %vm6599_vm14, %v6310_v59, %v6888_v44  ;;  %v6894_v14 = vmul.f32 %v21134_v28, %v6316_v20  ;;  %vm6606_vm2 = vcmp.ge.f32.partialorder %v6317_v39, 0.0  ;;  %v6895_v33 = vmul.f32 %v21134_v28, %v6317_v39 }
 0x979   : > { %v7359_v52 = vmax.f32 %v7173_v48, %v7176_v13  ;;  %v7177_v36 = vsel %vm6600_vm15, %v6311_v12, %v6889_v51  ;;  %vm6614_vm3 = vcmp.ge.f32.partialorder %v6325_v18, 0.0  ;;  %v6903_v45 = vmul.f32 %v21134_v28, %v6325_v18  ;;  %v23839_v51 = vld [vmem:[#allocation55_spill] sm:$0xff] }
 0x97a   : > { %v7360_v11 = vmax.f32 %v21798_v22, %v7177_v36  ;;  %v7182_v53 = vsel %vm6605_vm0, %v6316_v20, %v6894_v14  ;;  %vm6620_vm4 = vcmp.ge.f32.partialorder %v6331_v40, 0.0  ;;  %v7183_v16 = vsel %vm6606_vm2, %v6317_v39, %v6895_v33  ;;  %v5723_v6 = vpop.f32.mrb[172].mxu0 }
 0x97b   : > { %v7504_v26 = vmax.f32 %v7353_v4, %v7359_v52  ;;  %v7362_v34 = vmax.f32 %v7179_v54, %v7182_v53  ;;  %v6909_v59 = vmul.f32 %v21134_v28, %v6331_v40  ;;  %v7363_v48 = vmax.f32 %v23837_v38, %v7183_v16  ;;  %v5725_v44 = vpop.f32.mrb[173].mxu0 }
 0x97c   : > { %v7505_v29 = vmax.f32 %v7354_v1, %v7360_v11  ;;  %v6322_v12 = vadd.f32 %v21828_v5, %v5723_v6  ;;  %v22498_v15 = vadd.f32 %v21789_v49, %v23838_v62  ;;  %v22502_v22 = vadd.f32 %v21789_v49, %v23839_v51  ;;  %v5727_v20 = vpop.f32.mrb[174].mxu0  ;;  %v23840_v6 = vld [vmem:[#allocation79_spill] sm:$0xff] }
 0x97d   : > { %v7507_v4 = vmax.f32 %v7356_v17, %v7362_v34  ;;  %v6323_v54 = vadd.f32 %v21833_v25, %v5725_v44  ;;  %v7508_v39 = vmax.f32 %v7357_v56, %v7363_v48  ;;  %v6328_v13 = vadd.f32 %v21828_v5, %v5727_v20  ;;  %v5729_v14 = vpop.f32.mrb[175].mxu0  ;;  %v23842_v44 = vld [vmem:[#allocation96_spill] sm:$0xff] }
 0x97e   : > { %vm6611_vm5 = vcmp.ge.f32.partialorder %v6322_v12, 0.0  ;;  %v6900_v1 = vmul.f32 %v21134_v28, %v6322_v12  ;;  %v6329_v33 = vadd.f32 %v21833_v25, %v5729_v14  ;;  %v6349_v38 = vadd.f32 %v21789_v49, %v23840_v6 }
 0x97f   : > { %v22507_v52 = vpack.c.bf16 %v7507_v4, %v7504_v26  ;;  %vm6612_vm6 = vcmp.ge.f32.partialorder %v6323_v54, 0.0  ;;  %v6901_v36 = vmul.f32 %v21134_v28, %v6323_v54  ;;  %v22511_v11 = vpack.c.bf16 %v7508_v39, %v7505_v29 }
 0x980   : > { %v7188_v17 = vsel %vm6611_vm5, %v6322_v12, %v6900_v1  ;;  %vm6617_vm7 = vcmp.ge.f32.partialorder %v6328_v13, 0.0  ;;  %v6906_v53 = vmul.f32 %v21134_v28, %v6328_v13  ;;  %vm6618_vm8 = vcmp.ge.f32.partialorder %v6329_v33, 0.0  ;;  %v23841_v12 = vld [vmem:[#allocation50_spill] sm:$0xff] }
 0x981   : > { %v7365_v56 = vmax.f32 %v22487_v0, %v7188_v17  ;;  %v7189_v34 = vsel %vm6612_vm6, %v6323_v54, %v6901_v36  ;;  %v6907_v16 = vmul.f32 %v21134_v28, %v6329_v33  ;;  %8378 = vmatprep.mubr.bf16.mxu1 %v22507_v52  ;;  %v7191_v26 = vsel %vm6614_vm3, %v6325_v18, %v6903_v45  ;;  %v23843_v0 = vld [vmem:[#allocation98_spill] sm:$0xff] }
 0x982   : > { %v7366_v29 = vmax.f32 %v21836_v46, %v7189_v34  ;;  %v7194_v48 = vsel %vm6617_vm7, %v6328_v13, %v6906_v53  ;;  %8379 = vmatmul.mubr.bf16.gmra.mrb[124].mxu1 %v23841_v12  ;;  %v22524_v62 = vadd.f32 %v21321_v55, %v23842_v44  ;;  %v22528_v51 = vadd.f32 %v21321_v55, %v23843_v0  ;;  %v5733_v20 = vpop.f32.mrb[176].mxu0  ;;  %v18053_v0 = vld [vmem:[#allocation9 + $0x32c] ss:$16 sps:$4 sm:$0xff]  }
 0x983   : > { %v7368_v4 = vmax.f32 %v7191_v26, %v7194_v48  ;;  %v7195_v54 = vsel %vm6618_vm8, %v6329_v33, %v6907_v16  ;;  %v23844_v18 = vmov 0   ;;  %v7197_v45 = vsel %vm6620_vm4, %v6331_v40, %v6909_v59  ;;  %v5735_v1 = vpop.f32.mrb[177].mxu0  ;;  %v18048_v16 = vld [vmem:[#allocation9 + $0x308] ss:$16 sps:$4 sm:$0xff]  }
 0x984   : > { %8421 = vmatprep.mubr.bf16.mxu1 %v23844_v18  ;;  %vm6626_vm9 = vcmp.ge.f32.partialorder %v22498_v15, 0.0  ;;  %v7369_v46 = vmax.f32 %v21841_v32, %v7195_v54  ;;  %v6334_v39 = vadd.f32 %v21828_v5, %v5733_v20  ;;  %v6915_v13 = vmul.f32 %v21134_v28, %v22498_v15  ;;  %v5737_v33 = vpop.f32.mrb[178].mxu0  ;;  %v23845_v26 = vld [vmem:[#allocation32_spill] sm:$0xff] }
 0x985   : > { %vm6632_vm10 = vcmp.ge.f32.partialorder %v22502_v22, 0.0  ;;  %v6921_v14 = vmul.f32 %v21134_v28, %v22502_v22  ;;  %v6335_v36 = vadd.f32 %v21833_v25, %v5735_v1  ;;  %vm6638_vm11 = vcmp.ge.f32.partialorder %v6349_v38, 0.0  ;;  %v5739_v59 = vpop.f32.mrb[179].mxu0 }
 0x986   : > { %vm6623_vm1 = vcmp.ge.f32.partialorder %v6334_v39, 0.0  ;;  %v6912_v40 = vmul.f32 %v21134_v28, %v6334_v39  ;;  %v6340_v32 = vadd.f32 %v21828_v5, %v5737_v33  ;;  %v6927_v17 = vmul.f32 %v21134_v28, %v6349_v38 }
 0x987   : > { %vm6624_vm12 = vcmp.ge.f32.partialorder %v6335_v36, 0.0  ;;  %v6913_v53 = vmul.f32 %v21134_v28, %v6335_v36  ;;  %v6341_v34 = vadd.f32 %v21833_v25, %v5739_v59  ;;  %v22548_v6 = vadd.f32 %v21789_v49, %v23845_v26 }
 0x988   : > { %v7200_v48 = vsel %vm6623_vm1, %v6334_v39, %v6912_v40  ;;  %vm6629_vm13 = vcmp.ge.f32.partialorder %v6340_v32, 0.0  ;;  %v6918_v44 = vmul.f32 %v21134_v28, %v6340_v32  ;;  %v7203_v33 = vsel %vm6626_vm9, %v22498_v15, %v6915_v13 }
 0x989   : > { %v7371_v54 = vmax.f32 %v7197_v45, %v7200_v48  ;;  %v7201_v20 = vsel %vm6624_vm12, %v6335_v36, %v6913_v53  ;;  %vm6630_vm14 = vcmp.ge.f32.partialorder %v6341_v34, 0.0  ;;  %v6919_v1 = vmul.f32 %v21134_v28, %v6341_v34  ;;  %v18051_v48 = vld [vmem:[#allocation9 + $0x328] ss:$16 sps:$4 sm:$0xff]  }
 0x98a   : > { %v22558_v59 = vsel %vm6632_vm10, %v22502_v22, %v6921_v14  ;;  %v7372_v39 = vmax.f32 %v21868_v31, %v7201_v20  ;;  %v7206_v40 = vsel %vm6629_vm13, %v6340_v32, %v6918_v44  ;;  %8422 = vmatmul.mubr.bf16.vlgmr.msra.gmra.mrb[96].mxu1 %v21987_v23  ;;  %v5743_v53 = vpop.f32.mrb[180].mxu0  ;;  %v22564_v15 = vsel %vm6638_vm11, %v6349_v38, %v6927_v17  ;;  %v18056_v32 = vld [vmem:[#allocation9 + $0x34c] ss:$16 sps:$4 sm:$0xff]  }
 0x98b   : > { %v7517_v26 = vmax.f32 %v7365_v56, %v7371_v54  ;;  %v7374_v45 = vmax.f32 %v7203_v33, %v7206_v40  ;;  %v7207_v36 = vsel %vm6630_vm14, %v6341_v34, %v6919_v1  ;;  %8503 = vmatpush1.bf16.msra.mxu1 %v18048_v16  ;;  %8431 = vmatprep.mubr.bf16.mxu1 %v23844_v18  ;;  %v5745_v31 = vpop.f32.mrb[181].mxu0  ;;  %v23846_v34 = vld [vmem:[#allocation59_spill] sm:$0xff]  ;;  %vm6644_vm4 = vcmp.ge.f32.partialorder %v22548_v6, 0.0 }
 0x98c   : > { %v7518_v13 = vmax.f32 %v7366_v29, %v7372_v39  ;;  %v7375_v22 = vmax.f32 %v22006_v50, %v7207_v36  ;;  %v6346_v14 = vadd.f32 %v21828_v5, %v5743_v53  ;;  %8504 = vmatprep.subr.bf16.mxu1 %v18053_v0  ;;  %v6933_v56 = vmul.f32 %v21134_v28, %v22548_v6  ;;  %v5747_v38 = vpop.f32.mrb[182].mxu0  ;;  %v18054_v39 = vld [vmem:[#allocation9 + $0x348] ss:$16 sps:$4 sm:$0xff]  }
 0x98d   : > { %v22572_v16 = vadd.f32 %v21789_v49, %v23846_v34  ;;  %v7520_v44 = vmax.f32 %v7368_v4, %v7374_v45  ;;  %v6347_v54 = vadd.f32 %v21833_v25, %v5745_v31  ;;  %v6352_v29 = vadd.f32 %v21828_v5, %v5747_v38  ;;  %v5749_v20 = vpop.f32.mrb[183].mxu0  ;;  %v18059_v45 = vld [vmem:[#allocation9 + $0x36c] ss:$16 sps:$4 sm:$0xff]  }
 0x98e   : > { %v7521_v17 = vmax.f32 %v7369_v46, %v7375_v22  ;;  %vm6635_vm15 = vcmp.ge.f32.partialorder %v6346_v14, 0.0  ;;  %v6924_v50 = vmul.f32 %v21134_v28, %v6346_v14  ;;  %v6353_v33 = vadd.f32 %v21833_v25, %v5749_v20  ;;  %v23847_v22 = vld [vmem:[#allocation65_spill] sm:$0xff] }
 0x98f   : > { %v22577_v0 = vpack.c.bf16 %v7520_v44, %v7517_v26  ;;  %vm6636_vm0 = vcmp.ge.f32.partialorder %v6347_v54, 0.0  ;;  %v6925_v1 = vmul.f32 %v21134_v28, %v6347_v54  ;;  %8505 = vmatpush1.bf16.msra.mxu1 %v18051_v48  ;;  %vm6641_vm2 = vcmp.ge.f32.partialorder %v6352_v29, 0.0  ;;  %v18057_v44 = vld [vmem:[#allocation9 + $0x368] ss:$16 sps:$4 sm:$0xff]  }
 0x990   : > { %v22581_v4 = vpack.c.bf16 %v7521_v17, %v7518_v13  ;;  %v7212_v40 = vsel %vm6635_vm15, %v6346_v14, %v6924_v50  ;;  %v6930_v46 = vmul.f32 %v21134_v28, %v6352_v29  ;;  %8506 = vmatprep.subr.bf16.mxu1 %v18056_v32  ;;  %vm6642_vm3 = vcmp.ge.f32.partialorder %v6353_v33, 0.0 }
 0x991   : > { %v7377_v36 = vmax.f32 %v22558_v59, %v7212_v40  ;;  %v22585_v53 = vsel %vm6636_vm0, %v6347_v54, %v6925_v1  ;;  %v6931_v26 = vmul.f32 %v21134_v28, %v6353_v33  ;;  %v6367_v48 = vadd.f32 %v21789_v49, %v23847_v22  ;;  %v23848_v54 = vld [vmem:[#allocation100_spill] sm:$0xff] }
 0x992   : > { %v7378_v13 = vmax.f32 %v22080_v61, %v22585_v53  ;;  %v22593_v14 = vsel %vm6641_vm2, %v6352_v29, %v6930_v46  ;;  %8432 = vmatmul.mubr.bf16.gmra.mrb[100].mxu1 %v22070_v27  ;;  %v22598_v59 = vmul.f32 %v21134_v28, %v22524_v62  ;;  %v5753_v34 = vpop.f32.mrb[184].mxu0  ;;  %v22607_v61 = vmul.f32 %v21134_v28, %v22528_v51  ;;  %v18062_v29 = vld [vmem:[#allocation9 + $0x38c] ss:$16 sps:$4 sm:$0xff]   ;;  %v23849_v53 = vld [vmem:[#allocation87_spill] sm:$0xff] }
 0x993   : > { %v7380_v31 = vmax.f32 %v22564_v15, %v22593_v14  ;;  %v22602_v32 = vsel %vm6642_vm3, %v6353_v33, %v6931_v26  ;;  %8507 = vmatpush1.bf16.msra.mxu1 %v18054_v39  ;;  %8441 = vmatprep.mubr.bf16.mxu1 %v23844_v18  ;;  %v22611_v38 = vadd.f32 %v21321_v55, %v23848_v54  ;;  %v5755_v50 = vpop.f32.mrb[185].mxu0  ;;  %vm6650_vm5 = vcmp.ge.f32.partialorder %v22572_v16, 0.0 }
 0x994   : > { %v7381_v17 = vmax.f32 %v22234_v37, %v22602_v32  ;;  %v6358_v15 = vadd.f32 %v21828_v5, %v5753_v34  ;;  %8508 = vmatprep.subr.bf16.mxu1 %v18059_v45  ;;  %v7221_v20 = vsel %vm6644_vm4, %v22548_v6, %v6933_v56  ;;  %v6939_v1 = vmul.f32 %v21134_v28, %v22572_v16  ;;  %v5757_v33 = vpop.f32.mrb[186].mxu0  ;;  %v18060_v45 = vld [vmem:[#allocation9 + $0x388] ss:$16 sps:$4 sm:$0xff]   ;;  %v18065_v32 = vld [vmem:[#allocation9 + $0x3ac] ss:$16 sps:$4 sm:$0xff]  }
 0x995   : > { %v6359_v55 = vadd.f32 %v21833_v25, %v5755_v50  ;;  %v6945_v39 = vmul.f32 %v21134_v28, %v6367_v48  ;;  %v6364_v40 = vadd.f32 %v21828_v5, %v5757_v33  ;;  %v5759_v46 = vpop.f32.mrb[187].mxu0  ;;  %vm6656_vm7 = vcmp.ge.f32.partialorder %v6367_v48, 0.0 }
 0x996   : > { %vm6647_vm6 = vcmp.ge.f32.partialorder %v6358_v15, 0.0  ;;  %v6936_v37 = vmul.f32 %v21134_v28, %v6358_v15  ;;  %v6365_v56 = vadd.f32 %v21833_v25, %v5759_v46  ;;  %vm6663_vm9 = vcmp.ge.f32.partialorder %v22524_v62, 0.0 }
 0x997   : > { %vm6648_vm8 = vcmp.ge.f32.partialorder %v6359_v55, 0.0  ;;  %v6937_v6 = vmul.f32 %v21134_v28, %v6359_v55  ;;  %8509 = vmatpush1.bf16.msra.mxu1 %v18057_v44  ;;  %v6373_v26 = vadd.f32 %v21789_v49, %v23849_v53  ;;  %vm6653_vm10 = vcmp.ge.f32.partialorder %v6364_v40, 0.0  ;;  %v23850_v53 = vld [vmem:[#allocation89_spill] sm:$0xff] }
 0x998   : > { %v7224_v22 = vsel %vm6647_vm6, %v6358_v15, %v6936_v37  ;;  %v6942_v14 = vmul.f32 %v21134_v28, %v6364_v40  ;;  %8510 = vmatprep.subr.bf16.mxu1 %v18062_v29  ;;  %vm6654_vm11 = vcmp.ge.f32.partialorder %v6365_v56, 0.0  ;;  %v6943_v50 = vmul.f32 %v21134_v28, %v6365_v56 }
 0x999   : > { %v7383_v34 = vmax.f32 %v7221_v20, %v7224_v22  ;;  %v7225_v54 = vsel %vm6648_vm8, %v6359_v55, %v6937_v6  ;;  %v7227_v44 = vsel %vm6650_vm5, %v22572_v16, %v6939_v1  ;;  %v22637_v33 = vsel %vm6656_vm7, %v6367_v48, %v6945_v39  ;;  %v18063_v6 = vld [vmem:[#allocation9 + $0x3a8] ss:$16 sps:$4 sm:$0xff]   ;;  %v18068_v39 = vld [vmem:[#allocation9 + $0x3cc] ss:$16 sps:$4 sm:$0xff]  }
 0x99a   : > { %v7384_v46 = vmax.f32 %v22458_v8, %v7225_v54  ;;  %v7230_v15 = vsel %vm6653_vm10, %v6364_v40, %v6942_v14  ;;  %8442 = vmatmul.mubr.bf16.gmra.mrb[104].mxu1 %v22155_v60  ;;  %vm6669_vm1 = vcmp.ge.f32.partialorder %v22528_v51, 0.0  ;;  %v7231_v55 = vsel %vm6654_vm11, %v6365_v56, %v6943_v50  ;;  %v5763_v37 = vpop.f32.mrb[188].mxu0  ;;  %v18066_v50 = vld [vmem:[#allocation9 + $0x3c8] ss:$16 sps:$4 sm:$0xff]  }
 0x99b   : > { %v7530_v29 = vmax.f32 %v7377_v36, %v7383_v34  ;;  %v7386_v20 = vmax.f32 %v7227_v44, %v7230_v15  ;;  %8511 = vmatpush1.bf16.msra.mxu1 %v18060_v45  ;;  %8451 = vmatprep.mubr.bf16.mxu1 %v23844_v18  ;;  %vm6662_vm12 = vcmp.ge.f32.partialorder %v6373_v26, 0.0  ;;  %v7387_v48 = vmax.f32 %v22464_v30, %v7231_v55  ;;  %v5765_v8 = vpop.f32.mrb[189].mxu0 }
 0x99c   : > { %v7531_v16 = vmax.f32 %v7378_v13, %v7384_v46  ;;  %v6370_v1 = vadd.f32 %v21828_v5, %v5763_v37  ;;  %8512 = vmatprep.subr.bf16.mxu1 %v18065_v32  ;;  %v6951_v40 = vmul.f32 %v21134_v28, %v6373_v26  ;;  %v6379_v36 = vadd.f32 %v21789_v49, %v23850_v53  ;;  %v5767_v22 = vpop.f32.mrb[190].mxu0  ;;  %v18071_v46 = vld [vmem:[#allocation9 + $0x3ec] ss:$16 sps:$4 sm:$0xff]  }
 0x99d   : > { %v7533_v56 = vmax.f32 %v7380_v31, %v7386_v20  ;;  %v6371_v45 = vadd.f32 %v21833_v25, %v5765_v8  ;;  %v7534_v14 = vmax.f32 %v7381_v17, %v7387_v48  ;;  %v6376_v30 = vadd.f32 %v21828_v5, %v5767_v22  ;;  %v5769_v34 = vpop.f32.mrb[191].mxu0 }
 0x99e   : > { %vm6659_vm13 = vcmp.ge.f32.partialorder %v6370_v1, 0.0  ;;  %v6948_v13 = vmul.f32 %v21134_v28, %v6370_v1  ;;  %v6377_v54 = vadd.f32 %v21833_v25, %v5769_v34  ;;  %vm6675_vm2 = vcmp.ge.f32.partialorder %v22611_v38, 0.0 }
 0x99f   : > { %vm6660_vm14 = vcmp.ge.f32.partialorder %v6371_v45, 0.0  ;;  %v6949_v32 = vmul.f32 %v21134_v28, %v6371_v45  ;;  %8513 = vmatpush1.bf16.msra.mxu1 %v18063_v6  ;;  %v22653_v44 = vpack.c.bf16 %v7533_v56, %v7530_v29  ;;  %vm6665_vm15 = vcmp.ge.f32.partialorder %v6376_v30, 0.0  ;;  %v23851_v6 = vld [vmem:[#allocation68_spill] sm:$0xff] }
 0x9a0   : > { %v22655_v31 = vsel %vm6659_vm13, %v6370_v1, %v6948_v13  ;;  %v6954_v17 = vmul.f32 %v21134_v28, %v6376_v30  ;;  %8514 = vmatprep.subr.bf16.mxu1 %v18068_v39  ;;  %v22658_v15 = vpack.c.bf16 %v7534_v14, %v7531_v16  ;;  %vm6666_vm0 = vcmp.ge.f32.partialorder %v6377_v54, 0.0  ;;  %v18069_v56 = vld [vmem:[#allocation9 + $0x3e8] ss:$16 sps:$4 sm:$0xff]  }
 0x9a1   : > { %v7389_v20 = vmax.f32 %v22637_v33, %v22655_v31  ;;  %v22662_v55 = vsel %vm6660_vm14, %v6371_v45, %v6949_v32  ;;  %v6955_v37 = vmul.f32 %v21134_v28, %v6377_v54  ;;  %v7239_v29 = vsel %vm6662_vm12, %v6373_v26, %v6951_v40 }
 0x9a2   : > { %v6385_v48 = vadd.f32 %v21789_v49, %v23851_v6  ;;  %v7390_v1 = vmax.f32 %v22471_v3, %v22662_v55  ;;  %v7242_v8 = vsel %vm6665_vm15, %v6376_v30, %v6954_v17  ;;  %8452 = vmatmul.mubr.bf16.gmra.mrb[108].mxu1 %v22224_v63  ;;  %v7240_v33 = vsel %vm6663_vm9, %v22524_v62, %v22598_v59  ;;  %v5773_v53 = vpop.f32.mrb[192].mxu0  ;;  %v18074_v62 = vld [vmem:[#allocation9 + $0x40c] ss:$16 sps:$4 sm:$0xff]  }
 0x9a3   : > { %v7392_v16 = vmax.f32 %v7239_v29, %v7242_v8  ;;  %v7243_v39 = vsel %vm6666_vm0, %v6377_v54, %v6955_v37  ;;  %8515 = vmatpush1.bf16.msra.mxu1 %v18066_v50  ;;  %8461 = vmatprep.mubr.bf16.mxu1 %v23844_v18  ;;  %v7246_v49 = vsel %vm6669_vm1, %v22528_v51, %v22607_v61  ;;  %v5775_v45 = vpop.f32.mrb[193].mxu0  ;;  %vm6668_vm3 = vcmp.ge.f32.partialorder %v6379_v36, 0.0  ;;  %v18072_v54 = vld [vmem:[#allocation9 + $0x408] ss:$16 sps:$4 sm:$0xff]  }
 0x9a4   : > { %v6957_v3 = vmul.f32 %v21134_v28, %v6379_v36  ;;  %v7393_v26 = vmax.f32 %v7240_v33, %v7243_v39  ;;  %v6382_v40 = vadd.f32 %v21828_v5, %v5773_v53  ;;  %8516 = vmatprep.subr.bf16.mxu1 %v18071_v46  ;;  %v6964_v59 = vmul.f32 %v21134_v28, %v22611_v38  ;;  %v5777_v14 = vpop.f32.mrb[194].mxu0  ;;  %v18077_v46 = vld [vmem:[#allocation9 + $0x42c] ss:$16 sps:$4 sm:$0xff]   ;;  %v18075_v39 = vld [vmem:[#allocation9 + $0x428] ss:$16 sps:$4 sm:$0xff]  }
 0x9a5   : > { %v6383_v22 = vadd.f32 %v21833_v25, %v5775_v45  ;;  %v6963_v13 = vmul.f32 %v21134_v28, %v6385_v48  ;;  %v6388_v61 = vadd.f32 %v21828_v5, %v5777_v14  ;;  %v5779_v30 = vpop.f32.mrb[195].mxu0  ;;  %vm6674_vm5 = vcmp.ge.f32.partialorder %v6385_v48, 0.0  ;;  %v18090_v14 = vld [vmem:[#allocation9 + $0x4c8] ss:$16 sps:$4 sm:$0xff]  }
 0x9a6   : > { %vm6671_vm4 = vcmp.ge.f32.partialorder %v6382_v40, 0.0  ;;  %v6960_v51 = vmul.f32 %v21134_v28, %v6382_v40  ;;  %v6389_v32 = vadd.f32 %v21833_v25, %v5779_v30  ;;  %v7245_v50 = vsel %vm6668_vm3, %v6379_v36, %v6957_v3  ;;  %v18096_v30 = vld [vmem:[#allocation9 + $0x508] ss:$16 sps:$4 sm:$0xff]  }
 0x9a7   : > { %vm6672_vm6 = vcmp.ge.f32.partialorder %v6383_v22, 0.0  ;;  %v6961_v34 = vmul.f32 %v21134_v28, %v6383_v22  ;;  %8517 = vmatpush1.bf16.msra.mxu1 %v18069_v56  ;;  %vm6677_vm7 = vcmp.ge.f32.partialorder %v6388_v61, 0.0  ;;  %v6966_v17 = vmul.f32 %v21134_v28, %v6388_v61 }
 0x9a8   : > { %v7248_v31 = vsel %vm6671_vm4, %v6382_v40, %v6960_v51  ;;  %8518 = vmatprep.subr.bf16.mxu1 %v18074_v62  ;;  %vm6678_vm8 = vcmp.ge.f32.partialorder %v6389_v32, 0.0  ;;  %v6967_v5 = vmul.f32 %v21134_v28, %v6389_v32  ;;  %v7252_v29 = vsel %vm6675_vm2, %v22611_v38, %v6964_v59  ;;  %v18080_v28 = vld [vmem:[#allocation9 + $0x44c] ss:$16 sps:$4 sm:$0xff]   ;;  %v18078_v38 = vld [vmem:[#allocation9 + $0x448] ss:$16 sps:$4 sm:$0xff]  }
 0x9a9   : > { %v7395_v55 = vmax.f32 %v7245_v50, %v7248_v31  ;;  %v7249_v37 = vsel %vm6672_vm6, %v6383_v22, %v6961_v34  ;;  %v7251_v25 = vsel %vm6674_vm5, %v6385_v48, %v6963_v13  ;;  %v7254_v8 = vsel %vm6677_vm7, %v6388_v61, %v6966_v17  ;;  %v18081_v59 = vld [vmem:[#allocation9 + $0x468] ss:$16 sps:$4 sm:$0xff]   ;;  %v18092_v22 = vld [vmem:[#allocation9 + $0x4cc] ss:$16 sps:$4 sm:$0xff]  }
 0x9aa   : > { %v7396_v6 = vmax.f32 %v7246_v49, %v7249_v37  ;;  %8462 = vmatmul.mubr.bf16.gmra.mrb[112].mxu1 %v22297_v21  ;;  %v7398_v36 = vmax.f32 %v7251_v25, %v7254_v8  ;;  %v7255_v33 = vsel %vm6678_vm8, %v6389_v32, %v6967_v5  ;;  %v18083_v49 = vld [vmem:[#allocation9 + $0x46c] ss:$16 sps:$4 sm:$0xff]   ;;  %v18093_v51 = vld [vmem:[#allocation9 + $0x4e8] ss:$16 sps:$4 sm:$0xff]  }
 0x9ab   : > { %8519 = vmatpush1.bf16.msra.mxu1 %v18072_v54  ;;  %8471 = vmatprep.mubr.bf16.mxu1 %v23844_v18  ;;  %v7543_v53 = vmax.f32 %v7389_v20, %v7395_v55  ;;  %v7399_v56 = vmax.f32 %v7252_v29, %v7255_v33  ;;  %v18086_v20 = vld [vmem:[#allocation9 + $0x48c] ss:$16 sps:$4 sm:$0xff]   ;;  %v18099_v32 = vld [vmem:[#allocation9 + $0x528] ss:$16 sps:$4 sm:$0xff]  }
 0x9ac   : > { %8520 = vmatprep.subr.bf16.mxu1 %v18077_v46  ;;  %v7544_v3 = vmax.f32 %v7390_v1, %v7396_v6  ;;  %v7546_v40 = vmax.f32 %v7392_v16, %v7398_v36  ;;  %v18084_v1 = vld [vmem:[#allocation9 + $0x488] ss:$16 sps:$4 sm:$0xff]   ;;  %v18089_v16 = vld [vmem:[#allocation9 + $0x4ac] ss:$16 sps:$4 sm:$0xff]   ;;  %v18122_v36 = vld [vmem:[#allocation9 + $0x4] ss:$16 sps:$4 sm:$0xff]  }
 0x9ad   : > { %v7547_v45 = vmax.f32 %v7393_v26, %v7399_v56  ;;  %v18087_v26 = vld [vmem:[#allocation9 + $0x4a8] ss:$16 sps:$4 sm:$0xff]   ;;  %v18095_v13 = vld [vmem:[#allocation9 + $0x4ec] ss:$16 sps:$4 sm:$0xff]   ;;  %v18120_v56 = vld [vmem:[#allocation9] ss:$16 sps:$4 sm:$0xff]  }
 0x9ae   : > { %v22699_v48 = vpack.c.bf16 %v7546_v40, %v7543_v53  ;;  %v18098_v61 = vld [vmem:[#allocation9 + $0x50c] ss:$16 sps:$4 sm:$0xff]   ;;  %v18102_v50 = vld [vmem:[#allocation9 + $0x548] ss:$16 sps:$4 sm:$0xff]   ;;  %v18128_v40 = vld [vmem:[#allocation9 + $0x44] ss:$16 sps:$4 sm:$0xff]  }
 0x9af   : > { %8521 = vmatpush1.bf16.msra.mxu1 %v18075_v39  ;;  %v22701_v62 = vpack.c.bf16 %v7547_v45, %v7544_v3  ;;  %v18101_v34 = vld [vmem:[#allocation9 + $0x52c] ss:$16 sps:$4 sm:$0xff]   ;;  %v18105_v17 = vld [vmem:[#allocation9 + $0x568] ss:$16 sps:$4 sm:$0xff]   ;;  %v18123_v3 = vld [vmem:[#allocation9 + $0x20] ss:$16 sps:$4 sm:$0xff]  }
 0x9b0   : > { %8522 = vmatprep.subr.bf16.mxu1 %v18080_v28  ;;  %v18104_v54 = vld [vmem:[#allocation9 + $0x54c] ss:$16 sps:$4 sm:$0xff]   ;;  %v18108_v55 = vld [vmem:[#allocation9 + $0x588] ss:$16 sps:$4 sm:$0xff]   ;;  %v18125_v28 = vld [vmem:[#allocation9 + $0x24] ss:$16 sps:$4 sm:$0xff]  }
 0x9b1   : > { %v18107_v31 = vld [vmem:[#allocation9 + $0x56c] ss:$16 sps:$4 sm:$0xff]   ;;  %v18111_v5 = vld [vmem:[#allocation9 + $0x5a8] ss:$16 sps:$4 sm:$0xff]   ;;  %v18126_v45 = vld [vmem:[#allocation9 + $0x40] ss:$16 sps:$4 sm:$0xff]  }
 0x9b2   : > { %8472 = vmatmul.mubr.bf16.gmra.mrb[116].mxu1 %v22366_v57  ;;  %v18110_v46 = vld [vmem:[#allocation9 + $0x58c] ss:$16 sps:$4 sm:$0xff]   ;;  %v18114_v25 = vld [vmem:[#allocation9 + $0x5c8] ss:$16 sps:$4 sm:$0xff]  }
 0x9b3   : > { %8523 = vmatpush1.bf16.msra.mxu1 %v18078_v38  ;;  %8481 = vmatprep.mubr.bf16.mxu1 %v23844_v18  ;;  %v18113_v37 = vld [vmem:[#allocation9 + $0x5ac] ss:$16 sps:$4 sm:$0xff]   ;;  %v18117_v8 = vld [vmem:[#allocation9 + $0x5e8] ss:$16 sps:$4 sm:$0xff]   ;;  %v18131_v38 = vld [vmem:[#allocation9 + $0x64] ss:$16 sps:$4 sm:$0xff]  }
 0x9b4   : > { %8524 = vmatprep.subr.bf16.mxu1 %v18083_v49  ;;  %v18116_v29 = vld [vmem:[#allocation9 + $0x5cc] ss:$16 sps:$4 sm:$0xff]   ;;  %v23852_v33 = vld [vmem:[#allocation57_spill] sm:$0xff] }
 0x9b5   : > { %v18119_v6 = vld [vmem:[#allocation9 + $0x5ec] ss:$16 sps:$4 sm:$0xff]   ;;  %v23853_v39 = vld [vmem:[#allocation93_spill] sm:$0xff] }
 0x9b6   : > { %v23854_v53 = vld [vmem:[#allocation62_spill] sm:$0xff] }
 0x9b7   : > { %8525 = vmatpush1.bf16.msra.mxu1 %v18081_v59  ;;  %v18129_v49 = vld [vmem:[#allocation9 + $0x60] ss:$16 sps:$4 sm:$0xff]   ;;  %v18134_v59 = vld [vmem:[#allocation9 + $0x84] ss:$16 sps:$4 sm:$0xff]  }
 0x9b8   : > { %8526 = vmatprep.subr.bf16.mxu1 %v18086_v20  ;;  %v18132_v20 = vld [vmem:[#allocation9 + $0x80] ss:$16 sps:$4 sm:$0xff]  }
 0x9ba   : > { %8482 = vmatmul.mubr.bf16.gmra.mrb[120].mxu1 %v22444_v42 }
 0x9bb   : > { %8527 = vmatpush1.bf16.msra.mxu1 %v18084_v1  ;;  %8491 = vmatprep.mubr.bf16.mxu1 %v23844_v18  ;;  %v18137_v1 = vld [vmem:[#allocation9 + $0xa4] ss:$16 sps:$4 sm:$0xff]  }
 0x9bc   : > { %8528 = vmatprep.subr.bf16.mxu1 %v18089_v16  ;;  %v18135_v16 = vld [vmem:[#allocation9 + $0xa0] ss:$16 sps:$4 sm:$0xff]  }
 0x9bf   : > { %8529 = vmatpush1.bf16.msra.mxu1 %v18087_v26  ;;  %v18140_v26 = vld [vmem:[#allocation9 + $0xc4] ss:$16 sps:$4 sm:$0xff]  }
 0x9c0   : > { %8530 = vmatprep.subr.bf16.mxu1 %v18092_v22  ;;  %v18138_v22 = vld [vmem:[#allocation9 + $0xc0] ss:$16 sps:$4 sm:$0xff]  }
 0x9c2   : > { %8492 = vmatmul.mubr.bf16.gmra.mrb[124].mxu1 %v22511_v11 }
 0x9c3   : > { %8531 = vmatpush1.bf16.msra.mxu1 %v18090_v14  ;;  %8534 = vmatprep.mubr.bf16.mxu1 %v21985_v2  ;;  %v18143_v14 = vld [vmem:[#allocation9 + $0xe4] ss:$16 sps:$4 sm:$0xff]  }
 0x9c4   : > { %8532 = vmatprep.subr.bf16.mxu1 %v18095_v13  ;;  %v18141_v13 = vld [vmem:[#allocation9 + $0xe0] ss:$16 sps:$4 sm:$0xff]  }
 0x9c7   : > { %8533 = vmatpush1.bf16.msra.mxu1 %v18093_v51  ;;  %v18146_v51 = vld [vmem:[#allocation9 + $0x104] ss:$16 sps:$4 sm:$0xff]  }
 0x9c8   : > { %8615 = vmatprep.subr.bf16.mxu1 %v18098_v61  ;;  %v18144_v61 = vld [vmem:[#allocation9 + $0x100] ss:$16 sps:$4 sm:$0xff]  }
 0x9ca   : > { %8535 = vmatmul.mubr.bf16.vlgmr.msra.gmra.mrb[128].mxu1 %v21220_v58 }
 0x9cb   : > { %8544 = vmatprep.mubr.bf16.mxu1 %v22066_v19  ;;  %8616 = vmatpush1.bf16.msra.mxu1 %v18096_v30  ;;  %v18149_v30 = vld [vmem:[#allocation9 + $0x124] ss:$16 sps:$4 sm:$0xff]  }
 0x9cc   : > { %8617 = vmatprep.subr.bf16.mxu1 %v18101_v34  ;;  %v18147_v34 = vld [vmem:[#allocation9 + $0x120] ss:$16 sps:$4 sm:$0xff]  }
 0x9cf   : > { %8618 = vmatpush1.bf16.msra.mxu1 %v18099_v32  ;;  %v18152_v32 = vld [vmem:[#allocation9 + $0x144] ss:$16 sps:$4 sm:$0xff]  }
 0x9d0   : > { %8619 = vmatprep.subr.bf16.mxu1 %v18104_v54  ;;  %v18150_v54 = vld [vmem:[#allocation9 + $0x140] ss:$16 sps:$4 sm:$0xff]  }
 0x9d2   : > { %8545 = vmatmul.mubr.bf16.gmra.mrb[132].mxu1 %v23787_v10 }
 0x9d3   : > { %8554 = vmatprep.mubr.bf16.mxu1 %v22151_v35  ;;  %8620 = vmatpush1.bf16.msra.mxu1 %v18102_v50  ;;  %v18155_v50 = vld [vmem:[#allocation9 + $0x164] ss:$16 sps:$4 sm:$0xff]  }
 0x9d4   : > { %8621 = vmatprep.subr.bf16.mxu1 %v18107_v31  ;;  %v18153_v31 = vld [vmem:[#allocation9 + $0x160] ss:$16 sps:$4 sm:$0xff]  }
 0x9d7   : > { %8622 = vmatpush1.bf16.msra.mxu1 %v18105_v17  ;;  %v18158_v17 = vld [vmem:[#allocation9 + $0x184] ss:$16 sps:$4 sm:$0xff]  }
 0x9d8   : > { %8623 = vmatprep.subr.bf16.mxu1 %v18110_v46  ;;  %v18156_v46 = vld [vmem:[#allocation9 + $0x180] ss:$16 sps:$4 sm:$0xff]  }
 0x9da   : > { %8555 = vmatmul.mubr.bf16.gmra.mrb[136].mxu1 %v23796_v9 }
 0x9db   : > { %8564 = vmatprep.mubr.bf16.mxu1 %v22220_v43  ;;  %8624 = vmatpush1.bf16.msra.mxu1 %v18108_v55  ;;  %v18161_v55 = vld [vmem:[#allocation9 + $0x1a4] ss:$16 sps:$4 sm:$0xff]  }
 0x9dc   : > { %8625 = vmatprep.subr.bf16.mxu1 %v18113_v37  ;;  %v18159_v37 = vld [vmem:[#allocation9 + $0x1a0] ss:$16 sps:$4 sm:$0xff]  }
 0x9df   : > { %8626 = vmatpush1.bf16.msra.mxu1 %v18111_v5  ;;  %v18164_v5 = vld [vmem:[#allocation9 + $0x1c4] ss:$16 sps:$4 sm:$0xff]  }
 0x9e0   : > { %8627 = vmatprep.subr.bf16.mxu1 %v18116_v29  ;;  %v18162_v29 = vld [vmem:[#allocation9 + $0x1c0] ss:$16 sps:$4 sm:$0xff]  }
 0x9e2   : > { %8565 = vmatmul.mubr.bf16.gmra.mrb[140].mxu1 %v23806_v41 }
 0x9e3   : > { %8574 = vmatprep.mubr.bf16.mxu1 %v22293_v24  ;;  %8628 = vmatpush1.bf16.msra.mxu1 %v18114_v25  ;;  %v18167_v25 = vld [vmem:[#allocation9 + $0x1e4] ss:$16 sps:$4 sm:$0xff]  }
 0x9e4   : > { %8629 = vmatprep.subr.bf16.mxu1 %v18119_v6  ;;  %v23855_v6 = vld [vmem:[#allocation34_spill] sm:$0xff] }
 0x9e7   : > { %8630 = vmatpush1.bf16.msra.mxu1 %v18117_v8  ;;  %v18165_v8 = vld [vmem:[#allocation9 + $0x1e0] ss:$16 sps:$4 sm:$0xff]  }
 0x9e8   : > { %9208 = vmatprep.subr.bf16.mxu1 %v18122_v36  ;;  %v18170_v36 = vld [vmem:[#allocation9 + $0x204] ss:$16 sps:$4 sm:$0xff]  }
 0x9ea   : > { %8575 = vmatmul.mubr.bf16.gmra.mrb[144].mxu1 %v23852_v33 }
 0x9eb   : > { %8584 = vmatprep.mubr.bf16.mxu1 %v23853_v39 }
 0x9f2   : > { %8585 = vmatmul.mubr.bf16.gmra.mrb[148].mxu1 %v23854_v53 }
 0x9f3   : > { %8594 = vmatprep.mubr.bf16.mxu1 %v22440_v47 }
 0x9fa   : > { %8595 = vmatmul.mubr.bf16.gmra.mrb[152].mxu1 %v23834_v7 }
 0x9fb   : > { %8604 = vmatprep.mubr.bf16.mxu1 %v22507_v52 }
 0xa02   : > { %8605 = vmatmul.mubr.bf16.gmra.mrb[156].mxu1 %v23841_v12 }
 0xa03   : > { %8647 = vmatprep.mubr.bf16.mxu1 %v23844_v18 }
 0xa0a   : > { %8648 = vmatmul.mubr.bf16.vlgmr.msra.gmra.mrb[128].mxu1 %v21987_v23 }
 0xa0b   : > { %9209 = vmatpush1.bf16.msra.mxu1 %v18120_v56  ;;  %8657 = vmatprep.mubr.bf16.mxu1 %v23844_v18  ;;  %v18168_v56 = vld [vmem:[#allocation9 + $0x200] ss:$16 sps:$4 sm:$0xff]  }
 0xa0c   : > { %9210 = vmatprep.subr.bf16.mxu1 %v18125_v28  ;;  %v18173_v28 = vld [vmem:[#allocation9 + $0x224] ss:$16 sps:$4 sm:$0xff]  }
 0xa0f   : > { %9211 = vmatpush1.bf16.msra.mxu1 %v18123_v3  ;;  %v23856_v3 = vld [vmem:[#allocation107_spill] sm:$0xff] }
 0xa10   : > { %9212 = vmatprep.subr.bf16.mxu1 %v18128_v40  ;;  %v18171_v40 = vld [vmem:[#allocation9 + $0x220] ss:$16 sps:$4 sm:$0xff]  }
 0xa12   : > { %8658 = vmatmul.mubr.bf16.gmra.mrb[132].mxu1 %v22070_v27 }
 0xa13   : > { %9213 = vmatpush1.bf16.msra.mxu1 %v18126_v45  ;;  %8667 = vmatprep.mubr.bf16.mxu1 %v23844_v18  ;;  %v18176_v45 = vld [vmem:[#allocation9 + $0x244] ss:$16 sps:$4 sm:$0xff]  }
 0xa14   : > { %9214 = vmatprep.subr.bf16.mxu1 %v18131_v38  ;;  %v18174_v38 = vld [vmem:[#allocation9 + $0x240] ss:$16 sps:$4 sm:$0xff]  }
 0xa17   : > { %9215 = vmatpush1.bf16.msra.mxu1 %v18129_v49  ;;  %v18179_v49 = vld [vmem:[#allocation9 + $0x264] ss:$16 sps:$4 sm:$0xff]  }
 0xa18   : > { %9216 = vmatprep.subr.bf16.mxu1 %v18134_v59  ;;  %v18177_v59 = vld [vmem:[#allocation9 + $0x260] ss:$16 sps:$4 sm:$0xff]  }
 0xa1a   : > { %8668 = vmatmul.mubr.bf16.gmra.mrb[136].mxu1 %v22155_v60 }
 0xa1b   : > { %9217 = vmatpush1.bf16.msra.mxu1 %v18132_v20  ;;  %8677 = vmatprep.mubr.bf16.mxu1 %v23844_v18  ;;  %v18182_v20 = vld [vmem:[#allocation9 + $0x284] ss:$16 sps:$4 sm:$0xff]  }
 0xa1c   : > { %9218 = vmatprep.subr.bf16.mxu1 %v18137_v1  ;;  %v18180_v1 = vld [vmem:[#allocation9 + $0x280] ss:$16 sps:$4 sm:$0xff]  }
 0xa1f   : > { %9219 = vmatpush1.bf16.msra.mxu1 %v18135_v16  ;;  %v18185_v16 = vld [vmem:[#allocation9 + $0x2a4] ss:$16 sps:$4 sm:$0xff]  }
 0xa20   : > { %9220 = vmatprep.subr.bf16.mxu1 %v18140_v26  ;;  %v18183_v26 = vld [vmem:[#allocation9 + $0x2a0] ss:$16 sps:$4 sm:$0xff]  }
 0xa22   : > { %8678 = vmatmul.mubr.bf16.gmra.mrb[140].mxu1 %v22224_v63 }
 0xa23   : > { %9221 = vmatpush1.bf16.msra.mxu1 %v18138_v22  ;;  %8687 = vmatprep.mubr.bf16.mxu1 %v23844_v18  ;;  %v18188_v22 = vld [vmem:[#allocation9 + $0x2c4] ss:$16 sps:$4 sm:$0xff]  }
 0xa24   : > { %9222 = vmatprep.subr.bf16.mxu1 %v18143_v14  ;;  %v18186_v14 = vld [vmem:[#allocation9 + $0x2c0] ss:$16 sps:$4 sm:$0xff]  }
 0xa27   : > { %9223 = vmatpush1.bf16.msra.mxu1 %v18141_v13  ;;  %v18191_v13 = vld [vmem:[#allocation9 + $0x2e4] ss:$16 sps:$4 sm:$0xff]  }
 0xa28   : > { %9224 = vmatprep.subr.bf16.mxu1 %v18146_v51  ;;  %v18189_v51 = vld [vmem:[#allocation9 + $0x2e0] ss:$16 sps:$4 sm:$0xff]  }
 0xa2a   : > { %8688 = vmatmul.mubr.bf16.gmra.mrb[144].mxu1 %v22297_v21 }
 0xa2b   : > { %9225 = vmatpush1.bf16.msra.mxu1 %v18144_v61  ;;  %8697 = vmatprep.mubr.bf16.mxu1 %v23844_v18  ;;  %v18194_v61 = vld [vmem:[#allocation9 + $0xc] ss:$16 sps:$4 sm:$0xff]  }
 0xa2c   : > { %9226 = vmatprep.subr.bf16.mxu1 %v18149_v30  ;;  %v18192_v30 = vld [vmem:[#allocation9 + $0x8] ss:$16 sps:$4 sm:$0xff]  }
 0xa2f   : > { %9227 = vmatpush1.bf16.msra.mxu1 %v18147_v34  ;;  %v18197_v34 = vld [vmem:[#allocation9 + $0x2c] ss:$16 sps:$4 sm:$0xff]  }
 0xa30   : > { %9228 = vmatprep.subr.bf16.mxu1 %v18152_v32  ;;  %v23857_v32 = vld [vmem:[#allocation70_spill] sm:$0xff] }
 0xa32   : > { %8698 = vmatmul.mubr.bf16.gmra.mrb[148].mxu1 %v22366_v57 }
 0xa33   : > { %9229 = vmatpush1.bf16.msra.mxu1 %v18150_v54  ;;  %8707 = vmatprep.mubr.bf16.mxu1 %v23844_v18  ;;  %v18195_v54 = vld [vmem:[#allocation9 + $0x28] ss:$16 sps:$4 sm:$0xff]  }
 0xa34   : > { %9230 = vmatprep.subr.bf16.mxu1 %v18155_v50  ;;  %v18200_v50 = vld [vmem:[#allocation9 + $0x4c] ss:$16 sps:$4 sm:$0xff]  }
 0xa37   : > { %9231 = vmatpush1.bf16.msra.mxu1 %v18153_v31  ;;  %v18198_v31 = vld [vmem:[#allocation9 + $0x48] ss:$16 sps:$4 sm:$0xff]  }
 0xa38   : > { %9232 = vmatprep.subr.bf16.mxu1 %v18158_v17  ;;  %v18203_v17 = vld [vmem:[#allocation9 + $0x6c] ss:$16 sps:$4 sm:$0xff]  }
 0xa3a   : > { %8708 = vmatmul.mubr.bf16.gmra.mrb[152].mxu1 %v22444_v42 }
 0xa3b   : > { %9233 = vmatpush1.bf16.msra.mxu1 %v18156_v46  ;;  %8717 = vmatprep.mubr.bf16.mxu1 %v23844_v18  ;;  %v18201_v46 = vld [vmem:[#allocation9 + $0x68] ss:$16 sps:$4 sm:$0xff]  }
 0xa3c   : > { %9234 = vmatprep.subr.bf16.mxu1 %v18161_v55  ;;  %v18206_v55 = vld [vmem:[#allocation9 + $0x8c] ss:$16 sps:$4 sm:$0xff]  }
 0xa3f   : > { %9235 = vmatpush1.bf16.msra.mxu1 %v18159_v37  ;;  %v18204_v37 = vld [vmem:[#allocation9 + $0x88] ss:$16 sps:$4 sm:$0xff]  }
 0xa40   : > { %9236 = vmatprep.subr.bf16.mxu1 %v18164_v5  ;;  %v18209_v5 = vld [vmem:[#allocation9 + $0xac] ss:$16 sps:$4 sm:$0xff]  }
 0xa42   : > { %8718 = vmatmul.mubr.bf16.gmra.mrb[156].mxu1 %v22511_v11 }
 0xa43   : > { %9237 = vmatpush1.bf16.msra.mxu1 %v18162_v29  ;;  %9240 = vmatprep.mubr.bf16.mxu1 %v23855_v6  ;;  %v18207_v29 = vld [vmem:[#allocation9 + $0xa8] ss:$16 sps:$4 sm:$0xff]  }
 0xa44   : > { %9238 = vmatprep.subr.bf16.mxu1 %v18167_v25  ;;  %v18212_v25 = vld [vmem:[#allocation9 + $0xcc] ss:$16 sps:$4 sm:$0xff]  }
 0xa47   : > { %9239 = vmatpush1.bf16.msra.mxu1 %v18165_v8  ;;  %v18210_v8 = vld [vmem:[#allocation9 + $0xc8] ss:$16 sps:$4 sm:$0xff]  }
 0xa48   : > { %9321 = vmatprep.subr.bf16.mxu1 %v18170_v36  ;;  %v18215_v36 = vld [vmem:[#allocation9 + $0xec] ss:$16 sps:$4 sm:$0xff]  }
 0xa4a   : > { %9241 = vmatmul.mubr.bf16.vlgmr.msra.gmra.mrb[96].mxu1 %v23856_v3 }
 0xa4b   : > { %9250 = vmatprep.mubr.bf16.mxu1 %v21985_v2  ;;  %9322 = vmatpush1.bf16.msra.mxu1 %v18168_v56  ;;  %v18213_v56 = vld [vmem:[#allocation9 + $0xe8] ss:$16 sps:$4 sm:$0xff]  }
 0xa4c   : > { %9323 = vmatprep.subr.bf16.mxu1 %v18173_v28  ;;  %v18218_v28 = vld [vmem:[#allocation9 + $0x10c] ss:$16 sps:$4 sm:$0xff]  }
 0xa4f   : > { %9324 = vmatpush1.bf16.msra.mxu1 %v18171_v40  ;;  %v18216_v40 = vld [vmem:[#allocation9 + $0x108] ss:$16 sps:$4 sm:$0xff]  }
 0xa50   : > { %9325 = vmatprep.subr.bf16.mxu1 %v18176_v45  ;;  %v18221_v45 = vld [vmem:[#allocation9 + $0x12c] ss:$16 sps:$4 sm:$0xff]  }
 0xa52   : > { %9251 = vmatmul.mubr.bf16.gmra.mrb[100].mxu1 %v21220_v58 }
 0xa53   : > { %9260 = vmatprep.mubr.bf16.mxu1 %v22066_v19  ;;  %9326 = vmatpush1.bf16.msra.mxu1 %v18174_v38  ;;  %v18219_v38 = vld [vmem:[#allocation9 + $0x128] ss:$16 sps:$4 sm:$0xff]  }
 0xa54   : > { %9327 = vmatprep.subr.bf16.mxu1 %v18179_v49  ;;  %v18224_v49 = vld [vmem:[#allocation9 + $0x14c] ss:$16 sps:$4 sm:$0xff]  }
 0xa57   : > { %9328 = vmatpush1.bf16.msra.mxu1 %v18177_v59  ;;  %v18222_v59 = vld [vmem:[#allocation9 + $0x148] ss:$16 sps:$4 sm:$0xff]  }
 0xa58   : > { %9329 = vmatprep.subr.bf16.mxu1 %v18182_v20  ;;  %v18227_v20 = vld [vmem:[#allocation9 + $0x16c] ss:$16 sps:$4 sm:$0xff]  }
 0xa5a   : > { %9261 = vmatmul.mubr.bf16.gmra.mrb[104].mxu1 %v23787_v10 }
 0xa5b   : > { %9270 = vmatprep.mubr.bf16.mxu1 %v22151_v35  ;;  %9330 = vmatpush1.bf16.msra.mxu1 %v18180_v1  ;;  %v18225_v1 = vld [vmem:[#allocation9 + $0x168] ss:$16 sps:$4 sm:$0xff]  }
 0xa5c   : > { %9331 = vmatprep.subr.bf16.mxu1 %v18185_v16  ;;  %v18230_v16 = vld [vmem:[#allocation9 + $0x18c] ss:$16 sps:$4 sm:$0xff]  }
 0xa5f   : > { %9332 = vmatpush1.bf16.msra.mxu1 %v18183_v26  ;;  %v18228_v26 = vld [vmem:[#allocation9 + $0x188] ss:$16 sps:$4 sm:$0xff]  }
 0xa60   : > { %9333 = vmatprep.subr.bf16.mxu1 %v18188_v22  ;;  %v18233_v22 = vld [vmem:[#allocation9 + $0x1ac] ss:$16 sps:$4 sm:$0xff]  }
 0xa62   : > { %9271 = vmatmul.mubr.bf16.gmra.mrb[108].mxu1 %v23796_v9 }
 0xa63   : > { %9280 = vmatprep.mubr.bf16.mxu1 %v22220_v43  ;;  %9334 = vmatpush1.bf16.msra.mxu1 %v18186_v14  ;;  %v18231_v14 = vld [vmem:[#allocation9 + $0x1a8] ss:$16 sps:$4 sm:$0xff]  }
 0xa64   : > { %9335 = vmatprep.subr.bf16.mxu1 %v18191_v13  ;;  %v18236_v13 = vld [vmem:[#allocation9 + $0x1cc] ss:$16 sps:$4 sm:$0xff]  }
 0xa67   : > { %9336 = vmatpush1.bf16.msra.mxu1 %v18189_v51  ;;  %v18234_v51 = vld [vmem:[#allocation9 + $0x1c8] ss:$16 sps:$4 sm:$0xff]  }
 0xa68   : > { %9434 = vmatprep.subr.bf16.mxu1 %v18194_v61  ;;  %v18239_v61 = vld [vmem:[#allocation9 + $0x1ec] ss:$16 sps:$4 sm:$0xff]  }
 0xa6a   : > { %9281 = vmatmul.mubr.bf16.gmra.mrb[112].mxu1 %v23806_v41 }
 0xa6b   : > { %9290 = vmatprep.mubr.bf16.mxu1 %v22293_v24 }
 0xa72   : > { %9291 = vmatmul.mubr.bf16.gmra.mrb[116].mxu1 %v23852_v33 }
 0xa73   : > { %9300 = vmatprep.mubr.bf16.mxu1 %v23853_v39 }
 0xa7a   : > { %9301 = vmatmul.mubr.bf16.gmra.mrb[120].mxu1 %v23854_v53 }
 0xa7b   : > { %9310 = vmatprep.mubr.bf16.mxu1 %v22440_v47 }
 0xa82   : > { %9311 = vmatmul.mubr.bf16.gmra.mrb[124].mxu1 %v23834_v7 }
 0xa83   : > { %9353 = vmatprep.mubr.bf16.mxu1 %v23844_v18 }
 0xa8a   : > { %9354 = vmatmul.mubr.bf16.vlgmr.msra.gmra.mrb[96].mxu1 %v23857_v32 }
 0xa8b   : > { %9435 = vmatpush1.bf16.msra.mxu1 %v18192_v30  ;;  %9363 = vmatprep.mubr.bf16.mxu1 %v23844_v18  ;;  %v18237_v30 = vld [vmem:[#allocation9 + $0x1e8] ss:$16 sps:$4 sm:$0xff]  }
 0xa8c   : > { %9436 = vmatprep.subr.bf16.mxu1 %v18197_v34  ;;  %v18242_v34 = vld [vmem:[#allocation9 + $0x20c] ss:$16 sps:$4 sm:$0xff]  }
 0xa8f   : > { %9437 = vmatpush1.bf16.msra.mxu1 %v18195_v54  ;;  %v18240_v54 = vld [vmem:[#allocation9 + $0x208] ss:$16 sps:$4 sm:$0xff]  }
 0xa90   : > { %9438 = vmatprep.subr.bf16.mxu1 %v18200_v50  ;;  %v18245_v50 = vld [vmem:[#allocation9 + $0x22c] ss:$16 sps:$4 sm:$0xff]  }
 0xa92   : > { %9364 = vmatmul.mubr.bf16.gmra.mrb[100].mxu1 %v21987_v23 }
 0xa93   : > { %9439 = vmatpush1.bf16.msra.mxu1 %v18198_v31  ;;  %9373 = vmatprep.mubr.bf16.mxu1 %v23844_v18  ;;  %v18243_v31 = vld [vmem:[#allocation9 + $0x228] ss:$16 sps:$4 sm:$0xff]  }
 0xa94   : > { %9440 = vmatprep.subr.bf16.mxu1 %v18203_v17  ;;  %v18248_v17 = vld [vmem:[#allocation9 + $0x24c] ss:$16 sps:$4 sm:$0xff]  }
 0xa97   : > { %9441 = vmatpush1.bf16.msra.mxu1 %v18201_v46  ;;  %v18246_v46 = vld [vmem:[#allocation9 + $0x248] ss:$16 sps:$4 sm:$0xff]  }
 0xa98   : > { %9442 = vmatprep.subr.bf16.mxu1 %v18206_v55  ;;  %v18251_v55 = vld [vmem:[#allocation9 + $0x26c] ss:$16 sps:$4 sm:$0xff]  }
 0xa9a   : > { %9374 = vmatmul.mubr.bf16.gmra.mrb[104].mxu1 %v22070_v27 }
 0xa9b   : > { %9443 = vmatpush1.bf16.msra.mxu1 %v18204_v37  ;;  %9383 = vmatprep.mubr.bf16.mxu1 %v23844_v18  ;;  %v18254_v37 = vld [vmem:[#allocation9 + $0x28c] ss:$16 sps:$4 sm:$0xff]  }
 0xa9c   : > { %9444 = vmatprep.subr.bf16.mxu1 %v18209_v5  ;;  %v18255_v5 = vld [vmem:[#allocation9 + $0x2a8] ss:$16 sps:$4 sm:$0xff]  }
 0xa9f   : > { %9445 = vmatpush1.bf16.msra.mxu1 %v18207_v29  ;;  %v18260_v29 = vld [vmem:[#allocation9 + $0x2cc] ss:$16 sps:$4 sm:$0xff]  }
 0xaa0   : > { %9446 = vmatprep.subr.bf16.mxu1 %v18212_v25  ;;  %v18263_v25 = vld [vmem:[#allocation9 + $0x2ec] ss:$16 sps:$4 sm:$0xff]  }
 0xaa2   : > { %9384 = vmatmul.mubr.bf16.gmra.mrb[108].mxu1 %v22155_v60 }
 0xaa3   : > { %9447 = vmatpush1.bf16.msra.mxu1 %v18210_v8  ;;  %9393 = vmatprep.mubr.bf16.mxu1 %v23844_v18  ;;  %v18261_v8 = vld [vmem:[#allocation9 + $0x2e8] ss:$16 sps:$4 sm:$0xff]  }
 0xaa4   : > { %9448 = vmatprep.subr.bf16.mxu1 %v18215_v36  ;;  %v18266_v36 = vld [vmem:[#allocation9 + $0x904] ss:$16 sps:$4 sm:$0xff]  }
 0xaa7   : > { %9449 = vmatpush1.bf16.msra.mxu1 %v18213_v56  ;;  %v18264_v56 = vld [vmem:[#allocation9 + $0x900] ss:$16 sps:$4 sm:$0xff]  }
 0xaa8   : > { %9450 = vmatprep.subr.bf16.mxu1 %v18218_v28  ;;  %v18269_v28 = vld [vmem:[#allocation9 + $0x924] ss:$16 sps:$4 sm:$0xff]  }
 0xaaa   : > { %9394 = vmatmul.mubr.bf16.gmra.mrb[112].mxu1 %v22224_v63 }
 0xaab   : > { %9451 = vmatpush1.bf16.msra.mxu1 %v18216_v40  ;;  %9403 = vmatprep.mubr.bf16.mxu1 %v23844_v18  ;;  %v18267_v40 = vld [vmem:[#allocation9 + $0x920] ss:$16 sps:$4 sm:$0xff]  }
 0xaac   : > { %9452 = vmatprep.subr.bf16.mxu1 %v18221_v45  ;;  %v18272_v45 = vld [vmem:[#allocation9 + $0x944] ss:$16 sps:$4 sm:$0xff]  }
 0xaaf   : > { %9453 = vmatpush1.bf16.msra.mxu1 %v18219_v38  ;;  %v18270_v38 = vld [vmem:[#allocation9 + $0x940] ss:$16 sps:$4 sm:$0xff]  }
 0xab0   : > { %9454 = vmatprep.subr.bf16.mxu1 %v18224_v49  ;;  %v18275_v49 = vld [vmem:[#allocation9 + $0x964] ss:$16 sps:$4 sm:$0xff]  }
 0xab2   : > { %9404 = vmatmul.mubr.bf16.gmra.mrb[116].mxu1 %v22297_v21 }
 0xab3   : > { %9455 = vmatpush1.bf16.msra.mxu1 %v18222_v59  ;;  %9413 = vmatprep.mubr.bf16.mxu1 %v23844_v18  ;;  %v18273_v59 = vld [vmem:[#allocation9 + $0x960] ss:$16 sps:$4 sm:$0xff]  }
 0xab4   : > { %9456 = vmatprep.subr.bf16.mxu1 %v18227_v20  ;;  %v18278_v20 = vld [vmem:[#allocation9 + $0x984] ss:$16 sps:$4 sm:$0xff]  }
 0xab7   : > { %9457 = vmatpush1.bf16.msra.mxu1 %v18225_v1  ;;  %v18281_v1 = vld [vmem:[#allocation9 + $0x9a4] ss:$16 sps:$4 sm:$0xff]  }
 0xab8   : > { %9458 = vmatprep.subr.bf16.mxu1 %v18230_v16  ;;  %v18279_v16 = vld [vmem:[#allocation9 + $0x9a0] ss:$16 sps:$4 sm:$0xff]  }
 0xaba   : > { %9414 = vmatmul.mubr.bf16.gmra.mrb[120].mxu1 %v22366_v57 }
 0xabb   : > { %9459 = vmatpush1.bf16.msra.mxu1 %v18228_v26  ;;  %9423 = vmatprep.mubr.bf16.mxu1 %v23844_v18  ;;  %v18284_v26 = vld [vmem:[#allocation9 + $0x9c4] ss:$16 sps:$4 sm:$0xff]  }
 0xabc   : > { %9460 = vmatprep.subr.bf16.mxu1 %v18233_v22  ;;  %v18287_v22 = vld [vmem:[#allocation9 + $0x9e4] ss:$16 sps:$4 sm:$0xff]  }
 0xabf   : > { %9461 = vmatpush1.bf16.msra.mxu1 %v18231_v14  ;;  %v18285_v14 = vld [vmem:[#allocation9 + $0x9e0] ss:$16 sps:$4 sm:$0xff]  }
 0xac0   : > { %9462 = vmatprep.subr.bf16.mxu1 %v18236_v13  ;;  %v18290_v13 = vld [vmem:[#allocation9 + $0xa04] ss:$16 sps:$4 sm:$0xff]  }
 0xac2   : > { %9424 = vmatmul.mubr.bf16.gmra.mrb[124].mxu1 %v22444_v42 }
 0xac3   : > { %9463 = vmatpush1.bf16.msra.mxu1 %v18234_v51  ;;  %9466 = vmatprep.mubr.bf16.mxu1 %v23855_v6  ;;  %v18249_v6 = vld [vmem:[#allocation9 + $0x268] ss:$16 sps:$4 sm:$0xff]   ;;  %v18288_v51 = vld [vmem:[#allocation9 + $0xa00] ss:$16 sps:$4 sm:$0xff]  }
 0xac4   : > { %9464 = vmatprep.subr.bf16.mxu1 %v18239_v61  ;;  %v18293_v61 = vld [vmem:[#allocation9 + $0xa24] ss:$16 sps:$4 sm:$0xff]  }
 0xac7   : > { %9465 = vmatpush1.bf16.msra.mxu1 %v18237_v30  ;;  %v18291_v30 = vld [vmem:[#allocation9 + $0xa20] ss:$16 sps:$4 sm:$0xff]  }
 0xac8   : > { %9547 = vmatprep.subr.bf16.mxu1 %v18242_v34  ;;  %v18296_v34 = vld [vmem:[#allocation9 + $0xa44] ss:$16 sps:$4 sm:$0xff]  }
 0xaca   : > { %9467 = vmatmul.mubr.bf16.vlgmr.msra.gmra.mrb[128].mxu1 %v23856_v3  ;;  %v18252_v3 = vld [vmem:[#allocation9 + $0x288] ss:$16 sps:$4 sm:$0xff]  }
 0xacb   : > { %9476 = vmatprep.mubr.bf16.mxu1 %v21985_v2  ;;  %9548 = vmatpush1.bf16.msra.mxu1 %v18240_v54  ;;  %v18257_v2 = vld [vmem:[#allocation9 + $0x2ac] ss:$16 sps:$4 sm:$0xff]   ;;  %v18294_v54 = vld [vmem:[#allocation9 + $0xa40] ss:$16 sps:$4 sm:$0xff]  }
 0xacc   : > { %9549 = vmatprep.subr.bf16.mxu1 %v18245_v50  ;;  %v18299_v50 = vld [vmem:[#allocation9 + $0xa64] ss:$16 sps:$4 sm:$0xff]  }
 0xacf   : > { %9550 = vmatpush1.bf16.msra.mxu1 %v18243_v31  ;;  %v18297_v31 = vld [vmem:[#allocation9 + $0xa60] ss:$16 sps:$4 sm:$0xff]  }
 0xad0   : > { %9551 = vmatprep.subr.bf16.mxu1 %v18248_v17  ;;  %v18302_v17 = vld [vmem:[#allocation9 + $0xa84] ss:$16 sps:$4 sm:$0xff]  }
 0xad2   : > { %9477 = vmatmul.mubr.bf16.gmra.mrb[132].mxu1 %v21220_v58  ;;  %v18258_v58 = vld [vmem:[#allocation9 + $0x2c8] ss:$16 sps:$4 sm:$0xff]  }
 0xad3   : > { %9486 = vmatprep.mubr.bf16.mxu1 %v22066_v19  ;;  %9552 = vmatpush1.bf16.msra.mxu1 %v18246_v46  ;;  %v18300_v46 = vld [vmem:[#allocation9 + $0xa80] ss:$16 sps:$4 sm:$0xff]  }
 0xad4   : > { %9553 = vmatprep.subr.bf16.mxu1 %v18251_v55  ;;  %v18305_v55 = vld [vmem:[#allocation9 + $0xaa4] ss:$16 sps:$4 sm:$0xff]  }
 0xad7   : > { %9554 = vmatpush1.bf16.msra.mxu1 %v18249_v6  ;;  %v18303_v6 = vld [vmem:[#allocation9 + $0xaa0] ss:$16 sps:$4 sm:$0xff]  }
 0xad8   : > { %9555 = vmatprep.subr.bf16.mxu1 %v18254_v37  ;;  %v18308_v37 = vld [vmem:[#allocation9 + $0xac4] ss:$16 sps:$4 sm:$0xff]  }
 0xada   : > { %9487 = vmatmul.mubr.bf16.gmra.mrb[136].mxu1 %v23787_v10 }
 0xadb   : > { %9496 = vmatprep.mubr.bf16.mxu1 %v22151_v35  ;;  %9556 = vmatpush1.bf16.msra.mxu1 %v18252_v3  ;;  %v18306_v3 = vld [vmem:[#allocation9 + $0xac0] ss:$16 sps:$4 sm:$0xff]  }
 0xadc   : > { %9557 = vmatprep.subr.bf16.mxu1 %v18257_v2  ;;  %v18311_v2 = vld [vmem:[#allocation9 + $0xae4] ss:$16 sps:$4 sm:$0xff]  }
 0xadf   : > { %9558 = vmatpush1.bf16.msra.mxu1 %v18255_v5  ;;  %v18309_v5 = vld [vmem:[#allocation9 + $0xae0] ss:$16 sps:$4 sm:$0xff]  }
 0xae0   : > { %9559 = vmatprep.subr.bf16.mxu1 %v18260_v29  ;;  %v18314_v29 = vld [vmem:[#allocation9 + $0xb04] ss:$16 sps:$4 sm:$0xff]  }
 0xae2   : > { %9497 = vmatmul.mubr.bf16.gmra.mrb[140].mxu1 %v23796_v9 }
 0xae3   : > { %9506 = vmatprep.mubr.bf16.mxu1 %v22220_v43  ;;  %9560 = vmatpush1.bf16.msra.mxu1 %v18258_v58  ;;  %v18312_v58 = vld [vmem:[#allocation9 + $0xb00] ss:$16 sps:$4 sm:$0xff]  }
 0xae4   : > { %9561 = vmatprep.subr.bf16.mxu1 %v18263_v25  ;;  %v18317_v25 = vld [vmem:[#allocation9 + $0xb24] ss:$16 sps:$4 sm:$0xff]  }
 0xae7   : > { %9562 = vmatpush1.bf16.msra.mxu1 %v18261_v8  ;;  %v18315_v8 = vld [vmem:[#allocation9 + $0xb20] ss:$16 sps:$4 sm:$0xff]  }
 0xae8   : > { %10382 = vmatprep.subr.bf16.mxu1 %v18266_v36  ;;  %v18320_v36 = vld [vmem:[#allocation9 + $0xb44] ss:$16 sps:$4 sm:$0xff]  }
 0xaea   : > { %9507 = vmatmul.mubr.bf16.gmra.mrb[144].mxu1 %v23806_v41 }
 0xaeb   : > { %9516 = vmatprep.mubr.bf16.mxu1 %v22293_v24 }
 0xaf2   : > { %9517 = vmatmul.mubr.bf16.gmra.mrb[148].mxu1 %v23852_v33 }
 0xaf3   : > { %9526 = vmatprep.mubr.bf16.mxu1 %v23853_v39 }
 0xafa   : > { %9527 = vmatmul.mubr.bf16.gmra.mrb[152].mxu1 %v23854_v53 }
 0xafb   : > { %9536 = vmatprep.mubr.bf16.mxu1 %v22440_v47 }
 0xb02   : > { %9537 = vmatmul.mubr.bf16.gmra.mrb[156].mxu1 %v23834_v7 }
 0xb03   : > { %9579 = vmatprep.mubr.bf16.mxu1 %v23844_v18 }
 0xb0a   : > { %9580 = vmatmul.mubr.bf16.vlgmr.msra.gmra.mrb[128].mxu1 %v23857_v32  ;;  %v18276_v32 = vld [vmem:[#allocation9 + $0x980] ss:$16 sps:$4 sm:$0xff]  }
 0xb0b   : > { %10383 = vmatpush1.bf16.msra.mxu1 %v18264_v56  ;;  %9589 = vmatprep.mubr.bf16.mxu1 %v23844_v18  ;;  %v18318_v56 = vld [vmem:[#allocation9 + $0xb40] ss:$16 sps:$4 sm:$0xff]  }
 0xb0c   : > { %10384 = vmatprep.subr.bf16.mxu1 %v18269_v28  ;;  %v18323_v28 = vld [vmem:[#allocation9 + $0xb64] ss:$16 sps:$4 sm:$0xff]  }
 0xb0f   : > { %10385 = vmatpush1.bf16.msra.mxu1 %v18267_v40  ;;  %v18321_v40 = vld [vmem:[#allocation9 + $0xb60] ss:$16 sps:$4 sm:$0xff]  }
 0xb10   : > { %10386 = vmatprep.subr.bf16.mxu1 %v18272_v45  ;;  %v18326_v45 = vld [vmem:[#allocation9 + $0xb84] ss:$16 sps:$4 sm:$0xff]  }
 0xb12   : > { %9590 = vmatmul.mubr.bf16.gmra.mrb[132].mxu1 %v21987_v23  ;;  %v18282_v23 = vld [vmem:[#allocation9 + $0x9c0] ss:$16 sps:$4 sm:$0xff]  }
 0xb13   : > { %10387 = vmatpush1.bf16.msra.mxu1 %v18270_v38  ;;  %9599 = vmatprep.mubr.bf16.mxu1 %v23844_v18  ;;  %v18324_v38 = vld [vmem:[#allocation9 + $0xb80] ss:$16 sps:$4 sm:$0xff]  }
 0xb14   : > { %10388 = vmatprep.subr.bf16.mxu1 %v18275_v49  ;;  %v18329_v49 = vld [vmem:[#allocation9 + $0xba4] ss:$16 sps:$4 sm:$0xff]  }
 0xb17   : > { %10389 = vmatpush1.bf16.msra.mxu1 %v18273_v59  ;;  %v18327_v59 = vld [vmem:[#allocation9 + $0xba0] ss:$16 sps:$4 sm:$0xff]  }
 0xb18   : > { %10390 = vmatprep.subr.bf16.mxu1 %v18278_v20  ;;  %v18332_v20 = vld [vmem:[#allocation9 + $0xbc4] ss:$16 sps:$4 sm:$0xff]  }
 0xb1a   : > { %9600 = vmatmul.mubr.bf16.gmra.mrb[136].mxu1 %v22070_v27 }
 0xb1b   : > { %10391 = vmatpush1.bf16.msra.mxu1 %v18276_v32  ;;  %9609 = vmatprep.mubr.bf16.mxu1 %v23844_v18  ;;  %v18330_v32 = vld [vmem:[#allocation9 + $0xbc0] ss:$16 sps:$4 sm:$0xff]  }
 0xb1c   : > { %10392 = vmatprep.subr.bf16.mxu1 %v18281_v1  ;;  %v18335_v1 = vld [vmem:[#allocation9 + $0xbe4] ss:$16 sps:$4 sm:$0xff]  }
 0xb1f   : > { %10393 = vmatpush1.bf16.msra.mxu1 %v18279_v16  ;;  %v18333_v16 = vld [vmem:[#allocation9 + $0xbe0] ss:$16 sps:$4 sm:$0xff]  }
 0xb20   : > { %10394 = vmatprep.subr.bf16.mxu1 %v18284_v26  ;;  %v18338_v26 = vld [vmem:[#allocation9 + $0x90c] ss:$16 sps:$4 sm:$0xff]  }
 0xb22   : > { %9610 = vmatmul.mubr.bf16.gmra.mrb[140].mxu1 %v22155_v60 }
 0xb23   : > { %10395 = vmatpush1.bf16.msra.mxu1 %v18282_v23  ;;  %9619 = vmatprep.mubr.bf16.mxu1 %v23844_v18  ;;  %v23858_v23 = vld [vmem:[#allocation31_spill] sm:$0xff] }
 0xb24   : > { %10396 = vmatprep.subr.bf16.mxu1 %v18287_v22  ;;  %v23859_v22 = vld [vmem:[#allocation33_spill] sm:$0xff] }
 0xb27   : > { %10397 = vmatpush1.bf16.msra.mxu1 %v18285_v14  ;;  %v18336_v14 = vld [vmem:[#allocation9 + $0x908] ss:$16 sps:$4 sm:$0xff]  }
 0xb28   : > { %10398 = vmatprep.subr.bf16.mxu1 %v18290_v13  ;;  %v18341_v13 = vld [vmem:[#allocation9 + $0x92c] ss:$16 sps:$4 sm:$0xff]  }
 0xb2a   : > { %9620 = vmatmul.mubr.bf16.gmra.mrb[144].mxu1 %v22224_v63 }
 0xb2b   : > { %10399 = vmatpush1.bf16.msra.mxu1 %v18288_v51  ;;  %9629 = vmatprep.mubr.bf16.mxu1 %v23844_v18  ;;  %v18339_v51 = vld [vmem:[#allocation9 + $0x928] ss:$16 sps:$4 sm:$0xff]  }
 0xb2c   : > { %10400 = vmatprep.subr.bf16.mxu1 %v18293_v61  ;;  %v18344_v61 = vld [vmem:[#allocation9 + $0x94c] ss:$16 sps:$4 sm:$0xff]  }
 0xb2f   : > { %10401 = vmatpush1.bf16.msra.mxu1 %v18291_v30  ;;  %v18342_v30 = vld [vmem:[#allocation9 + $0x948] ss:$16 sps:$4 sm:$0xff]  }
 0xb30   : > { %10402 = vmatprep.subr.bf16.mxu1 %v18296_v34  ;;  %v18347_v34 = vld [vmem:[#allocation9 + $0x96c] ss:$16 sps:$4 sm:$0xff]  }
 0xb32   : > { %9630 = vmatmul.mubr.bf16.gmra.mrb[148].mxu1 %v22297_v21 }
 0xb33   : > { %10403 = vmatpush1.bf16.msra.mxu1 %v18294_v54  ;;  %9639 = vmatprep.mubr.bf16.mxu1 %v23844_v18  ;;  %v18345_v54 = vld [vmem:[#allocation9 + $0x968] ss:$16 sps:$4 sm:$0xff]  }
 0xb34   : > { %10404 = vmatprep.subr.bf16.mxu1 %v18299_v50  ;;  %v18350_v50 = vld [vmem:[#allocation9 + $0x98c] ss:$16 sps:$4 sm:$0xff]  }
 0xb37   : > { %10405 = vmatpush1.bf16.msra.mxu1 %v18297_v31  ;;  %v18348_v31 = vld [vmem:[#allocation9 + $0x988] ss:$16 sps:$4 sm:$0xff]  }
 0xb38   : > { %10406 = vmatprep.subr.bf16.mxu1 %v18302_v17  ;;  %v18353_v17 = vld [vmem:[#allocation9 + $0x9ac] ss:$16 sps:$4 sm:$0xff]  }
 0xb3a   : > { %9640 = vmatmul.mubr.bf16.gmra.mrb[152].mxu1 %v22366_v57 }
 0xb3b   : > { %10407 = vmatpush1.bf16.msra.mxu1 %v18300_v46  ;;  %9649 = vmatprep.mubr.bf16.mxu1 %v23844_v18  ;;  %v18351_v46 = vld [vmem:[#allocation9 + $0x9a8] ss:$16 sps:$4 sm:$0xff]  }
 0xb3c   : > { %10408 = vmatprep.subr.bf16.mxu1 %v18305_v55  ;;  %v18356_v55 = vld [vmem:[#allocation9 + $0x9cc] ss:$16 sps:$4 sm:$0xff]  }
 0xb3f   : > { %10409 = vmatpush1.bf16.msra.mxu1 %v18303_v6  ;;  %v18354_v6 = vld [vmem:[#allocation9 + $0x9c8] ss:$16 sps:$4 sm:$0xff]  }
 0xb40   : > { %10410 = vmatprep.subr.bf16.mxu1 %v18308_v37  ;;  %v18359_v37 = vld [vmem:[#allocation9 + $0x9ec] ss:$16 sps:$4 sm:$0xff]  }
 0xb42   : > { %9650 = vmatmul.mubr.bf16.gmra.mrb[156].mxu1 %v22444_v42 }
 0xb43   : > { %10411 = vmatpush1.bf16.msra.mxu1 %v18306_v3  ;;  %10414 = vmatprep.mubr.bf16.mxu1 %v22151_v35  ;;  %v18357_v3 = vld [vmem:[#allocation9 + $0x9e8] ss:$16 sps:$4 sm:$0xff]  }
 0xb44   : > { %10412 = vmatprep.subr.bf16.mxu1 %v18311_v2  ;;  %v18362_v2 = vld [vmem:[#allocation9 + $0xa0c] ss:$16 sps:$4 sm:$0xff]  }
 0xb47   : > { %10413 = vmatpush1.bf16.msra.mxu1 %v18309_v5  ;;  %v18360_v5 = vld [vmem:[#allocation9 + $0xa08] ss:$16 sps:$4 sm:$0xff]  }
 0xb48   : > { %10495 = vmatprep.subr.bf16.mxu1 %v18314_v29  ;;  %v18365_v29 = vld [vmem:[#allocation9 + $0xa2c] ss:$16 sps:$4 sm:$0xff]  }
 0xb4a   : > { %10415 = vmatmul.mubr.bf16.vlgmr.msra.gmra.mrb[96].mxu1 %v23796_v9 }
 0xb4b   : > { %10424 = vmatprep.mubr.bf16.mxu1 %v22220_v43  ;;  %10496 = vmatpush1.bf16.msra.mxu1 %v18312_v58  ;;  %v18363_v58 = vld [vmem:[#allocation9 + $0xa28] ss:$16 sps:$4 sm:$0xff]  }
 0xb4c   : > { %10497 = vmatprep.subr.bf16.mxu1 %v18317_v25  ;;  %v18368_v25 = vld [vmem:[#allocation9 + $0xa4c] ss:$16 sps:$4 sm:$0xff]  }
 0xb4f   : > { %10498 = vmatpush1.bf16.msra.mxu1 %v18315_v8  ;;  %v18366_v8 = vld [vmem:[#allocation9 + $0xa48] ss:$16 sps:$4 sm:$0xff]  }
 0xb50   : > { %10499 = vmatprep.subr.bf16.mxu1 %v18320_v36  ;;  %v18371_v36 = vld [vmem:[#allocation9 + $0xa6c] ss:$16 sps:$4 sm:$0xff]  }
 0xb52   : > { %10425 = vmatmul.mubr.bf16.gmra.mrb[100].mxu1 %v23806_v41 }
 0xb53   : > { %10434 = vmatprep.mubr.bf16.mxu1 %v22293_v24  ;;  %10500 = vmatpush1.bf16.msra.mxu1 %v18318_v56  ;;  %v18369_v56 = vld [vmem:[#allocation9 + $0xa68] ss:$16 sps:$4 sm:$0xff]  }
 0xb54   : > { %10501 = vmatprep.subr.bf16.mxu1 %v18323_v28  ;;  %v18374_v28 = vld [vmem:[#allocation9 + $0xa8c] ss:$16 sps:$4 sm:$0xff]  }
 0xb57   : > { %10502 = vmatpush1.bf16.msra.mxu1 %v18321_v40  ;;  %v18372_v40 = vld [vmem:[#allocation9 + $0xa88] ss:$16 sps:$4 sm:$0xff]  }
 0xb58   : > { %10503 = vmatprep.subr.bf16.mxu1 %v18326_v45  ;;  %v18377_v45 = vld [vmem:[#allocation9 + $0xaac] ss:$16 sps:$4 sm:$0xff]  }
 0xb5a   : > { %10435 = vmatmul.mubr.bf16.gmra.mrb[104].mxu1 %v23852_v33 }
 0xb5b   : > { %10444 = vmatprep.mubr.bf16.mxu1 %v23853_v39  ;;  %10504 = vmatpush1.bf16.msra.mxu1 %v18324_v38  ;;  %v18375_v38 = vld [vmem:[#allocation9 + $0xaa8] ss:$16 sps:$4 sm:$0xff]  }
 0xb5c   : > { %10505 = vmatprep.subr.bf16.mxu1 %v18329_v49  ;;  %v18380_v49 = vld [vmem:[#allocation9 + $0xacc] ss:$16 sps:$4 sm:$0xff]  }
 0xb5f   : > { %10506 = vmatpush1.bf16.msra.mxu1 %v18327_v59  ;;  %v18378_v59 = vld [vmem:[#allocation9 + $0xac8] ss:$16 sps:$4 sm:$0xff]  }
 0xb60   : > { %10507 = vmatprep.subr.bf16.mxu1 %v18332_v20  ;;  %v18383_v20 = vld [vmem:[#allocation9 + $0xaec] ss:$16 sps:$4 sm:$0xff]  }
 0xb62   : > { %10445 = vmatmul.mubr.bf16.gmra.mrb[108].mxu1 %v23854_v53 }
 0xb63   : > { %10454 = vmatprep.mubr.bf16.mxu1 %v22440_v47  ;;  %10508 = vmatpush1.bf16.msra.mxu1 %v18330_v32  ;;  %v18381_v32 = vld [vmem:[#allocation9 + $0xae8] ss:$16 sps:$4 sm:$0xff]  }
 0xb64   : > { %10509 = vmatprep.subr.bf16.mxu1 %v18335_v1  ;;  %v18386_v1 = vld [vmem:[#allocation9 + $0xb0c] ss:$16 sps:$4 sm:$0xff]  }
 0xb67   : > { %10510 = vmatpush1.bf16.msra.mxu1 %v18333_v16  ;;  %v18384_v16 = vld [vmem:[#allocation9 + $0xb08] ss:$16 sps:$4 sm:$0xff]  }
 0xb68   : > { %10608 = vmatprep.subr.bf16.mxu1 %v18338_v26  ;;  %v18389_v26 = vld [vmem:[#allocation9 + $0xb2c] ss:$16 sps:$4 sm:$0xff]  }
 0xb6a   : > { %10455 = vmatmul.mubr.bf16.gmra.mrb[112].mxu1 %v23834_v7 }
 0xb6b   : > { %10464 = vmatprep.mubr.bf16.mxu1 %v22507_v52 }
 0xb72   : > { %10465 = vmatmul.mubr.bf16.gmra.mrb[116].mxu1 %v23841_v12 }
 0xb73   : > { %10474 = vmatprep.mubr.bf16.mxu1 %v22577_v0 }
 0xb7a   : > { %10475 = vmatmul.mubr.bf16.gmra.mrb[120].mxu1 %v23858_v23 }
 0xb7b   : > { %10484 = vmatprep.mubr.bf16.mxu1 %v22653_v44 }
 0xb82   : > { %10485 = vmatmul.mubr.bf16.gmra.mrb[124].mxu1 %v23859_v22 }
 0xb83   : > { %10527 = vmatprep.mubr.bf16.mxu1 %v23844_v18 }
 0xb8a   : > { %10528 = vmatmul.mubr.bf16.vlgmr.msra.gmra.mrb[96].mxu1 %v22155_v60 }
 0xb8b   : > { %10609 = vmatpush1.bf16.msra.mxu1 %v18336_v14  ;;  %10537 = vmatprep.mubr.bf16.mxu1 %v23844_v18  ;;  %v18387_v14 = vld [vmem:[#allocation9 + $0xb28] ss:$16 sps:$4 sm:$0xff]  }
 0xb8c   : > { %10610 = vmatprep.subr.bf16.mxu1 %v18341_v13  ;;  %v18392_v13 = vld [vmem:[#allocation9 + $0xb4c] ss:$16 sps:$4 sm:$0xff]  }
 0xb8f   : > { %10611 = vmatpush1.bf16.msra.mxu1 %v18339_v51  ;;  %v18390_v51 = vld [vmem:[#allocation9 + $0xb48] ss:$16 sps:$4 sm:$0xff]  }
 0xb90   : > { %10612 = vmatprep.subr.bf16.mxu1 %v18344_v61  ;;  %v18395_v61 = vld [vmem:[#allocation9 + $0xb6c] ss:$16 sps:$4 sm:$0xff]  }
 0xb92   : > { %10538 = vmatmul.mubr.bf16.gmra.mrb[100].mxu1 %v22224_v63 }
 0xb93   : > { %10613 = vmatpush1.bf16.msra.mxu1 %v18342_v30  ;;  %10547 = vmatprep.mubr.bf16.mxu1 %v23844_v18  ;;  %v18393_v30 = vld [vmem:[#allocation9 + $0xb68] ss:$16 sps:$4 sm:$0xff]  }
 0xb94   : > { %10614 = vmatprep.subr.bf16.mxu1 %v18347_v34  ;;  %v18398_v34 = vld [vmem:[#allocation9 + $0xb8c] ss:$16 sps:$4 sm:$0xff]  }
 0xb97   : > { %10615 = vmatpush1.bf16.msra.mxu1 %v18345_v54  ;;  %v18396_v54 = vld [vmem:[#allocation9 + $0xb88] ss:$16 sps:$4 sm:$0xff]  }
 0xb98   : > { %10616 = vmatprep.subr.bf16.mxu1 %v18350_v50  ;;  %v18401_v50 = vld [vmem:[#allocation9 + $0xbac] ss:$16 sps:$4 sm:$0xff]  }
 0xb9a   : > { %10548 = vmatmul.mubr.bf16.gmra.mrb[104].mxu1 %v22297_v21 }
 0xb9b   : > { %10617 = vmatpush1.bf16.msra.mxu1 %v18348_v31  ;;  %10557 = vmatprep.mubr.bf16.mxu1 %v23844_v18  ;;  %v18399_v31 = vld [vmem:[#allocation9 + $0xba8] ss:$16 sps:$4 sm:$0xff]  }
 0xb9c   : > { %10618 = vmatprep.subr.bf16.mxu1 %v18353_v17  ;;  %v18404_v17 = vld [vmem:[#allocation9 + $0xbcc] ss:$16 sps:$4 sm:$0xff]  }
 0xb9f   : > { %10619 = vmatpush1.bf16.msra.mxu1 %v18351_v46  ;;  %v18402_v46 = vld [vmem:[#allocation9 + $0xbc8] ss:$16 sps:$4 sm:$0xff]  }
 0xba0   : > { %10620 = vmatprep.subr.bf16.mxu1 %v18356_v55  ;;  %v18407_v55 = vld [vmem:[#allocation9 + $0xbec] ss:$16 sps:$4 sm:$0xff]  }
 0xba2   : > { %10558 = vmatmul.mubr.bf16.gmra.mrb[108].mxu1 %v22366_v57 }
 0xba3   : > { %10621 = vmatpush1.bf16.msra.mxu1 %v18354_v6  ;;  %10567 = vmatprep.mubr.bf16.mxu1 %v23844_v18  ;;  %v18405_v6 = vld [vmem:[#allocation9 + $0xbe8] ss:$16 sps:$4 sm:$0xff]  }
 0xba4   : > { %10622 = vmatprep.subr.bf16.mxu1 %v18359_v37  ;;  %v18410_v37 = vld [vmem:[#allocation9 + $0x604] ss:$16 sps:$4 sm:$0xff]  }
 0xba7   : > { %10623 = vmatpush1.bf16.msra.mxu1 %v18357_v3  ;;  %v18408_v3 = vld [vmem:[#allocation9 + $0x600] ss:$16 sps:$4 sm:$0xff]  }
 0xba8   : > { %10624 = vmatprep.subr.bf16.mxu1 %v18362_v2  ;;  %v18413_v2 = vld [vmem:[#allocation9 + $0x624] ss:$16 sps:$4 sm:$0xff]  }
 0xbaa   : > { %10568 = vmatmul.mubr.bf16.gmra.mrb[112].mxu1 %v22444_v42 }
 0xbab   : > { %10625 = vmatpush1.bf16.msra.mxu1 %v18360_v5  ;;  %10577 = vmatprep.mubr.bf16.mxu1 %v23844_v18  ;;  %v18411_v5 = vld [vmem:[#allocation9 + $0x620] ss:$16 sps:$4 sm:$0xff]  }
 0xbac   : > { %10626 = vmatprep.subr.bf16.mxu1 %v18365_v29  ;;  %v18416_v29 = vld [vmem:[#allocation9 + $0x644] ss:$16 sps:$4 sm:$0xff]  }
 0xbaf   : > { %10627 = vmatpush1.bf16.msra.mxu1 %v18363_v58  ;;  %v18414_v58 = vld [vmem:[#allocation9 + $0x640] ss:$16 sps:$4 sm:$0xff]  }
 0xbb0   : > { %10628 = vmatprep.subr.bf16.mxu1 %v18368_v25  ;;  %v18419_v25 = vld [vmem:[#allocation9 + $0x664] ss:$16 sps:$4 sm:$0xff]  }
 0xbb2   : > { %10578 = vmatmul.mubr.bf16.gmra.mrb[116].mxu1 %v22511_v11 }
 0xbb3   : > { %10629 = vmatpush1.bf16.msra.mxu1 %v18366_v8  ;;  %10587 = vmatprep.mubr.bf16.mxu1 %v23844_v18  ;;  %v18417_v8 = vld [vmem:[#allocation9 + $0x660] ss:$16 sps:$4 sm:$0xff]  }
 0xbb4   : > { %10630 = vmatprep.subr.bf16.mxu1 %v18371_v36  ;;  %v18422_v36 = vld [vmem:[#allocation9 + $0x684] ss:$16 sps:$4 sm:$0xff]  }
 0xbb7   : > { %10631 = vmatpush1.bf16.msra.mxu1 %v18369_v56  ;;  %v18420_v56 = vld [vmem:[#allocation9 + $0x680] ss:$16 sps:$4 sm:$0xff]  }
 0xbb8   : > { %10632 = vmatprep.subr.bf16.mxu1 %v18374_v28  ;;  %v18425_v28 = vld [vmem:[#allocation9 + $0x6a4] ss:$16 sps:$4 sm:$0xff]  }
 0xbba   : > { %10588 = vmatmul.mubr.bf16.gmra.mrb[120].mxu1 %v22581_v4 }
 0xbbb   : > { %10633 = vmatpush1.bf16.msra.mxu1 %v18372_v40  ;;  %10597 = vmatprep.mubr.bf16.mxu1 %v23844_v18  ;;  %v18423_v40 = vld [vmem:[#allocation9 + $0x6a0] ss:$16 sps:$4 sm:$0xff]  }
 0xbbc   : > { %10634 = vmatprep.subr.bf16.mxu1 %v18377_v45  ;;  %v18428_v45 = vld [vmem:[#allocation9 + $0x6c4] ss:$16 sps:$4 sm:$0xff]  }
 0xbbf   : > { %10635 = vmatpush1.bf16.msra.mxu1 %v18375_v38  ;;  %v18426_v38 = vld [vmem:[#allocation9 + $0x6c0] ss:$16 sps:$4 sm:$0xff]  }
 0xbc0   : > { %10636 = vmatprep.subr.bf16.mxu1 %v18380_v49  ;;  %v18431_v49 = vld [vmem:[#allocation9 + $0x6e4] ss:$16 sps:$4 sm:$0xff]  }
 0xbc2   : > { %10598 = vmatmul.mubr.bf16.gmra.mrb[124].mxu1 %v22658_v15 }
 0xbc3   : > { %10637 = vmatpush1.bf16.msra.mxu1 %v18378_v59  ;;  %10640 = vmatprep.mubr.bf16.mxu1 %v22151_v35  ;;  %v18429_v59 = vld [vmem:[#allocation9 + $0x6e0] ss:$16 sps:$4 sm:$0xff]  }
 0xbc4   : > { %10638 = vmatprep.subr.bf16.mxu1 %v18383_v20  ;;  %v18434_v20 = vld [vmem:[#allocation9 + $0x704] ss:$16 sps:$4 sm:$0xff]  }
 0xbc7   : > { %10639 = vmatpush1.bf16.msra.mxu1 %v18381_v32  ;;  %v18432_v32 = vld [vmem:[#allocation9 + $0x700] ss:$16 sps:$4 sm:$0xff]  }
 0xbc8   : > { %10721 = vmatprep.subr.bf16.mxu1 %v18386_v1  ;;  %v18437_v1 = vld [vmem:[#allocation9 + $0x724] ss:$16 sps:$4 sm:$0xff]  }
 0xbca   : > { %10641 = vmatmul.mubr.bf16.vlgmr.msra.gmra.mrb[128].mxu1 %v23796_v9 }
 0xbcb   : > { %10650 = vmatprep.mubr.bf16.mxu1 %v22220_v43  ;;  %10722 = vmatpush1.bf16.msra.mxu1 %v18384_v16  ;;  %v18435_v16 = vld [vmem:[#allocation9 + $0x720] ss:$16 sps:$4 sm:$0xff]  }
 0xbcc   : > { %10723 = vmatprep.subr.bf16.mxu1 %v18389_v26  ;;  %v18440_v26 = vld [vmem:[#allocation9 + $0x744] ss:$16 sps:$4 sm:$0xff]  }
 0xbcf   : > { %10724 = vmatpush1.bf16.msra.mxu1 %v18387_v14  ;;  %v18438_v14 = vld [vmem:[#allocation9 + $0x740] ss:$16 sps:$4 sm:$0xff]  }
 0xbd0   : > { %10725 = vmatprep.subr.bf16.mxu1 %v18392_v13  ;;  %v18443_v13 = vld [vmem:[#allocation9 + $0x764] ss:$16 sps:$4 sm:$0xff]  }
 0xbd2   : > { %10651 = vmatmul.mubr.bf16.gmra.mrb[132].mxu1 %v23806_v41 }
 0xbd3   : > { %10660 = vmatprep.mubr.bf16.mxu1 %v22293_v24  ;;  %10726 = vmatpush1.bf16.msra.mxu1 %v18390_v51  ;;  %v18441_v51 = vld [vmem:[#allocation9 + $0x760] ss:$16 sps:$4 sm:$0xff]  }
 0xbd4   : > { %10727 = vmatprep.subr.bf16.mxu1 %v18395_v61  ;;  %v18446_v61 = vld [vmem:[#allocation9 + $0x784] ss:$16 sps:$4 sm:$0xff]  }
 0xbd7   : > { %10728 = vmatpush1.bf16.msra.mxu1 %v18393_v30  ;;  %v18444_v30 = vld [vmem:[#allocation9 + $0x780] ss:$16 sps:$4 sm:$0xff]  }
 0xbd8   : > { %10729 = vmatprep.subr.bf16.mxu1 %v18398_v34  ;;  %v18449_v34 = vld [vmem:[#allocation9 + $0x7a4] ss:$16 sps:$4 sm:$0xff]  }
 0xbda   : > { %10661 = vmatmul.mubr.bf16.gmra.mrb[136].mxu1 %v23852_v33 }
 0xbdb   : > { %10670 = vmatprep.mubr.bf16.mxu1 %v23853_v39  ;;  %10730 = vmatpush1.bf16.msra.mxu1 %v18396_v54  ;;  %v18447_v54 = vld [vmem:[#allocation9 + $0x7a0] ss:$16 sps:$4 sm:$0xff]  }
 0xbdc   : > { %10731 = vmatprep.subr.bf16.mxu1 %v18401_v50  ;;  %v18452_v50 = vld [vmem:[#allocation9 + $0x7c4] ss:$16 sps:$4 sm:$0xff]  }
 0xbdf   : > { %10732 = vmatpush1.bf16.msra.mxu1 %v18399_v31  ;;  %v18450_v31 = vld [vmem:[#allocation9 + $0x7c0] ss:$16 sps:$4 sm:$0xff]  }
 0xbe0   : > { %10733 = vmatprep.subr.bf16.mxu1 %v18404_v17  ;;  %v18455_v17 = vld [vmem:[#allocation9 + $0x7e4] ss:$16 sps:$4 sm:$0xff]  }
 0xbe2   : > { %10671 = vmatmul.mubr.bf16.gmra.mrb[140].mxu1 %v23854_v53 }
 0xbe3   : > { %10680 = vmatprep.mubr.bf16.mxu1 %v22440_v47  ;;  %10734 = vmatpush1.bf16.msra.mxu1 %v18402_v46  ;;  %v18453_v46 = vld [vmem:[#allocation9 + $0x7e0] ss:$16 sps:$4 sm:$0xff]  }
 0xbe4   : > { %10735 = vmatprep.subr.bf16.mxu1 %v18407_v55  ;;  %v18458_v55 = vld [vmem:[#allocation9 + $0x804] ss:$16 sps:$4 sm:$0xff]  }
 0xbe7   : > { %10736 = vmatpush1.bf16.msra.mxu1 %v18405_v6  ;;  %v18456_v6 = vld [vmem:[#allocation9 + $0x800] ss:$16 sps:$4 sm:$0xff]  }
 0xbe8   : > { %11314 = vmatprep.subr.bf16.mxu1 %v18410_v37  ;;  %v18461_v37 = vld [vmem:[#allocation9 + $0x824] ss:$16 sps:$4 sm:$0xff]  }
 0xbea   : > { %10681 = vmatmul.mubr.bf16.gmra.mrb[144].mxu1 %v23834_v7 }
 0xbeb   : > { %10690 = vmatprep.mubr.bf16.mxu1 %v22507_v52 }
 0xbf2   : > { %10691 = vmatmul.mubr.bf16.gmra.mrb[148].mxu1 %v23841_v12 }
 0xbf3   : > { %10700 = vmatprep.mubr.bf16.mxu1 %v22577_v0 }
 0xbfa   : > { %10701 = vmatmul.mubr.bf16.gmra.mrb[152].mxu1 %v23858_v23 }
 0xbfb   : > { %10710 = vmatprep.mubr.bf16.mxu1 %v22653_v44 }
 0xc02   : > { %10711 = vmatmul.mubr.bf16.gmra.mrb[156].mxu1 %v23859_v22 }
 0xc03   : > { %10753 = vmatprep.mubr.bf16.mxu1 %v23844_v18 }
 0xc0a   : > { %10754 = vmatmul.mubr.bf16.vlgmr.msra.gmra.mrb[128].mxu1 %v22155_v60 }
 0xc0b   : > { %11315 = vmatpush1.bf16.msra.mxu1 %v18408_v3  ;;  %10763 = vmatprep.mubr.bf16.mxu1 %v23844_v18  ;;  %v18459_v3 = vld [vmem:[#allocation9 + $0x820] ss:$16 sps:$4 sm:$0xff]  }
 0xc0c   : > { %11316 = vmatprep.subr.bf16.mxu1 %v18413_v2  ;;  %v18464_v2 = vld [vmem:[#allocation9 + $0x844] ss:$16 sps:$4 sm:$0xff]  }
 0xc0f   : > { %11317 = vmatpush1.bf16.msra.mxu1 %v18411_v5  ;;  %v18462_v5 = vld [vmem:[#allocation9 + $0x840] ss:$16 sps:$4 sm:$0xff]  }
 0xc10   : > { %11318 = vmatprep.subr.bf16.mxu1 %v18416_v29  ;;  %v18467_v29 = vld [vmem:[#allocation9 + $0x864] ss:$16 sps:$4 sm:$0xff]  }
 0xc12   : > { %10764 = vmatmul.mubr.bf16.gmra.mrb[132].mxu1 %v22224_v63 }
 0xc13   : > { %11319 = vmatpush1.bf16.msra.mxu1 %v18414_v58  ;;  %10773 = vmatprep.mubr.bf16.mxu1 %v23844_v18  ;;  %v18465_v58 = vld [vmem:[#allocation9 + $0x860] ss:$16 sps:$4 sm:$0xff]  }
 0xc14   : > { %11320 = vmatprep.subr.bf16.mxu1 %v18419_v25  ;;  %v18470_v25 = vld [vmem:[#allocation9 + $0x884] ss:$16 sps:$4 sm:$0xff]  }
 0xc17   : > { %11321 = vmatpush1.bf16.msra.mxu1 %v18417_v8  ;;  %v18468_v8 = vld [vmem:[#allocation9 + $0x880] ss:$16 sps:$4 sm:$0xff]  }
 0xc18   : > { %11322 = vmatprep.subr.bf16.mxu1 %v18422_v36  ;;  %v18473_v36 = vld [vmem:[#allocation9 + $0x8a4] ss:$16 sps:$4 sm:$0xff]  }
 0xc1a   : > { %10774 = vmatmul.mubr.bf16.gmra.mrb[136].mxu1 %v22297_v21 }
 0xc1b   : > { %11323 = vmatpush1.bf16.msra.mxu1 %v18420_v56  ;;  %10783 = vmatprep.mubr.bf16.mxu1 %v23844_v18  ;;  %v18471_v56 = vld [vmem:[#allocation9 + $0x8a0] ss:$16 sps:$4 sm:$0xff]  }
 0xc1c   : > { %11324 = vmatprep.subr.bf16.mxu1 %v18425_v28  ;;  %v18476_v28 = vld [vmem:[#allocation9 + $0x8c4] ss:$16 sps:$4 sm:$0xff]  }
 0xc1f   : > { %11325 = vmatpush1.bf16.msra.mxu1 %v18423_v40  ;;  %v18474_v40 = vld [vmem:[#allocation9 + $0x8c0] ss:$16 sps:$4 sm:$0xff]  }
 0xc20   : > { %11326 = vmatprep.subr.bf16.mxu1 %v18428_v45  ;;  %v18479_v45 = vld [vmem:[#allocation9 + $0x8e4] ss:$16 sps:$4 sm:$0xff]  }
 0xc22   : > { %10784 = vmatmul.mubr.bf16.gmra.mrb[140].mxu1 %v22366_v57 }
 0xc23   : > { %11327 = vmatpush1.bf16.msra.mxu1 %v18426_v38  ;;  %10793 = vmatprep.mubr.bf16.mxu1 %v23844_v18  ;;  %v18477_v38 = vld [vmem:[#allocation9 + $0x8e0] ss:$16 sps:$4 sm:$0xff]  }
 0xc24   : > { %11328 = vmatprep.subr.bf16.mxu1 %v18431_v49  ;;  %v18482_v49 = vld [vmem:[#allocation9 + $0x60c] ss:$16 sps:$4 sm:$0xff]  }
 0xc27   : > { %11329 = vmatpush1.bf16.msra.mxu1 %v18429_v59  ;;  %v18480_v59 = vld [vmem:[#allocation9 + $0x608] ss:$16 sps:$4 sm:$0xff]  }
 0xc28   : > { %11330 = vmatprep.subr.bf16.mxu1 %v18434_v20  ;;  %v18485_v20 = vld [vmem:[#allocation9 + $0x62c] ss:$16 sps:$4 sm:$0xff]  }
 0xc2a   : > { %10794 = vmatmul.mubr.bf16.gmra.mrb[144].mxu1 %v22444_v42 }
 0xc2b   : > { %11331 = vmatpush1.bf16.msra.mxu1 %v18432_v32  ;;  %10803 = vmatprep.mubr.bf16.mxu1 %v23844_v18  ;;  %v18483_v32 = vld [vmem:[#allocation9 + $0x628] ss:$16 sps:$4 sm:$0xff]  }
 0xc2c   : > { %11332 = vmatprep.subr.bf16.mxu1 %v18437_v1  ;;  %v18488_v1 = vld [vmem:[#allocation9 + $0x64c] ss:$16 sps:$4 sm:$0xff]  }
 0xc2f   : > { %11333 = vmatpush1.bf16.msra.mxu1 %v18435_v16  ;;  %v18486_v16 = vld [vmem:[#allocation9 + $0x648] ss:$16 sps:$4 sm:$0xff]  }
 0xc30   : > { %11334 = vmatprep.subr.bf16.mxu1 %v18440_v26  ;;  %v18491_v26 = vld [vmem:[#allocation9 + $0x66c] ss:$16 sps:$4 sm:$0xff]  }
 0xc32   : > { %10804 = vmatmul.mubr.bf16.gmra.mrb[148].mxu1 %v22511_v11 }
 0xc33   : > { %11335 = vmatpush1.bf16.msra.mxu1 %v18438_v14  ;;  %10813 = vmatprep.mubr.bf16.mxu1 %v23844_v18  ;;  %v18489_v14 = vld [vmem:[#allocation9 + $0x668] ss:$16 sps:$4 sm:$0xff]  }
 0xc34   : > { %11336 = vmatprep.subr.bf16.mxu1 %v18443_v13  ;;  %v18494_v13 = vld [vmem:[#allocation9 + $0x68c] ss:$16 sps:$4 sm:$0xff]  }
 0xc37   : > { %11337 = vmatpush1.bf16.msra.mxu1 %v18441_v51  ;;  %v18492_v51 = vld [vmem:[#allocation9 + $0x688] ss:$16 sps:$4 sm:$0xff]  }
 0xc38   : > { %11338 = vmatprep.subr.bf16.mxu1 %v18446_v61  ;;  %v18497_v61 = vld [vmem:[#allocation9 + $0x6ac] ss:$16 sps:$4 sm:$0xff]  }
 0xc3a   : > { %10814 = vmatmul.mubr.bf16.gmra.mrb[152].mxu1 %v22581_v4 }
 0xc3b   : > { %11339 = vmatpush1.bf16.msra.mxu1 %v18444_v30  ;;  %10823 = vmatprep.mubr.bf16.mxu1 %v23844_v18  ;;  %v18495_v30 = vld [vmem:[#allocation9 + $0x6a8] ss:$16 sps:$4 sm:$0xff]  }
 0xc3c   : > { %11340 = vmatprep.subr.bf16.mxu1 %v18449_v34  ;;  %v18500_v34 = vld [vmem:[#allocation9 + $0x6cc] ss:$16 sps:$4 sm:$0xff]  }
 0xc3f   : > { %11341 = vmatpush1.bf16.msra.mxu1 %v18447_v54  ;;  %v18498_v54 = vld [vmem:[#allocation9 + $0x6c8] ss:$16 sps:$4 sm:$0xff]  }
 0xc40   : > { %11342 = vmatprep.subr.bf16.mxu1 %v18452_v50  ;;  %v18503_v50 = vld [vmem:[#allocation9 + $0x6ec] ss:$16 sps:$4 sm:$0xff]  }
 0xc42   : > { %10824 = vmatmul.mubr.bf16.gmra.mrb[156].mxu1 %v22658_v15 }
 0xc43   : > { %11343 = vmatpush1.bf16.msra.mxu1 %v18450_v31  ;;  %11346 = vmatprep.mubr.bf16.mxu1 %v22066_v19  ;;  %v18501_v31 = vld [vmem:[#allocation9 + $0x6e8] ss:$16 sps:$4 sm:$0xff]  }
 0xc44   : > { %11344 = vmatprep.subr.bf16.mxu1 %v18455_v17  ;;  %v18506_v17 = vld [vmem:[#allocation9 + $0x70c] ss:$16 sps:$4 sm:$0xff]  }
 0xc47   : > { %11345 = vmatpush1.bf16.msra.mxu1 %v18453_v46  ;;  %v18504_v46 = vld [vmem:[#allocation9 + $0x708] ss:$16 sps:$4 sm:$0xff]  }
 0xc48   : > { %11427 = vmatprep.subr.bf16.mxu1 %v18458_v55  ;;  %v18509_v55 = vld [vmem:[#allocation9 + $0x72c] ss:$16 sps:$4 sm:$0xff]  }
 0xc4a   : > { %11347 = vmatmul.mubr.bf16.vlgmr.msra.gmra.mrb[96].mxu1 %v23787_v10 }
 0xc4b   : > { %11356 = vmatprep.mubr.bf16.mxu1 %v22151_v35  ;;  %11428 = vmatpush1.bf16.msra.mxu1 %v18456_v6  ;;  %v18507_v6 = vld [vmem:[#allocation9 + $0x728] ss:$16 sps:$4 sm:$0xff]  }
 0xc4c   : > { %11429 = vmatprep.subr.bf16.mxu1 %v18461_v37  ;;  %v18512_v37 = vld [vmem:[#allocation9 + $0x74c] ss:$16 sps:$4 sm:$0xff]  }
 0xc4f   : > { %11430 = vmatpush1.bf16.msra.mxu1 %v18459_v3  ;;  %v18510_v3 = vld [vmem:[#allocation9 + $0x748] ss:$16 sps:$4 sm:$0xff]  }
 0xc50   : > { %11431 = vmatprep.subr.bf16.mxu1 %v18464_v2  ;;  %v18515_v2 = vld [vmem:[#allocation9 + $0x76c] ss:$16 sps:$4 sm:$0xff]  }
 0xc52   : > { %11357 = vmatmul.mubr.bf16.gmra.mrb[100].mxu1 %v23796_v9 }
 0xc53   : > { %11366 = vmatprep.mubr.bf16.mxu1 %v22220_v43  ;;  %11432 = vmatpush1.bf16.msra.mxu1 %v18462_v5  ;;  %v18513_v5 = vld [vmem:[#allocation9 + $0x768] ss:$16 sps:$4 sm:$0xff]  }
 0xc54   : > { %11433 = vmatprep.subr.bf16.mxu1 %v18467_v29  ;;  %v18518_v29 = vld [vmem:[#allocation9 + $0x78c] ss:$16 sps:$4 sm:$0xff]  }
 0xc57   : > { %11434 = vmatpush1.bf16.msra.mxu1 %v18465_v58  ;;  %v18516_v58 = vld [vmem:[#allocation9 + $0x788] ss:$16 sps:$4 sm:$0xff]  }
 0xc58   : > { %11435 = vmatprep.subr.bf16.mxu1 %v18470_v25  ;;  %v18521_v25 = vld [vmem:[#allocation9 + $0x7ac] ss:$16 sps:$4 sm:$0xff]  }
 0xc5a   : > { %11367 = vmatmul.mubr.bf16.gmra.mrb[104].mxu1 %v23806_v41 }
 0xc5b   : > { %11376 = vmatprep.mubr.bf16.mxu1 %v22293_v24  ;;  %11436 = vmatpush1.bf16.msra.mxu1 %v18468_v8  ;;  %v18519_v8 = vld [vmem:[#allocation9 + $0x7a8] ss:$16 sps:$4 sm:$0xff]  }
 0xc5c   : > { %11437 = vmatprep.subr.bf16.mxu1 %v18473_v36  ;;  %v18524_v36 = vld [vmem:[#allocation9 + $0x7cc] ss:$16 sps:$4 sm:$0xff]  }
 0xc5f   : > { %11438 = vmatpush1.bf16.msra.mxu1 %v18471_v56  ;;  %v18522_v56 = vld [vmem:[#allocation9 + $0x7c8] ss:$16 sps:$4 sm:$0xff]  }
 0xc60   : > { %11439 = vmatprep.subr.bf16.mxu1 %v18476_v28  ;;  %v18527_v28 = vld [vmem:[#allocation9 + $0x7ec] ss:$16 sps:$4 sm:$0xff]  }
 0xc62   : > { %11377 = vmatmul.mubr.bf16.gmra.mrb[108].mxu1 %v23852_v33 }
 0xc63   : > { %11386 = vmatprep.mubr.bf16.mxu1 %v23853_v39  ;;  %11440 = vmatpush1.bf16.msra.mxu1 %v18474_v40  ;;  %v18525_v40 = vld [vmem:[#allocation9 + $0x7e8] ss:$16 sps:$4 sm:$0xff]  }
 0xc64   : > { %11441 = vmatprep.subr.bf16.mxu1 %v18479_v45  ;;  %v18530_v45 = vld [vmem:[#allocation9 + $0x80c] ss:$16 sps:$4 sm:$0xff]  }
 0xc67   : > { %11442 = vmatpush1.bf16.msra.mxu1 %v18477_v38  ;;  %v18528_v38 = vld [vmem:[#allocation9 + $0x808] ss:$16 sps:$4 sm:$0xff]  }
 0xc68   : > { %11540 = vmatprep.subr.bf16.mxu1 %v18482_v49  ;;  %v18533_v49 = vld [vmem:[#allocation9 + $0x82c] ss:$16 sps:$4 sm:$0xff]  }
 0xc6a   : > { %11387 = vmatmul.mubr.bf16.gmra.mrb[112].mxu1 %v23854_v53 }
 0xc6b   : > { %11396 = vmatprep.mubr.bf16.mxu1 %v22440_v47 }
 0xc72   : > { %11397 = vmatmul.mubr.bf16.gmra.mrb[116].mxu1 %v23834_v7 }
 0xc73   : > { %11406 = vmatprep.mubr.bf16.mxu1 %v22507_v52 }
 0xc7a   : > { %11407 = vmatmul.mubr.bf16.gmra.mrb[120].mxu1 %v23841_v12 }
 0xc7b   : > { %11416 = vmatprep.mubr.bf16.mxu1 %v22577_v0 }
 0xc82   : > { %11417 = vmatmul.mubr.bf16.gmra.mrb[124].mxu1 %v23858_v23 }
 0xc83   : > { %11459 = vmatprep.mubr.bf16.mxu1 %v23844_v18 }
 0xc8a   : > { %11460 = vmatmul.mubr.bf16.vlgmr.msra.gmra.mrb[96].mxu1 %v22070_v27 }
 0xc8b   : > { %11541 = vmatpush1.bf16.msra.mxu1 %v18480_v59  ;;  %11469 = vmatprep.mubr.bf16.mxu1 %v23844_v18  ;;  %v18531_v59 = vld [vmem:[#allocation9 + $0x828] ss:$16 sps:$4 sm:$0xff]  }
 0xc8c   : > { %11542 = vmatprep.subr.bf16.mxu1 %v18485_v20  ;;  %v18536_v20 = vld [vmem:[#allocation9 + $0x84c] ss:$16 sps:$4 sm:$0xff]  }
 0xc8f   : > { %11543 = vmatpush1.bf16.msra.mxu1 %v18483_v32  ;;  %v18534_v32 = vld [vmem:[#allocation9 + $0x848] ss:$16 sps:$4 sm:$0xff]  }
 0xc90   : > { %11544 = vmatprep.subr.bf16.mxu1 %v18488_v1  ;;  %v18539_v1 = vld [vmem:[#allocation9 + $0x86c] ss:$16 sps:$4 sm:$0xff]  }
 0xc92   : > { %11470 = vmatmul.mubr.bf16.gmra.mrb[100].mxu1 %v22155_v60 }
 0xc93   : > { %11545 = vmatpush1.bf16.msra.mxu1 %v18486_v16  ;;  %11479 = vmatprep.mubr.bf16.mxu1 %v23844_v18  ;;  %v18542_v16 = vld [vmem:[#allocation9 + $0x88c] ss:$16 sps:$4 sm:$0xff]  }
 0xc94   : > { %11546 = vmatprep.subr.bf16.mxu1 %v18491_v26  ;;  %v18543_v26 = vld [vmem:[#allocation9 + $0x8a8] ss:$16 sps:$4 sm:$0xff]  }
 0xc97   : > { %11547 = vmatpush1.bf16.msra.mxu1 %v18489_v14  ;;  %v18548_v14 = vld [vmem:[#allocation9 + $0x8cc] ss:$16 sps:$4 sm:$0xff]  }
 0xc98   : > { %11548 = vmatprep.subr.bf16.mxu1 %v18494_v13  ;;  %v18551_v13 = vld [vmem:[#allocation9 + $0x8ec] ss:$16 sps:$4 sm:$0xff]  }
 0xc9a   : > { %11480 = vmatmul.mubr.bf16.gmra.mrb[104].mxu1 %v22224_v63 }
 0xc9b   : > { %11549 = vmatpush1.bf16.msra.mxu1 %v18492_v51  ;;  %11489 = vmatprep.mubr.bf16.mxu1 %v23844_v18  ;;  %v18549_v51 = vld [vmem:[#allocation9 + $0x8e8] ss:$16 sps:$4 sm:$0xff]  }
 0xc9c   : > { %11550 = vmatprep.subr.bf16.mxu1 %v18497_v61  ;;  %v18554_v61 = vld [vmem:[#allocation9 + $0xc04] ss:$16 sps:$4 sm:$0xff]  }
 0xc9f   : > { %11551 = vmatpush1.bf16.msra.mxu1 %v18495_v30  ;;  %v18552_v30 = vld [vmem:[#allocation9 + $0xc00] ss:$16 sps:$4 sm:$0xff]  }
 0xca0   : > { %11552 = vmatprep.subr.bf16.mxu1 %v18500_v34  ;;  %v18557_v34 = vld [vmem:[#allocation9 + $0xc24] ss:$16 sps:$4 sm:$0xff]  }
 0xca2   : > { %11490 = vmatmul.mubr.bf16.gmra.mrb[108].mxu1 %v22297_v21 }
 0xca3   : > { %11553 = vmatpush1.bf16.msra.mxu1 %v18498_v54  ;;  %11499 = vmatprep.mubr.bf16.mxu1 %v23844_v18  ;;  %v18555_v54 = vld [vmem:[#allocation9 + $0xc20] ss:$16 sps:$4 sm:$0xff]  }
 0xca4   : > { %11554 = vmatprep.subr.bf16.mxu1 %v18503_v50  ;;  %v18560_v50 = vld [vmem:[#allocation9 + $0xc44] ss:$16 sps:$4 sm:$0xff]  }
 0xca7   : > { %11555 = vmatpush1.bf16.msra.mxu1 %v18501_v31  ;;  %v18558_v31 = vld [vmem:[#allocation9 + $0xc40] ss:$16 sps:$4 sm:$0xff]  }
 0xca8   : > { %11556 = vmatprep.subr.bf16.mxu1 %v18506_v17  ;;  %v18563_v17 = vld [vmem:[#allocation9 + $0xc64] ss:$16 sps:$4 sm:$0xff]  }
 0xcaa   : > { %11500 = vmatmul.mubr.bf16.gmra.mrb[112].mxu1 %v22366_v57 }
 0xcab   : > { %11557 = vmatpush1.bf16.msra.mxu1 %v18504_v46  ;;  %11509 = vmatprep.mubr.bf16.mxu1 %v23844_v18  ;;  %v18561_v46 = vld [vmem:[#allocation9 + $0xc60] ss:$16 sps:$4 sm:$0xff]  }
 0xcac   : > { %11558 = vmatprep.subr.bf16.mxu1 %v18509_v55  ;;  %v18566_v55 = vld [vmem:[#allocation9 + $0xc84] ss:$16 sps:$4 sm:$0xff]  }
 0xcaf   : > { %11559 = vmatpush1.bf16.msra.mxu1 %v18507_v6  ;;  %v18569_v6 = vld [vmem:[#allocation9 + $0xca4] ss:$16 sps:$4 sm:$0xff]  }
 0xcb0   : > { %11560 = vmatprep.subr.bf16.mxu1 %v18512_v37  ;;  %v18567_v37 = vld [vmem:[#allocation9 + $0xca0] ss:$16 sps:$4 sm:$0xff]  }
 0xcb2   : > { %11510 = vmatmul.mubr.bf16.gmra.mrb[116].mxu1 %v22444_v42 }
 0xcb3   : > { %11561 = vmatpush1.bf16.msra.mxu1 %v18510_v3  ;;  %11519 = vmatprep.mubr.bf16.mxu1 %v23844_v18  ;;  %v18572_v3 = vld [vmem:[#allocation9 + $0xcc4] ss:$16 sps:$4 sm:$0xff]  }
 0xcb4   : > { %11562 = vmatprep.subr.bf16.mxu1 %v18515_v2  ;;  %v18575_v2 = vld [vmem:[#allocation9 + $0xce4] ss:$16 sps:$4 sm:$0xff]  }
 0xcb7   : > { %11563 = vmatpush1.bf16.msra.mxu1 %v18513_v5  ;;  %v18573_v5 = vld [vmem:[#allocation9 + $0xce0] ss:$16 sps:$4 sm:$0xff]  }
 0xcb8   : > { %11564 = vmatprep.subr.bf16.mxu1 %v18518_v29  ;;  %v18578_v29 = vld [vmem:[#allocation9 + $0xd04] ss:$16 sps:$4 sm:$0xff]  }
 0xcba   : > { %11520 = vmatmul.mubr.bf16.gmra.mrb[120].mxu1 %v22511_v11 }
 0xcbb   : > { %11565 = vmatpush1.bf16.msra.mxu1 %v18516_v58  ;;  %11529 = vmatprep.mubr.bf16.mxu1 %v23844_v18  ;;  %v18576_v58 = vld [vmem:[#allocation9 + $0xd00] ss:$16 sps:$4 sm:$0xff]  }
 0xcbc   : > { %11566 = vmatprep.subr.bf16.mxu1 %v18521_v25  ;;  %v18581_v25 = vld [vmem:[#allocation9 + $0xd24] ss:$16 sps:$4 sm:$0xff]  }
 0xcbf   : > { %11567 = vmatpush1.bf16.msra.mxu1 %v18519_v8  ;;  %v18579_v8 = vld [vmem:[#allocation9 + $0xd20] ss:$16 sps:$4 sm:$0xff]  }
 0xcc0   : > { %11568 = vmatprep.subr.bf16.mxu1 %v18524_v36  ;;  %v18584_v36 = vld [vmem:[#allocation9 + $0xd44] ss:$16 sps:$4 sm:$0xff]  }
 0xcc2   : > { %11530 = vmatmul.mubr.bf16.gmra.mrb[124].mxu1 %v22581_v4 }
 0xcc3   : > { %11569 = vmatpush1.bf16.msra.mxu1 %v18522_v56  ;;  %11572 = vmatprep.mubr.bf16.mxu1 %v22066_v19  ;;  %v18537_v19 = vld [vmem:[#allocation9 + $0x868] ss:$16 sps:$4 sm:$0xff]   ;;  %v18582_v56 = vld [vmem:[#allocation9 + $0xd40] ss:$16 sps:$4 sm:$0xff]  }
 0xcc4   : > { %11570 = vmatprep.subr.bf16.mxu1 %v18527_v28  ;;  %v18587_v28 = vld [vmem:[#allocation9 + $0xd64] ss:$16 sps:$4 sm:$0xff]  }
 0xcc7   : > { %11571 = vmatpush1.bf16.msra.mxu1 %v18525_v40  ;;  %v18585_v40 = vld [vmem:[#allocation9 + $0xd60] ss:$16 sps:$4 sm:$0xff]  }
 0xcc8   : > { %11653 = vmatprep.subr.bf16.mxu1 %v18530_v45  ;;  %v18590_v45 = vld [vmem:[#allocation9 + $0xd84] ss:$16 sps:$4 sm:$0xff]  }
 0xcca   : > { %11573 = vmatmul.mubr.bf16.vlgmr.msra.gmra.mrb[128].mxu1 %v23787_v10  ;;  %v18540_v10 = vld [vmem:[#allocation9 + $0x888] ss:$16 sps:$4 sm:$0xff]  }
 0xccb   : > { %11582 = vmatprep.mubr.bf16.mxu1 %v22151_v35  ;;  %11654 = vmatpush1.bf16.msra.mxu1 %v18528_v38  ;;  %v18545_v35 = vld [vmem:[#allocation9 + $0x8ac] ss:$16 sps:$4 sm:$0xff]   ;;  %v18588_v38 = vld [vmem:[#allocation9 + $0xd80] ss:$16 sps:$4 sm:$0xff]  }
 0xccc   : > { %11655 = vmatprep.subr.bf16.mxu1 %v18533_v49  ;;  %v18593_v49 = vld [vmem:[#allocation9 + $0xda4] ss:$16 sps:$4 sm:$0xff]  }
 0xccf   : > { %11656 = vmatpush1.bf16.msra.mxu1 %v18531_v59  ;;  %v18591_v59 = vld [vmem:[#allocation9 + $0xda0] ss:$16 sps:$4 sm:$0xff]  }
 0xcd0   : > { %11657 = vmatprep.subr.bf16.mxu1 %v18536_v20  ;;  %v18596_v20 = vld [vmem:[#allocation9 + $0xdc4] ss:$16 sps:$4 sm:$0xff]  }
 0xcd2   : > { %11583 = vmatmul.mubr.bf16.gmra.mrb[132].mxu1 %v23796_v9  ;;  %v18546_v9 = vld [vmem:[#allocation9 + $0x8c8] ss:$16 sps:$4 sm:$0xff]  }
 0xcd3   : > { %11592 = vmatprep.mubr.bf16.mxu1 %v22220_v43  ;;  %11658 = vmatpush1.bf16.msra.mxu1 %v18534_v32  ;;  %v18594_v32 = vld [vmem:[#allocation9 + $0xdc0] ss:$16 sps:$4 sm:$0xff]  }
 0xcd4   : > { %11659 = vmatprep.subr.bf16.mxu1 %v18539_v1  ;;  %v18599_v1 = vld [vmem:[#allocation9 + $0xde4] ss:$16 sps:$4 sm:$0xff]  }
 0xcd7   : > { %11660 = vmatpush1.bf16.msra.mxu1 %v18537_v19  ;;  %v18597_v19 = vld [vmem:[#allocation9 + $0xde0] ss:$16 sps:$4 sm:$0xff]  }
 0xcd8   : > { %11661 = vmatprep.subr.bf16.mxu1 %v18542_v16  ;;  %v18602_v16 = vld [vmem:[#allocation9 + $0xe04] ss:$16 sps:$4 sm:$0xff]  }
 0xcda   : > { %11593 = vmatmul.mubr.bf16.gmra.mrb[136].mxu1 %v23806_v41 }
 0xcdb   : > { %11602 = vmatprep.mubr.bf16.mxu1 %v22293_v24  ;;  %11662 = vmatpush1.bf16.msra.mxu1 %v18540_v10  ;;  %v18600_v10 = vld [vmem:[#allocation9 + $0xe00] ss:$16 sps:$4 sm:$0xff]  }
 0xcdc   : > { %11663 = vmatprep.subr.bf16.mxu1 %v18545_v35  ;;  %v18605_v35 = vld [vmem:[#allocation9 + $0xe24] ss:$16 sps:$4 sm:$0xff]  }
 0xcdf   : > { %11664 = vmatpush1.bf16.msra.mxu1 %v18543_v26  ;;  %v18603_v26 = vld [vmem:[#allocation9 + $0xe20] ss:$16 sps:$4 sm:$0xff]  }
 0xce0   : > { %11665 = vmatprep.subr.bf16.mxu1 %v18548_v14  ;;  %v18608_v14 = vld [vmem:[#allocation9 + $0xe44] ss:$16 sps:$4 sm:$0xff]  }
 0xce2   : > { %11603 = vmatmul.mubr.bf16.gmra.mrb[140].mxu1 %v23852_v33 }
 0xce3   : > { %11612 = vmatprep.mubr.bf16.mxu1 %v23853_v39  ;;  %11666 = vmatpush1.bf16.msra.mxu1 %v18546_v9  ;;  %v18606_v9 = vld [vmem:[#allocation9 + $0xe40] ss:$16 sps:$4 sm:$0xff]  }
 0xce4   : > { %11667 = vmatprep.subr.bf16.mxu1 %v18551_v13  ;;  %v18611_v13 = vld [vmem:[#allocation9 + $0xe64] ss:$16 sps:$4 sm:$0xff]  }
 0xce7   : > { %11668 = vmatpush1.bf16.msra.mxu1 %v18549_v51  ;;  %v18609_v51 = vld [vmem:[#allocation9 + $0xe60] ss:$16 sps:$4 sm:$0xff]  }
 0xce8   : > { %12431 = vmatprep.subr.bf16.mxu1 %v18554_v61  ;;  %v18614_v61 = vld [vmem:[#allocation9 + $0xe84] ss:$16 sps:$4 sm:$0xff]  }
 0xcea   : > { %11613 = vmatmul.mubr.bf16.gmra.mrb[144].mxu1 %v23854_v53 }
 0xceb   : > { %11622 = vmatprep.mubr.bf16.mxu1 %v22440_v47 }
 0xcf2   : > { %11623 = vmatmul.mubr.bf16.gmra.mrb[148].mxu1 %v23834_v7 }
 0xcf3   : > { %11632 = vmatprep.mubr.bf16.mxu1 %v22507_v52 }
 0xcfa   : > { %11633 = vmatmul.mubr.bf16.gmra.mrb[152].mxu1 %v23841_v12 }
 0xcfb   : > { %11642 = vmatprep.mubr.bf16.mxu1 %v22577_v0 }
 0xd02   : > { %11643 = vmatmul.mubr.bf16.gmra.mrb[156].mxu1 %v23858_v23 }
 0xd03   : > { %11685 = vmatprep.mubr.bf16.mxu1 %v23844_v18 }
 0xd0a   : > { %11686 = vmatmul.mubr.bf16.vlgmr.msra.gmra.mrb[128].mxu1 %v22070_v27  ;;  %v18564_v27 = vld [vmem:[#allocation9 + $0xc80] ss:$16 sps:$4 sm:$0xff]  }
 0xd0b   : > { %12432 = vmatpush1.bf16.msra.mxu1 %v18552_v30  ;;  %11695 = vmatprep.mubr.bf16.mxu1 %v23844_v18  ;;  %v18612_v30 = vld [vmem:[#allocation9 + $0xe80] ss:$16 sps:$4 sm:$0xff]  }
 0xd0c   : > { %12433 = vmatprep.subr.bf16.mxu1 %v18557_v34  ;;  %v18617_v34 = vld [vmem:[#allocation9 + $0xea4] ss:$16 sps:$4 sm:$0xff]  }
 0xd0f   : > { %12434 = vmatpush1.bf16.msra.mxu1 %v18555_v54  ;;  %v18615_v54 = vld [vmem:[#allocation9 + $0xea0] ss:$16 sps:$4 sm:$0xff]  }
 0xd10   : > { %12435 = vmatprep.subr.bf16.mxu1 %v18560_v50  ;;  %v18620_v50 = vld [vmem:[#allocation9 + $0xec4] ss:$16 sps:$4 sm:$0xff]  }
 0xd12   : > { %11696 = vmatmul.mubr.bf16.gmra.mrb[132].mxu1 %v22155_v60  ;;  %v18570_v60 = vld [vmem:[#allocation9 + $0xcc0] ss:$16 sps:$4 sm:$0xff]  }
 0xd13   : > { %12436 = vmatpush1.bf16.msra.mxu1 %v18558_v31  ;;  %11705 = vmatprep.mubr.bf16.mxu1 %v23844_v18  ;;  %v18618_v31 = vld [vmem:[#allocation9 + $0xec0] ss:$16 sps:$4 sm:$0xff]  }
 0xd14   : > { %12437 = vmatprep.subr.bf16.mxu1 %v18563_v17  ;;  %v18623_v17 = vld [vmem:[#allocation9 + $0xee4] ss:$16 sps:$4 sm:$0xff]  }
 0xd17   : > { %12438 = vmatpush1.bf16.msra.mxu1 %v18561_v46  ;;  %v18621_v46 = vld [vmem:[#allocation9 + $0xee0] ss:$16 sps:$4 sm:$0xff]  }
 0xd18   : > { %12439 = vmatprep.subr.bf16.mxu1 %v18566_v55  ;;  %v18626_v55 = vld [vmem:[#allocation9 + $0xc0c] ss:$16 sps:$4 sm:$0xff]  }
 0xd1a   : > { %11706 = vmatmul.mubr.bf16.gmra.mrb[136].mxu1 %v22224_v63 }
 0xd1b   : > { %12440 = vmatpush1.bf16.msra.mxu1 %v18564_v27  ;;  %11715 = vmatprep.mubr.bf16.mxu1 %v23844_v18  ;;  %v23860_v27 = vld [vmem:[#allocation91_spill] sm:$0xff] }
 0xd1c   : > { %12441 = vmatprep.subr.bf16.mxu1 %v18569_v6  ;;  %v18624_v6 = vld [vmem:[#allocation9 + $0xc08] ss:$16 sps:$4 sm:$0xff]  }
 0xd1f   : > { %12442 = vmatpush1.bf16.msra.mxu1 %v18567_v37  ;;  %v18629_v37 = vld [vmem:[#allocation9 + $0xc2c] ss:$16 sps:$4 sm:$0xff]  }
 0xd20   : > { %12443 = vmatprep.subr.bf16.mxu1 %v18572_v3  ;;  %v18627_v3 = vld [vmem:[#allocation9 + $0xc28] ss:$16 sps:$4 sm:$0xff]  }
 0xd22   : > { %11716 = vmatmul.mubr.bf16.gmra.mrb[140].mxu1 %v22297_v21 }
 0xd23   : > { %12444 = vmatpush1.bf16.msra.mxu1 %v18570_v60  ;;  %11725 = vmatprep.mubr.bf16.mxu1 %v23844_v18  ;;  %v18632_v60 = vld [vmem:[#allocation9 + $0xc4c] ss:$16 sps:$4 sm:$0xff]  }
 0xd24   : > { %12445 = vmatprep.subr.bf16.mxu1 %v18575_v2  ;;  %v18630_v2 = vld [vmem:[#allocation9 + $0xc48] ss:$16 sps:$4 sm:$0xff]  }
 0xd27   : > { %12446 = vmatpush1.bf16.msra.mxu1 %v18573_v5  ;;  %v18635_v5 = vld [vmem:[#allocation9 + $0xc6c] ss:$16 sps:$4 sm:$0xff]  }
 0xd28   : > { %12447 = vmatprep.subr.bf16.mxu1 %v18578_v29  ;;  %v18633_v29 = vld [vmem:[#allocation9 + $0xc68] ss:$16 sps:$4 sm:$0xff]  }
 0xd2a   : > { %11726 = vmatmul.mubr.bf16.gmra.mrb[144].mxu1 %v22366_v57 }
 0xd2b   : > { %12448 = vmatpush1.bf16.msra.mxu1 %v18576_v58  ;;  %11735 = vmatprep.mubr.bf16.mxu1 %v23844_v18  ;;  %v18638_v58 = vld [vmem:[#allocation9 + $0xc8c] ss:$16 sps:$4 sm:$0xff]  }
 0xd2c   : > { %12449 = vmatprep.subr.bf16.mxu1 %v18581_v25  ;;  %v18636_v25 = vld [vmem:[#allocation9 + $0xc88] ss:$16 sps:$4 sm:$0xff]  }
 0xd2f   : > { %12450 = vmatpush1.bf16.msra.mxu1 %v18579_v8  ;;  %v18641_v8 = vld [vmem:[#allocation9 + $0xcac] ss:$16 sps:$4 sm:$0xff]  }
 0xd30   : > { %12451 = vmatprep.subr.bf16.mxu1 %v18584_v36  ;;  %v18639_v36 = vld [vmem:[#allocation9 + $0xca8] ss:$16 sps:$4 sm:$0xff]  }
 0xd32   : > { %11736 = vmatmul.mubr.bf16.gmra.mrb[148].mxu1 %v22444_v42 }
 0xd33   : > { %12452 = vmatpush1.bf16.msra.mxu1 %v18582_v56  ;;  %11745 = vmatprep.mubr.bf16.mxu1 %v23844_v18  ;;  %v18644_v56 = vld [vmem:[#allocation9 + $0xccc] ss:$16 sps:$4 sm:$0xff]  }
 0xd34   : > { %12453 = vmatprep.subr.bf16.mxu1 %v18587_v28  ;;  %v18642_v28 = vld [vmem:[#allocation9 + $0xcc8] ss:$16 sps:$4 sm:$0xff]  }
 0xd37   : > { %12454 = vmatpush1.bf16.msra.mxu1 %v18585_v40  ;;  %v18647_v40 = vld [vmem:[#allocation9 + $0xcec] ss:$16 sps:$4 sm:$0xff]  }
 0xd38   : > { %12455 = vmatprep.subr.bf16.mxu1 %v18590_v45  ;;  %v18645_v45 = vld [vmem:[#allocation9 + $0xce8] ss:$16 sps:$4 sm:$0xff]  }
 0xd3a   : > { %11746 = vmatmul.mubr.bf16.gmra.mrb[152].mxu1 %v22511_v11 }
 0xd3b   : > { %12456 = vmatpush1.bf16.msra.mxu1 %v18588_v38  ;;  %11755 = vmatprep.mubr.bf16.mxu1 %v23844_v18  ;;  %v18650_v38 = vld [vmem:[#allocation9 + $0xd0c] ss:$16 sps:$4 sm:$0xff]  }
 0xd3c   : > { %12457 = vmatprep.subr.bf16.mxu1 %v18593_v49  ;;  %v18648_v49 = vld [vmem:[#allocation9 + $0xd08] ss:$16 sps:$4 sm:$0xff]  }
 0xd3f   : > { %12458 = vmatpush1.bf16.msra.mxu1 %v18591_v59  ;;  %v18653_v59 = vld [vmem:[#allocation9 + $0xd2c] ss:$16 sps:$4 sm:$0xff]  }
 0xd40   : > { %12459 = vmatprep.subr.bf16.mxu1 %v18596_v20  ;;  %v18651_v20 = vld [vmem:[#allocation9 + $0xd28] ss:$16 sps:$4 sm:$0xff]  }
 0xd42   : > { %11756 = vmatmul.mubr.bf16.gmra.mrb[156].mxu1 %v22581_v4 }
 0xd43   : > { %12460 = vmatpush1.bf16.msra.mxu1 %v18594_v32  ;;  %12463 = vmatprep.mubr.bf16.mxu1 %v22220_v43  ;;  %v18656_v32 = vld [vmem:[#allocation9 + $0xd4c] ss:$16 sps:$4 sm:$0xff]  }
 0xd44   : > { %12461 = vmatprep.subr.bf16.mxu1 %v18599_v1  ;;  %v18654_v1 = vld [vmem:[#allocation9 + $0xd48] ss:$16 sps:$4 sm:$0xff]  }
 0xd47   : > { %12462 = vmatpush1.bf16.msra.mxu1 %v18597_v19  ;;  %v18659_v19 = vld [vmem:[#allocation9 + $0xd6c] ss:$16 sps:$4 sm:$0xff]  }
 0xd48   : > { %12544 = vmatprep.subr.bf16.mxu1 %v18602_v16  ;;  %v18696_v16 = vld [vmem:[#allocation12] ss:$8 sps:$4 sm:$0xff]  }
 0xd4a   : > { %12464 = vmatmul.mubr.bf16.vlgmr.msra.gmra.mrb[96].mxu1 %v23806_v41 }
 0xd4b   : > { %12473 = vmatprep.mubr.bf16.mxu1 %v22293_v24  ;;  %12545 = vmatpush1.bf16.msra.mxu1 %v18600_v10  ;;  %v18698_v10 = vld [vmem:[#allocation12 + $0x4] ss:$8 sps:$4 sm:$0xff]  }
 0xd4c   : > { %12546 = vmatprep.subr.bf16.mxu1 %v18605_v35  ;;  %v18657_v35 = vld [vmem:[#allocation9 + $0xd68] ss:$16 sps:$4 sm:$0xff]   ;;  %14063 = vmatprep.subr.bf16.mxu0 %v18698_v10 }
 0xd4d   : > { %14064 = vmatpush1.bf16.msra.mxu0 %v18696_v16  ;;  %v23861_v16 = vld [vmem:[#allocation103_spill] sm:$0xff] }
 0xd4f   : > { %12547 = vmatpush1.bf16.msra.mxu1 %v18603_v26  ;;  %v18662_v26 = vld [vmem:[#allocation9 + $0xd8c] ss:$16 sps:$4 sm:$0xff]  }
 0xd50   : > { %12548 = vmatprep.subr.bf16.mxu1 %v18608_v14  ;;  %v18660_v14 = vld [vmem:[#allocation9 + $0xd88] ss:$16 sps:$4 sm:$0xff]  }
 0xd52   : > { %12474 = vmatmul.mubr.bf16.gmra.mrb[100].mxu1 %v23852_v33 }
 0xd53   : > { %12483 = vmatprep.mubr.bf16.mxu1 %v23853_v39  ;;  %12549 = vmatpush1.bf16.msra.mxu1 %v18606_v9  ;;  %v18665_v9 = vld [vmem:[#allocation9 + $0xdac] ss:$16 sps:$4 sm:$0xff]  }
 0xd54   : > { %12550 = vmatprep.subr.bf16.mxu1 %v18611_v13  ;;  %v18663_v13 = vld [vmem:[#allocation9 + $0xda8] ss:$16 sps:$4 sm:$0xff]  }
 0xd57   : > { %12551 = vmatpush1.bf16.msra.mxu1 %v18609_v51  ;;  %v18699_v51 = vld [vmem:[#allocation12 + $0x10] ss:$8 sps:$4 sm:$0xff]  }
 0xd58   : > { %12552 = vmatprep.subr.bf16.mxu1 %v18614_v61  ;;  %v18701_v61 = vld [vmem:[#allocation12 + $0x14] ss:$8 sps:$4 sm:$0xff]  }
 0xd59   : > { %14065 = vmatprep.subr.bf16.mxu0 %v18701_v61 }
 0xd5a   : > { %12484 = vmatmul.mubr.bf16.gmra.mrb[104].mxu1 %v23854_v53  ;;  %14066 = vmatpush1.bf16.msra.mxu0 %v18699_v51  ;;  %v18741_v51 = vld [vmem:[#allocation12 + $0xf0] ss:$8 sps:$4 sm:$0xff]  }
 0xd5b   : > { %12493 = vmatprep.mubr.bf16.mxu1 %v22440_v47  ;;  %12553 = vmatpush1.bf16.msra.mxu1 %v18612_v30  ;;  %v18668_v30 = vld [vmem:[#allocation9 + $0xdcc] ss:$16 sps:$4 sm:$0xff]  }
 0xd5c   : > { %12554 = vmatprep.subr.bf16.mxu1 %v18617_v34  ;;  %v18666_v34 = vld [vmem:[#allocation9 + $0xdc8] ss:$16 sps:$4 sm:$0xff]  }
 0xd5f   : > { %12555 = vmatpush1.bf16.msra.mxu1 %v18615_v54  ;;  %v18671_v54 = vld [vmem:[#allocation9 + $0xdec] ss:$16 sps:$4 sm:$0xff]  }
 0xd60   : > { %12556 = vmatprep.subr.bf16.mxu1 %v18620_v50  ;;  %v18702_v50 = vld [vmem:[#allocation12 + $0x20] ss:$8 sps:$4 sm:$0xff]  }
 0xd62   : > { %12494 = vmatmul.mubr.bf16.gmra.mrb[108].mxu1 %v23834_v7 }
 0xd63   : > { %12503 = vmatprep.mubr.bf16.mxu1 %v22507_v52  ;;  %12557 = vmatpush1.bf16.msra.mxu1 %v18618_v31  ;;  %v18704_v31 = vld [vmem:[#allocation12 + $0x24] ss:$8 sps:$4 sm:$0xff]  }
 0xd64   : > { %12558 = vmatprep.subr.bf16.mxu1 %v18623_v17  ;;  %v18669_v17 = vld [vmem:[#allocation9 + $0xde8] ss:$16 sps:$4 sm:$0xff]   ;;  %14067 = vmatprep.subr.bf16.mxu0 %v18704_v31 }
 0xd65   : > { %14068 = vmatpush1.bf16.msra.mxu0 %v18702_v50 }
 0xd67   : > { %12559 = vmatpush1.bf16.msra.mxu1 %v18621_v46  ;;  %v18707_v46 = vld [vmem:[#allocation12 + $0x34] ss:$8 sps:$4 sm:$0xff]  }
 0xd68   : > { %12657 = vmatprep.subr.bf16.mxu1 %v18626_v55  ;;  %v18674_v55 = vld [vmem:[#allocation9 + $0xe0c] ss:$16 sps:$4 sm:$0xff]   ;;  %14069 = vmatprep.subr.bf16.mxu0 %v18707_v46 }
 0xd6a   : > { %12504 = vmatmul.mubr.bf16.gmra.mrb[112].mxu1 %v23841_v12 }
 0xd6b   : > { %12513 = vmatprep.mubr.bf16.mxu1 %v22577_v0 }
 0xd72   : > { %12514 = vmatmul.mubr.bf16.gmra.mrb[116].mxu1 %v23858_v23 }
 0xd73   : > { %12523 = vmatprep.mubr.bf16.mxu1 %v22653_v44 }
 0xd7a   : > { %12524 = vmatmul.mubr.bf16.gmra.mrb[120].mxu1 %v23859_v22 }
 0xd7b   : > { %12533 = vmatprep.mubr.bf16.mxu1 %v22699_v48 }
 0xd82   : > { %12534 = vmatmul.mubr.bf16.gmra.mrb[124].mxu1 %v23860_v27 }
 0xd83   : > { %12576 = vmatprep.mubr.bf16.mxu1 %v23844_v18 }
 0xd8a   : > { %12577 = vmatmul.mubr.bf16.vlgmr.msra.gmra.mrb[96].mxu1 %v22224_v63 }
 0xd8b   : > { %12658 = vmatpush1.bf16.msra.mxu1 %v18624_v6  ;;  %12586 = vmatprep.mubr.bf16.mxu1 %v23844_v18  ;;  %v18705_v6 = vld [vmem:[#allocation12 + $0x30] ss:$8 sps:$4 sm:$0xff]  }
 0xd8c   : > { %12659 = vmatprep.subr.bf16.mxu1 %v18629_v37  ;;  %v18672_v37 = vld [vmem:[#allocation9 + $0xe08] ss:$16 sps:$4 sm:$0xff]   ;;  %14070 = vmatpush1.bf16.msra.mxu0 %v18705_v6 }
 0xd8d   : > { %v23862_v6 = vld [vmem:[#allocation63_spill] sm:$0xff] }
 0xd8f   : > { %12660 = vmatpush1.bf16.msra.mxu1 %v18627_v3  ;;  %v18677_v3 = vld [vmem:[#allocation9 + $0xe2c] ss:$16 sps:$4 sm:$0xff]  }
 0xd90   : > { %12661 = vmatprep.subr.bf16.mxu1 %v18632_v60  ;;  %v18675_v60 = vld [vmem:[#allocation9 + $0xe28] ss:$16 sps:$4 sm:$0xff]  }
 0xd92   : > { %12587 = vmatmul.mubr.bf16.gmra.mrb[100].mxu1 %v22297_v21 }
 0xd93   : > { %12662 = vmatpush1.bf16.msra.mxu1 %v18630_v2  ;;  %12596 = vmatprep.mubr.bf16.mxu1 %v23844_v18  ;;  %v18678_v2 = vld [vmem:[#allocation9 + $0xe48] ss:$16 sps:$4 sm:$0xff]  }
 0xd94   : > { %12663 = vmatprep.subr.bf16.mxu1 %v18635_v5  ;;  %v18683_v5 = vld [vmem:[#allocation9 + $0xe6c] ss:$16 sps:$4 sm:$0xff]  }
 0xd97   : > { %12664 = vmatpush1.bf16.msra.mxu1 %v18633_v29  ;;  %v18681_v29 = vld [vmem:[#allocation9 + $0xe68] ss:$16 sps:$4 sm:$0xff]  }
 0xd98   : > { %12665 = vmatprep.subr.bf16.mxu1 %v18638_v58  ;;  %v18686_v58 = vld [vmem:[#allocation9 + $0xe8c] ss:$16 sps:$4 sm:$0xff]  }
 0xd9a   : > { %12597 = vmatmul.mubr.bf16.gmra.mrb[104].mxu1 %v22366_v57 }
 0xd9b   : > { %12666 = vmatpush1.bf16.msra.mxu1 %v18636_v25  ;;  %12606 = vmatprep.mubr.bf16.mxu1 %v23844_v18  ;;  %v18687_v25 = vld [vmem:[#allocation9 + $0xea8] ss:$16 sps:$4 sm:$0xff]  }
 0xd9c   : > { %12667 = vmatprep.subr.bf16.mxu1 %v18641_v8  ;;  %v18692_v8 = vld [vmem:[#allocation9 + $0xecc] ss:$16 sps:$4 sm:$0xff]  }
 0xd9f   : > { %12668 = vmatpush1.bf16.msra.mxu1 %v18639_v36  ;;  %v18693_v36 = vld [vmem:[#allocation9 + $0xee8] ss:$16 sps:$4 sm:$0xff]  }
 0xda0   : > { %12669 = vmatprep.subr.bf16.mxu1 %v18644_v56  ;;  %v18711_v56 = vld [vmem:[#allocation12 + $0x50] ss:$8 sps:$4 sm:$0xff]  }
 0xda2   : > { %12607 = vmatmul.mubr.bf16.gmra.mrb[108].mxu1 %v22444_v42 }
 0xda3   : > { %12670 = vmatpush1.bf16.msra.mxu1 %v18642_v28  ;;  %12616 = vmatprep.mubr.bf16.mxu1 %v23844_v18  ;;  %v18726_v28 = vld [vmem:[#allocation12 + $0xa0] ss:$8 sps:$4 sm:$0xff]  }
 0xda4   : > { %12671 = vmatprep.subr.bf16.mxu1 %v18647_v40  ;;  %v18734_v40 = vld [vmem:[#allocation12 + $0xc4] ss:$8 sps:$4 sm:$0xff]  }
 0xda7   : > { %12672 = vmatpush1.bf16.msra.mxu1 %v18645_v45  ;;  %v18732_v45 = vld [vmem:[#allocation12 + $0xc0] ss:$8 sps:$4 sm:$0xff]  }
 0xda8   : > { %12673 = vmatprep.subr.bf16.mxu1 %v18650_v38  ;;  %v18737_v38 = vld [vmem:[#allocation12 + $0xd4] ss:$8 sps:$4 sm:$0xff]  }
 0xdaa   : > { %12617 = vmatmul.mubr.bf16.gmra.mrb[112].mxu1 %v22511_v11 }
 0xdab   : > { %12674 = vmatpush1.bf16.msra.mxu1 %v18648_v49  ;;  %12626 = vmatprep.mubr.bf16.mxu1 %v23844_v18  ;;  %v18735_v49 = vld [vmem:[#allocation12 + $0xd0] ss:$8 sps:$4 sm:$0xff]  }
 0xdac   : > { %12675 = vmatprep.subr.bf16.mxu1 %v18653_v59 }
 0xdaf   : > { %12676 = vmatpush1.bf16.msra.mxu1 %v18651_v20 }
 0xdb0   : > { %12677 = vmatprep.subr.bf16.mxu1 %v18656_v32  ;;  %v18738_v32 = vld [vmem:[#allocation12 + $0xe0] ss:$8 sps:$4 sm:$0xff]  }
 0xdb2   : > { %12627 = vmatmul.mubr.bf16.gmra.mrb[116].mxu1 %v22581_v4 }
 0xdb3   : > { %12678 = vmatpush1.bf16.msra.mxu1 %v18654_v1  ;;  %12636 = vmatprep.mubr.bf16.mxu1 %v23844_v18  ;;  %v18740_v1 = vld [vmem:[#allocation12 + $0xe4] ss:$8 sps:$4 sm:$0xff]  }
 0xdb4   : > { %12679 = vmatprep.subr.bf16.mxu1 %v18659_v19 }
 0xdb7   : > { %12680 = vmatpush1.bf16.msra.mxu1 %v18657_v35 }
 0xdb8   : > { %12681 = vmatprep.subr.bf16.mxu1 %v18662_v26 }
 0xdba   : > { %12637 = vmatmul.mubr.bf16.gmra.mrb[120].mxu1 %v22658_v15 }
 0xdbb   : > { %12682 = vmatpush1.bf16.msra.mxu1 %v18660_v14  ;;  %12646 = vmatprep.mubr.bf16.mxu1 %v23844_v18 }
 0xdbc   : > { %12683 = vmatprep.subr.bf16.mxu1 %v18665_v9  ;;  %v18743_v9 = vld [vmem:[#allocation12 + $0xf4] ss:$8 sps:$4 sm:$0xff]  }
 0xdbf   : > { %12684 = vmatpush1.bf16.msra.mxu1 %v18663_v13 }
 0xdc0   : > { %12685 = vmatprep.subr.bf16.mxu1 %v18668_v30 }
 0xdc2   : > { %12647 = vmatmul.mubr.bf16.gmra.mrb[124].mxu1 %v22701_v62 }
 0xdc3   : > { %12686 = vmatpush1.bf16.msra.mxu1 %v18666_v34  ;;  %12689 = vmatprep.mubr.bf16.mxu1 %v22220_v43  ;;  %v18680_v43 = vld [vmem:[#allocation9 + $0xe4c] ss:$16 sps:$4 sm:$0xff]   ;;  %v18746_v34 = vld [vmem:[#allocation12 + $0x104] ss:$8 sps:$4 sm:$0xff]  }
 0xdc4   : > { %12687 = vmatprep.subr.bf16.mxu1 %v18671_v54 }
 0xdc7   : > { %12688 = vmatpush1.bf16.msra.mxu1 %v18669_v17 }
 0xdc8   : > { %12770 = vmatprep.subr.bf16.mxu1 %v18674_v55 }
 0xdca   : > { %12690 = vmatmul.mubr.bf16.vlgmr.msra.gmra.mrb[128].mxu1 %v23806_v41  ;;  %v18684_v41 = vld [vmem:[#allocation9 + $0xe88] ss:$16 sps:$4 sm:$0xff]  }
 0xdcb   : > { %12699 = vmatprep.mubr.bf16.mxu1 %v22293_v24  ;;  %12771 = vmatpush1.bf16.msra.mxu1 %v18672_v37  ;;  %v18689_v24 = vld [vmem:[#allocation9 + $0xeac] ss:$16 sps:$4 sm:$0xff]  }
 0xdcc   : > { %12772 = vmatprep.subr.bf16.mxu1 %v18677_v3 }
 0xdcf   : > { %12773 = vmatpush1.bf16.msra.mxu1 %v18675_v60 }
 0xdd0   : > { %12774 = vmatprep.subr.bf16.mxu1 %v18680_v43 }
 0xdd2   : > { %12700 = vmatmul.mubr.bf16.gmra.mrb[132].mxu1 %v23852_v33  ;;  %v18690_v33 = vld [vmem:[#allocation9 + $0xec8] ss:$16 sps:$4 sm:$0xff]  }
 0xdd3   : > { %12709 = vmatprep.mubr.bf16.mxu1 %v23853_v39  ;;  %12775 = vmatpush1.bf16.msra.mxu1 %v18678_v2  ;;  %v18695_v39 = vld [vmem:[#allocation9 + $0xeec] ss:$16 sps:$4 sm:$0xff]  }
 0xdd4   : > { %12776 = vmatprep.subr.bf16.mxu1 %v18683_v5 }
 0xdd7   : > { %12777 = vmatpush1.bf16.msra.mxu1 %v18681_v29 }
 0xdd8   : > { %12778 = vmatprep.subr.bf16.mxu1 %v18686_v58 }
 0xdda   : > { %12710 = vmatmul.mubr.bf16.gmra.mrb[136].mxu1 %v23854_v53  ;;  %v18708_v53 = vld [vmem:[#allocation12 + $0x40] ss:$8 sps:$4 sm:$0xff]  }
 0xddb   : > { %12719 = vmatprep.mubr.bf16.mxu1 %v22440_v47  ;;  %12779 = vmatpush1.bf16.msra.mxu1 %v18684_v41  ;;  %v18710_v47 = vld [vmem:[#allocation12 + $0x44] ss:$8 sps:$4 sm:$0xff]  }
 0xddc   : > { %12780 = vmatprep.subr.bf16.mxu1 %v18689_v24  ;;  %14071 = vmatprep.subr.bf16.mxu0 %v18710_v47 }
 0xddd   : > { %14072 = vmatpush1.bf16.msra.mxu0 %v18708_v53 }
 0xddf   : > { %12781 = vmatpush1.bf16.msra.mxu1 %v18687_v25 }
 0xde0   : > { %12782 = vmatprep.subr.bf16.mxu1 %v18692_v8 }
 0xde2   : > { %12720 = vmatmul.mubr.bf16.gmra.mrb[140].mxu1 %v23834_v7  ;;  %v18713_v7 = vld [vmem:[#allocation12 + $0x54] ss:$8 sps:$4 sm:$0xff]  }
 0xde3   : > { %12729 = vmatprep.mubr.bf16.mxu1 %v22507_v52  ;;  %12783 = vmatpush1.bf16.msra.mxu1 %v18690_v33  ;;  %v18714_v52 = vld [vmem:[#allocation12 + $0x60] ss:$8 sps:$4 sm:$0xff]  }
 0xde4   : > { %12784 = vmatprep.subr.bf16.mxu1 %v18695_v39  ;;  %14073 = vmatprep.subr.bf16.mxu0 %v18713_v7 }
 0xde5   : > { %14074 = vmatpush1.bf16.msra.mxu0 %v18711_v56 }
 0xde7   : > { %12785 = vmatpush1.bf16.msra.mxu1 %v18693_v36 }
 0xdea   : > { %12730 = vmatmul.mubr.bf16.gmra.mrb[144].mxu1 %v23841_v12  ;;  %v18716_v12 = vld [vmem:[#allocation12 + $0x64] ss:$8 sps:$4 sm:$0xff]  }
 0xdeb   : > { %12739 = vmatprep.mubr.bf16.mxu1 %v22577_v0  ;;  %14075 = vmatprep.subr.bf16.mxu0 %v18716_v12  ;;  %v18717_v0 = vld [vmem:[#allocation12 + $0x70] ss:$8 sps:$4 sm:$0xff]  }
 0xdec   : > { %14076 = vmatpush1.bf16.msra.mxu0 %v18714_v52 }
 0xdf2   : > { %12740 = vmatmul.mubr.bf16.gmra.mrb[148].mxu1 %v23858_v23  ;;  %v18722_v23 = vld [vmem:[#allocation12 + $0x84] ss:$8 sps:$4 sm:$0xff]  }
 0xdf3   : > { %12749 = vmatprep.mubr.bf16.mxu1 %v22653_v44  ;;  %v18719_v44 = vld [vmem:[#allocation12 + $0x74] ss:$8 sps:$4 sm:$0xff]  }
 0xdf4   : > { %14077 = vmatprep.subr.bf16.mxu0 %v18719_v44 }
 0xdf5   : > { %14078 = vmatpush1.bf16.msra.mxu0 %v18717_v0 }
 0xdf6   : > { %14079 = vmatprep.subr.bf16.mxu0 %v18722_v23 }
 0xdfa   : > { %12750 = vmatmul.mubr.bf16.gmra.mrb[152].mxu1 %v23859_v22  ;;  %v18723_v22 = vld [vmem:[#allocation12 + $0x90] ss:$8 sps:$4 sm:$0xff]  }
 0xdfb   : > { %12759 = vmatprep.mubr.bf16.mxu1 %v22699_v48  ;;  %v18720_v48 = vld [vmem:[#allocation12 + $0x80] ss:$8 sps:$4 sm:$0xff]  }
 0xdfc   : > { %14080 = vmatpush1.bf16.msra.mxu0 %v18720_v48 }
 0xe02   : > { %12760 = vmatmul.mubr.bf16.gmra.mrb[156].mxu1 %v23860_v27  ;;  %v18728_v27 = vld [vmem:[#allocation12 + $0xa4] ss:$8 sps:$4 sm:$0xff]  }
 0xe03   : > { %12802 = vmatprep.mubr.bf16.mxu1 %v23844_v18 }
 0xe0a   : > { %12803 = vmatmul.mubr.bf16.vlgmr.msra.gmra.mrb[128].mxu1 %v22224_v63  ;;  %v18725_v63 = vld [vmem:[#allocation12 + $0x94] ss:$8 sps:$4 sm:$0xff]  }
 0xe0b   : > { %12812 = vmatprep.mubr.bf16.mxu1 %v23844_v18  ;;  %14081 = vmatprep.subr.bf16.mxu0 %v18725_v63 }
 0xe0c   : > { %14082 = vmatpush1.bf16.msra.mxu0 %v18723_v22 }
 0xe0d   : > { %14083 = vmatprep.subr.bf16.mxu0 %v18728_v27 }
 0xe10   : > { %14084 = vmatpush1.bf16.msra.mxu0 %v18726_v28 }
 0xe12   : > { %12813 = vmatmul.mubr.bf16.gmra.mrb[132].mxu1 %v22297_v21  ;;  %v18731_v21 = vld [vmem:[#allocation12 + $0xb4] ss:$8 sps:$4 sm:$0xff]  }
 0xe13   : > { %12822 = vmatprep.mubr.bf16.mxu1 %v23844_v18  ;;  %14085 = vmatprep.subr.bf16.mxu0 %v18731_v21 }
 0xe1a   : > { %12823 = vmatmul.mubr.bf16.gmra.mrb[136].mxu1 %v22366_v57  ;;  %v18729_v57 = vld [vmem:[#allocation12 + $0xb0] ss:$8 sps:$4 sm:$0xff]  }
 0xe1b   : > { %12832 = vmatprep.mubr.bf16.mxu1 %v23844_v18  ;;  %14086 = vmatpush1.bf16.msra.mxu0 %v18729_v57 }
 0xe1c   : > { %14087 = vmatprep.subr.bf16.mxu0 %v18734_v40 }
 0xe1f   : > { %14088 = vmatpush1.bf16.msra.mxu0 %v18732_v45 }
 0xe20   : > { %14089 = vmatprep.subr.bf16.mxu0 %v18737_v38 }
 0xe22   : > { %12833 = vmatmul.mubr.bf16.gmra.mrb[140].mxu1 %v22444_v42 }
 0xe23   : > { %12842 = vmatprep.mubr.bf16.mxu1 %v23844_v18  ;;  %14090 = vmatpush1.bf16.msra.mxu0 %v18735_v49 }
 0xe24   : > { %14091 = vmatprep.subr.bf16.mxu0 %v18740_v1 }
 0xe27   : > { %14092 = vmatpush1.bf16.msra.mxu0 %v18738_v32  ;;  %v23079_v32 = vstv %s15799_s30 }
 0xe28   : > { %14093 = vmatprep.subr.bf16.mxu0 %v18743_v9 }
 0xe2a   : > { %12843 = vmatmul.mubr.bf16.gmra.mrb[144].mxu1 %v22511_v11 }
 0xe2b   : > { %12852 = vmatprep.mubr.bf16.mxu1 %v23844_v18  ;;  %14094 = vmatpush1.bf16.msra.mxu0 %v18741_v51 }
 0xe2c   : > { %14106 = vmatprep.subr.bf16.mxu0 %v18746_v34  ;;  %v23863_v34 = vld [vmem:[#allocation102_spill] sm:$0xff] }
 0xe32   : > { %12853 = vmatmul.mubr.bf16.gmra.mrb[148].mxu1 %v22581_v4 }
 0xe33   : > { %12862 = vmatprep.mubr.bf16.mxu1 %v23844_v18 }
 0xe3a   : > { %12863 = vmatmul.mubr.bf16.gmra.mrb[152].mxu1 %v22658_v15 }
 0xe3b   : > { %12872 = vmatprep.mubr.bf16.mxu1 %v23844_v18 }
 0xe42   : > { %12873 = vmatmul.mubr.bf16.gmra.mrb[156].mxu1 %v22701_v62  ;;  %v23012_v62 = vld [vmem:[#allocation10] sm:$0xf] }
 0xe43   : > { %v12952_v10 = vrot.slane %v23012_v62, %v23861_v16  ;;  %v23034_v37 = vrot.slane %v23012_v62, %v23862_v6 }
 0xe5d   : > { %v22996_v42 = vpop.f32.mrb[96].mxu1 }
 0xe5e   : > { %v22998_v11 = vpop.f32.mrb[97].mxu1  ;;  %v12969_v38 = vadd.f32 %v12952_v10, %v22996_v42 }
 0xe5f   : > { %v23000_v59 = vpop.f32.mrb[98].mxu1  ;;  %v12970_v49 = vadd.f32 %v23034_v37, %v22998_v11 }
 0xe60   : > { %v23002_v20 = vpop.f32.mrb[99].mxu1  ;;  %v12973_v1 = vadd.f32 %v12952_v10, %v23000_v59  ;;  %vm13034_vm9 = vcmp.ge.f32.partialorder %v12969_v38, 0.0  ;;  %v13099_v11 = vmul.f32 %v23079_v32, %v12969_v38 }
 0xe61   : > { %vm13035_vm10 = vcmp.ge.f32.partialorder %v12970_v49, 0.0 }
 0xe62   : > { %vm13038_vm11 = vcmp.ge.f32.partialorder %v12973_v1, 0.0 }
 0xe65   : > { %v23004_v19 = vpop.f32.mrb[100].mxu1 }
 0xe66   : > { %v23006_v4 = vpop.f32.mrb[101].mxu1  ;;  %v12977_v9 = vadd.f32 %v12952_v10, %v23004_v19  ;;  %v13103_v19 = vmul.f32 %v23079_v32, %v12973_v1 }
 0xe67   : > { %v23008_v15 = vpop.f32.mrb[102].mxu1 }
 0xe68   : > { %v23010_v18 = vpop.f32.mrb[103].mxu1  ;;  %v12981_v51 = vadd.f32 %v12952_v10, %v23008_v15  ;;  %v13107_v15 = vmul.f32 %v23079_v32, %v12977_v9  ;;  %vm13042_vm12 = vcmp.ge.f32.partialorder %v12977_v9, 0.0 }
 0xe69   : > { %v12982_v42 = vadd.f32 %v23034_v37, %v23010_v18 }
 0xe6a   : > { %vm13046_vm14 = vcmp.ge.f32.partialorder %v12981_v51, 0.0 }
 0xe6b   : > { %vm13047_vm15 = vcmp.ge.f32.partialorder %v12982_v42, 0.0 }
 0xe6d   : > { %v12598_v35 = vpop.f32.mrb[104].mxu1 }
 0xe6e   : > { %v23016_v26 = vadd.f32 %v12952_v10, %v12598_v35  ;;  %v23018_v14 = vpop.f32.mrb[105].mxu1  ;;  %v12974_v35 = vadd.f32 %v23034_v37, %v23002_v20  ;;  %v13100_v20 = vmul.f32 %v23079_v32, %v12970_v49 }
 0xe6f   : > { %v12602_v13 = vpop.f32.mrb[106].mxu1 }
 0xe70   : > { %v23020_v61 = vadd.f32 %v12952_v10, %v12602_v13  ;;  %v23022_v30 = vpop.f32.mrb[107].mxu1  ;;  %v12978_v13 = vadd.f32 %v23034_v37, %v23006_v4  ;;  %v13104_v4 = vmul.f32 %v23079_v32, %v12974_v35  ;;  %vm13039_vm1 = vcmp.ge.f32.partialorder %v12974_v35, 0.0 }
 0xe71   : > { %vm13050_vm0 = vcmp.ge.f32.partialorder %v23016_v26, 0.0 }
 0xe72   : > { %v13108_v18 = vmul.f32 %v23079_v32, %v12978_v13  ;;  %vm13043_vm13 = vcmp.ge.f32.partialorder %v12978_v13, 0.0  ;;  %vm13054_vm3 = vcmp.ge.f32.partialorder %v23020_v61, 0.0 }
 0xe75   : > { %v12608_v54 = vpop.f32.mrb[108].mxu1 }
 0xe76   : > { %v23024_v50 = vadd.f32 %v12952_v10, %v12608_v54  ;;  %v23026_v31 = vpop.f32.mrb[109].mxu1  ;;  %v23864_v54 = vsub.s32 2, %v23863_v34 }
 0xe77   : > { %v12612_v17 = vpop.f32.mrb[110].mxu1 }
 0xe78   : > { %v23028_v46 = vadd.f32 %v12952_v10, %v12612_v17  ;;  %v23030_v55 = vpop.f32.mrb[111].mxu1  ;;  %v23094_v59 = vrot.slane %v23012_v62, %v23864_v54  ;;  %v13112_v17 = vmul.f32 %v23079_v32, %v12982_v42 }
 0xe7d   : > { %v12618_v3 = vpop.f32.mrb[112].mxu1 }
 0xe7e   : > { %v23036_v60 = vadd.f32 %v12952_v10, %v12618_v3  ;;  %v12620_v43 = vpop.f32.mrb[113].mxu1  ;;  %v12986_v3 = vadd.f32 %v23034_v37, %v23018_v14 }
 0xe7f   : > { %v23039_v2 = vadd.f32 %v23034_v37, %v12620_v43  ;;  %v12622_v5 = vpop.f32.mrb[114].mxu1  ;;  %v23865_v43 = vsub.s32 3, %v23863_v34 }
 0xe80   : > { %v23041_v29 = vadd.f32 %v12952_v10, %v12622_v5  ;;  %v12624_v58 = vpop.f32.mrb[115].mxu1  ;;  %vm13051_vm2 = vcmp.ge.f32.partialorder %v12986_v3, 0.0 }
 0xe81   : > { %v23044_v41 = vadd.f32 %v23034_v37, %v12624_v58  ;;  %v23108_v5 = vrot.slane %v23012_v62, %v23865_v43  ;;  %v23111_v58 = vsel %vm13034_vm9, %v12969_v38, %v13099_v11  ;;  %v12990_v62 = vadd.f32 %v23034_v37, %v23022_v30 }
 0xe82   : > { %v13119_v30 = vmul.f32 %v23079_v32, %v23020_v61  ;;  %vm13058_vm9 = vcmp.ge.f32.partialorder %v23024_v50, 0.0 }
 0xe83   : > { %vm13055_vm8 = vcmp.ge.f32.partialorder %v12990_v62, 0.0 }
 0xe85   : > { %v12628_v24 = vpop.f32.mrb[116].mxu1 }
 0xe86   : > { %v23046_v25 = vadd.f32 %v12952_v10, %v12628_v24  ;;  %v12630_v8 = vpop.f32.mrb[117].mxu1  ;;  %v23114_v24 = vsel %vm13035_vm10, %v12970_v49, %v13100_v20 }
 0xe87   : > { %v23049_v33 = vadd.f32 %v23034_v37, %v12630_v8  ;;  %v12632_v39 = vpop.f32.mrb[118].mxu1  ;;  %v23117_v8 = vsel %vm13038_vm11, %v12973_v1, %v13103_v19 }
 0xe88   : > { %v23051_v36 = vadd.f32 %v12952_v10, %v12632_v39  ;;  %v12634_v53 = vpop.f32.mrb[119].mxu1  ;;  %v23119_v39 = vsel %vm13039_vm1, %v12974_v35, %v13104_v4 }
 0xe89   : > { %v23054_v47 = vadd.f32 %v23034_v37, %v12634_v53  ;;  %v23121_v53 = vsel %vm13042_vm12, %v12977_v9, %v13107_v15  ;;  %v13120_v9 = vmul.f32 %v23079_v32, %v12990_v62 }
 0xe8d   : > { %v12638_v56 = vpop.f32.mrb[120].mxu1 }
 0xe8e   : > { %v23056_v7 = vadd.f32 %v12952_v10, %v12638_v56  ;;  %v12640_v52 = vpop.f32.mrb[121].mxu1  ;;  %v23123_v56 = vsel %vm13043_vm13, %v12978_v13, %v13108_v18 }
 0xe8f   : > { %v23059_v12 = vadd.f32 %v23034_v37, %v12640_v52  ;;  %v12642_v0 = vpop.f32.mrb[122].mxu1 }
 0xe90   : > { %v23061_v44 = vadd.f32 %v12952_v10, %v12642_v0  ;;  %v12644_v48 = vpop.f32.mrb[123].mxu1  ;;  %v23129_v0 = vsel %vm13047_vm15, %v12982_v42, %v13112_v17  ;;  %v12994_v42 = vadd.f32 %v23034_v37, %v23026_v31 }
 0xe91   : > { %v23064_v23 = vadd.f32 %v23034_v37, %v12644_v48  ;;  %v13115_v48 = vmul.f32 %v23079_v32, %v23016_v26 }
 0xe92   : > { %vm13059_vm10 = vcmp.ge.f32.partialorder %v12994_v42, 0.0 }
 0xe93   : > { %v23153_v4 = vsel %vm13050_vm0, %v23016_v26, %v13115_v48  ;;  %v23170_v48 = vsel %vm13055_vm8, %v12990_v62, %v13120_v9  ;;  %vm13071_vm8 = vcmp.ge.f32.partialorder %v23044_v41, 0.0 }
 0xe95   : > { %v12648_v22 = vpop.f32.mrb[124].mxu1 }
 0xe96   : > { %v23066_v63 = vadd.f32 %v12952_v10, %v12648_v22  ;;  %v12650_v27 = vpop.f32.mrb[125].mxu1 }
 0xe97   : > { %v23069_v28 = vadd.f32 %v23034_v37, %v12650_v27  ;;  %v12652_v21 = vpop.f32.mrb[126].mxu1 }
 0xe98   : > { %v23071_v57 = vadd.f32 %v12952_v10, %v12652_v21  ;;  %v12654_v40 = vpop.f32.mrb[127].mxu1  ;;  %v13111_v10 = vmul.f32 %v23079_v32, %v12981_v51  ;;  %v13116_v21 = vmul.f32 %v23079_v32, %v12986_v3 }
 0xe99   : > { %v23074_v45 = vadd.f32 %v23034_v37, %v12654_v40 }
 0xe9a   : > { %v23125_v14 = vsel %vm13046_vm14, %v12981_v51, %v13111_v10  ;;  %v23157_v31 = vsel %vm13051_vm2, %v12986_v3, %v13116_v21  ;;  %v13123_v10 = vmul.f32 %v23079_v32, %v23024_v50  ;;  %v23176_v21 = vadd.f32 %v23034_v37, %v23030_v55 }
 0xe9b   : > { %vm13062_vm14 = vcmp.ge.f32.partialorder %v23028_v46, 0.0 }
 0xe9c   : > { %vm13063_vm15 = vcmp.ge.f32.partialorder %v23176_v21, 0.0 }
 0xedd   : > { %v12804_v52 = vpop.f32.mrb[128].mxu1 }
 0xede   : > { %v12971_v22 = vadd.f32 %v23094_v59, %v12804_v52  ;;  %v12806_v27 = vpop.f32.mrb[129].mxu1  ;;  %v23165_v52 = vsel %vm13054_vm3, %v23020_v61, %v13119_v30 }
 0xedf   : > { %v12972_v40 = vadd.f32 %v23108_v5, %v12806_v27  ;;  %v12808_v38 = vpop.f32.mrb[130].mxu1 }
 0xee0   : > { %vm13036_vm4 = vcmp.ge.f32.partialorder %v12971_v22, 0.0  ;;  %v13101_v49 = vmul.f32 %v23079_v32, %v12971_v22  ;;  %v12975_v1 = vadd.f32 %v23094_v59, %v12808_v38  ;;  %v12810_v35 = vpop.f32.mrb[131].mxu1  ;;  %v23181_v38 = vsel %vm13058_vm9, %v23024_v50, %v13123_v10 }
 0xee1   : > { %vm13037_vm5 = vcmp.ge.f32.partialorder %v12972_v40, 0.0  ;;  %v13102_v13 = vmul.f32 %v23079_v32, %v12972_v40  ;;  %v12976_v51 = vadd.f32 %v23108_v5, %v12810_v35 }
 0xee2   : > { %v13165_v11 = vsel %vm13036_vm4, %v12971_v22, %v13101_v49  ;;  %vm13040_vm6 = vcmp.ge.f32.partialorder %v12975_v1, 0.0  ;;  %v13105_v34 = vmul.f32 %v23079_v32, %v12975_v1  ;;  %v13124_v22 = vmul.f32 %v23079_v32, %v12994_v42 }
 0xee3   : > { %v13227_v54 = vmax.f32 %v23111_v58, %v13165_v11  ;;  %v13166_v20 = vsel %vm13037_vm5, %v12972_v40, %v13102_v13  ;;  %vm13041_vm7 = vcmp.ge.f32.partialorder %v12976_v51, 0.0  ;;  %v13106_v19 = vmul.f32 %v23079_v32, %v12976_v51 }
 0xee4   : > { %v13228_v15 = vmax.f32 %v23114_v24, %v13166_v20  ;;  %v13169_v18 = vsel %vm13040_vm6, %v12975_v1, %v13105_v34  ;;  %v13127_v49 = vmul.f32 %v23079_v32, %v23028_v46  ;;  %v23191_v50 = vsel %vm13059_vm10, %v12994_v42, %v13124_v22 }
 0xee5   : > { %v13229_v17 = vmax.f32 %v23117_v8, %v13169_v18  ;;  %v13170_v43 = vsel %vm13041_vm7, %v12976_v51, %v13106_v19  ;;  %v12814_v58 = vpop.f32.mrb[132].mxu1  ;;  %vm13066_vm5 = vcmp.ge.f32.partialorder %v23036_v60, 0.0  ;;  %vm13067_vm6 = vcmp.ge.f32.partialorder %v23039_v2, 0.0 }
 0xee6   : > { %v13230_v26 = vmax.f32 %v23119_v39, %v13170_v43  ;;  %v12979_v24 = vadd.f32 %v23094_v59, %v12814_v58  ;;  %v12816_v3 = vpop.f32.mrb[133].mxu1  ;;  %v23202_v58 = vsel %vm13062_vm14, %v23028_v46, %v13127_v49  ;;  %vm13070_vm7 = vcmp.ge.f32.partialorder %v23041_v29, 0.0 }
 0xee7   : > { %v12980_v8 = vadd.f32 %v23108_v5, %v12816_v3  ;;  %v12818_v27 = vpop.f32.mrb[134].mxu1 }
 0xee8   : > { %vm13044_vm11 = vcmp.ge.f32.partialorder %v12979_v24, 0.0  ;;  %v13109_v61 = vmul.f32 %v23079_v32, %v12979_v24  ;;  %v12983_v39 = vadd.f32 %v23094_v59, %v12818_v27  ;;  %v12820_v40 = vpop.f32.mrb[135].mxu1 }
 0xee9   : > { %vm13045_vm1 = vcmp.ge.f32.partialorder %v12980_v8, 0.0  ;;  %v13110_v62 = vmul.f32 %v23079_v32, %v12980_v8  ;;  %v12984_v30 = vadd.f32 %v23108_v5, %v12820_v40  ;;  %v18744_v40 = vld [vmem:[#allocation12 + $0x100] ss:$8 sps:$4 sm:$0xff]  }
 0xeea   : > { %v13173_v1 = vsel %vm13044_vm11, %v12979_v24, %v13109_v61  ;;  %vm13048_vm12 = vcmp.ge.f32.partialorder %v12983_v39, 0.0  ;;  %v13113_v55 = vmul.f32 %v23079_v32, %v12983_v39 }
 0xeeb   : > { %v13231_v37 = vmax.f32 %v23121_v53, %v13173_v1  ;;  %v13174_v35 = vsel %vm13045_vm1, %v12980_v8, %v13110_v62  ;;  %vm13049_vm13 = vcmp.ge.f32.partialorder %v12984_v30, 0.0  ;;  %v13114_v9 = vmul.f32 %v23079_v32, %v12984_v30 }
 0xeec   : > { %v13232_v13 = vmax.f32 %v23123_v56, %v13174_v35  ;;  %v13177_v51 = vsel %vm13048_vm12, %v12983_v39, %v13113_v55  ;;  %v13128_v53 = vmul.f32 %v23079_v32, %v23176_v21  ;;  %v13131_v56 = vmul.f32 %v23079_v32, %v23036_v60 }
 0xeed   : > { %v13259_v11 = vmax.f32 %v13227_v54, %v13231_v37  ;;  %v13233_v34 = vmax.f32 %v23125_v14, %v13177_v51  ;;  %v13178_v20 = vsel %vm13049_vm13, %v12984_v30, %v13114_v9  ;;  %v12824_v19 = vpop.f32.mrb[136].mxu1  ;;  %v13132_v1 = vmul.f32 %v23079_v32, %v23039_v2 }
 0xeee   : > { %v13234_v18 = vmax.f32 %v23129_v0, %v13178_v20  ;;  %v12987_v42 = vadd.f32 %v23094_v59, %v12824_v19  ;;  %v12826_v10 = vpop.f32.mrb[137].mxu1  ;;  %v13260_v43 = vmax.f32 %v13228_v15, %v13232_v13  ;;  %v13136_v51 = vmul.f32 %v23079_v32, %v23044_v41  ;;  %v18747_v20 = vld [vmem:[#allocation12 + $0x110] ss:$8 sps:$4 sm:$0xff]  }
 0xeef   : > { %v13261_v54 = vmax.f32 %v13229_v17, %v13233_v34  ;;  %v12988_v14 = vadd.f32 %v23108_v5, %v12826_v10  ;;  %v12828_v24 = vpop.f32.mrb[138].mxu1  ;;  %v23239_v19 = vsel %vm13066_vm5, %v23036_v60, %v13131_v56  ;;  %v23246_v10 = vsel %vm13067_vm6, %v23039_v2, %v13132_v1 }
 0xef0   : > { %vm13052_vm0 = vcmp.ge.f32.partialorder %v12987_v42, 0.0  ;;  %v13117_v3 = vmul.f32 %v23079_v32, %v12987_v42  ;;  %v12991_v22 = vadd.f32 %v23094_v59, %v12828_v24  ;;  %v12830_v0 = vpop.f32.mrb[139].mxu1  ;;  %v13262_v8 = vmax.f32 %v13230_v26, %v13234_v18  ;;  %v18749_v26 = vld [vmem:[#allocation12 + $0x114] ss:$8 sps:$4 sm:$0xff]  }
 0xef1   : > { %v13275_v27 = vpack.c.bf16 %v13261_v54, %v13259_v11  ;;  %vm13053_vm2 = vcmp.ge.f32.partialorder %v12988_v14, 0.0  ;;  %v13118_v15 = vmul.f32 %v23079_v32, %v12988_v14  ;;  %v12992_v46 = vadd.f32 %v23108_v5, %v12830_v0 }
 0xef2   : > { %v13181_v61 = vsel %vm13052_vm0, %v12987_v42, %v13117_v3  ;;  %vm13056_vm3 = vcmp.ge.f32.partialorder %v12991_v22, 0.0  ;;  %v13121_v17 = vmul.f32 %v23079_v32, %v12991_v22  ;;  %v13276_v39 = vpack.c.bf16 %v13262_v8, %v13260_v43  ;;  %v18750_v3 = vld [vmem:[#allocation12 + $0x120] ss:$8 sps:$4 sm:$0xff]   ;;  %v18755_v8 = vld [vmem:[#allocation12 + $0x134] ss:$8 sps:$4 sm:$0xff]  }
 0xef3   : > { %v13235_v62 = vmax.f32 %v23153_v4, %v13181_v61  ;;  %v23213_v30 = vsel %vm13053_vm2, %v12988_v14, %v13118_v15  ;;  %vm13057_vm4 = vcmp.ge.f32.partialorder %v12992_v46, 0.0  ;;  %v13122_v49 = vmul.f32 %v23079_v32, %v12992_v46 }
 0xef4   : > { %v13236_v55 = vmax.f32 %v23157_v31, %v23213_v30  ;;  %v13185_v37 = vsel %vm13056_vm3, %v12991_v22, %v13121_v17  ;;  %14095 = vmatprep.mubr.bf16.mxu0 %v13276_v39  ;;  %v13135_v4 = vmul.f32 %v23079_v32, %v23041_v29  ;;  %v23258_v14 = vsel %vm13071_vm8, %v23044_v41, %v13136_v51 }
 0xef5   : > { %v13237_v35 = vmax.f32 %v23165_v52, %v13185_v37  ;;  %v23225_v9 = vsel %vm13057_vm4, %v12992_v46, %v13122_v49  ;;  %v12834_v13 = vpop.f32.mrb[140].mxu1  ;;  %14096 = vmatmul.mubr.bf16.vlgmr.msra.gmra.mrb[196].mxu0 %v13275_v27  ;;  %v13192_v52 = vsel %vm13063_vm15, %v23176_v21, %v13128_v53  ;;  %vm13074_vm12 = vcmp.ge.f32.partialorder %v23046_v25, 0.0 }
 0xef6   : > { %v13238_v31 = vmax.f32 %v23170_v48, %v23225_v9  ;;  %v12995_v11 = vadd.f32 %v23094_v59, %v12834_v13  ;;  %14107 = vmatpush1.bf16.msra.mxu0 %v18744_v40  ;;  %v12836_v34 = vpop.f32.mrb[141].mxu1  ;;  %v18752_v48 = vld [vmem:[#allocation12 + $0x124] ss:$8 sps:$4 sm:$0xff]   ;;  %v23253_v60 = vsel %vm13070_vm7, %v23041_v29, %v13135_v4  ;;  %v13139_v41 = vmul.f32 %v23079_v32, %v23046_v25 }
 0xef7   : > { %v12996_v18 = vadd.f32 %v23108_v5, %v12836_v34  ;;  %v12838_v42 = vpop.f32.mrb[142].mxu1  ;;  %14108 = vmatprep.subr.bf16.mxu0 %v18749_v26  ;;  %vm13075_vm13 = vcmp.ge.f32.partialorder %v23049_v33, 0.0  ;;  %v13140_v39 = vmul.f32 %v23079_v32, %v23049_v33  ;;  %v18753_v26 = vld [vmem:[#allocation12 + $0x130] ss:$8 sps:$4 sm:$0xff]   ;;  %v18758_v9 = vld [vmem:[#allocation12 + $0x144] ss:$8 sps:$4 sm:$0xff]  }
 0xef8   : > { %vm13060_vm9 = vcmp.ge.f32.partialorder %v12995_v11, 0.0  ;;  %v13125_v21 = vmul.f32 %v23079_v32, %v12995_v11  ;;  %v12999_v53 = vadd.f32 %v23094_v59, %v12838_v42  ;;  %v12840_v43 = vpop.f32.mrb[143].mxu1  ;;  %v18756_v42 = vld [vmem:[#allocation12 + $0x140] ss:$8 sps:$4 sm:$0xff]   ;;  %vm13078_vm3 = vcmp.ge.f32.partialorder %v23051_v36, 0.0 }
 0xef9   : > { %vm13061_vm10 = vcmp.ge.f32.partialorder %v12996_v18, 0.0  ;;  %v13126_v56 = vmul.f32 %v23079_v32, %v12996_v18  ;;  %v13000_v54 = vadd.f32 %v23108_v5, %v12840_v43  ;;  %v18761_v43 = vld [vmem:[#allocation12 + $0x154] ss:$8 sps:$4 sm:$0xff]   ;;  %vm13079_vm4 = vcmp.ge.f32.partialorder %v23054_v47, 0.0 }
 0xefa   : > { %v13189_v2 = vsel %vm13060_vm9, %v12995_v11, %v13125_v21  ;;  %vm13064_vm11 = vcmp.ge.f32.partialorder %v12999_v53, 0.0  ;;  %v13129_v24 = vmul.f32 %v23079_v32, %v12999_v53  ;;  %14109 = vmatpush1.bf16.msra.mxu0 %v18747_v20  ;;  %vm13082_vm5 = vcmp.ge.f32.partialorder %v23056_v7, 0.0 }
 0xefb   : > { %v13239_v22 = vmax.f32 %v23181_v38, %v13189_v2  ;;  %v13190_v0 = vsel %vm13061_vm10, %v12996_v18, %v13126_v56  ;;  %vm13065_vm1 = vcmp.ge.f32.partialorder %v13000_v54, 0.0  ;;  %v13130_v29 = vmul.f32 %v23079_v32, %v13000_v54  ;;  %14110 = vmatprep.subr.bf16.mxu0 %v18752_v48 }
 0xefc   : > { %v13240_v27 = vmax.f32 %v23191_v50, %v13190_v0  ;;  %v13193_v15 = vsel %vm13064_vm11, %v12999_v53, %v13129_v24  ;;  %v13143_v50 = vmul.f32 %v23079_v32, %v23051_v36  ;;  %v13147_v2 = vmul.f32 %v23079_v32, %v23056_v7 }
 0xefd   : > { %v23268_v46 = vmax.f32 %v13235_v62, %v13239_v22  ;;  %v13241_v38 = vmax.f32 %v23202_v58, %v13193_v15  ;;  %v13194_v61 = vsel %vm13065_vm1, %v13000_v54, %v13130_v29  ;;  %v12844_v17 = vpop.f32.mrb[144].mxu1  ;;  %v13144_v62 = vmul.f32 %v23079_v32, %v23054_v47 }
 0xefe   : > { %v13242_v40 = vmax.f32 %v13192_v52, %v13194_v61  ;;  %v13003_v30 = vadd.f32 %v23094_v59, %v12844_v17  ;;  %14111 = vmatpush1.bf16.msra.mxu0 %v18750_v3  ;;  %v12846_v49 = vpop.f32.mrb[145].mxu1  ;;  %v13264_v1 = vmax.f32 %v13236_v55, %v13240_v27  ;;  %v13204_v0 = vsel %vm13075_vm13, %v23049_v33, %v13140_v39 }
 0xeff   : > { %v23278_v37 = vmax.f32 %v13237_v35, %v13241_v38  ;;  %v13004_v58 = vadd.f32 %v23108_v5, %v12846_v49  ;;  %v12848_v4 = vpop.f32.mrb[146].mxu1  ;;  %14112 = vmatprep.subr.bf16.mxu0 %v18755_v8  ;;  %v18759_v8 = vld [vmem:[#allocation12 + $0x150] ss:$8 sps:$4 sm:$0xff]   ;;  %vm13083_vm6 = vcmp.ge.f32.partialorder %v23059_v12, 0.0  ;;  %v13148_v15 = vmul.f32 %v23079_v32, %v23059_v12 }
 0xf00   : > { %vm13068_vm14 = vcmp.ge.f32.partialorder %v13003_v30, 0.0  ;;  %v13133_v13 = vmul.f32 %v23079_v32, %v13003_v30  ;;  %v13007_v51 = vadd.f32 %v23094_v59, %v12848_v4  ;;  %v12850_v11 = vpop.f32.mrb[147].mxu1  ;;  %v13266_v55 = vmax.f32 %v13238_v31, %v13242_v40 }
 0xf01   : > { %vm13069_vm15 = vcmp.ge.f32.partialorder %v13004_v58, 0.0  ;;  %v13134_v34 = vmul.f32 %v23079_v32, %v13004_v58  ;;  %v13008_v20 = vadd.f32 %v23108_v5, %v12850_v11  ;;  %v13277_v35 = vpack.c.bf16 %v23278_v37, %v23268_v46  ;;  %v18809_v46 = vld [vmem:[#allocation12 + $0x254] ss:$8 sps:$4 sm:$0xff]   ;;  %v18807_v37 = vld [vmem:[#allocation12 + $0x250] ss:$8 sps:$4 sm:$0xff]  }
 0xf02   : > { %v23287_v52 = vsel %vm13068_vm14, %v13003_v30, %v13133_v13  ;;  %vm13072_vm0 = vcmp.ge.f32.partialorder %v13007_v51, 0.0  ;;  %v13137_v18 = vmul.f32 %v23079_v32, %v13007_v51  ;;  %14113 = vmatpush1.bf16.msra.mxu0 %v18753_v26  ;;  %v13278_v48 = vpack.c.bf16 %v13266_v55, %v13264_v1  ;;  %v18762_v26 = vld [vmem:[#allocation12 + $0x160] ss:$8 sps:$4 sm:$0xff]  }
 0xf03   : > { %v13243_v21 = vmax.f32 %v23239_v19, %v23287_v52  ;;  %v23292_v31 = vsel %vm13069_vm15, %v13004_v58, %v13134_v34  ;;  %vm13073_vm2 = vcmp.ge.f32.partialorder %v13008_v20, 0.0  ;;  %v13138_v53 = vmul.f32 %v23079_v32, %v13008_v20  ;;  %14114 = vmatprep.subr.bf16.mxu0 %v18758_v9 }
 0xf04   : > { %v13244_v56 = vmax.f32 %v23246_v10, %v23292_v31  ;;  %v13201_v54 = vsel %vm13072_vm0, %v13007_v51, %v13137_v18  ;;  %14138 = vmatprep.mubr.bf16.mxu0 %v13278_v48  ;;  %v13203_v19 = vsel %vm13074_vm12, %v23046_v25, %v13139_v41  ;;  %v13208_v41 = vsel %vm13079_vm4, %v23054_v47, %v13144_v62  ;;  %v18767_v62 = vld [vmem:[#allocation12 + $0x174] ss:$8 sps:$4 sm:$0xff]   ;;  %v18765_v18 = vld [vmem:[#allocation12 + $0x170] ss:$8 sps:$4 sm:$0xff]  }
 0xf05   : > { %v13245_v24 = vmax.f32 %v23253_v60, %v13201_v54  ;;  %v23305_v3 = vsel %vm13073_vm2, %v13008_v20, %v13138_v53  ;;  %v12854_v22 = vpop.f32.mrb[148].mxu1  ;;  %v13207_v60 = vsel %vm13078_vm3, %v23051_v36, %v13143_v50  ;;  %v23329_v47 = vsel %vm13082_vm5, %v23056_v7, %v13147_v2  ;;  %v18770_v54 = vld [vmem:[#allocation12 + $0x184] ss:$8 sps:$4 sm:$0xff]  }
 0xf06   : > { %v13246_v10 = vmax.f32 %v23258_v14, %v23305_v3  ;;  %v13011_v29 = vadd.f32 %v23094_v59, %v12854_v22  ;;  %14115 = vmatpush1.bf16.msra.mxu0 %v18756_v42  ;;  %v12856_v25 = vpop.f32.mrb[149].mxu1  ;;  %v18764_v14 = vld [vmem:[#allocation12 + $0x164] ss:$8 sps:$4 sm:$0xff]   ;;  %v13151_v40 = vmul.f32 %v23079_v32, %v23061_v44  ;;  %v23340_v58 = vsel %vm13083_vm6, %v23059_v12, %v13148_v15 }
 0xf07   : > { %v13012_v33 = vadd.f32 %v23108_v5, %v12856_v25  ;;  %v12858_v27 = vpop.f32.mrb[150].mxu1  ;;  %14116 = vmatprep.subr.bf16.mxu0 %v18761_v43  ;;  %vm13086_vm11 = vcmp.ge.f32.partialorder %v23061_v44, 0.0  ;;  %vm13087_vm1 = vcmp.ge.f32.partialorder %v23064_v23, 0.0  ;;  %v13152_v34 = vmul.f32 %v23079_v32, %v23064_v23  ;;  %v18768_v25 = vld [vmem:[#allocation12 + $0x180] ss:$8 sps:$4 sm:$0xff]  }
 0xf08   : > { %vm13076_vm7 = vcmp.ge.f32.partialorder %v13011_v29, 0.0  ;;  %v13141_v38 = vmul.f32 %v23079_v32, %v13011_v29  ;;  %v13015_v61 = vadd.f32 %v23094_v59, %v12858_v27  ;;  %v12860_v36 = vpop.f32.mrb[151].mxu1  ;;  %v23352_v48 = vsel %vm13086_vm11, %v23061_v44, %v13151_v40 }
 0xf09   : > { %vm13077_vm8 = vcmp.ge.f32.partialorder %v13012_v33, 0.0  ;;  %v13142_v17 = vmul.f32 %v23079_v32, %v13012_v33  ;;  %v13016_v39 = vadd.f32 %v23108_v5, %v12860_v36  ;;  %vm13090_vm0 = vcmp.ge.f32.partialorder %v23066_v63, 0.0 }
 0xf0a   : > { %v13205_v30 = vsel %vm13076_vm7, %v13011_v29, %v13141_v38  ;;  %vm13080_vm9 = vcmp.ge.f32.partialorder %v13015_v61, 0.0  ;;  %v13145_v49 = vmul.f32 %v23079_v32, %v13015_v61  ;;  %14117 = vmatpush1.bf16.msra.mxu0 %v18759_v8  ;;  %v13156_v27 = vmul.f32 %v23079_v32, %v23069_v28 }
 0xf0b   : > { %v13247_v1 = vmax.f32 %v13203_v19, %v13205_v30  ;;  %v13206_v50 = vsel %vm13077_vm8, %v13012_v33, %v13142_v17  ;;  %vm13081_vm10 = vcmp.ge.f32.partialorder %v13016_v39, 0.0  ;;  %v13146_v7 = vmul.f32 %v23079_v32, %v13016_v39  ;;  %14118 = vmatprep.subr.bf16.mxu0 %v18764_v14  ;;  %v18773_v33 = vld [vmem:[#allocation12 + $0x194] ss:$8 sps:$4 sm:$0xff]   ;;  %v18771_v30 = vld [vmem:[#allocation12 + $0x190] ss:$8 sps:$4 sm:$0xff]  }
 0xf0c   : > { %v13248_v4 = vmax.f32 %v13204_v0, %v13206_v50  ;;  %v13209_v9 = vsel %vm13080_vm9, %v13015_v61, %v13145_v49  ;;  %v13216_v38 = vsel %vm13087_vm1, %v23064_v23, %v13152_v34  ;;  %vm13091_vm2 = vcmp.ge.f32.partialorder %v23069_v28, 0.0  ;;  %v18776_v50 = vld [vmem:[#allocation12 + $0x1a4] ss:$8 sps:$4 sm:$0xff]  }
 0xf0d   : > { %v23344_v13 = vmax.f32 %v13243_v21, %v13247_v1  ;;  %v13249_v51 = vmax.f32 %v13207_v60, %v13209_v9  ;;  %v13210_v11 = vsel %vm13081_vm10, %v13016_v39, %v13146_v7  ;;  %v12864_v55 = vpop.f32.mrb[152].mxu1  ;;  %v13155_v21 = vmul.f32 %v23079_v32, %v23066_v63 }
 0xf0e   : > { %v13250_v20 = vmax.f32 %v13208_v41, %v13210_v11  ;;  %v13019_v52 = vadd.f32 %v23094_v59, %v12864_v55  ;;  %14119 = vmatpush1.bf16.msra.mxu0 %v18762_v26  ;;  %v12866_v12 = vpop.f32.mrb[153].mxu1  ;;  %v23349_v42 = vmax.f32 %v13244_v56, %v13248_v4  ;;  %vm13094_vm3 = vcmp.ge.f32.partialorder %v23071_v57, 0.0  ;;  %v18774_v55 = vld [vmem:[#allocation12 + $0x1a0] ss:$8 sps:$4 sm:$0xff]  }
 0xf0f   : > { %v23356_v31 = vmax.f32 %v13245_v24, %v13249_v51  ;;  %v13020_v53 = vadd.f32 %v23108_v5, %v12866_v12  ;;  %v12868_v43 = vpop.f32.mrb[154].mxu1  ;;  %14120 = vmatprep.subr.bf16.mxu0 %v18767_v62  ;;  %v13219_v49 = vsel %vm13090_vm0, %v23066_v63, %v13155_v21  ;;  %v13159_v26 = vmul.f32 %v23079_v32, %v23071_v57 }
 0xf10   : > { %vm13084_vm12 = vcmp.ge.f32.partialorder %v13019_v52, 0.0  ;;  %v13149_v19 = vmul.f32 %v23079_v32, %v13019_v52  ;;  %v13023_v2 = vadd.f32 %v23094_v59, %v12868_v43  ;;  %v12870_v56 = vpop.f32.mrb[155].mxu1  ;;  %v23361_v3 = vmax.f32 %v13246_v10, %v13250_v20 }
 0xf11   : > { %vm13085_vm13 = vcmp.ge.f32.partialorder %v13020_v53, 0.0  ;;  %v13150_v44 = vmul.f32 %v23079_v32, %v13020_v53  ;;  %v13024_v22 = vadd.f32 %v23108_v5, %v12870_v56  ;;  %v13279_v24 = vpack.c.bf16 %v23356_v31, %v23344_v13  ;;  %v18782_v56 = vld [vmem:[#allocation12 + $0x1c4] ss:$8 sps:$4 sm:$0xff]   ;;  %v18857_v13 = vld [vmem:[#allocation12 + $0x354] ss:$8 sps:$4 sm:$0xff]  }
 0xf12   : > { %v13213_v0 = vsel %vm13084_vm12, %v13019_v52, %v13149_v19  ;;  %vm13088_vm14 = vcmp.ge.f32.partialorder %v13023_v2, 0.0  ;;  %v13153_v29 = vmul.f32 %v23079_v32, %v13023_v2  ;;  %14121 = vmatpush1.bf16.msra.mxu0 %v18765_v18  ;;  %v13280_v8 = vpack.c.bf16 %v23361_v3, %v23349_v42  ;;  %v18779_v52 = vld [vmem:[#allocation12 + $0x1b4] ss:$8 sps:$4 sm:$0xff]   ;;  %v18777_v19 = vld [vmem:[#allocation12 + $0x1b0] ss:$8 sps:$4 sm:$0xff]  }
 0xf13   : > { %v13251_v10 = vmax.f32 %v23329_v47, %v13213_v0  ;;  %v13214_v60 = vsel %vm13085_vm13, %v13020_v53, %v13150_v44  ;;  %vm13089_vm15 = vcmp.ge.f32.partialorder %v13024_v22, 0.0  ;;  %v13154_v41 = vmul.f32 %v23079_v32, %v13024_v22  ;;  %14122 = vmatprep.subr.bf16.mxu0 %v18770_v54  ;;  %v18785_v0 = vld [vmem:[#allocation12 + $0x1d4] ss:$8 sps:$4 sm:$0xff]   ;;  %v18810_v42 = vld [vmem:[#allocation12 + $0x260] ss:$8 sps:$4 sm:$0xff]  }
 0xf14   : > { %v13252_v14 = vmax.f32 %v23340_v58, %v13214_v60  ;;  %v13217_v15 = vsel %vm13088_vm14, %v13023_v2, %v13153_v29  ;;  %v13220_v7 = vsel %vm13091_vm2, %v23069_v28, %v13156_v27  ;;  %v13160_v4 = vmul.f32 %v23079_v32, %v23074_v45  ;;  %v18783_v29 = vld [vmem:[#allocation12 + $0x1d0] ss:$8 sps:$4 sm:$0xff]   ;;  %v18791_v60 = vld [vmem:[#allocation12 + $0x1f4] ss:$8 sps:$4 sm:$0xff]   ;;  %v18792_v27 = vld [vmem:[#allocation12 + $0x200] ss:$8 sps:$4 sm:$0xff]  }
 0xf15   : > { %v13253_v61 = vmax.f32 %v23352_v48, %v13217_v15  ;;  %v13218_v36 = vsel %vm13089_vm15, %v13024_v22, %v13154_v41  ;;  %v12874_v47 = vpop.f32.mrb[156].mxu1  ;;  %vm13095_vm6 = vcmp.ge.f32.partialorder %v23074_v45, 0.0  ;;  %v13223_v12 = vsel %vm13094_vm3, %v23071_v57, %v13159_v26  ;;  %v18789_v41 = vld [vmem:[#allocation12 + $0x1f0] ss:$8 sps:$4 sm:$0xff]   ;;  %v18815_v3 = vld [vmem:[#allocation12 + $0x274] ss:$8 sps:$4 sm:$0xff]  }
 0xf16   : > { %v13254_v17 = vmax.f32 %v13216_v38, %v13218_v36  ;;  %v13027_v39 = vadd.f32 %v23094_v59, %v12874_v47  ;;  %14123 = vmatpush1.bf16.msra.mxu0 %v18768_v25  ;;  %v12876_v40 = vpop.f32.mrb[157].mxu1  ;;  %v13224_v48 = vsel %vm13095_vm6, %v23074_v45, %v13160_v4  ;;  %v18780_v45 = vld [vmem:[#allocation12 + $0x1c0] ss:$8 sps:$4 sm:$0xff]   ;;  %v18788_v25 = vld [vmem:[#allocation12 + $0x1e4] ss:$8 sps:$4 sm:$0xff]   ;;  %vm14690_vm0 = vcmask 15360  }
 0xf17   : > { %v13028_v23 = vadd.f32 %v23108_v5, %v12876_v40  ;;  %v12878_v1 = vpop.f32.mrb[158].mxu1  ;;  %14124 = vmatprep.subr.bf16.mxu0 %v18773_v33  ;;  %v18794_v33 = vld [vmem:[#allocation12 + $0x204] ss:$8 sps:$4 sm:$0xff]   ;;  %v18795_v15 = vld [vmem:[#allocation12 + $0x210] ss:$8 sps:$4 sm:$0xff]  }
 0xf18   : > { %vm13092_vm4 = vcmp.ge.f32.partialorder %v13027_v39, 0.0  ;;  %v13157_v62 = vmul.f32 %v23079_v32, %v13027_v39  ;;  %v13031_v58 = vadd.f32 %v23094_v59, %v12878_v1  ;;  %v12880_v63 = vpop.f32.mrb[159].mxu1  ;;  %v18800_v38 = vld [vmem:[#allocation12 + $0x224] ss:$8 sps:$4 sm:$0xff]   ;;  %v18803_v36 = vld [vmem:[#allocation12 + $0x234] ss:$8 sps:$4 sm:$0xff]  }
 0xf19   : > { %vm13093_vm5 = vcmp.ge.f32.partialorder %v13028_v23, 0.0  ;;  %v13158_v9 = vmul.f32 %v23079_v32, %v13028_v23  ;;  %v13032_v51 = vadd.f32 %v23108_v5, %v12880_v63  ;;  %v18801_v47 = vld [vmem:[#allocation12 + $0x230] ss:$8 sps:$4 sm:$0xff]   ;;  %v18818_v40 = vld [vmem:[#allocation12 + $0x284] ss:$8 sps:$4 sm:$0xff]  }
 0xf1a   : > { %v13221_v11 = vsel %vm13092_vm4, %v13027_v39, %v13157_v62  ;;  %vm13096_vm7 = vcmp.ge.f32.partialorder %v13031_v58, 0.0  ;;  %v13161_v28 = vmul.f32 %v23079_v32, %v13031_v58  ;;  %14125 = vmatpush1.bf16.msra.mxu0 %v18771_v30  ;;  %v18804_v39 = vld [vmem:[#allocation12 + $0x240] ss:$8 sps:$4 sm:$0xff]   ;;  %v18819_v26 = vld [vmem:[#allocation12 + $0x290] ss:$8 sps:$4 sm:$0xff]  }
 0xf1b   : > { %v13255_v34 = vmax.f32 %v13219_v49, %v13221_v11  ;;  %v13222_v20 = vsel %vm13093_vm5, %v13028_v23, %v13158_v9  ;;  %vm13097_vm8 = vcmp.ge.f32.partialorder %v13032_v51, 0.0  ;;  %v13162_v59 = vmul.f32 %v23079_v32, %v13032_v51  ;;  %14126 = vmatprep.subr.bf16.mxu0 %v18776_v50  ;;  %v18816_v30 = vld [vmem:[#allocation12 + $0x280] ss:$8 sps:$4 sm:$0xff]   ;;  %v18821_v49 = vld [vmem:[#allocation12 + $0x294] ss:$8 sps:$4 sm:$0xff]  }
 0xf1c   : > { %v13256_v5 = vmax.f32 %v13220_v7, %v13222_v20  ;;  %v13225_v18 = vsel %vm13096_vm7, %v13031_v58, %v13161_v28  ;;  %v18824_v23 = vld [vmem:[#allocation12 + $0x2a4] ss:$8 sps:$4 sm:$0xff]   ;;  %v18822_v1 = vld [vmem:[#allocation12 + $0x2a0] ss:$8 sps:$4 sm:$0xff]   ;;  %v18827_v50 = vld [vmem:[#allocation12 + $0x2b4] ss:$8 sps:$4 sm:$0xff]  }
 0xf1d   : > { %v23403_v21 = vmax.f32 %v13251_v10, %v13255_v34  ;;  %v13257_v53 = vmax.f32 %v13223_v12, %v13225_v18  ;;  %v13226_v43 = vsel %vm13097_vm8, %v13032_v51, %v13162_v59  ;;  %v18786_v10 = vld [vmem:[#allocation12 + $0x1e0] ss:$8 sps:$4 sm:$0xff]   ;;  %v18825_v7 = vld [vmem:[#allocation12 + $0x2b0] ss:$8 sps:$4 sm:$0xff]   ;;  %v18830_v62 = vld [vmem:[#allocation12 + $0x2c4] ss:$8 sps:$4 sm:$0xff]  }
 0xf1e   : > { %v13258_v54 = vmax.f32 %v13224_v48, %v13226_v43  ;;  %14127 = vmatpush1.bf16.msra.mxu0 %v18774_v55  ;;  %v23405_v2 = vmax.f32 %v13252_v14, %v13256_v5  ;;  %v18797_v14 = vld [vmem:[#allocation12 + $0x214] ss:$8 sps:$4 sm:$0xff]   ;;  %v18828_v58 = vld [vmem:[#allocation12 + $0x2c0] ss:$8 sps:$4 sm:$0xff]   ;;  %v18831_v4 = vld [vmem:[#allocation12 + $0x2d0] ss:$8 sps:$4 sm:$0xff]  }
 0xf1f   : > { %v23407_v32 = vmax.f32 %v13253_v61, %v13257_v53  ;;  %14128 = vmatprep.subr.bf16.mxu0 %v18779_v52  ;;  %v18798_v61 = vld [vmem:[#allocation12 + $0x220] ss:$8 sps:$4 sm:$0xff]   ;;  %v18833_v63 = vld [vmem:[#allocation12 + $0x2d4] ss:$8 sps:$4 sm:$0xff]   ;;  %v18836_v9 = vld [vmem:[#allocation12 + $0x2e4] ss:$8 sps:$4 sm:$0xff]  }
 0xf20   : > { %v23409_v44 = vmax.f32 %v13254_v17, %v13258_v54  ;;  %v18806_v17 = vld [vmem:[#allocation12 + $0x244] ss:$8 sps:$4 sm:$0xff]   ;;  %v18834_v51 = vld [vmem:[#allocation12 + $0x2e0] ss:$8 sps:$4 sm:$0xff]   ;;  %v18839_v11 = vld [vmem:[#allocation12 + $0x2f4] ss:$8 sps:$4 sm:$0xff]  }
 0xf21   : > { %v13281_v57 = vpack.c.bf16 %v23407_v32, %v23403_v21  ;;  %v18837_v28 = vld [vmem:[#allocation12 + $0x2f0] ss:$8 sps:$4 sm:$0xff]   ;;  %v18842_v55 = vld [vmem:[#allocation12 + $0x304] ss:$8 sps:$4 sm:$0xff]   ;;  %v18840_v34 = vld [vmem:[#allocation12 + $0x300] ss:$8 sps:$4 sm:$0xff]  }
 0xf22   : > { %14129 = vmatpush1.bf16.msra.mxu0 %v18777_v19  ;;  %v13282_v22 = vpack.c.bf16 %v23409_v44, %v23405_v2  ;;  %v18845_v20 = vld [vmem:[#allocation12 + $0x314] ss:$8 sps:$4 sm:$0xff]   ;;  %v18843_v59 = vld [vmem:[#allocation12 + $0x310] ss:$8 sps:$4 sm:$0xff]   ;;  %v18848_v52 = vld [vmem:[#allocation12 + $0x324] ss:$8 sps:$4 sm:$0xff]  }
 0xf23   : > { %14130 = vmatprep.subr.bf16.mxu0 %v18782_v56  ;;  %v18846_v12 = vld [vmem:[#allocation12 + $0x320] ss:$8 sps:$4 sm:$0xff]   ;;  %v18851_v5 = vld [vmem:[#allocation12 + $0x334] ss:$8 sps:$4 sm:$0xff]   ;;  %v18849_v18 = vld [vmem:[#allocation12 + $0x330] ss:$8 sps:$4 sm:$0xff]  }
 0xf24   : > { %v18854_v48 = vld [vmem:[#allocation12 + $0x344] ss:$8 sps:$4 sm:$0xff]   ;;  %v18852_v53 = vld [vmem:[#allocation12 + $0x340] ss:$8 sps:$4 sm:$0xff]   ;;  %v18855_v31 = vld [vmem:[#allocation12 + $0x350] ss:$8 sps:$4 sm:$0xff]  }
 0xf25   : > { %v18858_v43 = vld [vmem:[#allocation12 + $0x360] ss:$8 sps:$4 sm:$0xff]   ;;  %v18863_v54 = vld [vmem:[#allocation12 + $0x374] ss:$8 sps:$4 sm:$0xff]   ;;  %v18861_v19 = vld [vmem:[#allocation12 + $0x370] ss:$8 sps:$4 sm:$0xff]  }
 0xf26   : > { %14131 = vmatpush1.bf16.msra.mxu0 %v18780_v45  ;;  %v18866_v2 = vld [vmem:[#allocation12 + $0x384] ss:$8 sps:$4 sm:$0xff]   ;;  %v18864_v56 = vld [vmem:[#allocation12 + $0x380] ss:$8 sps:$4 sm:$0xff]   ;;  %v18869_v44 = vld [vmem:[#allocation12 + $0x394] ss:$8 sps:$4 sm:$0xff]  }
 0xf27   : > { %14132 = vmatprep.subr.bf16.mxu0 %v18785_v0  ;;  %v18867_v45 = vld [vmem:[#allocation12 + $0x390] ss:$8 sps:$4 sm:$0xff]   ;;  %v18870_v0 = vld [vmem:[#allocation12 + $0x3a0] ss:$8 sps:$4 sm:$0xff]  }
 0xf28   : > { %v18908_v21 = vld [vmem:[#allocation15 + $0x64] ss:$8 sps:$4 sm:$0xff]   ;;  %v18906_v32 = vld [vmem:[#allocation15 + $0x60] ss:$8 sps:$4 sm:$0xff]  }
 0xf2a   : > { %14133 = vmatpush1.bf16.msra.mxu0 %v18783_v29  ;;  %v18875_v29 = vld [vmem:[#allocation12 + $0x3b4] ss:$8 sps:$4 sm:$0xff]  }
 0xf2b   : > { %14134 = vmatprep.subr.bf16.mxu0 %v18788_v25  ;;  %v18873_v25 = vld [vmem:[#allocation12 + $0x3b0] ss:$8 sps:$4 sm:$0xff]  }
 0xf2e   : > { %14135 = vmatpush1.bf16.msra.mxu0 %v18786_v10  ;;  %v18878_v10 = vld [vmem:[#allocation12 + $0x3c4] ss:$8 sps:$4 sm:$0xff]  }
 0xf2f   : > { %14136 = vmatprep.subr.bf16.mxu0 %v18791_v60  ;;  %v18876_v60 = vld [vmem:[#allocation12 + $0x3c0] ss:$8 sps:$4 sm:$0xff]  }
 0xf32   : > { %14137 = vmatpush1.bf16.msra.mxu0 %v18789_v41  ;;  %v18881_v41 = vld [vmem:[#allocation12 + $0x3d4] ss:$8 sps:$4 sm:$0xff]  }
 0xf33   : > { %14149 = vmatprep.subr.bf16.mxu0 %v18794_v33  ;;  %v18879_v33 = vld [vmem:[#allocation12 + $0x3d0] ss:$8 sps:$4 sm:$0xff]  }
 0xf35   : > { %14139 = vmatmul.mubr.bf16.vlgmr.msra.gmra.mrb[196].mxu0 %v13277_v35  ;;  %v18812_v35 = vld [vmem:[#allocation12 + $0x264] ss:$8 sps:$4 sm:$0xff]  }
 0xf36   : > { %14150 = vmatpush1.bf16.msra.mxu0 %v18792_v27  ;;  %14181 = vmatprep.mubr.bf16.mxu0 %v13280_v8  ;;  %v18813_v8 = vld [vmem:[#allocation12 + $0x270] ss:$8 sps:$4 sm:$0xff]   ;;  %v18884_v27 = vld [vmem:[#allocation12 + $0x3e4] ss:$8 sps:$4 sm:$0xff]  }
 0xf37   : > { %14151 = vmatprep.subr.bf16.mxu0 %v18797_v14  ;;  %v18882_v14 = vld [vmem:[#allocation12 + $0x3e0] ss:$8 sps:$4 sm:$0xff]  }
 0xf3a   : > { %14152 = vmatpush1.bf16.msra.mxu0 %v18795_v15  ;;  %v18887_v15 = vld [vmem:[#allocation12 + $0x3f4] ss:$8 sps:$4 sm:$0xff]  }
 0xf3b   : > { %14153 = vmatprep.subr.bf16.mxu0 %v18800_v38  ;;  %v18885_v38 = vld [vmem:[#allocation12 + $0x3f0] ss:$8 sps:$4 sm:$0xff]  }
 0xf3e   : > { %14154 = vmatpush1.bf16.msra.mxu0 %v18798_v61  ;;  %v18890_v61 = vld [vmem:[#allocation15 + $0x4] ss:$8 sps:$4 sm:$0xff]  }
 0xf3f   : > { %14155 = vmatprep.subr.bf16.mxu0 %v18803_v36  ;;  %v18888_v36 = vld [vmem:[#allocation15] ss:$8 sps:$4 sm:$0xff]  }
 0xf42   : > { %14156 = vmatpush1.bf16.msra.mxu0 %v18801_v47  ;;  %v18893_v47 = vld [vmem:[#allocation15 + $0x14] ss:$8 sps:$4 sm:$0xff]  }
 0xf43   : > { %14157 = vmatprep.subr.bf16.mxu0 %v18806_v17  ;;  %v18891_v17 = vld [vmem:[#allocation15 + $0x10] ss:$8 sps:$4 sm:$0xff]  }
 0xf46   : > { %14158 = vmatpush1.bf16.msra.mxu0 %v18804_v39  ;;  %v18896_v39 = vld [vmem:[#allocation15 + $0x24] ss:$8 sps:$4 sm:$0xff]  }
 0xf47   : > { %14159 = vmatprep.subr.bf16.mxu0 %v18809_v46  ;;  %v18894_v46 = vld [vmem:[#allocation15 + $0x20] ss:$8 sps:$4 sm:$0xff]  }
 0xf4a   : > { %14160 = vmatpush1.bf16.msra.mxu0 %v18807_v37  ;;  %v18899_v37 = vld [vmem:[#allocation15 + $0x34] ss:$8 sps:$4 sm:$0xff]  }
 0xf4b   : > { %14161 = vmatprep.subr.bf16.mxu0 %v18812_v35  ;;  %v18897_v35 = vld [vmem:[#allocation15 + $0x30] ss:$8 sps:$4 sm:$0xff]  }
 0xf4e   : > { %14162 = vmatpush1.bf16.msra.mxu0 %v18810_v42  ;;  %v18902_v42 = vld [vmem:[#allocation15 + $0x44] ss:$8 sps:$4 sm:$0xff]  }
 0xf4f   : > { %14163 = vmatprep.subr.bf16.mxu0 %v18815_v3  ;;  %v18900_v3 = vld [vmem:[#allocation15 + $0x40] ss:$8 sps:$4 sm:$0xff]  }
 0xf52   : > { %14164 = vmatpush1.bf16.msra.mxu0 %v18813_v8  ;;  %v18905_v8 = vld [vmem:[#allocation15 + $0x54] ss:$8 sps:$4 sm:$0xff]  }
 0xf53   : > { %14165 = vmatprep.subr.bf16.mxu0 %v18818_v40  ;;  %v18903_v40 = vld [vmem:[#allocation15 + $0x50] ss:$8 sps:$4 sm:$0xff]  }
 0xf56   : > { %14166 = vmatpush1.bf16.msra.mxu0 %v18816_v30  ;;  %v18909_v30 = vld [vmem:[#allocation15 + $0x70] ss:$8 sps:$4 sm:$0xff]  }
 0xf57   : > { %14167 = vmatprep.subr.bf16.mxu0 %v18821_v49  ;;  %v18914_v49 = vld [vmem:[#allocation15 + $0x84] ss:$8 sps:$4 sm:$0xff]  }
 0xf5a   : > { %14168 = vmatpush1.bf16.msra.mxu0 %v18819_v26  ;;  %v18912_v26 = vld [vmem:[#allocation15 + $0x80] ss:$8 sps:$4 sm:$0xff]  }
 0xf5b   : > { %14169 = vmatprep.subr.bf16.mxu0 %v18824_v23  ;;  %v18917_v23 = vld [vmem:[#allocation15 + $0x94] ss:$8 sps:$4 sm:$0xff]  }
 0xf5e   : > { %14170 = vmatpush1.bf16.msra.mxu0 %v18822_v1  ;;  %v18915_v1 = vld [vmem:[#allocation15 + $0x90] ss:$8 sps:$4 sm:$0xff]  }
 0xf5f   : > { %14171 = vmatprep.subr.bf16.mxu0 %v18827_v50  ;;  %v18920_v50 = vld [vmem:[#allocation15 + $0xa4] ss:$8 sps:$4 sm:$0xff]  }
 0xf62   : > { %14172 = vmatpush1.bf16.msra.mxu0 %v18825_v7  ;;  %v18918_v7 = vld [vmem:[#allocation15 + $0xa0] ss:$8 sps:$4 sm:$0xff]  }
 0xf63   : > { %14173 = vmatprep.subr.bf16.mxu0 %v18830_v62  ;;  %v18923_v62 = vld [vmem:[#allocation15 + $0xb4] ss:$8 sps:$4 sm:$0xff]  }
 0xf66   : > { %14174 = vmatpush1.bf16.msra.mxu0 %v18828_v58  ;;  %v18921_v58 = vld [vmem:[#allocation15 + $0xb0] ss:$8 sps:$4 sm:$0xff]  }
 0xf67   : > { %14175 = vmatprep.subr.bf16.mxu0 %v18833_v63  ;;  %v18926_v63 = vld [vmem:[#allocation15 + $0xc4] ss:$8 sps:$4 sm:$0xff]  }
 0xf6a   : > { %14176 = vmatpush1.bf16.msra.mxu0 %v18831_v4  ;;  %v18924_v4 = vld [vmem:[#allocation15 + $0xc0] ss:$8 sps:$4 sm:$0xff]  }
 0xf6b   : > { %14177 = vmatprep.subr.bf16.mxu0 %v18836_v9  ;;  %v18929_v9 = vld [vmem:[#allocation15 + $0xd4] ss:$8 sps:$4 sm:$0xff]  }
 0xf6e   : > { %14178 = vmatpush1.bf16.msra.mxu0 %v18834_v51  ;;  %v18927_v51 = vld [vmem:[#allocation15 + $0xd0] ss:$8 sps:$4 sm:$0xff]  }
 0xf6f   : > { %14179 = vmatprep.subr.bf16.mxu0 %v18839_v11  ;;  %v18932_v11 = vld [vmem:[#allocation15 + $0xe4] ss:$8 sps:$4 sm:$0xff]  }
 0xf72   : > { %14180 = vmatpush1.bf16.msra.mxu0 %v18837_v28  ;;  %v18930_v28 = vld [vmem:[#allocation15 + $0xe0] ss:$8 sps:$4 sm:$0xff]  }
 0xf73   : > { %14192 = vmatprep.subr.bf16.mxu0 %v18842_v55  ;;  %v18935_v55 = vld [vmem:[#allocation15 + $0xf4] ss:$8 sps:$4 sm:$0xff]  }
 0xf75   : > { %14182 = vmatmul.mubr.bf16.vlgmr.msra.gmra.mrb[196].mxu0 %v13279_v24  ;;  %v18860_v24 = vld [vmem:[#allocation12 + $0x364] ss:$8 sps:$4 sm:$0xff]  }
 0xf76   : > { %14193 = vmatpush1.bf16.msra.mxu0 %v18840_v34  ;;  %14224 = vmatprep.mubr.bf16.mxu0 %v13282_v22  ;;  %v18872_v22 = vld [vmem:[#allocation12 + $0x3a4] ss:$8 sps:$4 sm:$0xff]   ;;  %v18933_v34 = vld [vmem:[#allocation15 + $0xf0] ss:$8 sps:$4 sm:$0xff]  }
 0xf77   : > { %14194 = vmatprep.subr.bf16.mxu0 %v18845_v20  ;;  %v18936_v20 = vld [vmem:[%s23866_s4 + $0x40] sm:$0xff]  }
 0xf7a   : > { %14195 = vmatpush1.bf16.msra.mxu0 %v18843_v59  ;;  %v13411_v59 = vld [vmem:[#allocation13] sm:$0x3] }
 0xf7b   : > { %14196 = vmatprep.subr.bf16.mxu0 %v18848_v52  ;;  %v13416_v52 = vrot.slane %v13411_v59, %v23861_v16 }
 0xf7e   : > { %14197 = vmatpush1.bf16.msra.mxu0 %v18846_v12  ;;  %v13420_v12 = vrot.slane %v13411_v59, %v23862_v6 }
 0xf7f   : > { %14198 = vmatprep.subr.bf16.mxu0 %v18851_v5 }
 0xf82   : > { %14199 = vmatpush1.bf16.msra.mxu0 %v18849_v18  ;;  %v14240_v18 = vstv %s15928_s9 }
 0xf83   : > { %14200 = vmatprep.subr.bf16.mxu0 %v18854_v48 }
 0xf86   : > { %14201 = vmatpush1.bf16.msra.mxu0 %v18852_v53 }
 0xf87   : > { %14202 = vmatprep.subr.bf16.mxu0 %v18857_v13 }
 0xf8a   : > { %14203 = vmatpush1.bf16.msra.mxu0 %v18855_v31 }
 0xf8b   : > { %14204 = vmatprep.subr.bf16.mxu0 %v18860_v24 }
 0xf8e   : > { %14205 = vmatpush1.bf16.msra.mxu0 %v18858_v43 }
 0xf8f   : > { %14206 = vmatprep.subr.bf16.mxu0 %v18863_v54 }
 0xf92   : > { %14207 = vmatpush1.bf16.msra.mxu0 %v18861_v19 }
 0xf93   : > { %14208 = vmatprep.subr.bf16.mxu0 %v18866_v2 }
 0xf96   : > { %14209 = vmatpush1.bf16.msra.mxu0 %v18864_v56 }
 0xf97   : > { %14210 = vmatprep.subr.bf16.mxu0 %v18869_v44 }
 0xf9a   : > { %14211 = vmatpush1.bf16.msra.mxu0 %v18867_v45 }
 0xf9b   : > { %14212 = vmatprep.subr.bf16.mxu0 %v18872_v22 }
 0xf9e   : > { %14213 = vmatpush1.bf16.msra.mxu0 %v18870_v0 }
 0xf9f   : > { %14214 = vmatprep.subr.bf16.mxu0 %v18875_v29 }
 0xfa2   : > { %14215 = vmatpush1.bf16.msra.mxu0 %v18873_v25 }
 0xfa3   : > { %14216 = vmatprep.subr.bf16.mxu0 %v18878_v10 }
 0xfa6   : > { %14217 = vmatpush1.bf16.msra.mxu0 %v18876_v60  ;;  %v18937_v60 = vld [vmem:[%s23866_s4] sm:$0xff]  }
 0xfa7   : > { %14218 = vmatprep.subr.bf16.mxu0 %v18881_v41  ;;  %v18938_v41 = vld [vmem:[%s23866_s4 + $0x48] sm:$0xff]  }
 0xfaa   : > { %14219 = vmatpush1.bf16.msra.mxu0 %v18879_v33  ;;  %v18939_v33 = vld [vmem:[%s23866_s4 + $0x8] sm:$0xff]  }
 0xfab   : > { %14220 = vmatprep.subr.bf16.mxu0 %v18884_v27  ;;  %v18940_v27 = vld [vmem:[%s23866_s4 + $0x50] sm:$0xff]  }
 0xfae   : > { %14221 = vmatpush1.bf16.msra.mxu0 %v18882_v14  ;;  %v18941_v14 = vld [vmem:[%s23866_s4 + $0x10] sm:$0xff]  }
 0xfaf   : > { %14222 = vmatprep.subr.bf16.mxu0 %v18887_v15  ;;  %v18942_v15 = vld [vmem:[%s23866_s4 + $0x58] sm:$0xff]  }
 0xfb2   : > { %14223 = vmatpush1.bf16.msra.mxu0 %v18885_v38  ;;  %v18943_v38 = vld [vmem:[%s23866_s4 + $0x18] sm:$0xff]  }
 0xfb3   : > { %14455 = vmatprep.subr.bf16.mxu0 %v18890_v61  ;;  %v18944_v61 = vld [vmem:[%s23866_s4 + $0x60] sm:$0xff]  }
 0xfb5   : > { %14225 = vmatmul.mubr.bf16.vlgmr.msra.gmra.mrb[196].mxu0 %v13281_v57  ;;  %v18911_v57 = vld [vmem:[#allocation15 + $0x74] ss:$8 sps:$4 sm:$0xff]  }
 0xfb6   : > { %14456 = vmatpush1.bf16.msra.mxu0 %v18888_v36  ;;  %v18945_v36 = vld [vmem:[%s23866_s4 + $0x20] sm:$0xff]  }
 0xfb7   : > { %14457 = vmatprep.subr.bf16.mxu0 %v18893_v47  ;;  %v18946_v47 = vld [vmem:[%s23866_s4 + $0x68] sm:$0xff]  }
 0xfba   : > { %14458 = vmatpush1.bf16.msra.mxu0 %v18891_v17  ;;  %v18947_v17 = vld [vmem:[%s23866_s4 + $0x28] sm:$0xff]  }
 0xfbb   : > { %14459 = vmatprep.subr.bf16.mxu0 %v18896_v39  ;;  %v18948_v39 = vld [vmem:[%s23866_s4 + $0x70] sm:$0xff]  }
 0xfbe   : > { %14460 = vmatpush1.bf16.msra.mxu0 %v18894_v46  ;;  %v18949_v46 = vld [vmem:[%s23866_s4 + $0x30] sm:$0xff]  }
 0xfbf   : > { %14461 = vmatprep.subr.bf16.mxu0 %v18899_v37  ;;  %v18950_v37 = vld [vmem:[%s23866_s4 + $0x78] sm:$0xff]  }
 0xfc2   : > { %14462 = vmatpush1.bf16.msra.mxu0 %v18897_v35  ;;  %v18951_v35 = vld [vmem:[%s23866_s4 + $0x38] sm:$0xff]  }
 0xfc3   : > { %14463 = vmatprep.subr.bf16.mxu0 %v18902_v42  ;;  %v14283_v42 = vld [vmem:[#allocation16] sm:$0x3] }
 0xfc6   : > { %14464 = vmatpush1.bf16.msra.mxu0 %v18900_v3  ;;  %v14288_v3 = vrot.slane %v14283_v42, %v23861_v16 }
 0xfc7   : > { %14465 = vmatprep.subr.bf16.mxu0 %v18905_v8  ;;  %v14292_v8 = vrot.slane %v14283_v42, %v23862_v6 }
 0xfca   : > { %14466 = vmatpush1.bf16.msra.mxu0 %v18903_v40 }
 0xfcb   : > { %14467 = vmatprep.subr.bf16.mxu0 %v18908_v21  ;;  %v14503_v21 = vstv %s15961_s25 }
 0xfce   : > { %14468 = vmatpush1.bf16.msra.mxu0 %v18906_v32 }
 0xfcf   : > { %14469 = vmatprep.subr.bf16.mxu0 %v18911_v57 }
 0xfd2   : > { %14470 = vmatpush1.bf16.msra.mxu0 %v18909_v30 }
 0xfd3   : > { %14471 = vmatprep.subr.bf16.mxu0 %v18914_v49 }
 0xfd6   : > { %14472 = vmatpush1.bf16.msra.mxu0 %v18912_v26 }
 0xfd7   : > { %14473 = vmatprep.subr.bf16.mxu0 %v18917_v23 }
 0xfda   : > { %14474 = vmatpush1.bf16.msra.mxu0 %v18915_v1 }
 0xfdb   : > { %14475 = vmatprep.subr.bf16.mxu0 %v18920_v50 }
 0xfde   : > { %14476 = vmatpush1.bf16.msra.mxu0 %v18918_v7 }
 0xfdf   : > { %14477 = vmatprep.subr.bf16.mxu0 %v18923_v62 }
 0xfe2   : > { %14478 = vmatpush1.bf16.msra.mxu0 %v18921_v58 }
 0xfe3   : > { %14479 = vmatprep.subr.bf16.mxu0 %v18926_v63 }
 0xfe6   : > { %14480 = vmatpush1.bf16.msra.mxu0 %v18924_v4 }
 0xfe7   : > { %14481 = vmatprep.subr.bf16.mxu0 %v18929_v9 }
 0xfea   : > { %14482 = vmatpush1.bf16.msra.mxu0 %v18927_v51 }
 0xfeb   : > { %14483 = vmatprep.subr.bf16.mxu0 %v18932_v11 }
 0xfee   : > { %14484 = vmatpush1.bf16.msra.mxu0 %v18930_v28  ;;  %v15962_v28 = vld [vmem:[#allocation18] ss:$0 sm:$0xff] }
 0xfef   : > { %14485 = vmatprep.subr.bf16.mxu0 %v18935_v55 }
 0xff2   : > { %14486 = vmatpush1.bf16.msra.mxu0 %v18933_v34 }
 0xff3   : > { %15982 = vmatprep.subr.bf16.mxu0 %v18936_v20 }
0x1088   : > { %v14226_v5 = vpop.f32.mrb[196].mxu0 }
0x1089   : > { %v16012_v48 = vadd.f32 %v14226_v5, %v13416_v52  ;;  %v14228_v53 = vpop.f32.mrb[197].mxu0 }
0x108a   : > { %v16013_v13 = vadd.f32 %v14228_v53, %v13420_v12  ;;  %v14230_v31 = vpop.f32.mrb[198].mxu0 }
0x108b   : > { %v14241_v24 = vmul.f32 %v16012_v48, %v14240_v18  ;;  %v16014_v43 = vadd.f32 %v14230_v31, %v13416_v52  ;;  %v14232_v54 = vpop.f32.mrb[199].mxu0  ;;  %vm14236_vm9 = vcmp.ge.f32.partialorder %v16012_v48, 0.0 }
0x108c   : > { %v14242_v19 = vmul.f32 %v16013_v13, %v14240_v18  ;;  %v16015_v2 = vadd.f32 %v14232_v54, %v13420_v12  ;;  %vm14237_vm10 = vcmp.ge.f32.partialorder %v16013_v13, 0.0 }
0x108d   : > { %vm14238_vm11 = vcmp.ge.f32.partialorder %v16014_v43, 0.0  ;;  %v14243_v56 = vmul.f32 %v16014_v43, %v14240_v18  ;;  %v14245_v45 = vsel %vm14236_vm9, %v16012_v48, %v14241_v24 }
0x108e   : > { %vm14239_vm1 = vcmp.ge.f32.partialorder %v16015_v2, 0.0  ;;  %v14244_v44 = vmul.f32 %v16015_v2, %v14240_v18  ;;  %v14246_v29 = vsel %vm14237_vm10, %v16013_v13, %v14242_v19 }
0x108f   : > { %v14247_v22 = vsel %vm14238_vm11, %v16014_v43, %v14243_v56 }
0x1090   : > { %v14249_v0 = vpack.c.bf16 %v14247_v22, %v14245_v45  ;;  %v14248_v25 = vsel %vm14239_vm1, %v16015_v2, %v14244_v44 }
0x1091   : > { %v14250_v10 = vpack.c.bf16 %v14248_v25, %v14246_v29 }
0x1093   : > { %14487 = vmatprep.mubr.bf16.mxu0 %v14250_v10 }
0x1094   : > { %14488 = vmatmul.mubr.bf16.vlgmr.msra.gmra.mrb[200].mxu0 %v14249_v0 }
0x1095   : > { %15983 = vmatpush3.bf16.msra.mxu0 %v18937_v60 }
0x1096   : > { %15984 = vmatprep.subr.bf16.mxu0 %v18938_v41 }
0x1099   : > { %15985 = vmatpush3.bf16.msra.mxu0 %v18939_v33 }
0x109a   : > { %15986 = vmatprep.subr.bf16.mxu0 %v18940_v27 }
0x109d   : > { %15987 = vmatpush3.bf16.msra.mxu0 %v18941_v14 }
0x109e   : > { %15988 = vmatprep.subr.bf16.mxu0 %v18942_v15 }
0x10a1   : > { %15989 = vmatpush3.bf16.msra.mxu0 %v18943_v38 }
0x10a2   : > { %15990 = vmatprep.subr.bf16.mxu0 %v18944_v61 }
0x10a5   : > { %15991 = vmatpush3.bf16.msra.mxu0 %v18945_v36 }
0x10a6   : > { %15992 = vmatprep.subr.bf16.mxu0 %v18946_v47 }
0x10a9   : > { %15993 = vmatpush3.bf16.msra.mxu0 %v18947_v17 }
0x10aa   : > { %15994 = vmatprep.subr.bf16.mxu0 %v18948_v39 }
0x10ad   : > { %15995 = vmatpush3.bf16.msra.mxu0 %v18949_v46 }
0x10ae   : > { %15996 = vmatprep.subr.bf16.mxu0 %v18950_v37 }
0x10b1   : > { %15997 = vmatpush3.bf16.msra.mxu0 %v18951_v35 }
0x1167   : > { %v14489_v40 = vpop.f32.mrb[200].mxu0 }
0x1168   : > { %v14490_v32 = vadd.f32 %v14489_v40, %v14288_v3  ;;  %v14491_v57 = vpop.f32.mrb[201].mxu0 }
0x1169   : > { %v14492_v30 = vadd.f32 %v14491_v57, %v14292_v8  ;;  %v14493_v49 = vpop.f32.mrb[202].mxu0 }
0x116a   : > { %v14504_v26 = vmul.f32 %v14503_v21, %v14490_v32  ;;  %v14494_v23 = vadd.f32 %v14493_v49, %v14288_v3  ;;  %v14495_v1 = vpop.f32.mrb[203].mxu0  ;;  %vm14499_vm12 = vcmp.ge.f32.partialorder %v14490_v32, 0.0 }
0x116b   : > { %v14505_v50 = vmul.f32 %v14503_v21, %v14492_v30  ;;  %v14496_v7 = vadd.f32 %v14495_v1, %v14292_v8  ;;  %vm14500_vm13 = vcmp.ge.f32.partialorder %v14492_v30, 0.0 }
0x116c   : > { %vm14501_vm14 = vcmp.ge.f32.partialorder %v14494_v23, 0.0  ;;  %v14506_v62 = vmul.f32 %v14503_v21, %v14494_v23  ;;  %v14508_v58 = vsel %vm14499_vm12, %v14490_v32, %v14504_v26 }
0x116d   : > { %vm14502_vm15 = vcmp.ge.f32.partialorder %v14496_v7, 0.0  ;;  %v14507_v16 = vmul.f32 %v14503_v21, %v14496_v7  ;;  %v14509_v4 = vsel %vm14500_vm13, %v14492_v30, %v14505_v50 }
0x116e   : > { %v14510_v6 = vsel %vm14501_vm14, %v14494_v23, %v14506_v62 }
0x116f   : > { %v14512_v63 = vpack.c.bf16 %v14510_v6, %v14508_v58  ;;  %v14511_v9 = vsel %vm14502_vm15, %v14496_v7, %v14507_v16 }
0x1170   : > { %v14513_v51 = vpack.c.bf16 %v14511_v9, %v14509_v4 }
0x1172   : > { %14681 = vmatprep.mubr.bf16.mxu0 %v14513_v51 }
0x1173   : > { %14682 = vmatmul.mubr.bf16.vlgmr.msra.gmra.mrb[204].mxu0 %v14512_v63 }
0x1246   : > { %v15998_v11 = vpop.f32.mrb[204].mxu0 }
0x1247   : > { %v15999_v55 = vpop.f32.mrb[205].mxu0 }
0x1248   : > { %v16000_v34 = vadd.f32 %v15999_v55, %v15998_v11  ;;  %v16001_v20 = vpop.f32.mrb[206].mxu0 }
0x1249   : > { %v16002_v59 = vpop.f32.mrb[207].mxu0 }
0x124a   : > { %v14684_v52 = vadd.f32 %v16000_v34, %v15962_v28  ;;  %v16003_v12 = vadd.f32 %v16002_v59, %v16001_v20 }
0x124c   : > { %14691 = vst.msk [vmem:[%s802_s21] sm:$0xff] %vm14690_vm0, %v14684_v52  ;;  %v14687_v5 = vadd.f32 %v16003_v12, %v15962_v28 }
0x124e   : > { %14692 = vst.msk [vmem:[%s802_s21 + $0x8] sm:$0xff] %vm14690_vm0, %v14687_v5 }
0x124f PF: > { %s23869_s23 = sld [smem:[#allocation26_spill]]  ;;  %s23870_s30 = sld [smem:[#allocation27_spill]] }
0x1250   : > { %s23871_s21 = smov %s19260_s22 }
0x1255   : > { %p25_p2 = scmp.ge.s32.totalorder %s23869_s23, 4   ;;  %s23872_s22 = smov %s23870_s30 }
0x1257   :  { %27 = sbr.rel (!%p25_p2) target bundleno = 14 (0xe), region = 202 }
0x125e   :  { %14715 = vsyncpa [#allocation5], 1 }
0x125f   :  { %14717 = vsyncpa [#allocation5 + $0x1], 1 }
0x1260   :  { %14718 = vsyncpa [#allocation8], 1 }
0x1261   :  { %14719 = vsyncpa [#allocation11], 1 }
0x1262   :  { %14720 = vsyncpa [#allocation14], 1 }
0x1263   :  { %14721 = vsyncpa [#allocation17], 1 }
0x1264   :  { %14722 = vsyncpa [#allocation6], 1 }
0x1265   :  { %14724 = vsyncpa [#allocation6 + $0x1], 1 }

</bundles_post_ra>
